<compile_context>
chip_gen: v7x
topology: tpu7x:2x2x1
jax: 0.10.0
libtpu: 0.0.40
codegen_flags: <defaults>
</compile_context>

<pallas_src>
import jax
import jax.numpy as jnp
from jax.experimental import pallas as pl
from jax.experimental.pallas import tpu as pltpu

KH1, KW1 = 20, 8          # conv1 kernel
POOL_W = 3                # MaxPool2d(kernel_size=(1, 3))
KH2, KW2 = 10, 4          # conv2 kernel


# ----------------------------- Pallas kernels ------------------------------

def conv1_bn_relu_pool_kernel(p_ref, w_ref, s_ref, t_ref, o_ref):
    # (im2col patches) @ w1 -> per-channel scale/shift -> ReLU -> MaxPool(1,3).
    # p_ref rows for this batch element are ordered (pool_phase, h_out, w_pool),
    # so the pool is a max over the leading axis of a layout-preserving reshape.
    rows_out, cout = o_ref.shape
    pool = p_ref.shape[0] // rows_out
    acc = jnp.dot(p_ref[...], w_ref[...], preferred_element_type=jnp.float32)
    y = jnp.maximum(acc * s_ref[...] + t_ref[...], 0.0)
    o_ref[...] = jnp.max(y.reshape(pool, rows_out, cout), axis=0)


def conv2_bn_relu_kernel(x_ref, w_ref, s_ref, t_ref, o_ref):
    # conv2 with im2col fused: accumulate jnp.dot over the KH*KW shifted windows
    # of the VMEM-resident input block (no patch matrix in HBM).
    _, h_in, w_in, cin = x_ref.shape
    kh, kw, _, cout = w_ref.shape
    h_out, w_out = h_in - kh + 1, w_in - kw + 1
    m = h_out * w_out
    acc = jnp.zeros((m, cout), jnp.float32)
    for di in range(kh):
        for dj in range(kw):
            lhs = x_ref[:, di:di + h_out, dj:dj + w_out, :]
            lhs = lhs.reshape(m, cin).astype(jnp.bfloat16)
            acc = acc + jnp.dot(lhs, w_ref[di, dj],
                                preferred_element_type=jnp.float32)
    o_ref[...] = jnp.maximum(acc * s_ref[...] + t_ref[...], 0.0).astype(o_ref.dtype)


def mlp_kernel(x_ref, w1_ref, b1_ref, w2_ref, b2_ref, o_ref, acc_ref):
    # Linear(11776,32)+ReLU fused with Linear(32,128)+Sigmoid; K is a grid axis
    # (accumulator in scratch) so the large weight read pipelines with the MXU.
    @pl.when(pl.program_id(0) == 0)
    def _init():
        acc_ref[...] = jnp.zeros_like(acc_ref)

    acc_ref[...] += jnp.dot(x_ref[...], w1_ref[...],
                            preferred_element_type=jnp.float32)

    @pl.when(pl.program_id(0) == pl.num_programs(0) - 1)
    def _finish():
        h = jnp.maximum(acc_ref[...] + b1_ref[...], 0.0).astype(jnp.bfloat16)
        z = jnp.dot(h, w2_ref[...], preferred_element_type=jnp.float32) + b2_ref[...]
        o_ref[...] = pl.reciprocal(1.0 + jnp.exp(-z), approx=True)   # sigmoid


# --------------------------- pallas_call wrappers ---------------------------

def conv1_bn_relu_pool(p1, w1, s1, t1, batch):
    m_total, k = p1.shape
    cout = w1.shape[1]
    m_b = m_total // batch                 # rows per batch element (pool*H1*Wp)
    rows_out = m_b // POOL_W
    return pl.pallas_call(
        conv1_bn_relu_pool_kernel,
        grid=(batch,),
        out_shape=jax.ShapeDtypeStruct((batch * rows_out, cout), jnp.float32),
        in_specs=[
            pl.BlockSpec((m_b, k), lambda b: (b, 0)),
            pl.BlockSpec((k, cout), lambda b: (0, 0)),
            pl.BlockSpec((1, cout), lambda b: (0, 0)),
            pl.BlockSpec((1, cout), lambda b: (0, 0)),
        ],
        out_specs=pl.BlockSpec((rows_out, cout), lambda b: (b, 0)),
        compiler_params=pltpu.CompilerParams(dimension_semantics=("parallel",)),
    )(p1, w1, s1, t1)


def conv2_bn_relu(y1p, w2, s2, t2):
    batch, h_in, w_in, cin = y1p.shape
    kh, kw, _, cout = w2.shape
    m = (h_in - kh + 1) * (w_in - kw + 1)
    return pl.pallas_call(
        conv2_bn_relu_kernel,
        grid=(batch,),
        out_shape=jax.ShapeDtypeStruct((batch * m, cout), jnp.bfloat16),
        in_specs=[
            pl.BlockSpec((1, h_in, w_in, cin), lambda b: (b, 0, 0, 0)),
            pl.BlockSpec((kh, kw, cin, cout), lambda b: (0, 0, 0, 0)),
            pl.BlockSpec((1, cout), lambda b: (0, 0)),
            pl.BlockSpec((1, cout), lambda b: (0, 0)),
        ],
        out_specs=pl.BlockSpec((m, cout), lambda b: (b, 0)),
        compiler_params=pltpu.CompilerParams(dimension_semantics=("parallel",)),
    )(y1p, w2, s2, t2)


def mlp(flat, w1, b1, w2, b2):
    bsz, k = flat.shape
    h = w1.shape[1]
    o = w2.shape[1]
    k_chunks = 2 if k % (2 * 128) == 0 else 1      # pipeline the weight stream
    kc = k // k_chunks
    return pl.pallas_call(
        mlp_kernel,
        grid=(k_chunks,),
        out_shape=jax.ShapeDtypeStruct((bsz, o), jnp.float32),
        in_specs=[
            pl.BlockSpec((bsz, kc), lambda i: (0, i)),
            pl.BlockSpec((kc, h), lambda i: (i, 0)),
            pl.BlockSpec((1, h), lambda i: (0, 0)),
            pl.BlockSpec((h, o), lambda i: (0, 0)),
            pl.BlockSpec((1, o), lambda i: (0, 0)),
        ],
        out_specs=pl.BlockSpec((bsz, o), lambda i: (0, 0)),
        scratch_shapes=[pltpu.VMEM((bsz, h), jnp.float32)],
        compiler_params=pltpu.CompilerParams(dimension_semantics=("arbitrary",)),
    )(flat, w1, b1, w2, b2)


# ------------------------------- JAX glue -----------------------------------

def conv1_patches_pooled_order(x_nhwc, kh, kw, pool):
    # im2col for conv1 only (~0.7 MB bf16); rows ordered (b, pool_phase, h, w_pool)
    # so MaxPool(1, pool) is a free leading-axis reduction inside the kernel and
    # the pooled result comes out directly in (b, h, w, c) order for conv2.
    b, hgt, wid, c = x_nhwc.shape
    ho, wo = hgt - kh + 1, wid - kw + 1
    wp = wo // pool                       # torch MaxPool2d floor mode
    wo_used = wp * pool
    cols = [x_nhwc[:, di:di + ho, dj:dj + wo_used, :]
            for di in range(kh) for dj in range(kw)]
    p = jnp.stack(cols, axis=3)                        # (b, ho, wo, kh*kw, c)
    p = p.reshape(b, ho, wp, pool, kh * kw * c)        # w -> (wp, pool); merge taps+cin
    p = jnp.transpose(p, (0, 3, 1, 2, 4))              # (b, pool, ho, wp, K)
    return p.reshape(b * pool * ho * wp, kh * kw * c).astype(jnp.bfloat16)


def cnn_trad_fpool3_forward(x_nchw, prep):
    x = jnp.transpose(x_nchw, (0, 2, 3, 1)).astype(jnp.float32)    # NCHW -> NHWC
    batch, hgt, wid, _ = x.shape
    cout = prep["w1"].shape[1]
    h1, w1 = hgt - KH1 + 1, wid - KW1 + 1
    wp = w1 // POOL_W
    h2, w2 = h1 - KH2 + 1, wp - KW2 + 1

    # conv1 + BN + ReLU + MaxPool(1,3), fused, grid over batch
    p1 = conv1_patches_pooled_order(x, KH1, KW1, POOL_W)
    y1p = conv1_bn_relu_pool(p1, prep["w1"], prep["s1"], prep["t1"], batch)
    y1p = y1p.reshape(batch, h1, wp, cout)             # free (bitcast) reshape

    # conv2 + BN + ReLU with fused im2col, grid over batch
    y2 = conv2_bn_relu(y1p, prep["w2"], prep["s2"], prep["t2"])

    # Flatten is a free reshape: torch's NCHW flatten ordering was folded into
    # prep["lin_w"] at parameter-prep time.
    flat = y2.reshape(batch, h2 * w2 * cout)
    return mlp(flat, prep["lin_w"], prep["lin_b"], prep["dnn_w"], prep["dnn_b"])


# ------------------------- parameter prep / folding -------------------------

def prepare_params(params, eps=1e-5):
    # One-time (outside jit): fold eval-mode BatchNorm + conv bias into
    # per-channel scale/shift, cast matmul weights to bf16 in kernel layout, and
    # fold the NCHW-flatten permutation + transpose into the Linear weights.
    def bn_fold(bias, g, b, m, v):
        s = g / jnp.sqrt(v + eps)
        t = b + s * (bias - m)
        return s[None, :].astype(jnp.float32), t[None, :].astype(jnp.float32)

    s1, t1 = bn_fold(params["conv1_b"], params["bn1_g"], params["bn1_b"],
                     params["bn1_m"], params["bn1_v"])
    s2, t2 = bn_fold(params["conv2_b"], params["bn2_g"], params["bn2_b"],
                     params["bn2_m"], params["bn2_v"])

    cout = params["conv1_w"].shape[0]
    # conv1 weight (Cout,Cin,KH,KW) -> (KH*KW*Cin, Cout), matching im2col order
    w1 = jnp.transpose(params["conv1_w"], (2, 3, 1, 0)).reshape(-1, cout)
    # conv2 weight -> per-tap (KH, KW, Cin, Cout)
    w2 = jnp.transpose(params["conv2_w"], (2, 3, 1, 0))

    # Linear(11776,32): torch flattens NCHW (k = c*HW + hw); the kernels produce
    # NHWC (k' = hw*C + c).  Permute the weight rows once here.
    lw = params["lin_w"]                               # (32, K)
    k_in = lw.shape[1]
    hw = k_in // cout
    lw_p = jnp.transpose(lw.T.reshape(cout, hw, lw.shape[0]), (1, 0, 2))
    lw_p = lw_p.reshape(k_in, lw.shape[0])

    return {
        "w1": w1.astype(jnp.bfloat16), "s1": s1, "t1": t1,
        "w2": w2.astype(jnp.bfloat16), "s2": s2, "t2": t2,
        "lin_w": lw_p.astype(jnp.bfloat16),
        "lin_b": params["lin_b"][None, :].astype(jnp.float32),
        "dnn_w": params["dnn_w"].T.astype(jnp.bfloat16),
        "dnn_b": params["dnn_b"][None, :].astype(jnp.float32),
    }


def init_params(key, in_channels=1, hid=64):
    ks = jax.random.split(key, 12)

    def u(k, shape, scale=0.05):
        return jax.random.uniform(k, shape, jnp.float32, -1.0, 1.0) * scale

    # BatchNorm is implemented in inference mode (running stats); torch default
    # stats are mean=0, var=1.
    return {
        "conv1_w": u(ks[0], (hid, in_channels, KH1, KW1)),
        "conv1_b": u(ks[1], (hid,)),
        "bn1_g": 1.0 + u(ks[2], (hid,)),
        "bn1_b": u(ks[3], (hid,)),
        "bn1_m": jnp.zeros((hid,), jnp.float32),
        "bn1_v": jnp.ones((hid,), jnp.float32),
        "conv2_w": u(ks[4], (hid, hid, KH2, KW2)),
        "conv2_b": u(ks[5], (hid,)),
        "bn2_g": 1.0 + u(ks[6], (hid,)),
        "bn2_b": u(ks[7], (hid,)),
        "bn2_m": jnp.zeros((hid,), jnp.float32),
        "bn2_v": jnp.ones((hid,), jnp.float32),
        "lin_w": u(ks[8], (32, 11776), 0.01),
        "lin_b": u(ks[9], (32,)),
        "dnn_w": u(ks[10], (128, 32)),
        "dnn_b": u(ks[11], (128,)),
    }


if __name__ == "__main__":
    key = jax.random.PRNGKey(0)
    pkey, xkey = jax.random.split(key)
    raw_params = init_params(pkey, in_channels=1, hid=64)
    prep = prepare_params(raw_params)    # one-time folding, outside the jit

    # Smallest input consistent with the hard-coded Linear(11776, 32):
    # (batch=2, channels=1, height=51 frames, width=40 features).
    x = jax.random.normal(xkey, (2, 1, 51, 40), jnp.float32)

    fwd = jax.jit(cnn_trad_fpool3_forward)
    out = jax.block_until_ready(fwd(x, prep))
    assert out.shape == (2, 128), out.shape
    assert bool(jnp.all(jnp.isfinite(out)))
    print("KERNEL_OK")
</pallas_src>

<mosaic_0001>
module attributes {stable_mosaic.version = 11 : i64} {
  func.func @conv1_bn_relu_pool_kernel(%arg0: i32, %arg1: memref<1056x160xbf16, #tpu.memory_space<vmem>>, %arg2: memref<160x64xbf16, #tpu.memory_space<vmem>>, %arg3: memref<1x64xf32, #tpu.memory_space<vmem>>, %arg4: memref<1x64xf32, #tpu.memory_space<vmem>>, %arg5: memref<352x64xf32, #tpu.memory_space<vmem>>) attributes {dimension_semantics = [#tpu.dimension_semantics<parallel>], iteration_bounds = array<i64: 2>, scalar_prefetch = 0 : i64, scratch_operands = 0 : i64, tpu.core_type = #tpu.core_type<tc>, window_params = [{transform_indices = @transform_0, window_bounds = array<i64: 1056, 160>}, {pipeline_mode = #tpu.pipeline_mode<synchronous>, transform_indices = @transform_1, window_bounds = array<i64: 160, 64>}, {pipeline_mode = #tpu.pipeline_mode<synchronous>, transform_indices = @transform_2, window_bounds = array<i64: 1, 64>}, {pipeline_mode = #tpu.pipeline_mode<synchronous>, transform_indices = @transform_3, window_bounds = array<i64: 1, 64>}, {transform_indices = @transform_4, window_bounds = array<i64: 352, 64>}]} {
    %c0 = arith.constant 0 : index
    %c0_0 = arith.constant 0 : index
    %0 = vector.load %arg1[%c0, %c0_0] : memref<1056x160xbf16, #tpu.memory_space<vmem>>, vector<1056x160xbf16>
    %c0_1 = arith.constant 0 : index
    %c0_2 = arith.constant 0 : index
    %1 = vector.load %arg2[%c0_1, %c0_2] : memref<160x64xbf16, #tpu.memory_space<vmem>>, vector<160x64xbf16>
    %cst = arith.constant dense<0.000000e+00> : vector<1056x64xf32>
    %2 = tpu.matmul %0, %1, %cst {dimension_numbers = #tpu.dot_dimension_numbers<[1], [0], [0], [1], [0, 0, 1, 1], [], []>} : vector<1056x160xbf16>, vector<160x64xbf16>, vector<1056x64xf32> -> vector<1056x64xf32>
    %c0_3 = arith.constant 0 : index
    %c0_4 = arith.constant 0 : index
    %3 = vector.load %arg3[%c0_3, %c0_4] : memref<1x64xf32, #tpu.memory_space<vmem>>, vector<1x64xf32>
    %4 = vector.broadcast %3 : vector<1x64xf32> to vector<1056x64xf32>
    %5 = arith.mulf %2, %4 : vector<1056x64xf32>
    %c0_5 = arith.constant 0 : index
    %c0_6 = arith.constant 0 : index
    %6 = vector.load %arg4[%c0_5, %c0_6] : memref<1x64xf32, #tpu.memory_space<vmem>>, vector<1x64xf32>
    %7 = vector.broadcast %6 : vector<1x64xf32> to vector<1056x64xf32>
    %8 = arith.addf %5, %7 : vector<1056x64xf32>
    %cst_7 = arith.constant 0.000000e+00 : f32
    %9 = vector.broadcast %cst_7 : f32 to vector<1056x64xf32>
    %10 = arith.maximumf %8, %9 : vector<1056x64xf32>
    %11 = vector.shape_cast %10 : vector<1056x64xf32> to vector<3x352x64xf32>
    %cst_8 = arith.constant dense<0xFF800000> : vector<352x64xf32>
    %12 = vector.multi_reduction <maximumf>, %11, %cst_8 [0] : vector<3x352x64xf32> to vector<352x64xf32>
    %c0_9 = arith.constant 0 : index
    %c0_10 = arith.constant 0 : index
    %13 = vector.load %arg5[%c0_9, %c0_10] : memref<352x64xf32, #tpu.memory_space<vmem>>, vector<352x64xf32>
    tpu.vector_store %arg5[%c0_9, %c0_10], %12 {strides = array<i32>} : memref<352x64xf32, #tpu.memory_space<vmem>>, vector<352x64xf32>,
    return
  }
  func.func @transform_0(%arg0: i32) -> (i32, i32) {
    %c0_i32 = arith.constant 0 : i32
    %c0_i32_0 = arith.constant 0 : i32
    return %arg0, %c0_i32 : i32, i32
  }
  func.func @transform_1(%arg0: i32) -> (i32, i32) {
    %c0_i32 = arith.constant 0 : i32
    %c0_i32_0 = arith.constant 0 : i32
    %c0_i32_1 = arith.constant 0 : i32
    return %c0_i32, %c0_i32_0 : i32, i32
  }
  func.func @transform_2(%arg0: i32) -> (i32, i32) {
    %c0_i32 = arith.constant 0 : i32
    %c0_i32_0 = arith.constant 0 : i32
    %c0_i32_1 = arith.constant 0 : i32
    return %c0_i32, %c0_i32_0 : i32, i32
  }
  func.func @transform_3(%arg0: i32) -> (i32, i32) {
    %c0_i32 = arith.constant 0 : i32
    %c0_i32_0 = arith.constant 0 : i32
    %c0_i32_1 = arith.constant 0 : i32
    return %c0_i32, %c0_i32_0 : i32, i32
  }
  func.func @transform_4(%arg0: i32) -> (i32, i32) {
    %c0_i32 = arith.constant 0 : i32
    %c0_i32_0 = arith.constant 0 : i32
    return %arg0, %c0_i32 : i32, i32
  }
}

module attributes {stable_mosaic.version = 11 : i64} {
  func.func @conv2_bn_relu_kernel(%arg0: i32, %arg1: memref<1x32x11x64xf32, #tpu.memory_space<vmem>>, %arg2: memref<10x4x64x64xbf16, #tpu.memory_space<vmem>>, %arg3: memref<1x64xf32, #tpu.memory_space<vmem>>, %arg4: memref<1x64xf32, #tpu.memory_space<vmem>>, %arg5: memref<184x64xbf16, #tpu.memory_space<vmem>>) attributes {dimension_semantics = [#tpu.dimension_semantics<parallel>], iteration_bounds = array<i64: 2>, scalar_prefetch = 0 : i64, scratch_operands = 0 : i64, tpu.core_type = #tpu.core_type<tc>, window_params = [{transform_indices = @transform_0, window_bounds = array<i64: 1, 32, 11, 64>}, {pipeline_mode = #tpu.pipeline_mode<synchronous>, transform_indices = @transform_1, window_bounds = array<i64: 10, 4, 64, 64>}, {pipeline_mode = #tpu.pipeline_mode<synchronous>, transform_indices = @transform_2, window_bounds = array<i64: 1, 64>}, {pipeline_mode = #tpu.pipeline_mode<synchronous>, transform_indices = @transform_3, window_bounds = array<i64: 1, 64>}, {transform_indices = @transform_4, window_bounds = array<i64: 184, 64>}]} {
    %cst = arith.constant 0.000000e+00 : f32
    %0 = vector.broadcast %cst : f32 to vector<184x64xf32>
    %c0 = arith.constant 0 : index
    %c0_0 = arith.constant 0 : index
    %c0_1 = arith.constant 0 : index
    %c0_2 = arith.constant 0 : index
    %1 = vector.load %arg1[%c0, %c0_0, %c0_1, %c0_2] : memref<1x32x11x64xf32, #tpu.memory_space<vmem>>, vector<1x23x8x64xf32>
    %2 = vector.shape_cast %1 : vector<1x23x8x64xf32> to vector<184x64xf32>
    %3 = arith.truncf %2 : vector<184x64xf32> to vector<184x64xbf16>
    %c0_3 = arith.constant 0 : index
    %c0_4 = arith.constant 0 : index
    %c0_5 = arith.constant 0 : index
    %c0_6 = arith.constant 0 : index
    %4 = vector.load %arg2[%c0_3, %c0_4, %c0_5, %c0_6] : memref<10x4x64x64xbf16, #tpu.memory_space<vmem>>, vector<1x1x64x64xbf16>
    %5 = vector.shape_cast %4 : vector<1x1x64x64xbf16> to vector<64x64xbf16>
    %cst_7 = arith.constant dense<0.000000e+00> : vector<184x64xf32>
    %6 = tpu.matmul %3, %5, %cst_7 {dimension_numbers = #tpu.dot_dimension_numbers<[1], [0], [0], [1], [0, 0, 1, 1], [], []>} : vector<184x64xbf16>, vector<64x64xbf16>, vector<184x64xf32> -> vector<184x64xf32>
    %7 = arith.addf %0, %6 : vector<184x64xf32>
    %c0_8 = arith.constant 0 : index
    %c0_9 = arith.constant 0 : index
    %c1 = arith.constant 1 : index
    %c0_10 = arith.constant 0 : index
    %8 = vector.load %arg1[%c0_8, %c0_9, %c1, %c0_10] : memref<1x32x11x64xf32, #tpu.memory_space<vmem>>, vector<1x23x8x64xf32>
    %9 = vector.shape_cast %8 : vector<1x23x8x64xf32> to vector<184x64xf32>
    %10 = arith.truncf %9 : vector<184x64xf32> to vector<184x64xbf16>
    %c0_11 = arith.constant 0 : index
    %c1_12 = arith.constant 1 : index
    %c0_13 = arith.constant 0 : index
    %c0_14 = arith.constant 0 : index
    %11 = vector.load %arg2[%c0_11, %c1_12, %c0_13, %c0_14] : memref<10x4x64x64xbf16, #tpu.memory_space<vmem>>, vector<1x1x64x64xbf16>
    %12 = vector.shape_cast %11 : vector<1x1x64x64xbf16> to vector<64x64xbf16>
    %cst_15 = arith.constant dense<0.000000e+00> : vector<184x64xf32>
    %13 = tpu.matmul %10, %12, %cst_15 {dimension_numbers = #tpu.dot_dimension_numbers<[1], [0], [0], [1], [0, 0, 1, 1], [], []>} : vector<184x64xbf16>, vector<64x64xbf16>, vector<184x64xf32> -> vector<184x64xf32>
    %14 = arith.addf %7, %13 : vector<184x64xf32>
    %c0_16 = arith.constant 0 : index
    %c0_17 = arith.constant 0 : index
    %c2 = arith.constant 2 : index
    %c0_18 = arith.constant 0 : index
    %15 = vector.load %arg1[%c0_16, %c0_17, %c2, %c0_18] : memref<1x32x11x64xf32, #tpu.memory_space<vmem>>, vector<1x23x8x64xf32>
    %16 = vector.shape_cast %15 : vector<1x23x8x64xf32> to vector<184x64xf32>
    %17 = arith.truncf %16 : vector<184x64xf32> to vector<184x64xbf16>
    %c0_19 = arith.constant 0 : index
    %c2_20 = arith.constant 2 : index
    %c0_21 = arith.constant 0 : index
    %c0_22 = arith.constant 0 : index
    %18 = vector.load %arg2[%c0_19, %c2_20, %c0_21, %c0_22] : memref<10x4x64x64xbf16, #tpu.memory_space<vmem>>, vector<1x1x64x64xbf16>
    %19 = vector.shape_cast %18 : vector<1x1x64x64xbf16> to vector<64x64xbf16>
    %cst_23 = arith.constant dense<0.000000e+00> : vector<184x64xf32>
    %20 = tpu.matmul %17, %19, %cst_23 {dimension_numbers = #tpu.dot_dimension_numbers<[1], [0], [0], [1], [0, 0, 1, 1], [], []>} : vector<184x64xbf16>, vector<64x64xbf16>, vector<184x64xf32> -> vector<184x64xf32>
    %21 = arith.addf %14, %20 : vector<184x64xf32>
    %c0_24 = arith.constant 0 : index
    %c0_25 = arith.constant 0 : index
    %c3 = arith.constant 3 : index
    %c0_26 = arith.constant 0 : index
    %22 = vector.load %arg1[%c0_24, %c0_25, %c3, %c0_26] : memref<1x32x11x64xf32, #tpu.memory_space<vmem>>, vector<1x23x8x64xf32>
    %23 = vector.shape_cast %22 : vector<1x23x8x64xf32> to vector<184x64xf32>
    %24 = arith.truncf %23 : vector<184x64xf32> to vector<184x64xbf16>
    %c0_27 = arith.constant 0 : index
    %c3_28 = arith.constant 3 : index
    %c0_29 = arith.constant 0 : index
    %c0_30 = arith.constant 0 : index
    %25 = vector.load %arg2[%c0_27, %c3_28, %c0_29, %c0_30] : memref<10x4x64x64xbf16, #tpu.memory_space<vmem>>, vector<1x1x64x64xbf16>
    %26 = vector.shape_cast %25 : vector<1x1x64x64xbf16> to vector<64x64xbf16>
    %cst_31 = arith.constant dense<0.000000e+00> : vector<184x64xf32>
    %27 = tpu.matmul %24, %26, %cst_31 {dimension_numbers = #tpu.dot_dimension_numbers<[1], [0], [0], [1], [0, 0, 1, 1], [], []>} : vector<184x64xbf16>, vector<64x64xbf16>, vector<184x64xf32> -> vector<184x64xf32>
    %28 = arith.addf %21, %27 : vector<184x64xf32>
    %c0_32 = arith.constant 0 : index
    %c1_33 = arith.constant 1 : index
    %c0_34 = arith.constant 0 : index
    %c0_35 = arith.constant 0 : index
    %29 = vector.load %arg1[%c0_32, %c1_33, %c0_34, %c0_35] : memref<1x32x11x64xf32, #tpu.memory_space<vmem>>, vector<1x23x8x64xf32>
    %30 = vector.shape_cast %29 : vector<1x23x8x64xf32> to vector<184x64xf32>
    %31 = arith.truncf %30 : vector<184x64xf32> to vector<184x64xbf16>
    %c1_36 = arith.constant 1 : index
    %c0_37 = arith.constant 0 : index
    %c0_38 = arith.constant 0 : index
    %c0_39 = arith.constant 0 : index
    %32 = vector.load %arg2[%c1_36, %c0_37, %c0_38, %c0_39] : memref<10x4x64x64xbf16, #tpu.memory_space<vmem>>, vector<1x1x64x64xbf16>
    %33 = vector.shape_cast %32 : vector<1x1x64x64xbf16> to vector<64x64xbf16>
    %cst_40 = arith.constant dense<0.000000e+00> : vector<184x64xf32>
    %34 = tpu.matmul %31, %33, %cst_40 {dimension_numbers = #tpu.dot_dimension_numbers<[1], [0], [0], [1], [0, 0, 1, 1], [], []>} : vector<184x64xbf16>, vector<64x64xbf16>, vector<184x64xf32> -> vector<184x64xf32>
    %35 = arith.addf %28, %34 : vector<184x64xf32>
    %c0_41 = arith.constant 0 : index
    %c1_42 = arith.constant 1 : index
    %c1_43 = arith.constant 1 : index
    %c0_44 = arith.constant 0 : index
    %36 = vector.load %arg1[%c0_41, %c1_42, %c1_43, %c0_44] : memref<1x32x11x64xf32, #tpu.memory_space<vmem>>, vector<1x23x8x64xf32>
    %37 = vector.shape_cast %36 : vector<1x23x8x64xf32> to vector<184x64xf32>
    %38 = arith.truncf %37 : vector<184x64xf32> to vector<184x64xbf16>
    %c1_45 = arith.constant 1 : index
    %c1_46 = arith.constant 1 : index
    %c0_47 = arith.constant 0 : index
    %c0_48 = arith.constant 0 : index
    %39 = vector.load %arg2[%c1_45, %c1_46, %c0_47, %c0_48] : memref<10x4x64x64xbf16, #tpu.memory_space<vmem>>, vector<1x1x64x64xbf16>
    %40 = vector.shape_cast %39 : vector<1x1x64x64xbf16> to vector<64x64xbf16>
    %cst_49 = arith.constant dense<0.000000e+00> : vector<184x64xf32>
    %41 = tpu.matmul %38, %40, %cst_49 {dimension_numbers = #tpu.dot_dimension_numbers<[1], [0], [0], [1], [0, 0, 1, 1], [], []>} : vector<184x64xbf16>, vector<64x64xbf16>, vector<184x64xf32> -> vector<184x64xf32>
    %42 = arith.addf %35, %41 : vector<184x64xf32>
    %c0_50 = arith.constant 0 : index
    %c1_51 = arith.constant 1 : index
    %c2_52 = arith.constant 2 : index
    %c0_53 = arith.constant 0 : index
    %43 = vector.load %arg1[%c0_50, %c1_51, %c2_52, %c0_53] : memref<1x32x11x64xf32, #tpu.memory_space<vmem>>, vector<1x23x8x64xf32>
    %44 = vector.shape_cast %43 : vector<1x23x8x64xf32> to vector<184x64xf32>
    %45 = arith.truncf %44 : vector<184x64xf32> to vector<184x64xbf16>
    %c1_54 = arith.constant 1 : index
    %c2_55 = arith.constant 2 : index
    %c0_56 = arith.constant 0 : index
    %c0_57 = arith.constant 0 : index
    %46 = vector.load %arg2[%c1_54, %c2_55, %c0_56, %c0_57] : memref<10x4x64x64xbf16, #tpu.memory_space<vmem>>, vector<1x1x64x64xbf16>
    %47 = vector.shape_cast %46 : vector<1x1x64x64xbf16> to vector<64x64xbf16>
    %cst_58 = arith.constant dense<0.000000e+00> : vector<184x64xf32>
    %48 = tpu.matmul %45, %47, %cst_58 {dimension_numbers = #tpu.dot_dimension_numbers<[1], [0], [0], [1], [0, 0, 1, 1], [], []>} : vector<184x64xbf16>, vector<64x64xbf16>, vector<184x64xf32> -> vector<184x64xf32>
    %49 = arith.addf %42, %48 : vector<184x64xf32>
    %c0_59 = arith.constant 0 : index
    %c1_60 = arith.constant 1 : index
    %c3_61 = arith.constant 3 : index
    %c0_62 = arith.constant 0 : index
    %50 = vector.load %arg1[%c0_59, %c1_60, %c3_61, %c0_62] : memref<1x32x11x64xf32, #tpu.memory_space<vmem>>, vector<1x23x8x64xf32>
    %51 = vector.shape_cast %50 : vector<1x23x8x64xf32> to vector<184x64xf32>
    %52 = arith.truncf %51 : vector<184x64xf32> to vector<184x64xbf16>
    %c1_63 = arith.constant 1 : index
    %c3_64 = arith.constant 3 : index
    %c0_65 = arith.constant 0 : index
    %c0_66 = arith.constant 0 : index
    %53 = vector.load %arg2[%c1_63, %c3_64, %c0_65, %c0_66] : memref<10x4x64x64xbf16, #tpu.memory_space<vmem>>, vector<1x1x64x64xbf16>
    %54 = vector.shape_cast %53 : vector<1x1x64x64xbf16> to vector<64x64xbf16>
    %cst_67 = arith.constant dense<0.000000e+00> : vector<184x64xf32>
    %55 = tpu.matmul %52, %54, %cst_67 {dimension_numbers = #tpu.dot_dimension_numbers<[1], [0], [0], [1], [0, 0, 1, 1], [], []>} : vector<184x64xbf16>, vector<64x64xbf16>, vector<184x64xf32> -> vector<184x64xf32>
    %56 = arith.addf %49, %55 : vector<184x64xf32>
    %c0_68 = arith.constant 0 : index
    %c2_69 = arith.constant 2 : index
    %c0_70 = arith.constant 0 : index
    %c0_71 = arith.constant 0 : index
    %57 = vector.load %arg1[%c0_68, %c2_69, %c0_70, %c0_71] : memref<1x32x11x64xf32, #tpu.memory_space<vmem>>, vector<1x23x8x64xf32>
    %58 = vector.shape_cast %57 : vector<1x23x8x64xf32> to vector<184x64xf32>
    %59 = arith.truncf %58 : vector<184x64xf32> to vector<184x64xbf16>
    %c2_72 = arith.constant 2 : index
    %c0_73 = arith.constant 0 : index
    %c0_74 = arith.constant 0 : index
    %c0_75 = arith.constant 0 : index
    %60 = vector.load %arg2[%c2_72, %c0_73, %c0_74, %c0_75] : memref<10x4x64x64xbf16, #tpu.memory_space<vmem>>, vector<1x1x64x64xbf16>
    %61 = vector.shape_cast %60 : vector<1x1x64x64xbf16> to vector<64x64xbf16>
    %cst_76 = arith.constant dense<0.000000e+00> : vector<184x64xf32>
    %62 = tpu.matmul %59, %61, %cst_76 {dimension_numbers = #tpu.dot_dimension_numbers<[1], [0], [0], [1], [0, 0, 1, 1], [], []>} : vector<184x64xbf16>, vector<64x64xbf16>, vector<184x64xf32> -> vector<184x64xf32>
    %63 = arith.addf %56, %62 : vector<184x64xf32>
    %c0_77 = arith.constant 0 : index
    %c2_78 = arith.constant 2 : index
    %c1_79 = arith.constant 1 : index
    %c0_80 = arith.constant 0 : index
    %64 = vector.load %arg1[%c0_77, %c2_78, %c1_79, %c0_80] : memref<1x32x11x64xf32, #tpu.memory_space<vmem>>, vector<1x23x8x64xf32>
    %65 = vector.shape_cast %64 : vector<1x23x8x64xf32> to vector<184x64xf32>
    %66 = arith.truncf %65 : vector<184x64xf32> to vector<184x64xbf16>
    %c2_81 = arith.constant 2 : index
    %c1_82 = arith.constant 1 : index
    %c0_83 = arith.constant 0 : index
    %c0_84 = arith.constant 0 : index
    %67 = vector.load %arg2[%c2_81, %c1_82, %c0_83, %c0_84] : memref<10x4x64x64xbf16, #tpu.memory_space<vmem>>, vector<1x1x64x64xbf16>
    %68 = vector.shape_cast %67 : vector<1x1x64x64xbf16> to vector<64x64xbf16>
    %cst_85 = arith.constant dense<0.000000e+00> : vector<184x64xf32>
    %69 = tpu.matmul %66, %68, %cst_85 {dimension_numbers = #tpu.dot_dimension_numbers<[1], [0], [0], [1], [0, 0, 1, 1], [], []>} : vector<184x64xbf16>, vector<64x64xbf16>, vector<184x64xf32> -> vector<184x64xf32>
    %70 = arith.addf %63, %69 : vector<184x64xf32>
    %c0_86 = arith.constant 0 : index
    %c2_87 = arith.constant 2 : index
    %c2_88 = arith.constant 2 : index
    %c0_89 = arith.constant 0 : index
    %71 = vector.load %arg1[%c0_86, %c2_87, %c2_88, %c0_89] : memref<1x32x11x64xf32, #tpu.memory_space<vmem>>, vector<1x23x8x64xf32>
    %72 = vector.shape_cast %71 : vector<1x23x8x64xf32> to vector<184x64xf32>
    %73 = arith.truncf %72 : vector<184x64xf32> to vector<184x64xbf16>
    %c2_90 = arith.constant 2 : index
    %c2_91 = arith.constant 2 : index
    %c0_92 = arith.constant 0 : index
    %c0_93 = arith.constant 0 : index
    %74 = vector.load %arg2[%c2_90, %c2_91, %c0_92, %c0_93] : memref<10x4x64x64xbf16, #tpu.memory_space<vmem>>, vector<1x1x64x64xbf16>
    %75 = vector.shape_cast %74 : vector<1x1x64x64xbf16> to vector<64x64xbf16>
    %cst_94 = arith.constant dense<0.000000e+00> : vector<184x64xf32>
    %76 = tpu.matmul %73, %75, %cst_94 {dimension_numbers = #tpu.dot_dimension_numbers<[1], [0], [0], [1], [0, 0, 1, 1], [], []>} : vector<184x64xbf16>, vector<64x64xbf16>, vector<184x64xf32> -> vector<184x64xf32>
    %77 = arith.addf %70, %76 : vector<184x64xf32>
    %c0_95 = arith.constant 0 : index
    %c2_96 = arith.constant 2 : index
    %c3_97 = arith.constant 3 : index
    %c0_98 = arith.constant 0 : index
    %78 = vector.load %arg1[%c0_95, %c2_96, %c3_97, %c0_98] : memref<1x32x11x64xf32, #tpu.memory_space<vmem>>, vector<1x23x8x64xf32>
    %79 = vector.shape_cast %78 : vector<1x23x8x64xf32> to vector<184x64xf32>
    %80 = arith.truncf %79 : vector<184x64xf32> to vector<184x64xbf16>
    %c2_99 = arith.constant 2 : index
    %c3_100 = arith.constant 3 : index
    %c0_101 = arith.constant 0 : index
    %c0_102 = arith.constant 0 : index
    %81 = vector.load %arg2[%c2_99, %c3_100, %c0_101, %c0_102] : memref<10x4x64x64xbf16, #tpu.memory_space<vmem>>, vector<1x1x64x64xbf16>
    %82 = vector.shape_cast %81 : vector<1x1x64x64xbf16> to vector<64x64xbf16>
    %cst_103 = arith.constant dense<0.000000e+00> : vector<184x64xf32>
    %83 = tpu.matmul %80, %82, %cst_103 {dimension_numbers = #tpu.dot_dimension_numbers<[1], [0], [0], [1], [0, 0, 1, 1], [], []>} : vector<184x64xbf16>, vector<64x64xbf16>, vector<184x64xf32> -> vector<184x64xf32>
    %84 = arith.addf %77, %83 : vector<184x64xf32>
    %c0_104 = arith.constant 0 : index
    %c3_105 = arith.constant 3 : index
    %c0_106 = arith.constant 0 : index
    %c0_107 = arith.constant 0 : index
    %85 = vector.load %arg1[%c0_104, %c3_105, %c0_106, %c0_107] : memref<1x32x11x64xf32, #tpu.memory_space<vmem>>, vector<1x23x8x64xf32>
    %86 = vector.shape_cast %85 : vector<1x23x8x64xf32> to vector<184x64xf32>
    %87 = arith.truncf %86 : vector<184x64xf32> to vector<184x64xbf16>
    %c3_108 = arith.constant 3 : index
    %c0_109 = arith.constant 0 : index
    %c0_110 = arith.constant 0 : index
    %c0_111 = arith.constant 0 : index
    %88 = vector.load %arg2[%c3_108, %c0_109, %c0_110, %c0_111] : memref<10x4x64x64xbf16, #tpu.memory_space<vmem>>, vector<1x1x64x64xbf16>
    %89 = vector.shape_cast %88 : vector<1x1x64x64xbf16> to vector<64x64xbf16>
    %cst_112 = arith.constant dense<0.000000e+00> : vector<184x64xf32>
    %90 = tpu.matmul %87, %89, %cst_112 {dimension_numbers = #tpu.dot_dimension_numbers<[1], [0], [0], [1], [0, 0, 1, 1], [], []>} : vector<184x64xbf16>, vector<64x64xbf16>, vector<184x64xf32> -> vector<184x64xf32>
    %91 = arith.addf %84, %90 : vector<184x64xf32>
    %c0_113 = arith.constant 0 : index
    %c3_114 = arith.constant 3 : index
    %c1_115 = arith.constant 1 : index
    %c0_116 = arith.constant 0 : index
    %92 = vector.load %arg1[%c0_113, %c3_114, %c1_115, %c0_116] : memref<1x32x11x64xf32, #tpu.memory_space<vmem>>, vector<1x23x8x64xf32>
    %93 = vector.shape_cast %92 : vector<1x23x8x64xf32> to vector<184x64xf32>
    %94 = arith.truncf %93 : vector<184x64xf32> to vector<184x64xbf16>
    %c3_117 = arith.constant 3 : index
    %c1_118 = arith.constant 1 : index
    %c0_119 = arith.constant 0 : index
    %c0_120 = arith.constant 0 : index
    %95 = vector.load %arg2[%c3_117, %c1_118, %c0_119, %c0_120] : memref<10x4x64x64xbf16, #tpu.memory_space<vmem>>, vector<1x1x64x64xbf16>
    %96 = vector.shape_cast %95 : vector<1x1x64x64xbf16> to vector<64x64xbf16>
    %cst_121 = arith.constant dense<0.000000e+00> : vector<184x64xf32>
    %97 = tpu.matmul %94, %96, %cst_121 {dimension_numbers = #tpu.dot_dimension_numbers<[1], [0], [0], [1], [0, 0, 1, 1], [], []>} : vector<184x64xbf16>, vector<64x64xbf16>, vector<184x64xf32> -> vector<184x64xf32>
    %98 = arith.addf %91, %97 : vector<184x64xf32>
    %c0_122 = arith.constant 0 : index
    %c3_123 = arith.constant 3 : index
    %c2_124 = arith.constant 2 : index
    %c0_125 = arith.constant 0 : index
    %99 = vector.load %arg1[%c0_122, %c3_123, %c2_124, %c0_125] : memref<1x32x11x64xf32, #tpu.memory_space<vmem>>, vector<1x23x8x64xf32>
    %100 = vector.shape_cast %99 : vector<1x23x8x64xf32> to vector<184x64xf32>
    %101 = arith.truncf %100 : vector<184x64xf32> to vector<184x64xbf16>
    %c3_126 = arith.constant 3 : index
    %c2_127 = arith.constant 2 : index
    %c0_128 = arith.constant 0 : index
    %c0_129 = arith.constant 0 : index
    %102 = vector.load %arg2[%c3_126, %c2_127, %c0_128, %c0_129] : memref<10x4x64x64xbf16, #tpu.memory_space<vmem>>, vector<1x1x64x64xbf16>
    %103 = vector.shape_cast %102 : vector<1x1x64x64xbf16> to vector<64x64xbf16>
    %cst_130 = arith.constant dense<0.000000e+00> : vector<184x64xf32>
    %104 = tpu.matmul %101, %103, %cst_130 {dimension_numbers = #tpu.dot_dimension_numbers<[1], [0], [0], [1], [0, 0, 1, 1], [], []>} : vector<184x64xbf16>, vector<64x64xbf16>, vector<184x64xf32> -> vector<184x64xf32>
    %105 = arith.addf %98, %104 : vector<184x64xf32>
    %c0_131 = arith.constant 0 : index
    %c3_132 = arith.constant 3 : index
    %c3_133 = arith.constant 3 : index
    %c0_134 = arith.constant 0 : index
    %106 = vector.load %arg1[%c0_131, %c3_132, %c3_133, %c0_134] : memref<1x32x11x64xf32, #tpu.memory_space<vmem>>, vector<1x23x8x64xf32>
    %107 = vector.shape_cast %106 : vector<1x23x8x64xf32> to vector<184x64xf32>
    %108 = arith.truncf %107 : vector<184x64xf32> to vector<184x64xbf16>
    %c3_135 = arith.constant 3 : index
    %c3_136 = arith.constant 3 : index
    %c0_137 = arith.constant 0 : index
    %c0_138 = arith.constant 0 : index
    %109 = vector.load %arg2[%c3_135, %c3_136, %c0_137, %c0_138] : memref<10x4x64x64xbf16, #tpu.memory_space<vmem>>, vector<1x1x64x64xbf16>
    %110 = vector.shape_cast %109 : vector<1x1x64x64xbf16> to vector<64x64xbf16>
    %cst_139 = arith.constant dense<0.000000e+00> : vector<184x64xf32>
    %111 = tpu.matmul %108, %110, %cst_139 {dimension_numbers = #tpu.dot_dimension_numbers<[1], [0], [0], [1], [0, 0, 1, 1], [], []>} : vector<184x64xbf16>, vector<64x64xbf16>, vector<184x64xf32> -> vector<184x64xf32>
    %112 = arith.addf %105, %111 : vector<184x64xf32>
    %c0_140 = arith.constant 0 : index
    %c4 = arith.constant 4 : index
    %c0_141 = arith.constant 0 : index
    %c0_142 = arith.constant 0 : index
    %113 = vector.load %arg1[%c0_140, %c4, %c0_141, %c0_142] : memref<1x32x11x64xf32, #tpu.memory_space<vmem>>, vector<1x23x8x64xf32>
    %114 = vector.shape_cast %113 : vector<1x23x8x64xf32> to vector<184x64xf32>
    %115 = arith.truncf %114 : vector<184x64xf32> to vector<184x64xbf16>
    %c4_143 = arith.constant 4 : index
    %c0_144 = arith.constant 0 : index
    %c0_145 = arith.constant 0 : index
    %c0_146 = arith.constant 0 : index
    %116 = vector.load %arg2[%c4_143, %c0_144, %c0_145, %c0_146] : memref<10x4x64x64xbf16, #tpu.memory_space<vmem>>, vector<1x1x64x64xbf16>
    %117 = vector.shape_cast %116 : vector<1x1x64x64xbf16> to vector<64x64xbf16>
    %cst_147 = arith.constant dense<0.000000e+00> : vector<184x64xf32>
    %118 = tpu.matmul %115, %117, %cst_147 {dimension_numbers = #tpu.dot_dimension_numbers<[1], [0], [0], [1], [0, 0, 1, 1], [], []>} : vector<184x64xbf16>, vector<64x64xbf16>, vector<184x64xf32> -> vector<184x64xf32>
    %119 = arith.addf %112, %118 : vector<184x64xf32>
    %c0_148 = arith.constant 0 : index
    %c4_149 = arith.constant 4 : index
    %c1_150 = arith.constant 1 : index
    %c0_151 = arith.constant 0 : index
    %120 = vector.load %arg1[%c0_148, %c4_149, %c1_150, %c0_151] : memref<1x32x11x64xf32, #tpu.memory_space<vmem>>, vector<1x23x8x64xf32>
    %121 = vector.shape_cast %120 : vector<1x23x8x64xf32> to vector<184x64xf32>
    %122 = arith.truncf %121 : vector<184x64xf32> to vector<184x64xbf16>
    %c4_152 = arith.constant 4 : index
    %c1_153 = arith.constant 1 : index
    %c0_154 = arith.constant 0 : index
    %c0_155 = arith.constant 0 : index
    %123 = vector.load %arg2[%c4_152, %c1_153, %c0_154, %c0_155] : memref<10x4x64x64xbf16, #tpu.memory_space<vmem>>, vector<1x1x64x64xbf16>
    %124 = vector.shape_cast %123 : vector<1x1x64x64xbf16> to vector<64x64xbf16>
    %cst_156 = arith.constant dense<0.000000e+00> : vector<184x64xf32>
    %125 = tpu.matmul %122, %124, %cst_156 {dimension_numbers = #tpu.dot_dimension_numbers<[1], [0], [0], [1], [0, 0, 1, 1], [], []>} : vector<184x64xbf16>, vector<64x64xbf16>, vector<184x64xf32> -> vector<184x64xf32>
    %126 = arith.addf %119, %125 : vector<184x64xf32>
    %c0_157 = arith.constant 0 : index
    %c4_158 = arith.constant 4 : index
    %c2_159 = arith.constant 2 : index
    %c0_160 = arith.constant 0 : index
    %127 = vector.load %arg1[%c0_157, %c4_158, %c2_159, %c0_160] : memref<1x32x11x64xf32, #tpu.memory_space<vmem>>, vector<1x23x8x64xf32>
    %128 = vector.shape_cast %127 : vector<1x23x8x64xf32> to vector<184x64xf32>
    %129 = arith.truncf %128 : vector<184x64xf32> to vector<184x64xbf16>
    %c4_161 = arith.constant 4 : index
    %c2_162 = arith.constant 2 : index
    %c0_163 = arith.constant 0 : index
    %c0_164 = arith.constant 0 : index
    %130 = vector.load %arg2[%c4_161, %c2_162, %c0_163, %c0_164] : memref<10x4x64x64xbf16, #tpu.memory_space<vmem>>, vector<1x1x64x64xbf16>
    %131 = vector.shape_cast %130 : vector<1x1x64x64xbf16> to vector<64x64xbf16>
    %cst_165 = arith.constant dense<0.000000e+00> : vector<184x64xf32>
    %132 = tpu.matmul %129, %131, %cst_165 {dimension_numbers = #tpu.dot_dimension_numbers<[1], [0], [0], [1], [0, 0, 1, 1], [], []>} : vector<184x64xbf16>, vector<64x64xbf16>, vector<184x64xf32> -> vector<184x64xf32>
    %133 = arith.addf %126, %132 : vector<184x64xf32>
    %c0_166 = arith.constant 0 : index
    %c4_167 = arith.constant 4 : index
    %c3_168 = arith.constant 3 : index
    %c0_169 = arith.constant 0 : index
    %134 = vector.load %arg1[%c0_166, %c4_167, %c3_168, %c0_169] : memref<1x32x11x64xf32, #tpu.memory_space<vmem>>, vector<1x23x8x64xf32>
    %135 = vector.shape_cast %134 : vector<1x23x8x64xf32> to vector<184x64xf32>
    %136 = arith.truncf %135 : vector<184x64xf32> to vector<184x64xbf16>
    %c4_170 = arith.constant 4 : index
    %c3_171 = arith.constant 3 : index
    %c0_172 = arith.constant 0 : index
    %c0_173 = arith.constant 0 : index
    %137 = vector.load %arg2[%c4_170, %c3_171, %c0_172, %c0_173] : memref<10x4x64x64xbf16, #tpu.memory_space<vmem>>, vector<1x1x64x64xbf16>
    %138 = vector.shape_cast %137 : vector<1x1x64x64xbf16> to vector<64x64xbf16>
    %cst_174 = arith.constant dense<0.000000e+00> : vector<184x64xf32>
    %139 = tpu.matmul %136, %138, %cst_174 {dimension_numbers = #tpu.dot_dimension_numbers<[1], [0], [0], [1], [0, 0, 1, 1], [], []>} : vector<184x64xbf16>, vector<64x64xbf16>, vector<184x64xf32> -> vector<184x64xf32>
    %140 = arith.addf %133, %139 : vector<184x64xf32>
    %c0_175 = arith.constant 0 : index
    %c5 = arith.constant 5 : index
    %c0_176 = arith.constant 0 : index
    %c0_177 = arith.constant 0 : index
    %141 = vector.load %arg1[%c0_175, %c5, %c0_176, %c0_177] : memref<1x32x11x64xf32, #tpu.memory_space<vmem>>, vector<1x23x8x64xf32>
    %142 = vector.shape_cast %141 : vector<1x23x8x64xf32> to vector<184x64xf32>
    %143 = arith.truncf %142 : vector<184x64xf32> to vector<184x64xbf16>
    %c5_178 = arith.constant 5 : index
    %c0_179 = arith.constant 0 : index
    %c0_180 = arith.constant 0 : index
    %c0_181 = arith.constant 0 : index
    %144 = vector.load %arg2[%c5_178, %c0_179, %c0_180, %c0_181] : memref<10x4x64x64xbf16, #tpu.memory_space<vmem>>, vector<1x1x64x64xbf16>
    %145 = vector.shape_cast %144 : vector<1x1x64x64xbf16> to vector<64x64xbf16>
    %cst_182 = arith.constant dense<0.000000e+00> : vector<184x64xf32>
    %146 = tpu.matmul %143, %145, %cst_182 {dimension_numbers = #tpu.dot_dimension_numbers<[1], [0], [0], [1], [0, 0, 1, 1], [], []>} : vector<184x64xbf16>, vector<64x64xbf16>, vector<184x64xf32> -> vector<184x64xf32>
    %147 = arith.addf %140, %146 : vector<184x64xf32>
    %c0_183 = arith.constant 0 : index
    %c5_184 = arith.constant 5 : index
    %c1_185 = arith.constant 1 : index
    %c0_186 = arith.constant 0 : index
    %148 = vector.load %arg1[%c0_183, %c5_184, %c1_185, %c0_186] : memref<1x32x11x64xf32, #tpu.memory_space<vmem>>, vector<1x23x8x64xf32>
    %149 = vector.shape_cast %148 : vector<1x23x8x64xf32> to vector<184x64xf32>
    %150 = arith.truncf %149 : vector<184x64xf32> to vector<184x64xbf16>
    %c5_187 = arith.constant 5 : index
    %c1_188 = arith.constant 1 : index
    %c0_189 = arith.constant 0 : index
    %c0_190 = arith.constant 0 : index
    %151 = vector.load %arg2[%c5_187, %c1_188, %c0_189, %c0_190] : memref<10x4x64x64xbf16, #tpu.memory_space<vmem>>, vector<1x1x64x64xbf16>
    %152 = vector.shape_cast %151 : vector<1x1x64x64xbf16> to vector<64x64xbf16>
    %cst_191 = arith.constant dense<0.000000e+00> : vector<184x64xf32>
    %153 = tpu.matmul %150, %152, %cst_191 {dimension_numbers = #tpu.dot_dimension_numbers<[1], [0], [0], [1], [0, 0, 1, 1], [], []>} : vector<184x64xbf16>, vector<64x64xbf16>, vector<184x64xf32> -> vector<184x64xf32>
    %154 = arith.addf %147, %153 : vector<184x64xf32>
    %c0_192 = arith.constant 0 : index
    %c5_193 = arith.constant 5 : index
    %c2_194 = arith.constant 2 : index
    %c0_195 = arith.constant 0 : index
    %155 = vector.load %arg1[%c0_192, %c5_193, %c2_194, %c0_195] : memref<1x32x11x64xf32, #tpu.memory_space<vmem>>, vector<1x23x8x64xf32>
    %156 = vector.shape_cast %155 : vector<1x23x8x64xf32> to vector<184x64xf32>
    %157 = arith.truncf %156 : vector<184x64xf32> to vector<184x64xbf16>
    %c5_196 = arith.constant 5 : index
    %c2_197 = arith.constant 2 : index
    %c0_198 = arith.constant 0 : index
    %c0_199 = arith.constant 0 : index
    %158 = vector.load %arg2[%c5_196, %c2_197, %c0_198, %c0_199] : memref<10x4x64x64xbf16, #tpu.memory_space<vmem>>, vector<1x1x64x64xbf16>
    %159 = vector.shape_cast %158 : vector<1x1x64x64xbf16> to vector<64x64xbf16>
    %cst_200 = arith.constant dense<0.000000e+00> : vector<184x64xf32>
    %160 = tpu.matmul %157, %159, %cst_200 {dimension_numbers = #tpu.dot_dimension_numbers<[1], [0], [0], [1], [0, 0, 1, 1], [], []>} : vector<184x64xbf16>, vector<64x64xbf16>, vector<184x64xf32> -> vector<184x64xf32>
    %161 = arith.addf %154, %160 : vector<184x64xf32>
    %c0_201 = arith.constant 0 : index
    %c5_202 = arith.constant 5 : index
    %c3_203 = arith.constant 3 : index
    %c0_204 = arith.constant 0 : index
    %162 = vector.load %arg1[%c0_201, %c5_202, %c3_203, %c0_204] : memref<1x32x11x64xf32, #tpu.memory_space<vmem>>, vector<1x23x8x64xf32>
    %163 = vector.shape_cast %162 : vector<1x23x8x64xf32> to vector<184x64xf32>
    %164 = arith.truncf %163 : vector<184x64xf32> to vector<184x64xbf16>
    %c5_205 = arith.constant 5 : index
    %c3_206 = arith.constant 3 : index
    %c0_207 = arith.constant 0 : index
    %c0_208 = arith.constant 0 : index
    %165 = vector.load %arg2[%c5_205, %c3_206, %c0_207, %c0_208] : memref<10x4x64x64xbf16, #tpu.memory_space<vmem>>, vector<1x1x64x64xbf16>
    %166 = vector.shape_cast %165 : vector<1x1x64x64xbf16> to vector<64x64xbf16>
    %cst_209 = arith.constant dense<0.000000e+00> : vector<184x64xf32>
    %167 = tpu.matmul %164, %166, %cst_209 {dimension_numbers = #tpu.dot_dimension_numbers<[1], [0], [0], [1], [0, 0, 1, 1], [], []>} : vector<184x64xbf16>, vector<64x64xbf16>, vector<184x64xf32> -> vector<184x64xf32>
    %168 = arith.addf %161, %167 : vector<184x64xf32>
    %c0_210 = arith.constant 0 : index
    %c6 = arith.constant 6 : index
    %c0_211 = arith.constant 0 : index
    %c0_212 = arith.constant 0 : index
    %169 = vector.load %arg1[%c0_210, %c6, %c0_211, %c0_212] : memref<1x32x11x64xf32, #tpu.memory_space<vmem>>, vector<1x23x8x64xf32>
    %170 = vector.shape_cast %169 : vector<1x23x8x64xf32> to vector<184x64xf32>
    %171 = arith.truncf %170 : vector<184x64xf32> to vector<184x64xbf16>
    %c6_213 = arith.constant 6 : index
    %c0_214 = arith.constant 0 : index
    %c0_215 = arith.constant 0 : index
    %c0_216 = arith.constant 0 : index
    %172 = vector.load %arg2[%c6_213, %c0_214, %c0_215, %c0_216] : memref<10x4x64x64xbf16, #tpu.memory_space<vmem>>, vector<1x1x64x64xbf16>
    %173 = vector.shape_cast %172 : vector<1x1x64x64xbf16> to vector<64x64xbf16>
    %cst_217 = arith.constant dense<0.000000e+00> : vector<184x64xf32>
    %174 = tpu.matmul %171, %173, %cst_217 {dimension_numbers = #tpu.dot_dimension_numbers<[1], [0], [0], [1], [0, 0, 1, 1], [], []>} : vector<184x64xbf16>, vector<64x64xbf16>, vector<184x64xf32> -> vector<184x64xf32>
    %175 = arith.addf %168, %174 : vector<184x64xf32>
    %c0_218 = arith.constant 0 : index
    %c6_219 = arith.constant 6 : index
    %c1_220 = arith.constant 1 : index
    %c0_221 = arith.constant 0 : index
    %176 = vector.load %arg1[%c0_218, %c6_219, %c1_220, %c0_221] : memref<1x32x11x64xf32, #tpu.memory_space<vmem>>, vector<1x23x8x64xf32>
    %177 = vector.shape_cast %176 : vector<1x23x8x64xf32> to vector<184x64xf32>
    %178 = arith.truncf %177 : vector<184x64xf32> to vector<184x64xbf16>
    %c6_222 = arith.constant 6 : index
    %c1_223 = arith.constant 1 : index
    %c0_224 = arith.constant 0 : index
    %c0_225 = arith.constant 0 : index
    %179 = vector.load %arg2[%c6_222, %c1_223, %c0_224, %c0_225] : memref<10x4x64x64xbf16, #tpu.memory_space<vmem>>, vector<1x1x64x64xbf16>
    %180 = vector.shape_cast %179 : vector<1x1x64x64xbf16> to vector<64x64xbf16>
    %cst_226 = arith.constant dense<0.000000e+00> : vector<184x64xf32>
    %181 = tpu.matmul %178, %180, %cst_226 {dimension_numbers = #tpu.dot_dimension_numbers<[1], [0], [0], [1], [0, 0, 1, 1], [], []>} : vector<184x64xbf16>, vector<64x64xbf16>, vector<184x64xf32> -> vector<184x64xf32>
    %182 = arith.addf %175, %181 : vector<184x64xf32>
    %c0_227 = arith.constant 0 : index
    %c6_228 = arith.constant 6 : index
    %c2_229 = arith.constant 2 : index
    %c0_230 = arith.constant 0 : index
    %183 = vector.load %arg1[%c0_227, %c6_228, %c2_229, %c0_230] : memref<1x32x11x64xf32, #tpu.memory_space<vmem>>, vector<1x23x8x64xf32>
    %184 = vector.shape_cast %183 : vector<1x23x8x64xf32> to vector<184x64xf32>
    %185 = arith.truncf %184 : vector<184x64xf32> to vector<184x64xbf16>
    %c6_231 = arith.constant 6 : index
    %c2_232 = arith.constant 2 : index
    %c0_233 = arith.constant 0 : index
    %c0_234 = arith.constant 0 : index
    %186 = vector.load %arg2[%c6_231, %c2_232, %c0_233, %c0_234] : memref<10x4x64x64xbf16, #tpu.memory_space<vmem>>, vector<1x1x64x64xbf16>
    %187 = vector.shape_cast %186 : vector<1x1x64x64xbf16> to vector<64x64xbf16>
    %cst_235 = arith.constant dense<0.000000e+00> : vector<184x64xf32>
    %188 = tpu.matmul %185, %187, %cst_235 {dimension_numbers = #tpu.dot_dimension_numbers<[1], [0], [0], [1], [0, 0, 1, 1], [], []>} : vector<184x64xbf16>, vector<64x64xbf16>, vector<184x64xf32> -> vector<184x64xf32>
    %189 = arith.addf %182, %188 : vector<184x64xf32>
    %c0_236 = arith.constant 0 : index
    %c6_237 = arith.constant 6 : index
    %c3_238 = arith.constant 3 : index
    %c0_239 = arith.constant 0 : index
    %190 = vector.load %arg1[%c0_236, %c6_237, %c3_238, %c0_239] : memref<1x32x11x64xf32, #tpu.memory_space<vmem>>, vector<1x23x8x64xf32>
    %191 = vector.shape_cast %190 : vector<1x23x8x64xf32> to vector<184x64xf32>
    %192 = arith.truncf %191 : vector<184x64xf32> to vector<184x64xbf16>
    %c6_240 = arith.constant 6 : index
    %c3_241 = arith.constant 3 : index
    %c0_242 = arith.constant 0 : index
    %c0_243 = arith.constant 0 : index
    %193 = vector.load %arg2[%c6_240, %c3_241, %c0_242, %c0_243] : memref<10x4x64x64xbf16, #tpu.memory_space<vmem>>, vector<1x1x64x64xbf16>
    %194 = vector.shape_cast %193 : vector<1x1x64x64xbf16> to vector<64x64xbf16>
    %cst_244 = arith.constant dense<0.000000e+00> : vector<184x64xf32>
    %195 = tpu.matmul %192, %194, %cst_244 {dimension_numbers = #tpu.dot_dimension_numbers<[1], [0], [0], [1], [0, 0, 1, 1], [], []>} : vector<184x64xbf16>, vector<64x64xbf16>, vector<184x64xf32> -> vector<184x64xf32>
    %196 = arith.addf %189, %195 : vector<184x64xf32>
    %c0_245 = arith.constant 0 : index
    %c7 = arith.constant 7 : index
    %c0_246 = arith.constant 0 : index
    %c0_247 = arith.constant 0 : index
    %197 = vector.load %arg1[%c0_245, %c7, %c0_246, %c0_247] : memref<1x32x11x64xf32, #tpu.memory_space<vmem>>, vector<1x23x8x64xf32>
    %198 = vector.shape_cast %197 : vector<1x23x8x64xf32> to vector<184x64xf32>
    %199 = arith.truncf %198 : vector<184x64xf32> to vector<184x64xbf16>
    %c7_248 = arith.constant 7 : index
    %c0_249 = arith.constant 0 : index
    %c0_250 = arith.constant 0 : index
    %c0_251 = arith.constant 0 : index
    %200 = vector.load %arg2[%c7_248, %c0_249, %c0_250, %c0_251] : memref<10x4x64x64xbf16, #tpu.memory_space<vmem>>, vector<1x1x64x64xbf16>
    %201 = vector.shape_cast %200 : vector<1x1x64x64xbf16> to vector<64x64xbf16>
    %cst_252 = arith.constant dense<0.000000e+00> : vector<184x64xf32>
    %202 = tpu.matmul %199, %201, %cst_252 {dimension_numbers = #tpu.dot_dimension_numbers<[1], [0], [0], [1], [0, 0, 1, 1], [], []>} : vector<184x64xbf16>, vector<64x64xbf16>, vector<184x64xf32> -> vector<184x64xf32>
    %203 = arith.addf %196, %202 : vector<184x64xf32>
    %c0_253 = arith.constant 0 : index
    %c7_254 = arith.constant 7 : index
    %c1_255 = arith.constant 1 : index
    %c0_256 = arith.constant 0 : index
    %204 = vector.load %arg1[%c0_253, %c7_254, %c1_255, %c0_256] : memref<1x32x11x64xf32, #tpu.memory_space<vmem>>, vector<1x23x8x64xf32>
    %205 = vector.shape_cast %204 : vector<1x23x8x64xf32> to vector<184x64xf32>
    %206 = arith.truncf %205 : vector<184x64xf32> to vector<184x64xbf16>
    %c7_257 = arith.constant 7 : index
    %c1_258 = arith.constant 1 : index
    %c0_259 = arith.constant 0 : index
    %c0_260 = arith.constant 0 : index
    %207 = vector.load %arg2[%c7_257, %c1_258, %c0_259, %c0_260] : memref<10x4x64x64xbf16, #tpu.memory_space<vmem>>, vector<1x1x64x64xbf16>
    %208 = vector.shape_cast %207 : vector<1x1x64x64xbf16> to vector<64x64xbf16>
    %cst_261 = arith.constant dense<0.000000e+00> : vector<184x64xf32>
    %209 = tpu.matmul %206, %208, %cst_261 {dimension_numbers = #tpu.dot_dimension_numbers<[1], [0], [0], [1], [0, 0, 1, 1], [], []>} : vector<184x64xbf16>, vector<64x64xbf16>, vector<184x64xf32> -> vector<184x64xf32>
    %210 = arith.addf %203, %209 : vector<184x64xf32>
    %c0_262 = arith.constant 0 : index
    %c7_263 = arith.constant 7 : index
    %c2_264 = arith.constant 2 : index
    %c0_265 = arith.constant 0 : index
    %211 = vector.load %arg1[%c0_262, %c7_263, %c2_264, %c0_265] : memref<1x32x11x64xf32, #tpu.memory_space<vmem>>, vector<1x23x8x64xf32>
    %212 = vector.shape_cast %211 : vector<1x23x8x64xf32> to vector<184x64xf32>
    %213 = arith.truncf %212 : vector<184x64xf32> to vector<184x64xbf16>
    %c7_266 = arith.constant 7 : index
    %c2_267 = arith.constant 2 : index
    %c0_268 = arith.constant 0 : index
    %c0_269 = arith.constant 0 : index
    %214 = vector.load %arg2[%c7_266, %c2_267, %c0_268, %c0_269] : memref<10x4x64x64xbf16, #tpu.memory_space<vmem>>, vector<1x1x64x64xbf16>
    %215 = vector.shape_cast %214 : vector<1x1x64x64xbf16> to vector<64x64xbf16>
    %cst_270 = arith.constant dense<0.000000e+00> : vector<184x64xf32>
    %216 = tpu.matmul %213, %215, %cst_270 {dimension_numbers = #tpu.dot_dimension_numbers<[1], [0], [0], [1], [0, 0, 1, 1], [], []>} : vector<184x64xbf16>, vector<64x64xbf16>, vector<184x64xf32> -> vector<184x64xf32>
    %217 = arith.addf %210, %216 : vector<184x64xf32>
    %c0_271 = arith.constant 0 : index
    %c7_272 = arith.constant 7 : index
    %c3_273 = arith.constant 3 : index
    %c0_274 = arith.constant 0 : index
    %218 = vector.load %arg1[%c0_271, %c7_272, %c3_273, %c0_274] : memref<1x32x11x64xf32, #tpu.memory_space<vmem>>, vector<1x23x8x64xf32>
    %219 = vector.shape_cast %218 : vector<1x23x8x64xf32> to vector<184x64xf32>
    %220 = arith.truncf %219 : vector<184x64xf32> to vector<184x64xbf16>
    %c7_275 = arith.constant 7 : index
    %c3_276 = arith.constant 3 : index
    %c0_277 = arith.constant 0 : index
    %c0_278 = arith.constant 0 : index
    %221 = vector.load %arg2[%c7_275, %c3_276, %c0_277, %c0_278] : memref<10x4x64x64xbf16, #tpu.memory_space<vmem>>, vector<1x1x64x64xbf16>
    %222 = vector.shape_cast %221 : vector<1x1x64x64xbf16> to vector<64x64xbf16>
    %cst_279 = arith.constant dense<0.000000e+00> : vector<184x64xf32>
    %223 = tpu.matmul %220, %222, %cst_279 {dimension_numbers = #tpu.dot_dimension_numbers<[1], [0], [0], [1], [0, 0, 1, 1], [], []>} : vector<184x64xbf16>, vector<64x64xbf16>, vector<184x64xf32> -> vector<184x64xf32>
    %224 = arith.addf %217, %223 : vector<184x64xf32>
    %c0_280 = arith.constant 0 : index
    %c8 = arith.constant 8 : index
    %c0_281 = arith.constant 0 : index
    %c0_282 = arith.constant 0 : index
    %225 = vector.load %arg1[%c0_280, %c8, %c0_281, %c0_282] : memref<1x32x11x64xf32, #tpu.memory_space<vmem>>, vector<1x23x8x64xf32>
    %226 = vector.shape_cast %225 : vector<1x23x8x64xf32> to vector<184x64xf32>
    %227 = arith.truncf %226 : vector<184x64xf32> to vector<184x64xbf16>
    %c8_283 = arith.constant 8 : index
    %c0_284 = arith.constant 0 : index
    %c0_285 = arith.constant 0 : index
    %c0_286 = arith.constant 0 : index
    %228 = vector.load %arg2[%c8_283, %c0_284, %c0_285, %c0_286] : memref<10x4x64x64xbf16, #tpu.memory_space<vmem>>, vector<1x1x64x64xbf16>
    %229 = vector.shape_cast %228 : vector<1x1x64x64xbf16> to vector<64x64xbf16>
    %cst_287 = arith.constant dense<0.000000e+00> : vector<184x64xf32>
    %230 = tpu.matmul %227, %229, %cst_287 {dimension_numbers = #tpu.dot_dimension_numbers<[1], [0], [0], [1], [0, 0, 1, 1], [], []>} : vector<184x64xbf16>, vector<64x64xbf16>, vector<184x64xf32> -> vector<184x64xf32>
    %231 = arith.addf %224, %230 : vector<184x64xf32>
    %c0_288 = arith.constant 0 : index
    %c8_289 = arith.constant 8 : index
    %c1_290 = arith.constant 1 : index
    %c0_291 = arith.constant 0 : index
    %232 = vector.load %arg1[%c0_288, %c8_289, %c1_290, %c0_291] : memref<1x32x11x64xf32, #tpu.memory_space<vmem>>, vector<1x23x8x64xf32>
    %233 = vector.shape_cast %232 : vector<1x23x8x64xf32> to vector<184x64xf32>
    %234 = arith.truncf %233 : vector<184x64xf32> to vector<184x64xbf16>
    %c8_292 = arith.constant 8 : index
    %c1_293 = arith.constant 1 : index
    %c0_294 = arith.constant 0 : index
    %c0_295 = arith.constant 0 : index
    %235 = vector.load %arg2[%c8_292, %c1_293, %c0_294, %c0_295] : memref<10x4x64x64xbf16, #tpu.memory_space<vmem>>, vector<1x1x64x64xbf16>
    %236 = vector.shape_cast %235 : vector<1x1x64x64xbf16> to vector<64x64xbf16>
    %cst_296 = arith.constant dense<0.000000e+00> : vector<184x64xf32>
    %237 = tpu.matmul %234, %236, %cst_296 {dimension_numbers = #tpu.dot_dimension_numbers<[1], [0], [0], [1], [0, 0, 1, 1], [], []>} : vector<184x64xbf16>, vector<64x64xbf16>, vector<184x64xf32> -> vector<184x64xf32>
    %238 = arith.addf %231, %237 : vector<184x64xf32>
    %c0_297 = arith.constant 0 : index
    %c8_298 = arith.constant 8 : index
    %c2_299 = arith.constant 2 : index
    %c0_300 = arith.constant 0 : index
    %239 = vector.load %arg1[%c0_297, %c8_298, %c2_299, %c0_300] : memref<1x32x11x64xf32, #tpu.memory_space<vmem>>, vector<1x23x8x64xf32>
    %240 = vector.shape_cast %239 : vector<1x23x8x64xf32> to vector<184x64xf32>
    %241 = arith.truncf %240 : vector<184x64xf32> to vector<184x64xbf16>
    %c8_301 = arith.constant 8 : index
    %c2_302 = arith.constant 2 : index
    %c0_303 = arith.constant 0 : index
    %c0_304 = arith.constant 0 : index
    %242 = vector.load %arg2[%c8_301, %c2_302, %c0_303, %c0_304] : memref<10x4x64x64xbf16, #tpu.memory_space<vmem>>, vector<1x1x64x64xbf16>
    %243 = vector.shape_cast %242 : vector<1x1x64x64xbf16> to vector<64x64xbf16>
    %cst_305 = arith.constant dense<0.000000e+00> : vector<184x64xf32>
    %244 = tpu.matmul %241, %243, %cst_305 {dimension_numbers = #tpu.dot_dimension_numbers<[1], [0], [0], [1], [0, 0, 1, 1], [], []>} : vector<184x64xbf16>, vector<64x64xbf16>, vector<184x64xf32> -> vector<184x64xf32>
    %245 = arith.addf %238, %244 : vector<184x64xf32>
    %c0_306 = arith.constant 0 : index
    %c8_307 = arith.constant 8 : index
    %c3_308 = arith.constant 3 : index
    %c0_309 = arith.constant 0 : index
    %246 = vector.load %arg1[%c0_306, %c8_307, %c3_308, %c0_309] : memref<1x32x11x64xf32, #tpu.memory_space<vmem>>, vector<1x23x8x64xf32>
    %247 = vector.shape_cast %246 : vector<1x23x8x64xf32> to vector<184x64xf32>
    %248 = arith.truncf %247 : vector<184x64xf32> to vector<184x64xbf16>
    %c8_310 = arith.constant 8 : index
    %c3_311 = arith.constant 3 : index
    %c0_312 = arith.constant 0 : index
    %c0_313 = arith.constant 0 : index
    %249 = vector.load %arg2[%c8_310, %c3_311, %c0_312, %c0_313] : memref<10x4x64x64xbf16, #tpu.memory_space<vmem>>, vector<1x1x64x64xbf16>
    %250 = vector.shape_cast %249 : vector<1x1x64x64xbf16> to vector<64x64xbf16>
    %cst_314 = arith.constant dense<0.000000e+00> : vector<184x64xf32>
    %251 = tpu.matmul %248, %250, %cst_314 {dimension_numbers = #tpu.dot_dimension_numbers<[1], [0], [0], [1], [0, 0, 1, 1], [], []>} : vector<184x64xbf16>, vector<64x64xbf16>, vector<184x64xf32> -> vector<184x64xf32>
    %252 = arith.addf %245, %251 : vector<184x64xf32>
    %c0_315 = arith.constant 0 : index
    %c9 = arith.constant 9 : index
    %c0_316 = arith.constant 0 : index
    %c0_317 = arith.constant 0 : index
    %253 = vector.load %arg1[%c0_315, %c9, %c0_316, %c0_317] : memref<1x32x11x64xf32, #tpu.memory_space<vmem>>, vector<1x23x8x64xf32>
    %254 = vector.shape_cast %253 : vector<1x23x8x64xf32> to vector<184x64xf32>
    %255 = arith.truncf %254 : vector<184x64xf32> to vector<184x64xbf16>
    %c9_318 = arith.constant 9 : index
    %c0_319 = arith.constant 0 : index
    %c0_320 = arith.constant 0 : index
    %c0_321 = arith.constant 0 : index
    %256 = vector.load %arg2[%c9_318, %c0_319, %c0_320, %c0_321] : memref<10x4x64x64xbf16, #tpu.memory_space<vmem>>, vector<1x1x64x64xbf16>
    %257 = vector.shape_cast %256 : vector<1x1x64x64xbf16> to vector<64x64xbf16>
    %cst_322 = arith.constant dense<0.000000e+00> : vector<184x64xf32>
    %258 = tpu.matmul %255, %257, %cst_322 {dimension_numbers = #tpu.dot_dimension_numbers<[1], [0], [0], [1], [0, 0, 1, 1], [], []>} : vector<184x64xbf16>, vector<64x64xbf16>, vector<184x64xf32> -> vector<184x64xf32>
    %259 = arith.addf %252, %258 : vector<184x64xf32>
    %c0_323 = arith.constant 0 : index
    %c9_324 = arith.constant 9 : index
    %c1_325 = arith.constant 1 : index
    %c0_326 = arith.constant 0 : index
    %260 = vector.load %arg1[%c0_323, %c9_324, %c1_325, %c0_326] : memref<1x32x11x64xf32, #tpu.memory_space<vmem>>, vector<1x23x8x64xf32>
    %261 = vector.shape_cast %260 : vector<1x23x8x64xf32> to vector<184x64xf32>
    %262 = arith.truncf %261 : vector<184x64xf32> to vector<184x64xbf16>
    %c9_327 = arith.constant 9 : index
    %c1_328 = arith.constant 1 : index
    %c0_329 = arith.constant 0 : index
    %c0_330 = arith.constant 0 : index
    %263 = vector.load %arg2[%c9_327, %c1_328, %c0_329, %c0_330] : memref<10x4x64x64xbf16, #tpu.memory_space<vmem>>, vector<1x1x64x64xbf16>
    %264 = vector.shape_cast %263 : vector<1x1x64x64xbf16> to vector<64x64xbf16>
    %cst_331 = arith.constant dense<0.000000e+00> : vector<184x64xf32>
    %265 = tpu.matmul %262, %264, %cst_331 {dimension_numbers = #tpu.dot_dimension_numbers<[1], [0], [0], [1], [0, 0, 1, 1], [], []>} : vector<184x64xbf16>, vector<64x64xbf16>, vector<184x64xf32> -> vector<184x64xf32>
    %266 = arith.addf %259, %265 : vector<184x64xf32>
    %c0_332 = arith.constant 0 : index
    %c9_333 = arith.constant 9 : index
    %c2_334 = arith.constant 2 : index
    %c0_335 = arith.constant 0 : index
    %267 = vector.load %arg1[%c0_332, %c9_333, %c2_334, %c0_335] : memref<1x32x11x64xf32, #tpu.memory_space<vmem>>, vector<1x23x8x64xf32>
    %268 = vector.shape_cast %267 : vector<1x23x8x64xf32> to vector<184x64xf32>
    %269 = arith.truncf %268 : vector<184x64xf32> to vector<184x64xbf16>
    %c9_336 = arith.constant 9 : index
    %c2_337 = arith.constant 2 : index
    %c0_338 = arith.constant 0 : index
    %c0_339 = arith.constant 0 : index
    %270 = vector.load %arg2[%c9_336, %c2_337, %c0_338, %c0_339] : memref<10x4x64x64xbf16, #tpu.memory_space<vmem>>, vector<1x1x64x64xbf16>
    %271 = vector.shape_cast %270 : vector<1x1x64x64xbf16> to vector<64x64xbf16>
    %cst_340 = arith.constant dense<0.000000e+00> : vector<184x64xf32>
    %272 = tpu.matmul %269, %271, %cst_340 {dimension_numbers = #tpu.dot_dimension_numbers<[1], [0], [0], [1], [0, 0, 1, 1], [], []>} : vector<184x64xbf16>, vector<64x64xbf16>, vector<184x64xf32> -> vector<184x64xf32>
    %273 = arith.addf %266, %272 : vector<184x64xf32>
    %c0_341 = arith.constant 0 : index
    %c9_342 = arith.constant 9 : index
    %c3_343 = arith.constant 3 : index
    %c0_344 = arith.constant 0 : index
    %274 = vector.load %arg1[%c0_341, %c9_342, %c3_343, %c0_344] : memref<1x32x11x64xf32, #tpu.memory_space<vmem>>, vector<1x23x8x64xf32>
    %275 = vector.shape_cast %274 : vector<1x23x8x64xf32> to vector<184x64xf32>
    %276 = arith.truncf %275 : vector<184x64xf32> to vector<184x64xbf16>
    %c9_345 = arith.constant 9 : index
    %c3_346 = arith.constant 3 : index
    %c0_347 = arith.constant 0 : index
    %c0_348 = arith.constant 0 : index
    %277 = vector.load %arg2[%c9_345, %c3_346, %c0_347, %c0_348] : memref<10x4x64x64xbf16, #tpu.memory_space<vmem>>, vector<1x1x64x64xbf16>
    %278 = vector.shape_cast %277 : vector<1x1x64x64xbf16> to vector<64x64xbf16>
    %cst_349 = arith.constant dense<0.000000e+00> : vector<184x64xf32>
    %279 = tpu.matmul %276, %278, %cst_349 {dimension_numbers = #tpu.dot_dimension_numbers<[1], [0], [0], [1], [0, 0, 1, 1], [], []>} : vector<184x64xbf16>, vector<64x64xbf16>, vector<184x64xf32> -> vector<184x64xf32>
    %280 = arith.addf %273, %279 : vector<184x64xf32>
    %c0_350 = arith.constant 0 : index
    %c0_351 = arith.constant 0 : index
    %281 = vector.load %arg3[%c0_350, %c0_351] : memref<1x64xf32, #tpu.memory_space<vmem>>, vector<1x64xf32>
    %282 = vector.broadcast %281 : vector<1x64xf32> to vector<184x64xf32>
    %283 = arith.mulf %280, %282 : vector<184x64xf32>
    %c0_352 = arith.constant 0 : index
    %c0_353 = arith.constant 0 : index
    %284 = vector.load %arg4[%c0_352, %c0_353] : memref<1x64xf32, #tpu.memory_space<vmem>>, vector<1x64xf32>
    %285 = vector.broadcast %284 : vector<1x64xf32> to vector<184x64xf32>
    %286 = arith.addf %283, %285 : vector<184x64xf32>
    %cst_354 = arith.constant 0.000000e+00 : f32
    %287 = vector.broadcast %cst_354 : f32 to vector<184x64xf32>
    %288 = arith.maximumf %286, %287 : vector<184x64xf32>
    %289 = arith.truncf %288 : vector<184x64xf32> to vector<184x64xbf16>
    %c0_355 = arith.constant 0 : index
    %c0_356 = arith.constant 0 : index
    %290 = vector.load %arg5[%c0_355, %c0_356] : memref<184x64xbf16, #tpu.memory_space<vmem>>, vector<184x64xbf16>
    tpu.vector_store %arg5[%c0_355, %c0_356], %289 {strides = array<i32>} : memref<184x64xbf16, #tpu.memory_space<vmem>>, vector<184x64xbf16>,
    return
  }
  func.func @transform_0(%arg0: i32) -> (i32, i32, i32, i32) {
    %c0_i32 = arith.constant 0 : i32
    %c0_i32_0 = arith.constant 0 : i32
    %c0_i32_1 = arith.constant 0 : i32
    %c0_i32_2 = arith.constant 0 : i32
    return %arg0, %c0_i32, %c0_i32_0, %c0_i32_1 : i32, i32, i32, i32
  }
  func.func @transform_1(%arg0: i32) -> (i32, i32, i32, i32) {
    %c0_i32 = arith.constant 0 : i32
    %c0_i32_0 = arith.constant 0 : i32
    %c0_i32_1 = arith.constant 0 : i32
    %c0_i32_2 = arith.constant 0 : i32
    %c0_i32_3 = arith.constant 0 : i32
    return %c0_i32, %c0_i32_0, %c0_i32_1, %c0_i32_2 : i32, i32, i32, i32
  }
  func.func @transform_2(%arg0: i32) -> (i32, i32) {
    %c0_i32 = arith.constant 0 : i32
    %c0_i32_0 = arith.constant 0 : i32
    %c0_i32_1 = arith.constant 0 : i32
    return %c0_i32, %c0_i32_0 : i32, i32
  }
  func.func @transform_3(%arg0: i32) -> (i32, i32) {
    %c0_i32 = arith.constant 0 : i32
    %c0_i32_0 = arith.constant 0 : i32
    %c0_i32_1 = arith.constant 0 : i32
    return %c0_i32, %c0_i32_0 : i32, i32
  }
  func.func @transform_4(%arg0: i32) -> (i32, i32) {
    %c0_i32 = arith.constant 0 : i32
    %c0_i32_0 = arith.constant 0 : i32
    return %arg0, %c0_i32 : i32, i32
  }
}

module attributes {stable_mosaic.version = 11 : i64} {
  func.func @mlp_kernel(%arg0: i32, %arg1: memref<2x5888xbf16, #tpu.memory_space<vmem>>, %arg2: memref<5888x32xbf16, #tpu.memory_space<vmem>>, %arg3: memref<1x32xf32, #tpu.memory_space<vmem>>, %arg4: memref<32x128xbf16, #tpu.memory_space<vmem>>, %arg5: memref<1x128xf32, #tpu.memory_space<vmem>>, %arg6: memref<2x128xf32, #tpu.memory_space<vmem>>, %arg7: memref<2x32xf32, #tpu.memory_space<vmem>>) attributes {dimension_semantics = [#tpu.dimension_semantics<arbitrary>], iteration_bounds = array<i64: 2>, scalar_prefetch = 0 : i64, scratch_operands = 1 : i64, tpu.core_type = #tpu.core_type<tc>, window_params = [{transform_indices = @transform_0, window_bounds = array<i64: 2, 5888>}, {transform_indices = @transform_1, window_bounds = array<i64: 5888, 32>}, {pipeline_mode = #tpu.pipeline_mode<synchronous>, transform_indices = @transform_2, window_bounds = array<i64: 1, 32>}, {pipeline_mode = #tpu.pipeline_mode<synchronous>, transform_indices = @transform_3, window_bounds = array<i64: 32, 128>}, {pipeline_mode = #tpu.pipeline_mode<synchronous>, transform_indices = @transform_4, window_bounds = array<i64: 1, 128>}, {pipeline_mode = #tpu.pipeline_mode<synchronous>, transform_indices = @transform_5, window_bounds = array<i64: 2, 128>}]} {
    %c0_i32 = arith.constant 0 : i32
    %0 = arith.cmpi eq, %arg0, %c0_i32 : i32
    %1 = arith.extui %0 : i1 to i32
    %c0_i32_0 = arith.constant 0 : i32
    %2 = arith.cmpi ne, %1, %c0_i32_0 : i32
    scf.if %2 {
      %cst_9 = arith.constant 0.000000e+00 : f32
      %12 = vector.broadcast %cst_9 : f32 to vector<2x32xf32>
      %c0_10 = arith.constant 0 : index
      %c0_11 = arith.constant 0 : index
      %13 = vector.load %arg7[%c0_10, %c0_11] : memref<2x32xf32, #tpu.memory_space<vmem>>, vector<2x32xf32>
      tpu.vector_store %arg7[%c0_10, %c0_11], %12 {strides = array<i32>} : memref<2x32xf32, #tpu.memory_space<vmem>>, vector<2x32xf32>,
    } else {
    }
    %c0 = arith.constant 0 : index
    %c0_1 = arith.constant 0 : index
    %3 = vector.load %arg7[%c0, %c0_1] : memref<2x32xf32, #tpu.memory_space<vmem>>, vector<2x32xf32>
    %c0_2 = arith.constant 0 : index
    %c0_3 = arith.constant 0 : index
    %4 = vector.load %arg1[%c0_2, %c0_3] : memref<2x5888xbf16, #tpu.memory_space<vmem>>, vector<2x5888xbf16>
    %c0_4 = arith.constant 0 : index
    %c0_5 = arith.constant 0 : index
    %5 = vector.load %arg2[%c0_4, %c0_5] : memref<5888x32xbf16, #tpu.memory_space<vmem>>, vector<5888x32xbf16>
    %cst = arith.constant dense<0.000000e+00> : vector<2x32xf32>
    %6 = tpu.matmul %4, %5, %cst {dimension_numbers = #tpu.dot_dimension_numbers<[1], [0], [0], [1], [0, 0, 1, 1], [], []>} : vector<2x5888xbf16>, vector<5888x32xbf16>, vector<2x32xf32> -> vector<2x32xf32>
    %7 = arith.addf %3, %6 : vector<2x32xf32>
    %c0_6 = arith.constant 0 : index
    %c0_7 = arith.constant 0 : index
    %8 = vector.load %arg7[%c0_6, %c0_7] : memref<2x32xf32, #tpu.memory_space<vmem>>, vector<2x32xf32>
    tpu.vector_store %arg7[%c0_6, %c0_7], %7 {strides = array<i32>} : memref<2x32xf32, #tpu.memory_space<vmem>>, vector<2x32xf32>,
    %c1_i32 = arith.constant 1 : i32
    %9 = arith.cmpi eq, %arg0, %c1_i32 : i32
    %10 = arith.extui %9 : i1 to i32
    %c0_i32_8 = arith.constant 0 : i32
    %11 = arith.cmpi ne, %10, %c0_i32_8 : i32
    scf.if %11 {
      %c0_9 = arith.constant 0 : index
      %c0_10 = arith.constant 0 : index
      %12 = vector.load %arg7[%c0_9, %c0_10] : memref<2x32xf32, #tpu.memory_space<vmem>>, vector<2x32xf32>
      %c0_11 = arith.constant 0 : index
      %c0_12 = arith.constant 0 : index
      %13 = vector.load %arg3[%c0_11, %c0_12] : memref<1x32xf32, #tpu.memory_space<vmem>>, vector<1x32xf32>
      %14 = vector.broadcast %13 : vector<1x32xf32> to vector<2x32xf32>
      %15 = arith.addf %12, %14 : vector<2x32xf32>
      %cst_13 = arith.constant 0.000000e+00 : f32
      %16 = vector.broadcast %cst_13 : f32 to vector<2x32xf32>
      %17 = arith.maximumf %15, %16 : vector<2x32xf32>
      %18 = arith.truncf %17 : vector<2x32xf32> to vector<2x32xbf16>
      %c0_14 = arith.constant 0 : index
      %c0_15 = arith.constant 0 : index
      %19 = vector.load %arg4[%c0_14, %c0_15] : memref<32x128xbf16, #tpu.memory_space<vmem>>, vector<32x128xbf16>
      %cst_16 = arith.constant dense<0.000000e+00> : vector<2x128xf32>
      %20 = tpu.matmul %18, %19, %cst_16 {dimension_numbers = #tpu.dot_dimension_numbers<[1], [0], [0], [1], [0, 0, 1, 1], [], []>} : vector<2x32xbf16>, vector<32x128xbf16>, vector<2x128xf32> -> vector<2x128xf32>
      %c0_17 = arith.constant 0 : index
      %c0_18 = arith.constant 0 : index
      %21 = vector.load %arg5[%c0_17, %c0_18] : memref<1x128xf32, #tpu.memory_space<vmem>>, vector<1x128xf32>
      %22 = vector.broadcast %21 : vector<1x128xf32> to vector<2x128xf32>
      %23 = arith.addf %20, %22 : vector<2x128xf32>
      %cst_19 = arith.constant 0.000000e+00 : f32
      %24 = vector.broadcast %cst_19 : f32 to vector<2x128xf32>
      %25 = arith.subf %24, %23 : vector<2x128xf32>
      %26 = math.exp %25 : vector<2x128xf32>
      %cst_20 = arith.constant 1.000000e+00 : f32
      %27 = vector.broadcast %cst_20 : f32 to vector<2x128xf32>
      %28 = arith.addf %27, %26 : vector<2x128xf32>
      %29 = tpu.reciprocal %28 {approx = true} : vector<2x128xf32> -> vector<2x128xf32>
      %c0_21 = arith.constant 0 : index
      %c0_22 = arith.constant 0 : index
      %30 = vector.load %arg6[%c0_21, %c0_22] : memref<2x128xf32, #tpu.memory_space<vmem>>, vector<2x128xf32>
      tpu.vector_store %arg6[%c0_21, %c0_22], %29 {strides = array<i32>} : memref<2x128xf32, #tpu.memory_space<vmem>>, vector<2x128xf32>,
    } else {
    }
    return
  }
  func.func @transform_0(%arg0: i32) -> (i32, i32) {
    %c0_i32 = arith.constant 0 : i32
    %c0_i32_0 = arith.constant 0 : i32
    return %c0_i32, %arg0 : i32, i32
  }
  func.func @transform_1(%arg0: i32) -> (i32, i32) {
    %c0_i32 = arith.constant 0 : i32
    %c0_i32_0 = arith.constant 0 : i32
    return %arg0, %c0_i32 : i32, i32
  }
  func.func @transform_2(%arg0: i32) -> (i32, i32) {
    %c0_i32 = arith.constant 0 : i32
    %c0_i32_0 = arith.constant 0 : i32
    %c0_i32_1 = arith.constant 0 : i32
    return %c0_i32, %c0_i32_0 : i32, i32
  }
  func.func @transform_3(%arg0: i32) -> (i32, i32) {
    %c0_i32 = arith.constant 0 : i32
    %c0_i32_0 = arith.constant 0 : i32
    %c0_i32_1 = arith.constant 0 : i32
    return %c0_i32, %c0_i32_0 : i32, i32
  }
  func.func @transform_4(%arg0: i32) -> (i32, i32) {
    %c0_i32 = arith.constant 0 : i32
    %c0_i32_0 = arith.constant 0 : i32
    %c0_i32_1 = arith.constant 0 : i32
    return %c0_i32, %c0_i32_0 : i32, i32
  }
  func.func @transform_5(%arg0: i32) -> (i32, i32) {
    %c0_i32 = arith.constant 0 : i32
    %c0_i32_0 = arith.constant 0 : i32
    %c0_i32_1 = arith.constant 0 : i32
    return %c0_i32, %c0_i32_0 : i32, i32
  }
}

</mosaic_0001>

<bundles_post_ra>
// kernel: cnn_trad_fpool3_forward.3
= control target key start
LH: loop header
LB: loop body
LE: loop exit
PB: predicated region body
PF: predicated region fallthrough
CT: control target
= control target key end

     0   :  { %s2996_s15 = smov 0   ;;  %s4253_s0 = inlined_call_operand.vmem [shape: bf16[2112,160], index: 0, kind: input, shape index: {}]   ;;  %s4254_s1 = inlined_call_operand.vmem [shape: bf16[160,64], index: 1, kind: input, shape index: {}]   ;;  %s4255_s2 = inlined_call_operand.vmem [shape: f32[1,64], index: 2, kind: input, shape index: {}]   ;;  %s4256_s3 = inlined_call_operand.vmem [shape: f32[1,64], index: 3, kind: input, shape index: {}]   ;;  %s4257_s4 = inlined_call_operand.vmem [shape: f32[704,64], index: 4, kind: output, shape index: {}]  }
   0x1 LB: > { %s2502_s16 = sadd.s32 4294967295, %s2968_s15   ;;  %p2506_p0 = scmp.ge.s32.totalorder %s2968_s15, 1  ;;  %s2968_s15 = sphi %s2996_s15, %s14_s15  }
   0x2   : > { %p164_p1 = scmp.lt.s32.totalorder %s2968_s15, 3 }
   0x4   : > { %p165_p2 = pnand %p2506_p0, %p164_p1 }
   0x6   : > { %168 = sbr.rel (%p165_p2) target bundleno = 540 (0x21c), region = 36 }
   0xd   : > { %v2752_v0 = vld [vmem:[%s4254_s1] sm:$0xff]   ;;  %v2970_v1 = vmov 0   ;;  %s191_s19 = smul.u32 132, %s2502_s16  ;;  %v2753_v2 = vld [vmem:[%s4254_s1 + $0x8] sm:$0xff]   ;;  %v2754_v3 = vld [vmem:[%s4254_s1 + $0x10] sm:$0xff]   ;;  %vm1011_vm0 = vcmask 261120  }
   0xe   : > { %1210 = vmatprep.subr.bf16.mxu0 %v2970_v1  ;;  %2723 = vmatprep.subr.bf16.mxu1 %v2970_v1  ;;  %v2755_v4 = vld [vmem:[%s4254_s1 + $0x18] sm:$0xff]   ;;  %v2756_v7 = vld [vmem:[%s4254_s1 + $0x20] sm:$0xff]   ;;  %v2757_v8 = vld [vmem:[%s4254_s1 + $0x28] sm:$0xff]   ;;  %vm2181_vm1 = vcmask 523264   ;;  %s3705_s22 = smul.u32 44, %s2502_s16 }
   0xf   : > { %1211 = vmatpush1.bf16.msra.mxu0 %v2752_v0  ;;  %2733 = vmatpush1.bf16.msra.mxu1 %v2752_v0  ;;  %p192_p3 = scmp.lt.s32.totalorder %s191_s19, 263  ;;  %v2758_v9 = vld [vmem:[%s4254_s1 + $0x30] sm:$0xff]   ;;  %v2759_v10 = vld [vmem:[%s4254_s1 + $0x38] sm:$0xff]   ;;  %v2760_v11 = vld [vmem:[%s4254_s1 + $0x40] sm:$0xff]  }
  0x10   : > { %1212 = vmatprep.subr.bf16.mxu0 %v2970_v1  ;;  %2724 = vmatprep.subr.bf16.mxu1 %v2970_v1  ;;  %v2761_v12 = vld [vmem:[%s4254_s1 + $0x48] sm:$0xff]   ;;  %p199_p4 = scmp.lt.s32.totalorder %s3705_s22, 87 }
  0x11   : > { %s4401_s19 = smov (!%p192_p3, %s191_s19), 263 }
  0x12   : > { %s2722_s24 = sshll.u32 %s4401_s19, 3  ;;  %s4403_s22 = smov (!%p199_p4, %s3705_s22), 87 }
  0x13   : > { %1213 = vmatpush1.bf16.msra.mxu0 %v2753_v2  ;;  %2734 = vmatpush1.bf16.msra.mxu1 %v2753_v2  ;;  %s3018_s27 = scalar_lea.vmem %s4253_s0, %s2722_s24  ;;  %s2509_s16 = sshll.u32 %s4403_s22, 3 }
  0x14   : > { %1214 = vmatprep.subr.bf16.mxu0 %v2970_v1  ;;  %2725 = vmatprep.subr.bf16.mxu1 %v2970_v1  ;;  %v2764_v5 = vld [vmem:[%s3018_s27 + $0x4] ss:$8 sps:$4 sm:$0xff]   ;;  %v2767_v6 = vld [vmem:[%s3018_s27 + $0x214] ss:$8 sps:$4 sm:$0xff]   ;;  %v2762_v13 = vld [vmem:[%s3018_s27] ss:$8 sps:$4 sm:$0xff]   ;;  %s3803_s25 = scalar_lea.vmem %s4257_s4, %s2509_s16 }
  0x15   : > { %2652 = vmatprep.mubr.msk.bf16.mxu0 %vm1011_vm0, %v2764_v5  ;;  %2685 = vmatprep.mubr.msk.bf16.mxu1 %vm1011_vm0, %v2767_v6  ;;  %v2765_v14 = vld [vmem:[%s3018_s27 + $0x210] ss:$8 sps:$4 sm:$0xff]   ;;  %v2768_v15 = vld [vmem:[%s3018_s27 + $0x14] ss:$8 sps:$4 sm:$0xff]   ;;  %v2770_v16 = vld [vmem:[%s3018_s27 + $0x224] ss:$8 sps:$4 sm:$0xff]  }
  0x16   : > { %v2772_v17 = vld [vmem:[%s3018_s27 + $0x10] ss:$8 sps:$4 sm:$0xff]   ;;  %v2773_v18 = vld [vmem:[%s3018_s27 + $0x220] ss:$8 sps:$4 sm:$0xff]   ;;  %v2774_v19 = vld [vmem:[%s3018_s27 + $0x24] ss:$8 sps:$4 sm:$0xff]  }
  0x17   : > { %1215 = vmatpush1.bf16.msra.mxu0 %v2754_v3  ;;  %2735 = vmatpush1.bf16.msra.mxu1 %v2754_v3  ;;  %v2776_v20 = vld [vmem:[%s3018_s27 + $0x234] ss:$8 sps:$4 sm:$0xff]   ;;  %v2778_v21 = vld [vmem:[%s3018_s27 + $0x20] ss:$8 sps:$4 sm:$0xff]   ;;  %v2779_v22 = vld [vmem:[%s3018_s27 + $0x230] ss:$8 sps:$4 sm:$0xff]  }
  0x18   : > { %1216 = vmatprep.subr.bf16.mxu0 %v2970_v1  ;;  %2726 = vmatprep.subr.bf16.mxu1 %v2970_v1  ;;  %v2780_v23 = vld [vmem:[%s3018_s27 + $0x34] ss:$8 sps:$4 sm:$0xff]   ;;  %v2782_v24 = vld [vmem:[%s3018_s27 + $0x244] ss:$8 sps:$4 sm:$0xff]   ;;  %v2784_v25 = vld [vmem:[%s3018_s27 + $0x30] ss:$8 sps:$4 sm:$0xff]  }
  0x19   : > { %v2785_v26 = vld [vmem:[%s3018_s27 + $0x240] ss:$8 sps:$4 sm:$0xff]   ;;  %v2786_v27 = vld [vmem:[%s3018_s27 + $0x44] ss:$8 sps:$4 sm:$0xff]   ;;  %v2788_v28 = vld [vmem:[%s3018_s27 + $0x254] ss:$8 sps:$4 sm:$0xff]  }
  0x1a   : > { %v2790_v29 = vld [vmem:[%s3018_s27 + $0x40] ss:$8 sps:$4 sm:$0xff]   ;;  %v2791_v30 = vld [vmem:[%s3018_s27 + $0x250] ss:$8 sps:$4 sm:$0xff]   ;;  %v2792_v31 = vld [vmem:[%s3018_s27 + $0x54] ss:$8 sps:$4 sm:$0xff]  }
  0x1b   : > { %1217 = vmatpush1.bf16.msra.mxu0 %v2755_v4  ;;  %2736 = vmatpush1.bf16.msra.mxu1 %v2755_v4  ;;  %v2794_v32 = vld [vmem:[%s3018_s27 + $0x264] ss:$8 sps:$4 sm:$0xff]   ;;  %v2796_v33 = vld [vmem:[%s3018_s27 + $0x50] ss:$8 sps:$4 sm:$0xff]   ;;  %v2797_v34 = vld [vmem:[%s3018_s27 + $0x260] ss:$8 sps:$4 sm:$0xff]  }
  0x1c   : > { %1218 = vmatprep.subr.bf16.mxu0 %v2970_v1  ;;  %2727 = vmatprep.subr.bf16.mxu1 %v2970_v1  ;;  %v2798_v35 = vld [vmem:[%s3018_s27 + $0x64] ss:$8 sps:$4 sm:$0xff]   ;;  %v2800_v36 = vld [vmem:[%s3018_s27 + $0x274] ss:$8 sps:$4 sm:$0xff]   ;;  %v2802_v37 = vld [vmem:[%s3018_s27 + $0x60] ss:$8 sps:$4 sm:$0xff]  }
  0x1d   : > { %v2803_v38 = vld [vmem:[%s3018_s27 + $0x270] ss:$8 sps:$4 sm:$0xff]   ;;  %v2804_v39 = vld [vmem:[%s3018_s27 + $0x74] ss:$8 sps:$4 sm:$0xff]   ;;  %v2806_v40 = vld [vmem:[%s3018_s27 + $0x284] ss:$8 sps:$4 sm:$0xff]  }
  0x1e   : > { %v2808_v41 = vld [vmem:[%s3018_s27 + $0x70] ss:$8 sps:$4 sm:$0xff]   ;;  %v2809_v42 = vld [vmem:[%s3018_s27 + $0x280] ss:$8 sps:$4 sm:$0xff]   ;;  %v2810_v43 = vld [vmem:[%s3018_s27 + $0x84] ss:$8 sps:$4 sm:$0xff]  }
  0x1f   : > { %1219 = vmatpush1.bf16.msra.mxu0 %v2756_v7  ;;  %2737 = vmatpush1.bf16.msra.mxu1 %v2756_v7  ;;  %v2812_v44 = vld [vmem:[%s3018_s27 + $0x294] ss:$8 sps:$4 sm:$0xff]   ;;  %v2814_v45 = vld [vmem:[%s3018_s27 + $0x80] ss:$8 sps:$4 sm:$0xff]   ;;  %v2815_v46 = vld [vmem:[%s3018_s27 + $0x290] ss:$8 sps:$4 sm:$0xff]  }
  0x20   : > { %1220 = vmatprep.subr.bf16.mxu0 %v2970_v1  ;;  %2728 = vmatprep.subr.bf16.mxu1 %v2970_v1  ;;  %v2816_v47 = vld [vmem:[%s3018_s27 + $0x94] ss:$8 sps:$4 sm:$0xff]   ;;  %v2818_v48 = vld [vmem:[%s3018_s27 + $0x2a4] ss:$8 sps:$4 sm:$0xff]   ;;  %v2820_v49 = vld [vmem:[%s3018_s27 + $0x90] ss:$8 sps:$4 sm:$0xff]  }
  0x21   : > { %v2821_v50 = vld [vmem:[%s3018_s27 + $0x2a0] ss:$8 sps:$4 sm:$0xff]   ;;  %v2822_v51 = vld [vmem:[%s3018_s27 + $0xa4] ss:$8 sps:$4 sm:$0xff]   ;;  %v2824_v52 = vld [vmem:[%s3018_s27 + $0x2b4] ss:$8 sps:$4 sm:$0xff]  }
  0x22   : > { %v2826_v53 = vld [vmem:[%s3018_s27 + $0xa0] ss:$8 sps:$4 sm:$0xff]   ;;  %v2827_v54 = vld [vmem:[%s3018_s27 + $0x2b0] ss:$8 sps:$4 sm:$0xff]   ;;  %v2828_v55 = vld [vmem:[%s3018_s27 + $0xb4] ss:$8 sps:$4 sm:$0xff]  }
  0x23   : > { %1221 = vmatpush1.bf16.msra.mxu0 %v2757_v8  ;;  %2738 = vmatpush1.bf16.msra.mxu1 %v2757_v8  ;;  %v2830_v56 = vld [vmem:[%s3018_s27 + $0x2c4] ss:$8 sps:$4 sm:$0xff]   ;;  %v2832_v57 = vld [vmem:[%s3018_s27 + $0xb0] ss:$8 sps:$4 sm:$0xff]   ;;  %v2833_v58 = vld [vmem:[%s3018_s27 + $0x2c0] ss:$8 sps:$4 sm:$0xff]  }
  0x24   : > { %1222 = vmatprep.subr.bf16.mxu0 %v2970_v1  ;;  %2729 = vmatprep.subr.bf16.mxu1 %v2970_v1  ;;  %v2834_v59 = vld [vmem:[%s3018_s27 + $0xc4] ss:$8 sps:$4 sm:$0xff]   ;;  %v2836_v60 = vld [vmem:[%s3018_s27 + $0x2d4] ss:$8 sps:$4 sm:$0xff]   ;;  %v2838_v61 = vld [vmem:[%s3018_s27 + $0xc0] ss:$8 sps:$4 sm:$0xff]  }
  0x25   : > { %v2839_v62 = vld [vmem:[%s3018_s27 + $0x2d0] ss:$8 sps:$4 sm:$0xff]   ;;  %v2840_v63 = vld [vmem:[%s3018_s27 + $0xd4] ss:$8 sps:$4 sm:$0xff]   ;;  %v2842_v0 = vld [vmem:[%s3018_s27 + $0x2e4] ss:$8 sps:$4 sm:$0xff]  }
  0x26   : > { %v2845_v2 = vld [vmem:[%s3018_s27 + $0x2e0] ss:$8 sps:$4 sm:$0xff]   ;;  %v2846_v3 = vld [vmem:[%s3018_s27 + $0xe4] ss:$8 sps:$4 sm:$0xff]   ;;  %v2848_v4 = vld [vmem:[%s3018_s27 + $0x2f4] ss:$8 sps:$4 sm:$0xff]  }
  0x27   : > { %1223 = vmatpush1.bf16.msra.mxu0 %v2758_v9  ;;  %2739 = vmatpush1.bf16.msra.mxu1 %v2758_v9  ;;  %v2850_v5 = vld [vmem:[%s3018_s27 + $0xe0] ss:$8 sps:$4 sm:$0xff]   ;;  %v2851_v6 = vld [vmem:[%s3018_s27 + $0x2f0] ss:$8 sps:$4 sm:$0xff]   ;;  %v2852_v7 = vld [vmem:[%s3018_s27 + $0xf4] ss:$8 sps:$4 sm:$0xff]  }
  0x28   : > { %1224 = vmatprep.subr.bf16.mxu0 %v2970_v1  ;;  %2730 = vmatprep.subr.bf16.mxu1 %v2970_v1  ;;  %v2854_v8 = vld [vmem:[%s3018_s27 + $0x304] ss:$8 sps:$4 sm:$0xff]   ;;  %v2856_v9 = vld [vmem:[%s3018_s27 + $0xf0] ss:$8 sps:$4 sm:$0xff]  }
  0x2b   : > { %1225 = vmatpush1.bf16.msra.mxu0 %v2759_v10  ;;  %2740 = vmatpush1.bf16.msra.mxu1 %v2759_v10  ;;  %v2857_v10 = vld [vmem:[%s3018_s27 + $0x300] ss:$8 sps:$4 sm:$0xff]  }
  0x2c   : > { %1226 = vmatprep.subr.bf16.mxu0 %v2970_v1  ;;  %2731 = vmatprep.subr.bf16.mxu1 %v2970_v1 }
  0x2f   : > { %1227 = vmatpush1.bf16.msra.mxu0 %v2760_v11  ;;  %2741 = vmatpush1.bf16.msra.mxu1 %v2760_v11  ;;  %v2858_v11 = vld [vmem:[%s3018_s27 + $0x104] ss:$8 sps:$4 sm:$0xff]  }
  0x30   : > { %1228 = vmatprep.subr.bf16.mxu0 %v2970_v1  ;;  %2732 = vmatprep.subr.bf16.mxu1 %v2970_v1  ;;  %v2844_v1 = vld [vmem:[%s3018_s27 + $0xd0] ss:$8 sps:$4 sm:$0xff]  }
  0x33   : > { %1229 = vmatpush1.bf16.msra.mxu0 %v2761_v12  ;;  %2742 = vmatpush1.bf16.msra.mxu1 %v2761_v12  ;;  %v2860_v12 = vld [vmem:[%s3018_s27 + $0x314] ss:$8 sps:$4 sm:$0xff]  }
  0x36   : > { %1243 = vmatmul.mubr.bf16.vlgmr.msra.gmra.mrb[0].mxu0 %v2762_v13  ;;  %1507 = vmatmul.mubr.bf16.vlgmr.msra.gmra.mrb[0].mxu1 %v2765_v14  ;;  %v2862_v13 = vld [vmem:[%s3018_s27 + $0x100] ss:$8 sps:$4 sm:$0xff]   ;;  %v2863_v14 = vld [vmem:[%s3018_s27 + $0x310] ss:$8 sps:$4 sm:$0xff]  }
  0x37   : > { %2653 = vmatprep.mubr.msk.bf16.mxu0 %vm1011_vm0, %v2768_v15  ;;  %2686 = vmatprep.mubr.msk.bf16.mxu1 %vm1011_vm0, %v2770_v16  ;;  %v2864_v15 = vld [vmem:[%s3018_s27 + $0x114] ss:$8 sps:$4 sm:$0xff]   ;;  %v2866_v16 = vld [vmem:[%s3018_s27 + $0x324] ss:$8 sps:$4 sm:$0xff]  }
  0x3e   : > { %1251 = vmatmul.mubr.bf16.gmra.mrb[4].mxu0 %v2772_v17  ;;  %1515 = vmatmul.mubr.bf16.gmra.mrb[4].mxu1 %v2773_v18  ;;  %v2868_v17 = vld [vmem:[%s3018_s27 + $0x110] ss:$8 sps:$4 sm:$0xff]   ;;  %v2869_v18 = vld [vmem:[%s3018_s27 + $0x320] ss:$8 sps:$4 sm:$0xff]  }
  0x3f   : > { %2654 = vmatprep.mubr.msk.bf16.mxu0 %vm1011_vm0, %v2774_v19  ;;  %2687 = vmatprep.mubr.msk.bf16.mxu1 %vm1011_vm0, %v2776_v20  ;;  %v2870_v19 = vld [vmem:[%s3018_s27 + $0x124] ss:$8 sps:$4 sm:$0xff]   ;;  %v2872_v20 = vld [vmem:[%s3018_s27 + $0x334] ss:$8 sps:$4 sm:$0xff]  }
  0x46   : > { %1259 = vmatmul.mubr.bf16.gmra.mrb[8].mxu0 %v2778_v21  ;;  %1523 = vmatmul.mubr.bf16.gmra.mrb[8].mxu1 %v2779_v22  ;;  %v2874_v21 = vld [vmem:[%s3018_s27 + $0x120] ss:$8 sps:$4 sm:$0xff]   ;;  %v2875_v22 = vld [vmem:[%s3018_s27 + $0x330] ss:$8 sps:$4 sm:$0xff]  }
  0x47   : > { %2655 = vmatprep.mubr.msk.bf16.mxu0 %vm1011_vm0, %v2780_v23  ;;  %2688 = vmatprep.mubr.msk.bf16.mxu1 %vm1011_vm0, %v2782_v24  ;;  %v2876_v23 = vld [vmem:[%s3018_s27 + $0x134] ss:$8 sps:$4 sm:$0xff]   ;;  %v2878_v24 = vld [vmem:[%s3018_s27 + $0x344] ss:$8 sps:$4 sm:$0xff]  }
  0x4e   : > { %1267 = vmatmul.mubr.bf16.gmra.mrb[12].mxu0 %v2784_v25  ;;  %1531 = vmatmul.mubr.bf16.gmra.mrb[12].mxu1 %v2785_v26  ;;  %v2880_v25 = vld [vmem:[%s3018_s27 + $0x130] ss:$8 sps:$4 sm:$0xff]   ;;  %v2881_v26 = vld [vmem:[%s3018_s27 + $0x340] ss:$8 sps:$4 sm:$0xff]  }
  0x4f   : > { %2656 = vmatprep.mubr.msk.bf16.mxu0 %vm1011_vm0, %v2786_v27  ;;  %2689 = vmatprep.mubr.msk.bf16.mxu1 %vm1011_vm0, %v2788_v28  ;;  %v2882_v27 = vld [vmem:[%s3018_s27 + $0x144] ss:$8 sps:$4 sm:$0xff]   ;;  %v2884_v28 = vld [vmem:[%s3018_s27 + $0x354] ss:$8 sps:$4 sm:$0xff]  }
  0x56   : > { %1275 = vmatmul.mubr.bf16.gmra.mrb[16].mxu0 %v2790_v29  ;;  %1539 = vmatmul.mubr.bf16.gmra.mrb[16].mxu1 %v2791_v30  ;;  %v2886_v29 = vld [vmem:[%s3018_s27 + $0x140] ss:$8 sps:$4 sm:$0xff]   ;;  %v2887_v30 = vld [vmem:[%s3018_s27 + $0x350] ss:$8 sps:$4 sm:$0xff]  }
  0x57   : > { %2657 = vmatprep.mubr.msk.bf16.mxu0 %vm1011_vm0, %v2792_v31  ;;  %2690 = vmatprep.mubr.msk.bf16.mxu1 %vm1011_vm0, %v2794_v32  ;;  %v2888_v31 = vld [vmem:[%s3018_s27 + $0x154] ss:$8 sps:$4 sm:$0xff]   ;;  %v2890_v32 = vld [vmem:[%s3018_s27 + $0x364] ss:$8 sps:$4 sm:$0xff]  }
  0x5e   : > { %1283 = vmatmul.mubr.bf16.gmra.mrb[20].mxu0 %v2796_v33  ;;  %1547 = vmatmul.mubr.bf16.gmra.mrb[20].mxu1 %v2797_v34  ;;  %v2892_v33 = vld [vmem:[%s3018_s27 + $0x150] ss:$8 sps:$4 sm:$0xff]   ;;  %v2893_v34 = vld [vmem:[%s3018_s27 + $0x360] ss:$8 sps:$4 sm:$0xff]  }
  0x5f   : > { %2658 = vmatprep.mubr.msk.bf16.mxu0 %vm1011_vm0, %v2798_v35  ;;  %2691 = vmatprep.mubr.msk.bf16.mxu1 %vm1011_vm0, %v2800_v36  ;;  %v2894_v35 = vld [vmem:[%s3018_s27 + $0x164] ss:$8 sps:$4 sm:$0xff]   ;;  %v2896_v36 = vld [vmem:[%s3018_s27 + $0x374] ss:$8 sps:$4 sm:$0xff]  }
  0x66   : > { %1291 = vmatmul.mubr.bf16.gmra.mrb[24].mxu0 %v2802_v37  ;;  %1555 = vmatmul.mubr.bf16.gmra.mrb[24].mxu1 %v2803_v38  ;;  %v2898_v37 = vld [vmem:[%s3018_s27 + $0x160] ss:$8 sps:$4 sm:$0xff]   ;;  %v2899_v38 = vld [vmem:[%s3018_s27 + $0x370] ss:$8 sps:$4 sm:$0xff]  }
  0x67   : > { %2659 = vmatprep.mubr.msk.bf16.mxu0 %vm1011_vm0, %v2804_v39  ;;  %2692 = vmatprep.mubr.msk.bf16.mxu1 %vm1011_vm0, %v2806_v40  ;;  %v2900_v39 = vld [vmem:[%s3018_s27 + $0x174] ss:$8 sps:$4 sm:$0xff]   ;;  %v2902_v40 = vld [vmem:[%s3018_s27 + $0x384] ss:$8 sps:$4 sm:$0xff]  }
  0x6e   : > { %1299 = vmatmul.mubr.bf16.gmra.mrb[28].mxu0 %v2808_v41  ;;  %1563 = vmatmul.mubr.bf16.gmra.mrb[28].mxu1 %v2809_v42  ;;  %v2904_v41 = vld [vmem:[%s3018_s27 + $0x170] ss:$8 sps:$4 sm:$0xff]   ;;  %v2905_v42 = vld [vmem:[%s3018_s27 + $0x380] ss:$8 sps:$4 sm:$0xff]  }
  0x6f   : > { %2660 = vmatprep.mubr.msk.bf16.mxu0 %vm1011_vm0, %v2810_v43  ;;  %2693 = vmatprep.mubr.msk.bf16.mxu1 %vm1011_vm0, %v2812_v44  ;;  %v2906_v43 = vld [vmem:[%s3018_s27 + $0x184] ss:$8 sps:$4 sm:$0xff]   ;;  %v2908_v44 = vld [vmem:[%s3018_s27 + $0x394] ss:$8 sps:$4 sm:$0xff]  }
  0x76   : > { %1307 = vmatmul.mubr.bf16.gmra.mrb[32].mxu0 %v2814_v45  ;;  %1571 = vmatmul.mubr.bf16.gmra.mrb[32].mxu1 %v2815_v46  ;;  %v2910_v45 = vld [vmem:[%s3018_s27 + $0x180] ss:$8 sps:$4 sm:$0xff]   ;;  %v2911_v46 = vld [vmem:[%s3018_s27 + $0x390] ss:$8 sps:$4 sm:$0xff]  }
  0x77   : > { %2661 = vmatprep.mubr.msk.bf16.mxu0 %vm1011_vm0, %v2816_v47  ;;  %2694 = vmatprep.mubr.msk.bf16.mxu1 %vm1011_vm0, %v2818_v48  ;;  %v2912_v47 = vld [vmem:[%s3018_s27 + $0x194] ss:$8 sps:$4 sm:$0xff]   ;;  %v2914_v48 = vld [vmem:[%s3018_s27 + $0x3a4] ss:$8 sps:$4 sm:$0xff]  }
  0x7e   : > { %1315 = vmatmul.mubr.bf16.gmra.mrb[36].mxu0 %v2820_v49  ;;  %1579 = vmatmul.mubr.bf16.gmra.mrb[36].mxu1 %v2821_v50  ;;  %v2916_v49 = vld [vmem:[%s3018_s27 + $0x190] ss:$8 sps:$4 sm:$0xff]   ;;  %v2917_v50 = vld [vmem:[%s3018_s27 + $0x3a0] ss:$8 sps:$4 sm:$0xff]  }
  0x7f   : > { %2662 = vmatprep.mubr.msk.bf16.mxu0 %vm1011_vm0, %v2822_v51  ;;  %2695 = vmatprep.mubr.msk.bf16.mxu1 %vm1011_vm0, %v2824_v52  ;;  %v2918_v51 = vld [vmem:[%s3018_s27 + $0x1a4] ss:$8 sps:$4 sm:$0xff]   ;;  %v2920_v52 = vld [vmem:[%s3018_s27 + $0x3b4] ss:$8 sps:$4 sm:$0xff]  }
  0x86   : > { %1323 = vmatmul.mubr.bf16.gmra.mrb[40].mxu0 %v2826_v53  ;;  %1587 = vmatmul.mubr.bf16.gmra.mrb[40].mxu1 %v2827_v54  ;;  %v2922_v53 = vld [vmem:[%s3018_s27 + $0x1a0] ss:$8 sps:$4 sm:$0xff]   ;;  %v2923_v54 = vld [vmem:[%s3018_s27 + $0x3b0] ss:$8 sps:$4 sm:$0xff]  }
  0x87   : > { %2663 = vmatprep.mubr.msk.bf16.mxu0 %vm1011_vm0, %v2828_v55  ;;  %2696 = vmatprep.mubr.msk.bf16.mxu1 %vm1011_vm0, %v2830_v56  ;;  %v2924_v55 = vld [vmem:[%s3018_s27 + $0x1b4] ss:$8 sps:$4 sm:$0xff]   ;;  %v2926_v56 = vld [vmem:[%s3018_s27 + $0x3c4] ss:$8 sps:$4 sm:$0xff]  }
  0x8e   : > { %1331 = vmatmul.mubr.bf16.gmra.mrb[44].mxu0 %v2832_v57  ;;  %1595 = vmatmul.mubr.bf16.gmra.mrb[44].mxu1 %v2833_v58 }
  0x8f   : > { %2664 = vmatprep.mubr.msk.bf16.mxu0 %vm1011_vm0, %v2834_v59  ;;  %2697 = vmatprep.mubr.msk.bf16.mxu1 %vm1011_vm0, %v2836_v60 }
  0x96   : > { %1339 = vmatmul.mubr.bf16.gmra.mrb[48].mxu0 %v2838_v61  ;;  %1603 = vmatmul.mubr.bf16.gmra.mrb[48].mxu1 %v2839_v62  ;;  %v2928_v61 = vld [vmem:[%s3018_s27 + $0x1b0] ss:$8 sps:$4 sm:$0xff]   ;;  %v2929_v62 = vld [vmem:[%s3018_s27 + $0x3c0] ss:$8 sps:$4 sm:$0xff]  }
  0x97   : > { %2665 = vmatprep.mubr.msk.bf16.mxu0 %vm1011_vm0, %v2840_v63  ;;  %2698 = vmatprep.mubr.msk.bf16.mxu1 %vm1011_vm0, %v2842_v0 }
  0x9e   : > { %1347 = vmatmul.mubr.bf16.gmra.mrb[52].mxu0 %v2844_v1  ;;  %1611 = vmatmul.mubr.bf16.gmra.mrb[52].mxu1 %v2845_v2  ;;  %v2930_v1 = vld [vmem:[%s3018_s27 + $0x1c4] ss:$8 sps:$4 sm:$0xff]   ;;  %v2932_v2 = vld [vmem:[%s3018_s27 + $0x3d4] ss:$8 sps:$4 sm:$0xff]  }
  0x9f   : > { %2666 = vmatprep.mubr.msk.bf16.mxu0 %vm1011_vm0, %v2846_v3  ;;  %2699 = vmatprep.mubr.msk.bf16.mxu1 %vm1011_vm0, %v2848_v4 }
  0xa6   : > { %1355 = vmatmul.mubr.bf16.gmra.mrb[56].mxu0 %v2850_v5  ;;  %1619 = vmatmul.mubr.bf16.gmra.mrb[56].mxu1 %v2851_v6 }
  0xa7   : > { %2667 = vmatprep.mubr.msk.bf16.mxu0 %vm1011_vm0, %v2852_v7  ;;  %2700 = vmatprep.mubr.msk.bf16.mxu1 %vm1011_vm0, %v2854_v8 }
  0xae   : > { %1363 = vmatmul.mubr.bf16.gmra.mrb[60].mxu0 %v2856_v9  ;;  %1627 = vmatmul.mubr.bf16.gmra.mrb[60].mxu1 %v2857_v10  ;;  %v2934_v9 = vld [vmem:[%s3018_s27 + $0x1c0] ss:$8 sps:$4 sm:$0xff]   ;;  %v2935_v10 = vld [vmem:[%s3018_s27 + $0x3d0] ss:$8 sps:$4 sm:$0xff]  }
  0xaf   : > { %2668 = vmatprep.mubr.msk.bf16.mxu0 %vm1011_vm0, %v2858_v11  ;;  %2701 = vmatprep.mubr.msk.bf16.mxu1 %vm1011_vm0, %v2860_v12 }
  0xb6   : > { %1371 = vmatmul.mubr.bf16.gmra.mrb[64].mxu0 %v2862_v13  ;;  %1635 = vmatmul.mubr.bf16.gmra.mrb[64].mxu1 %v2863_v14  ;;  %v2936_v13 = vld [vmem:[%s3018_s27 + $0x1d4] ss:$8 sps:$4 sm:$0xff]   ;;  %v2938_v14 = vld [vmem:[%s3018_s27 + $0x3e4] ss:$8 sps:$4 sm:$0xff]  }
  0xb7   : > { %2669 = vmatprep.mubr.msk.bf16.mxu0 %vm1011_vm0, %v2864_v15  ;;  %2702 = vmatprep.mubr.msk.bf16.mxu1 %vm1011_vm0, %v2866_v16 }
  0xbe   : > { %1379 = vmatmul.mubr.bf16.gmra.mrb[68].mxu0 %v2868_v17  ;;  %1643 = vmatmul.mubr.bf16.gmra.mrb[68].mxu1 %v2869_v18 }
  0xbf   : > { %2670 = vmatprep.mubr.msk.bf16.mxu0 %vm1011_vm0, %v2870_v19  ;;  %2703 = vmatprep.mubr.msk.bf16.mxu1 %vm1011_vm0, %v2872_v20 }
  0xc6   : > { %1387 = vmatmul.mubr.bf16.gmra.mrb[72].mxu0 %v2874_v21  ;;  %1651 = vmatmul.mubr.bf16.gmra.mrb[72].mxu1 %v2875_v22  ;;  %v2940_v21 = vld [vmem:[%s3018_s27 + $0x1d0] ss:$8 sps:$4 sm:$0xff]   ;;  %v2941_v22 = vld [vmem:[%s3018_s27 + $0x3e0] ss:$8 sps:$4 sm:$0xff]  }
  0xc7   : > { %2671 = vmatprep.mubr.msk.bf16.mxu0 %vm1011_vm0, %v2876_v23  ;;  %2704 = vmatprep.mubr.msk.bf16.mxu1 %vm1011_vm0, %v2878_v24 }
  0xce   : > { %1395 = vmatmul.mubr.bf16.gmra.mrb[76].mxu0 %v2880_v25  ;;  %1659 = vmatmul.mubr.bf16.gmra.mrb[76].mxu1 %v2881_v26  ;;  %v2942_v25 = vld [vmem:[%s3018_s27 + $0x1e4] ss:$8 sps:$4 sm:$0xff]   ;;  %v2944_v26 = vld [vmem:[%s3018_s27 + $0x3f4] ss:$8 sps:$4 sm:$0xff]  }
  0xcf   : > { %2672 = vmatprep.mubr.msk.bf16.mxu0 %vm1011_vm0, %v2882_v27  ;;  %2705 = vmatprep.mubr.msk.bf16.mxu1 %vm1011_vm0, %v2884_v28 }
  0xd6   : > { %1403 = vmatmul.mubr.bf16.gmra.mrb[80].mxu0 %v2886_v29  ;;  %1667 = vmatmul.mubr.bf16.gmra.mrb[80].mxu1 %v2887_v30 }
  0xd7   : > { %2673 = vmatprep.mubr.msk.bf16.mxu0 %vm1011_vm0, %v2888_v31  ;;  %2706 = vmatprep.mubr.msk.bf16.mxu1 %vm1011_vm0, %v2890_v32 }
  0xde   : > { %1411 = vmatmul.mubr.bf16.gmra.mrb[84].mxu0 %v2892_v33  ;;  %1675 = vmatmul.mubr.bf16.gmra.mrb[84].mxu1 %v2893_v34  ;;  %v2946_v33 = vld [vmem:[%s3018_s27 + $0x1e0] ss:$8 sps:$4 sm:$0xff]   ;;  %v2947_v34 = vld [vmem:[%s3018_s27 + $0x3f0] ss:$8 sps:$4 sm:$0xff]  }
  0xdf   : > { %2674 = vmatprep.mubr.msk.bf16.mxu0 %vm1011_vm0, %v2894_v35  ;;  %2707 = vmatprep.mubr.msk.bf16.mxu1 %vm1011_vm0, %v2896_v36 }
  0xe6   : > { %1419 = vmatmul.mubr.bf16.gmra.mrb[88].mxu0 %v2898_v37  ;;  %1683 = vmatmul.mubr.bf16.gmra.mrb[88].mxu1 %v2899_v38  ;;  %v2948_v37 = vld [vmem:[%s3018_s27 + $0x1f4] ss:$8 sps:$4 sm:$0xff]   ;;  %v2950_v38 = vld [vmem:[%s3018_s27 + $0x404] ss:$8 sps:$4 sm:$0xff]  }
  0xe7   : > { %2675 = vmatprep.mubr.msk.bf16.mxu0 %vm1011_vm0, %v2900_v39  ;;  %2708 = vmatprep.mubr.msk.bf16.mxu1 %vm1011_vm0, %v2902_v40 }
  0xee   : > { %1427 = vmatmul.mubr.bf16.gmra.mrb[92].mxu0 %v2904_v41  ;;  %1691 = vmatmul.mubr.bf16.gmra.mrb[92].mxu1 %v2905_v42 }
  0xef   : > { %2676 = vmatprep.mubr.msk.bf16.mxu0 %vm1011_vm0, %v2906_v43  ;;  %2709 = vmatprep.mubr.msk.bf16.mxu1 %vm1011_vm0, %v2908_v44 }
  0xf6   : > { %1435 = vmatmul.mubr.bf16.gmra.mrb[96].mxu0 %v2910_v45  ;;  %1699 = vmatmul.mubr.bf16.gmra.mrb[96].mxu1 %v2911_v46  ;;  %v2952_v45 = vld [vmem:[%s3018_s27 + $0x1f0] ss:$8 sps:$4 sm:$0xff]   ;;  %v2953_v46 = vld [vmem:[%s3018_s27 + $0x400] ss:$8 sps:$4 sm:$0xff]  }
  0xf7   : > { %2677 = vmatprep.mubr.msk.bf16.mxu0 %vm1011_vm0, %v2912_v47  ;;  %2710 = vmatprep.mubr.msk.bf16.mxu1 %vm1011_vm0, %v2914_v48 }
  0xfe   : > { %1443 = vmatmul.mubr.bf16.gmra.mrb[100].mxu0 %v2916_v49  ;;  %1707 = vmatmul.mubr.bf16.gmra.mrb[100].mxu1 %v2917_v50  ;;  %v2954_v49 = vld [vmem:[%s3018_s27 + $0x204] ss:$8 sps:$4 sm:$0xff]   ;;  %v2956_v50 = vld [vmem:[%s3018_s27 + $0x414] ss:$8 sps:$4 sm:$0xff]  }
  0xff   : > { %2678 = vmatprep.mubr.msk.bf16.mxu0 %vm1011_vm0, %v2918_v51  ;;  %2711 = vmatprep.mubr.msk.bf16.mxu1 %vm1011_vm0, %v2920_v52 }
 0x106   : > { %1451 = vmatmul.mubr.bf16.gmra.mrb[104].mxu0 %v2922_v53  ;;  %1715 = vmatmul.mubr.bf16.gmra.mrb[104].mxu1 %v2923_v54 }
 0x107   : > { %2679 = vmatprep.mubr.msk.bf16.mxu0 %vm1011_vm0, %v2924_v55  ;;  %2712 = vmatprep.mubr.msk.bf16.mxu1 %vm1011_vm0, %v2926_v56 }
 0x109   : > { %v3207_v57 = vpop.f32.mrb[0].mxu0  ;;  %v3209_v58 = vpop.f32.mrb[0].mxu1 }
 0x10a   : > { %v1246_v59 = vpop.f32.mrb[1].mxu0  ;;  %v1510_v60 = vpop.f32.mrb[1].mxu1 }
 0x10b   : > { %v3213_v63 = vpop.f32.mrb[2].mxu0  ;;  %v3215_v0 = vpop.f32.mrb[2].mxu1  ;;  %v2958_v59 = vld [vmem:[%s3018_s27 + $0x200] ss:$8 sps:$4 sm:$0xff]   ;;  %v2959_v60 = vld [vmem:[%s3018_s27 + $0x410] ss:$8 sps:$4 sm:$0xff]  }
 0x10c   : > { %v1249_v3 = vpop.f32.mrb[3].mxu0  ;;  %v1513_v4 = vpop.f32.mrb[3].mxu1 }
 0x10e   : > { %1459 = vmatmul.mubr.bf16.gmra.mrb[108].mxu0 %v2928_v61  ;;  %1723 = vmatmul.mubr.bf16.gmra.mrb[108].mxu1 %v2929_v62 }
 0x10f   : > { %2680 = vmatprep.mubr.msk.bf16.mxu0 %vm1011_vm0, %v2930_v1  ;;  %2713 = vmatprep.mubr.msk.bf16.mxu1 %vm1011_vm0, %v2932_v2 }
 0x111   : > { %v3221_v5 = vpop.f32.mrb[4].mxu0  ;;  %v3223_v6 = vpop.f32.mrb[4].mxu1 }
 0x112   : > { %v1254_v7 = vpop.f32.mrb[5].mxu0  ;;  %v1518_v8 = vpop.f32.mrb[5].mxu1 }
 0x113   : > { %v3227_v11 = vpop.f32.mrb[6].mxu0  ;;  %v3229_v12 = vpop.f32.mrb[6].mxu1 }
 0x114   : > { %v1257_v15 = vpop.f32.mrb[7].mxu0  ;;  %v1521_v16 = vpop.f32.mrb[7].mxu1 }
 0x116   : > { %1467 = vmatmul.mubr.bf16.gmra.mrb[112].mxu0 %v2934_v9  ;;  %1731 = vmatmul.mubr.bf16.gmra.mrb[112].mxu1 %v2935_v10 }
 0x117   : > { %2681 = vmatprep.mubr.msk.bf16.mxu0 %vm1011_vm0, %v2936_v13  ;;  %2714 = vmatprep.mubr.msk.bf16.mxu1 %vm1011_vm0, %v2938_v14 }
 0x119   : > { %v3235_v17 = vpop.f32.mrb[8].mxu0  ;;  %v3237_v18 = vpop.f32.mrb[8].mxu1 }
 0x11a   : > { %v1262_v19 = vpop.f32.mrb[9].mxu0  ;;  %v1526_v20 = vpop.f32.mrb[9].mxu1 }
 0x11b   : > { %v3241_v23 = vpop.f32.mrb[10].mxu0  ;;  %v3243_v24 = vpop.f32.mrb[10].mxu1 }
 0x11c   : > { %v1265_v27 = vpop.f32.mrb[11].mxu0  ;;  %v1529_v28 = vpop.f32.mrb[11].mxu1 }
 0x11e   : > { %1475 = vmatmul.mubr.bf16.gmra.mrb[116].mxu0 %v2940_v21  ;;  %1739 = vmatmul.mubr.bf16.gmra.mrb[116].mxu1 %v2941_v22 }
 0x11f   : > { %2682 = vmatprep.mubr.msk.bf16.mxu0 %vm1011_vm0, %v2942_v25  ;;  %2715 = vmatprep.mubr.msk.bf16.mxu1 %vm1011_vm0, %v2944_v26 }
 0x121   : > { %v3249_v29 = vpop.f32.mrb[12].mxu0  ;;  %v3251_v30 = vpop.f32.mrb[12].mxu1 }
 0x122   : > { %v1270_v31 = vpop.f32.mrb[13].mxu0  ;;  %v1534_v32 = vpop.f32.mrb[13].mxu1 }
 0x123   : > { %v3255_v35 = vpop.f32.mrb[14].mxu0  ;;  %v3257_v36 = vpop.f32.mrb[14].mxu1 }
 0x124   : > { %v1273_v39 = vpop.f32.mrb[15].mxu0  ;;  %v1537_v40 = vpop.f32.mrb[15].mxu1 }
 0x126   : > { %1483 = vmatmul.mubr.bf16.gmra.mrb[120].mxu0 %v2946_v33  ;;  %1747 = vmatmul.mubr.bf16.gmra.mrb[120].mxu1 %v2947_v34 }
 0x127   : > { %2683 = vmatprep.mubr.msk.bf16.mxu0 %vm1011_vm0, %v2948_v37  ;;  %2716 = vmatprep.mubr.msk.bf16.mxu1 %vm1011_vm0, %v2950_v38 }
 0x129   : > { %v3263_v41 = vpop.f32.mrb[16].mxu0  ;;  %v3265_v42 = vpop.f32.mrb[16].mxu1 }
 0x12a   : > { %v1278_v43 = vpop.f32.mrb[17].mxu0  ;;  %v1542_v44 = vpop.f32.mrb[17].mxu1 }
 0x12b   : > { %v3269_v47 = vpop.f32.mrb[18].mxu0  ;;  %v3271_v48 = vpop.f32.mrb[18].mxu1 }
 0x12c   : > { %v1281_v51 = vpop.f32.mrb[19].mxu0  ;;  %v1545_v52 = vpop.f32.mrb[19].mxu1 }
 0x12e   : > { %1491 = vmatmul.mubr.bf16.gmra.mrb[124].mxu0 %v2952_v45  ;;  %1755 = vmatmul.mubr.bf16.gmra.mrb[124].mxu1 %v2953_v46 }
 0x12f   : > { %2684 = vmatprep.mubr.msk.bf16.mxu0 %vm1011_vm0, %v2954_v49  ;;  %2717 = vmatprep.mubr.msk.bf16.mxu1 %vm1011_vm0, %v2956_v50 }
 0x131   : > { %v3277_v53 = vpop.f32.mrb[20].mxu0  ;;  %v3279_v54 = vpop.f32.mrb[20].mxu1 }
 0x132   : > { %v1286_v55 = vpop.f32.mrb[21].mxu0  ;;  %v1550_v56 = vpop.f32.mrb[21].mxu1 }
 0x133   : > { %v3283_v61 = vpop.f32.mrb[22].mxu0  ;;  %v3285_v62 = vpop.f32.mrb[22].mxu1 }
 0x134   : > { %v1289_v1 = vpop.f32.mrb[23].mxu0  ;;  %v1553_v2 = vpop.f32.mrb[23].mxu1 }
 0x136   : > { %1499 = vmatmul.mubr.bf16.gmra.mrb[128].mxu0 %v2958_v59  ;;  %1763 = vmatmul.mubr.bf16.gmra.mrb[128].mxu1 %v2959_v60  ;;  %v3326_v59 = vld [vmem:[%s4255_s2] ss:$0 sm:$0xff] }
 0x137   : > { %v1844_v2 = vmul.f32 %v3326_v59, %v3209_v58 }
 0x139   : > { %v3287_v3 = vpop.f32.mrb[24].mxu0  ;;  %v3289_v4 = vpop.f32.mrb[24].mxu1 }
 0x13a   : > { %v1294_v7 = vpop.f32.mrb[25].mxu0  ;;  %v1558_v8 = vpop.f32.mrb[25].mxu1 }
 0x13b   : > { %v3291_v9 = vpop.f32.mrb[26].mxu0  ;;  %v3293_v10 = vpop.f32.mrb[26].mxu1 }
 0x13c   : > { %v1297_v13 = vpop.f32.mrb[27].mxu0  ;;  %v1561_v14 = vpop.f32.mrb[27].mxu1 }
 0x13d   : > { %v1845_v13 = vmul.f32 %v3326_v59, %v3215_v0  ;;  %v3339_v14 = vld [vmem:[%s4256_s3] ss:$0 sm:$0xff] }
 0x141   : > { %v3295_v15 = vpop.f32.mrb[28].mxu0  ;;  %v3297_v16 = vpop.f32.mrb[28].mxu1 }
 0x142   : > { %v1302_v19 = vpop.f32.mrb[29].mxu0  ;;  %v1566_v20 = vpop.f32.mrb[29].mxu1 }
 0x143   : > { %v3299_v21 = vpop.f32.mrb[30].mxu0  ;;  %v3301_v22 = vpop.f32.mrb[30].mxu1  ;;  %v1983_v19 = vadd.f32 %v3339_v14, %v1844_v2  ;;  %v1847_v2 = vmul.f32 %v3326_v59, %v3229_v12 }
 0x144   : > { %v1305_v25 = vpop.f32.mrb[31].mxu0  ;;  %v1569_v26 = vpop.f32.mrb[31].mxu1 }
 0x145   : > { %v1984_v26 = vadd.f32 %v3339_v14, %v1845_v13  ;;  %v2115_v0 = vmax.f32 %v1983_v19, 0.0 }
 0x147   : > { %v3356_v13 = vsel %vm2181_vm1, %v2115_v0, -inf }
 0x149   : > { %v3303_v27 = vpop.f32.mrb[32].mxu0  ;;  %v3305_v28 = vpop.f32.mrb[32].mxu1 }
 0x14a   : > { %v1310_v31 = vpop.f32.mrb[33].mxu0  ;;  %v1574_v32 = vpop.f32.mrb[33].mxu1 }
 0x14b   : > { %v3307_v33 = vpop.f32.mrb[34].mxu0  ;;  %v3309_v34 = vpop.f32.mrb[34].mxu1 }
 0x14c   : > { %4294 = vst [vmem:[#allocation2_spill] sm:$0xff] %v3307_v33  ;;  %v1313_v37 = vpop.f32.mrb[35].mxu0  ;;  %v1577_v38 = vpop.f32.mrb[35].mxu1 }
 0x151   : > { %v3311_v39 = vpop.f32.mrb[36].mxu0  ;;  %v3313_v40 = vpop.f32.mrb[36].mxu1 }
 0x152   : > { %4295 = vst [vmem:[#allocation3_spill] sm:$0xff] %v3311_v39  ;;  %v1318_v43 = vpop.f32.mrb[37].mxu0  ;;  %v1582_v44 = vpop.f32.mrb[37].mxu1 }
 0x153   : > { %v3315_v45 = vpop.f32.mrb[38].mxu0  ;;  %v3317_v46 = vpop.f32.mrb[38].mxu1  ;;  %v1846_v43 = vmul.f32 %v3326_v59, %v3223_v6 }
 0x154   : > { %4296 = vst [vmem:[#allocation4_spill] sm:$0xff] %v3315_v45  ;;  %v1321_v49 = vpop.f32.mrb[39].mxu0  ;;  %v1585_v50 = vpop.f32.mrb[39].mxu1 }
 0x155   : > { %v1985_v19 = vadd.f32 %v3339_v14, %v1846_v43 }
 0x159   : > { %v3319_v51 = vpop.f32.mrb[40].mxu0  ;;  %v3321_v52 = vpop.f32.mrb[40].mxu1 }
 0x15a   : > { %4297 = vst [vmem:[#allocation5_spill] sm:$0xff] %v3319_v51  ;;  %v1326_v55 = vpop.f32.mrb[41].mxu0  ;;  %v1590_v56 = vpop.f32.mrb[41].mxu1 }
 0x15b   : > { %v3328_v60 = vpop.f32.mrb[42].mxu0  ;;  %v3330_v1 = vpop.f32.mrb[42].mxu1  ;;  %v2116_v56 = vmax.f32 %v1984_v26, 0.0 }
 0x15c   : > { %4298 = vst [vmem:[#allocation6_spill] sm:$0xff] %v3328_v60  ;;  %v1329_v7 = vpop.f32.mrb[43].mxu0  ;;  %v1593_v8 = vpop.f32.mrb[43].mxu1 }
 0x15d   : > { %v3367_v12 = vsel %vm2181_vm1, %v2116_v56, -inf  ;;  %v1848_v56 = vmul.f32 %v3326_v59, %v3237_v18 }
 0x161   : > { %v1332_v20 = vpop.f32.mrb[44].mxu0  ;;  %v3342_v25 = vpop.f32.mrb[44].mxu1 }
 0x162   : > { %v1800_v31 = vmul.f32 %v3326_v59, %v1332_v20  ;;  %v1334_v58 = vpop.f32.mrb[45].mxu0  ;;  %v1598_v32 = vpop.f32.mrb[45].mxu1 }
 0x163   : > { %v1335_v37 = vpop.f32.mrb[46].mxu0  ;;  %v3346_v38 = vpop.f32.mrb[46].mxu1  ;;  %v1986_v32 = vadd.f32 %v3339_v14, %v1847_v2 }
 0x164   : > { %v1939_v44 = vadd.f32 %v3339_v14, %v1800_v31  ;;  %v1801_v49 = vmul.f32 %v3326_v59, %v1335_v37  ;;  %v1337_v50 = vpop.f32.mrb[47].mxu0  ;;  %v1601_v55 = vpop.f32.mrb[47].mxu1 }
 0x165   : > { %v2118_v60 = vmax.f32 %v1986_v32, 0.0 }
 0x166   : > { %v2071_v7 = vmax.f32 %v1939_v44, 0.0  ;;  %v1940_v8 = vadd.f32 %v3339_v14, %v1801_v49 }
 0x168   : > { %v3360_v6 = vsel %vm2181_vm1, %v2071_v7, -inf  ;;  %v2072_v20 = vmax.f32 %v1940_v8, 0.0  ;;  %v2117_v7 = vmax.f32 %v1985_v19, 0.0  ;;  %v1987_v19 = vadd.f32 %v3339_v14, %v1848_v56 }
 0x169   : > { %v1340_v26 = vpop.f32.mrb[48].mxu0  ;;  %v3364_v58 = vpop.f32.mrb[48].mxu1 }
 0x16a   : > { %v3371_v37 = vsel %vm2181_vm1, %v2072_v20, -inf  ;;  %v1802_v0 = vmul.f32 %v3326_v59, %v1340_v26  ;;  %v1342_v43 = vpop.f32.mrb[49].mxu0  ;;  %v1606_v44 = vpop.f32.mrb[49].mxu1  ;;  %v1849_v26 = vmul.f32 %v3326_v59, %v3243_v24  ;;  %v3386_v49 = vsel %vm2181_vm1, %v2117_v7, -inf }
 0x16b   : > { %v1343_v50 = vpop.f32.mrb[50].mxu0  ;;  %v3376_v55 = vpop.f32.mrb[50].mxu1  ;;  %v3397_v24 = vsel %vm2181_vm1, %v2118_v60, -inf  ;;  %v2119_v51 = vmax.f32 %v1987_v19, 0.0  ;;  %v1850_v60 = vmul.f32 %v3326_v59, %v3251_v30 }
 0x16c   : > { %v1941_v8 = vadd.f32 %v3339_v14, %v1802_v0  ;;  %v1803_v2 = vmul.f32 %v3326_v59, %v1343_v50  ;;  %v1345_v20 = vpop.f32.mrb[51].mxu0  ;;  %v1609_v31 = vpop.f32.mrb[51].mxu1  ;;  %4299 = vst [vmem:[#allocation7_spill] sm:$0xff] %v3397_v24 }
 0x16d   : > { %v1989_v19 = vadd.f32 %v3339_v14, %v1850_v60 }
 0x16e   : > { %v2073_v43 = vmax.f32 %v1941_v8, 0.0  ;;  %v1942_v44 = vadd.f32 %v3339_v14, %v1803_v2  ;;  %v1988_v8 = vadd.f32 %v3339_v14, %v1849_v26 }
 0x170   : > { %v3390_v18 = vsel %vm2181_vm1, %v2073_v43, -inf  ;;  %v2074_v0 = vmax.f32 %v1942_v44, 0.0  ;;  %v2120_v33 = vmax.f32 %v1988_v8, 0.0  ;;  %v3416_v43 = vsel %vm2181_vm1, %v2119_v51, -inf }
 0x171   : > { %v1348_v31 = vpop.f32.mrb[52].mxu0  ;;  %v3394_v32 = vpop.f32.mrb[52].mxu1  ;;  %4301 = vst [vmem:[#allocation9_spill] sm:$0xff] %v3416_v43  ;;  %v2121_v43 = vmax.f32 %v1989_v19, 0.0 }
 0x172   : > { %v3401_v7 = vsel %vm2181_vm1, %v2074_v0, -inf  ;;  %v1804_v56 = vmul.f32 %v3326_v59, %v1348_v31  ;;  %v1350_v2 = vpop.f32.mrb[53].mxu0  ;;  %v1614_v20 = vpop.f32.mrb[53].mxu1  ;;  %v1851_v31 = vmul.f32 %v3326_v59, %v3257_v36  ;;  %v3427_v36 = vsel %vm2181_vm1, %v2120_v33, -inf }
 0x173   : > { %4300 = vst [vmem:[#allocation8_spill] sm:$0xff] %v3401_v7  ;;  %v1351_v44 = vpop.f32.mrb[54].mxu0  ;;  %v3406_v50 = vpop.f32.mrb[54].mxu1  ;;  %4303 = vst [vmem:[#allocation11_spill] sm:$0xff] %v3427_v36  ;;  %v1852_v33 = vmul.f32 %v3326_v59, %v3265_v42 }
 0x174   : > { %v1943_v45 = vadd.f32 %v3339_v14, %v1804_v56  ;;  %v1805_v26 = vmul.f32 %v3326_v59, %v1351_v44  ;;  %v1353_v0 = vpop.f32.mrb[55].mxu0  ;;  %v1617_v39 = vpop.f32.mrb[55].mxu1 }
 0x175   : > { %v1991_v19 = vadd.f32 %v3339_v14, %v1852_v33 }
 0x176   : > { %v2075_v2 = vmax.f32 %v1943_v45, 0.0  ;;  %v1944_v20 = vadd.f32 %v3339_v14, %v1805_v26  ;;  %v1990_v45 = vadd.f32 %v3339_v14, %v1851_v31 }
 0x178   : > { %v3420_v30 = vsel %vm2181_vm1, %v2075_v2, -inf  ;;  %v2076_v56 = vmax.f32 %v1944_v20, 0.0  ;;  %v2122_v7 = vmax.f32 %v1990_v45, 0.0  ;;  %v3446_v2 = vsel %vm2181_vm1, %v2121_v43, -inf }
 0x179   : > { %4302 = vst [vmem:[#allocation10_spill] sm:$0xff] %v3420_v30  ;;  %v1356_v39 = vpop.f32.mrb[56].mxu0  ;;  %v3424_v8 = vpop.f32.mrb[56].mxu1  ;;  %4305 = vst [vmem:[#allocation13_spill] sm:$0xff] %v3446_v2  ;;  %v2123_v2 = vmax.f32 %v1991_v19, 0.0 }
 0x17a   : > { %v3431_v51 = vsel %vm2181_vm1, %v2076_v56, -inf  ;;  %v1806_v60 = vmul.f32 %v3326_v59, %v1356_v39  ;;  %v1358_v26 = vpop.f32.mrb[57].mxu0  ;;  %v1622_v0 = vpop.f32.mrb[57].mxu1  ;;  %v1853_v39 = vmul.f32 %v3326_v59, %v3271_v48  ;;  %v3457_v48 = vsel %vm2181_vm1, %v2122_v7, -inf }
 0x17b   : > { %4304 = vst [vmem:[#allocation12_spill] sm:$0xff] %v3431_v51  ;;  %v1359_v20 = vpop.f32.mrb[58].mxu0  ;;  %v3436_v44 = vpop.f32.mrb[58].mxu1  ;;  %4307 = vst [vmem:[#allocation15_spill] sm:$0xff] %v3457_v48  ;;  %v1854_v7 = vmul.f32 %v3326_v59, %v3279_v54 }
 0x17c   : > { %v1945_v30 = vadd.f32 %v3339_v14, %v1806_v60  ;;  %v1807_v31 = vmul.f32 %v3326_v59, %v1359_v20  ;;  %v1361_v56 = vpop.f32.mrb[59].mxu0  ;;  %v1625_v24 = vpop.f32.mrb[59].mxu1 }
 0x17d   : > { %v1993_v19 = vadd.f32 %v3339_v14, %v1854_v7 }
 0x17e   : > { %v2077_v26 = vmax.f32 %v1945_v30, 0.0  ;;  %v1946_v0 = vadd.f32 %v3339_v14, %v1807_v31  ;;  %v1992_v30 = vadd.f32 %v3339_v14, %v1853_v39 }
 0x180   : > { %v3450_v42 = vsel %vm2181_vm1, %v2077_v26, -inf  ;;  %v2078_v60 = vmax.f32 %v1946_v0, 0.0  ;;  %v2124_v51 = vmax.f32 %v1992_v30, 0.0  ;;  %v3476_v26 = vsel %vm2181_vm1, %v2123_v2, -inf }
 0x181   : > { %4306 = vst [vmem:[#allocation14_spill] sm:$0xff] %v3450_v42  ;;  %v1364_v24 = vpop.f32.mrb[60].mxu0  ;;  %v3454_v45 = vpop.f32.mrb[60].mxu1  ;;  %4309 = vst [vmem:[#allocation17_spill] sm:$0xff] %v3476_v26  ;;  %v2125_v26 = vmax.f32 %v1993_v19, 0.0 }
 0x182   : > { %v3461_v43 = vsel %vm2181_vm1, %v2078_v60, -inf  ;;  %v1808_v33 = vmul.f32 %v3326_v59, %v1364_v24  ;;  %v1366_v31 = vpop.f32.mrb[61].mxu0  ;;  %v1630_v56 = vpop.f32.mrb[61].mxu1  ;;  %v1855_v24 = vmul.f32 %v3326_v59, %v3285_v62  ;;  %v3487_v62 = vsel %vm2181_vm1, %v2124_v51, -inf }
 0x183   : > { %4308 = vst [vmem:[#allocation16_spill] sm:$0xff] %v3461_v43  ;;  %v1367_v0 = vpop.f32.mrb[62].mxu0  ;;  %v3466_v20 = vpop.f32.mrb[62].mxu1  ;;  %4311 = vst [vmem:[#allocation19_spill] sm:$0xff] %v3487_v62  ;;  %v1856_v51 = vmul.f32 %v3326_v59, %v3289_v4 }
 0x184   : > { %v1947_v42 = vadd.f32 %v3339_v14, %v1808_v33  ;;  %v1809_v39 = vmul.f32 %v3326_v59, %v1367_v0  ;;  %v1369_v60 = vpop.f32.mrb[63].mxu0  ;;  %v1633_v36 = vpop.f32.mrb[63].mxu1 }
 0x185   : > { %v1995_v19 = vadd.f32 %v3339_v14, %v1856_v51 }
 0x186   : > { %v2079_v31 = vmax.f32 %v1947_v42, 0.0  ;;  %v1948_v56 = vadd.f32 %v3339_v14, %v1809_v39  ;;  %v1994_v42 = vadd.f32 %v3339_v14, %v1855_v24 }
 0x188   : > { %v3480_v54 = vsel %vm2181_vm1, %v2079_v31, -inf  ;;  %v2080_v33 = vmax.f32 %v1948_v56, 0.0  ;;  %v2126_v43 = vmax.f32 %v1994_v42, 0.0  ;;  %v3506_v31 = vsel %vm2181_vm1, %v2125_v26, -inf }
 0x189   : > { %4310 = vst [vmem:[#allocation18_spill] sm:$0xff] %v3480_v54  ;;  %v1372_v36 = vpop.f32.mrb[64].mxu0  ;;  %v3484_v30 = vpop.f32.mrb[64].mxu1  ;;  %4312 = vst [vmem:[#allocation20_spill] sm:$0xff] %v3506_v31  ;;  %v2127_v31 = vmax.f32 %v1995_v19, 0.0  ;;  %v1779_v19 = vmul.f32 %v3326_v59, %v3213_v63  ;;  %v1783_v63 = vmul.f32 %v3326_v59, %v3241_v23 }
 0x18a   : > { %v3491_v2 = vsel %vm2181_vm1, %v2080_v33, -inf  ;;  %v1810_v7 = vmul.f32 %v3326_v59, %v1372_v36  ;;  %v1374_v39 = vpop.f32.mrb[65].mxu0  ;;  %v1638_v60 = vpop.f32.mrb[65].mxu1  ;;  %v1857_v36 = vmul.f32 %v3326_v59, %v3293_v10 }
 0x18b   : > { %v1375_v56 = vpop.f32.mrb[66].mxu0  ;;  %v3496_v0 = vpop.f32.mrb[66].mxu1 }
 0x18c   : > { %v1949_v54 = vadd.f32 %v3339_v14, %v1810_v7  ;;  %v1811_v24 = vmul.f32 %v3326_v59, %v1375_v56  ;;  %v1377_v33 = vpop.f32.mrb[67].mxu0  ;;  %v1641_v48 = vpop.f32.mrb[67].mxu1  ;;  %v1778_v56 = vmul.f32 %v3326_v59, %v3207_v57  ;;  %v1996_v26 = vadd.f32 %v3339_v14, %v1857_v36 }
 0x18e   : > { %v2081_v39 = vmax.f32 %v1949_v54, 0.0  ;;  %v1950_v60 = vadd.f32 %v3339_v14, %v1811_v24  ;;  %v3519_v54 = vsel %vm2181_vm1, %v2126_v43, -inf  ;;  %v1858_v43 = vmul.f32 %v3326_v59, %v3297_v16 }
 0x18f   : > { %4314 = vst [vmem:[#allocation22_spill] sm:$0xff] %v3519_v54  ;;  %v1780_v16 = vmul.f32 %v3326_v59, %v3221_v5 }
 0x190   : > { %v3510_v4 = vsel %vm2181_vm1, %v2081_v39, -inf  ;;  %v2082_v7 = vmax.f32 %v1950_v60, 0.0 }
 0x191   : > { %4313 = vst [vmem:[#allocation21_spill] sm:$0xff] %v3510_v4  ;;  %v1380_v42 = vpop.f32.mrb[68].mxu0  ;;  %v3516_v10 = vpop.f32.mrb[68].mxu1 }
 0x192   : > { %v3523_v51 = vsel %vm2181_vm1, %v2082_v7, -inf  ;;  %v1812_v24 = vmul.f32 %v3326_v59, %v1380_v42  ;;  %v1382_v33 = vpop.f32.mrb[69].mxu0  ;;  %v1646_v39 = vpop.f32.mrb[69].mxu1  ;;  %v1917_v42 = vadd.f32 %v3339_v14, %v1778_v56 }
 0x193   : > { %4315 = vst [vmem:[#allocation23_spill] sm:$0xff] %v3523_v51  ;;  %v1383_v60 = vpop.f32.mrb[70].mxu0  ;;  %v3528_v48 = vpop.f32.mrb[70].mxu1  ;;  %v2128_v33 = vmax.f32 %v1996_v26, 0.0  ;;  %v1859_v39 = vmul.f32 %v3326_v59, %v3301_v22  ;;  %v1781_v22 = vmul.f32 %v3326_v59, %v3227_v11 }
 0x194   : > { %v1951_v4 = vadd.f32 %v3339_v14, %v1812_v24  ;;  %v1813_v36 = vmul.f32 %v3326_v59, %v1383_v60  ;;  %v1385_v7 = vpop.f32.mrb[71].mxu0  ;;  %v1649_v62 = vpop.f32.mrb[71].mxu1  ;;  %v3543_v24 = vsel %vm2181_vm1, %v2127_v31, -inf  ;;  %v2049_v60 = vmax.f32 %v1917_v42, 0.0 }
 0x195   : > { %4316 = vst [vmem:[#allocation24_spill] sm:$0xff] %v3543_v24  ;;  %v1997_v62 = vadd.f32 %v3339_v14, %v1858_v43  ;;  %v3558_v31 = vsel %vm2181_vm1, %v2128_v33, -inf  ;;  %v1919_v42 = vadd.f32 %v3339_v14, %v1780_v16  ;;  %v1920_v23 = vadd.f32 %v3339_v14, %v1781_v22 }
 0x196   : > { %v2083_v57 = vmax.f32 %v1951_v4, 0.0  ;;  %v1952_v54 = vadd.f32 %v3339_v14, %v1813_v36  ;;  %v1782_v4 = vmul.f32 %v3326_v59, %v3235_v17  ;;  %4318 = vst [vmem:[#allocation26_spill] sm:$0xff] %v3558_v31  ;;  %v1918_v17 = vadd.f32 %v3339_v14, %v1779_v19 }
 0x197   : > { %v3578_v16 = vsel %vm2181_vm1, %v2049_v60, -inf }
 0x198   : > { %v3547_v56 = vsel %vm2181_vm1, %v2083_v57, -inf  ;;  %v2084_v26 = vmax.f32 %v1952_v54, 0.0  ;;  %v1998_v57 = vadd.f32 %v3339_v14, %v1859_v39  ;;  %v2129_v39 = vmax.f32 %v1997_v62, 0.0 }
 0x199   : > { %4317 = vst [vmem:[#allocation25_spill] sm:$0xff] %v3547_v56  ;;  %v1388_v5 = vpop.f32.mrb[72].mxu0  ;;  %v3555_v36 = vpop.f32.mrb[72].mxu1  ;;  %v1921_v33 = vadd.f32 %v3339_v14, %v1782_v4  ;;  %v1861_v62 = vmul.f32 %v3326_v59, %v3309_v34  ;;  %v2050_v51 = vmax.f32 %v1918_v17, 0.0  ;;  %v2052_v34 = vmax.f32 %v1920_v23, 0.0 }
 0x19a   : > { %v3562_v54 = vsel %vm2181_vm1, %v2084_v26, -inf  ;;  %v1814_v43 = vmul.f32 %v3326_v59, %v1388_v5  ;;  %v1390_v11 = vpop.f32.mrb[73].mxu0  ;;  %v1654_v7 = vpop.f32.mrb[73].mxu1  ;;  %v1860_v26 = vmul.f32 %v3326_v59, %v3305_v28  ;;  %v2130_v31 = vmax.f32 %v1998_v57, 0.0 }
 0x19b   : > { %4319 = vst [vmem:[#allocation27_spill] sm:$0xff] %v3562_v54  ;;  %v1391_v24 = vpop.f32.mrb[74].mxu0  ;;  %v3571_v56 = vpop.f32.mrb[74].mxu1  ;;  %v3589_v60 = vsel %vm2181_vm1, %v2129_v39, -inf  ;;  %v1785_v17 = vmul.f32 %v3326_v59, %v3255_v35  ;;  %v2000_v39 = vadd.f32 %v3339_v14, %v1861_v62  ;;  %v3610_v35 = vsel %vm2181_vm1, %v2050_v51, -inf }
 0x19c   : > { %v1953_v5 = vadd.f32 %v3339_v14, %v1814_v43  ;;  %v1815_v11 = vmul.f32 %v3326_v59, %v1391_v24  ;;  %v1393_v19 = vpop.f32.mrb[75].mxu0  ;;  %v1657_v7 = vpop.f32.mrb[75].mxu1  ;;  %v2051_v43 = vmax.f32 %v1919_v42, 0.0  ;;  %v1922_v24 = vadd.f32 %v3339_v14, %v1783_v63  ;;  %4320 = vst [vmem:[#allocation28_spill] sm:$0xff] %v3589_v60 }
 0x19d   : > { %v1784_v19 = vmul.f32 %v3326_v59, %v3249_v29  ;;  %v1999_v22 = vadd.f32 %v3339_v14, %v1860_v26  ;;  %v3602_v29 = vsel %vm2181_vm1, %v2130_v31, -inf }
 0x19e   : > { %v2085_v54 = vmax.f32 %v1953_v5, 0.0  ;;  %v1954_v28 = vadd.f32 %v3339_v14, %v1815_v11  ;;  %v2053_v5 = vmax.f32 %v1921_v33, 0.0  ;;  %4321 = vst [vmem:[#allocation29_spill] sm:$0xff] %v3602_v29  ;;  %v2054_v23 = vmax.f32 %v1922_v24, 0.0 }
 0x19f   : > { %v2131_v62 = vmax.f32 %v1999_v22, 0.0  ;;  %v3622_v24 = vsel %vm2181_vm1, %v2051_v43, -inf  ;;  %v1924_v22 = vadd.f32 %v3339_v14, %v1785_v17  ;;  %v2132_v29 = vmax.f32 %v2000_v39, 0.0 }
 0x1a0   : > { %v3593_v4 = vsel %vm2181_vm1, %v2085_v54, -inf  ;;  %v2086_v57 = vmax.f32 %v1954_v28, 0.0  ;;  %v1923_v28 = vadd.f32 %v3339_v14, %v1784_v19  ;;  %v3625_v19 = vsel %vm2181_vm1, %v2052_v34, -inf }
 0x1a1   : > { %v1396_v42 = vpop.f32.mrb[76].mxu0  ;;  %v3599_v11 = vpop.f32.mrb[76].mxu1  ;;  %v3628_v63 = vsel %vm2181_vm1, %v2053_v5, -inf  ;;  %v1786_v34 = vmul.f32 %v3326_v59, %v3263_v41  ;;  %v1787_v5 = vmul.f32 %v3326_v59, %v3269_v47  ;;  %v1790_v41 = vmul.f32 %v3326_v59, %v3287_v3 }
 0x1a2   : > { %v3606_v54 = vsel %vm2181_vm1, %v2086_v57, -inf  ;;  %v1816_v26 = vmul.f32 %v3326_v59, %v1396_v42  ;;  %v1398_v33 = vpop.f32.mrb[77].mxu0  ;;  %v1662_v7 = vpop.f32.mrb[77].mxu1  ;;  %v1862_v57 = vmul.f32 %v3326_v59, %v3313_v40  ;;  %v1863_v40 = vmul.f32 %v3326_v59, %v3317_v46 }
 0x1a3   : > { %4322 = vst [vmem:[#allocation30_spill] sm:$0xff] %v3606_v54  ;;  %v1399_v31 = vpop.f32.mrb[78].mxu0  ;;  %v3615_v60 = vpop.f32.mrb[78].mxu1  ;;  %v2055_v43 = vmax.f32 %v1923_v28, 0.0  ;;  %v1789_v28 = vmul.f32 %v3326_v59, %v3283_v61  ;;  %v1925_v61 = vadd.f32 %v3339_v14, %v1786_v34  ;;  %v1926_v54 = vadd.f32 %v3339_v14, %v1787_v5 }
 0x1a4   : > { %v1955_v42 = vadd.f32 %v3339_v14, %v1816_v26  ;;  %v1817_v33 = vmul.f32 %v3326_v59, %v1399_v31  ;;  %v1401_v7 = vpop.f32.mrb[79].mxu0  ;;  %v1665_v51 = vpop.f32.mrb[79].mxu1  ;;  %v2001_v17 = vadd.f32 %v3339_v14, %v1862_v57  ;;  %v2002_v57 = vadd.f32 %v3339_v14, %v1863_v40 }
 0x1a5   : > { %v3635_v7 = vsel %vm2181_vm1, %v2054_v23, -inf  ;;  %v3642_v51 = vsel %vm2181_vm1, %v2131_v62, -inf  ;;  %v1788_v23 = vmul.f32 %v3326_v59, %v3277_v53  ;;  %v3657_v62 = vsel %vm2181_vm1, %v2132_v29, -inf }
 0x1a6   : > { %v2087_v26 = vmax.f32 %v1955_v42, 0.0  ;;  %v1956_v31 = vadd.f32 %v3339_v14, %v1817_v33  ;;  %4323 = vst [vmem:[#allocation31_spill] sm:$0xff] %v3642_v51  ;;  %v2056_v42 = vmax.f32 %v1924_v22, 0.0  ;;  %4325 = vst [vmem:[#allocation33_spill] sm:$0xff] %v3657_v62  ;;  %v2133_v40 = vmax.f32 %v2001_v17, 0.0 }
 0x1a7   : > { %v3677_v5 = vsel %vm2181_vm1, %v2055_v43, -inf  ;;  %v1927_v29 = vadd.f32 %v3339_v14, %v1788_v23  ;;  %v1928_v62 = vadd.f32 %v3339_v14, %v1789_v28  ;;  %v2134_v17 = vmax.f32 %v2002_v57, 0.0 }
 0x1a8   : > { %v3646_v46 = vsel %vm2181_vm1, %v2087_v26, -inf  ;;  %v2088_v39 = vmax.f32 %v1956_v31, 0.0  ;;  %v3680_v3 = vsel %vm2181_vm1, %v2056_v42, -inf  ;;  %v1929_v43 = vadd.f32 %v3339_v14, %v1790_v41 }
 0x1a9   : > { %4324 = vst [vmem:[#allocation32_spill] sm:$0xff] %v3646_v46  ;;  %v1404_v47 = vpop.f32.mrb[80].mxu0  ;;  %v3654_v33 = vpop.f32.mrb[80].mxu1  ;;  %v1791_v42 = vmul.f32 %v3326_v59, %v3291_v9  ;;  %v2059_v57 = vmax.f32 %v1927_v29, 0.0  ;;  %v3708_v9 = vsel %vm2181_vm1, %v2134_v17, -inf }
 0x1aa   : > { %v3661_v26 = vsel %vm2181_vm1, %v2088_v39, -inf  ;;  %v1818_v22 = vmul.f32 %v3326_v59, %v1404_v47  ;;  %v1406_v53 = vpop.f32.mrb[81].mxu0  ;;  %v1670_v31 = vpop.f32.mrb[81].mxu1  ;;  %v1864_v39 = vmul.f32 %v3326_v59, %v3321_v52  ;;  %v1865_v52 = vmul.f32 %v3326_v59, %v3330_v1  ;;  %4329 = vst [vmem:[#allocation37_spill] sm:$0xff] %v3708_v9 }
 0x1ab   : > { %4326 = vst [vmem:[#allocation34_spill] sm:$0xff] %v3661_v26  ;;  %v1407_v51 = vpop.f32.mrb[82].mxu0  ;;  %v3670_v46 = vpop.f32.mrb[82].mxu1  ;;  %v3733_v17 = vsel %vm2181_vm1, %v2059_v57, -inf }
 0x1ac   : > { %v1957_v47 = vadd.f32 %v3339_v14, %v1818_v22  ;;  %v1819_v53 = vmul.f32 %v3326_v59, %v1407_v51  ;;  %v1409_v34 = vpop.f32.mrb[83].mxu0  ;;  %v1673_v31 = vpop.f32.mrb[83].mxu1  ;;  %v2057_v22 = vmax.f32 %v1925_v61, 0.0  ;;  %v2003_v23 = vadd.f32 %v3339_v14, %v1864_v39 }
 0x1ad   : > { %v2058_v34 = vmax.f32 %v1926_v54, 0.0  ;;  %v3691_v31 = vsel %vm2181_vm1, %v2133_v40, -inf  ;;  %v1792_v61 = vmul.f32 %v3326_v59, %v3295_v15  ;;  %v2061_v39 = vmax.f32 %v1929_v43, 0.0 }
 0x1ae   : > { %v2089_v26 = vmax.f32 %v1957_v47, 0.0  ;;  %v1958_v51 = vadd.f32 %v3339_v14, %v1819_v53  ;;  %4327 = vst [vmem:[#allocation35_spill] sm:$0xff] %v3691_v31  ;;  %v2060_v47 = vmax.f32 %v1928_v62, 0.0  ;;  %v1867_v54 = vmul.f32 %v3326_v59, %v3346_v38 }
 0x1af   : > { %v3730_v38 = vsel %vm2181_vm1, %v2058_v34, -inf  ;;  %v1931_v9 = vadd.f32 %v3339_v14, %v1792_v61  ;;  %v1868_v61 = vmul.f32 %v3326_v59, %v3364_v58 }
 0x1b0   : > { %v3695_v28 = vsel %vm2181_vm1, %v2089_v26, -inf  ;;  %v2090_v1 = vmax.f32 %v1958_v51, 0.0  ;;  %v2004_v26 = vadd.f32 %v3339_v14, %v1865_v52  ;;  %v1866_v51 = vmul.f32 %v3326_v59, %v3342_v25 }
 0x1b1   : > { %4328 = vst [vmem:[#allocation36_spill] sm:$0xff] %v3695_v28  ;;  %v1412_v41 = vpop.f32.mrb[84].mxu0  ;;  %v3701_v53 = vpop.f32.mrb[84].mxu1  ;;  %v2135_v28 = vmax.f32 %v2003_v23, 0.0  ;;  %v3727_v25 = vsel %vm2181_vm1, %v2057_v22, -inf  ;;  %v3742_v22 = vsel %vm2181_vm1, %v2061_v39, -inf  ;;  %v2006_v57 = vadd.f32 %v3339_v14, %v1867_v54 }
 0x1b2   : > { %v3712_v29 = vsel %vm2181_vm1, %v2090_v1, -inf  ;;  %v1820_v62 = vmul.f32 %v3326_v59, %v1412_v41  ;;  %v1414_v15 = vpop.f32.mrb[85].mxu0  ;;  %v1678_v40 = vpop.f32.mrb[85].mxu1  ;;  %v1930_v1 = vadd.f32 %v3339_v14, %v1791_v42  ;;  %v3738_v42 = vsel %vm2181_vm1, %v2060_v47, -inf }
 0x1b3   : > { %4330 = vst [vmem:[#allocation38_spill] sm:$0xff] %v3712_v29  ;;  %v1415_v31 = vpop.f32.mrb[86].mxu0  ;;  %v3721_v52 = vpop.f32.mrb[86].mxu1  ;;  %v2005_v34 = vadd.f32 %v3339_v14, %v1866_v51  ;;  %v3749_v47 = vsel %vm2181_vm1, %v2135_v28, -inf  ;;  %v1793_v39 = vmul.f32 %v3326_v59, %v3299_v21  ;;  %v1869_v51 = vmul.f32 %v3326_v59, %v3376_v55 }
 0x1b4   : > { %4331 = vst [vmem:[#allocation39_spill] sm:$0xff] %v3721_v52  ;;  %v1959_v41 = vadd.f32 %v3339_v14, %v1820_v62  ;;  %v1821_v43 = vmul.f32 %v3326_v59, %v1415_v31  ;;  %v1417_v15 = vpop.f32.mrb[87].mxu0  ;;  %v1681_v40 = vpop.f32.mrb[87].mxu1  ;;  %v2136_v31 = vmax.f32 %v2004_v26, 0.0  ;;  %4332 = vst [vmem:[#allocation40_spill] sm:$0xff] %v3749_v47  ;;  %v2138_v54 = vmax.f32 %v2006_v57, 0.0 }
 0x1b5   : > { %v2062_v15 = vmax.f32 %v1930_v1, 0.0  ;;  %v3774_v47 = vadd.f32 %v3339_v14, %v1868_v61 }
 0x1b6   : > { %v2091_v23 = vmax.f32 %v1959_v41, 0.0  ;;  %v1960_v62 = vadd.f32 %v3339_v14, %v1821_v43  ;;  %v2063_v41 = vmax.f32 %v1931_v9, 0.0  ;;  %v3766_v1 = vsel %vm2181_vm1, %v2136_v31, -inf }
 0x1b7   : > { %4334 = vst [vmem:[#allocation42_spill] sm:$0xff] %v3766_v1  ;;  %v3783_v57 = vsel %vm2181_vm1, %v2062_v15, -inf  ;;  %v2190_v15 = vsel %vm2181_vm1, %v2138_v54, -inf  ;;  %v1871_v54 = vmul.f32 %v3326_v59, %v3406_v50 }
 0x1b8   : > { %v3752_v40 = vsel %vm2181_vm1, %v2091_v23, -inf  ;;  %v2092_v26 = vmax.f32 %v1960_v62, 0.0  ;;  %v2137_v62 = vmax.f32 %v2005_v34, 0.0  ;;  %v3786_v61 = vsel %vm2181_vm1, %v2063_v41, -inf }
 0x1b9   : > { %4333 = vst [vmem:[#allocation41_spill] sm:$0xff] %v3752_v40  ;;  %v1420_v58 = vpop.f32.mrb[88].mxu0  ;;  %v1684_v28 = vpop.f32.mrb[88].mxu1  ;;  %v2008_v40 = vadd.f32 %v3339_v14, %v1869_v51  ;;  %v1870_v41 = vmul.f32 %v3326_v59, %v3394_v32  ;;  %v4336_v32 = vmax.f32 %v3360_v6, %v3356_v13  ;;  %v4337_v6 = vmax.f32 %v3371_v37, %v3367_v12 }
 0x1ba   : > { %v3769_v43 = vsel %vm2181_vm1, %v2092_v26, -inf  ;;  %v1822_v9 = vmul.f32 %v3326_v59, %v1420_v58  ;;  %v1888_v21 = vmul.f32 %v3326_v59, %v1684_v28  ;;  %v1422_v23 = vpop.f32.mrb[89].mxu0  ;;  %v1686_v55 = vpop.f32.mrb[89].mxu1  ;;  %v2010_v12 = vadd.f32 %v3339_v14, %v1871_v54 }
 0x1bb   : > { %4335 = vst [vmem:[#allocation43_spill] sm:$0xff] %v3769_v43  ;;  %v1423_v31 = vpop.f32.mrb[90].mxu0  ;;  %v1687_v29 = vpop.f32.mrb[90].mxu1  ;;  %v3789_v55 = vadd.f32 %v3339_v14, %v1793_v39  ;;  %v3818_v50 = vadd.f32 %v3339_v14, %v1870_v41 }
 0x1bc   : > { %v1961_v26 = vadd.f32 %v3339_v14, %v1822_v9  ;;  %v2027_v52 = vadd.f32 %v3339_v14, %v1888_v21  ;;  %v1823_v58 = vmul.f32 %v3326_v59, %v1423_v31  ;;  %v1889_v28 = vmul.f32 %v3326_v59, %v1687_v29  ;;  %v1425_v23 = vpop.f32.mrb[91].mxu0  ;;  %v1689_v34 = vpop.f32.mrb[91].mxu1 }
 0x1bd   : > { %v2185_v23 = vsel %vm2181_vm1, %v2137_v62, -inf  ;;  %v2139_v34 = vmax.f32 %v3774_v47, 0.0  ;;  %v2140_v62 = vmax.f32 %v2008_v40, 0.0 }
 0x1be   : > { %v2093_v9 = vmax.f32 %v1961_v26, 0.0  ;;  %v2159_v21 = vmax.f32 %v2027_v52, 0.0  ;;  %v1962_v31 = vadd.f32 %v3339_v14, %v1823_v58  ;;  %v2028_v29 = vadd.f32 %v3339_v14, %v1889_v28 }
 0x1c0   : > { %v2183_v52 = vsel %vm2181_vm1, %v2093_v9, -inf  ;;  %v2295_v39 = vsel %vm2181_vm1, %v2159_v21, -inf  ;;  %v2094_v51 = vmax.f32 %v1962_v31, 0.0  ;;  %v2160_v26 = vmax.f32 %v2028_v29, 0.0 }
 0x1c1   : > { %v2184_v47 = vmax.f32 %v3578_v16, %v2183_v52  ;;  %v2296_v58 = vmax.f32 %v4336_v32, %v2295_v39  ;;  %v1428_v28 = vpop.f32.mrb[92].mxu0  ;;  %v1692_v1 = vpop.f32.mrb[92].mxu1 }
 0x1c2   : > { %v2188_v43 = vsel %vm2181_vm1, %v2094_v51, -inf  ;;  %v2300_v9 = vsel %vm2181_vm1, %v2160_v26, -inf  ;;  %v1824_v21 = vmul.f32 %v3326_v59, %v1428_v28  ;;  %v1890_v31 = vmul.f32 %v3326_v59, %v1692_v1  ;;  %v1430_v40 = vpop.f32.mrb[93].mxu0  ;;  %v1694_v29 = vpop.f32.mrb[93].mxu1 }
 0x1c3   : > { %v2186_v16 = vmax.f32 %v2184_v47, %v2185_v23  ;;  %2424 = vst.msk [vmem:[%s3803_s25 + $0xb0] sm:$0xff] %vm2181_vm1, %v2296_v58  ;;  %v2189_v13 = vmax.f32 %v3610_v35, %v2188_v43  ;;  %v2301_v52 = vmax.f32 %v4337_v6, %v2300_v9  ;;  %v1431_v39 = vpop.f32.mrb[94].mxu0  ;;  %v1695_v51 = vpop.f32.mrb[94].mxu1  ;;  %v2064_v58 = vmax.f32 %v3789_v55, 0.0 }
 0x1c4   : > { %v1963_v1 = vadd.f32 %v3339_v14, %v1824_v21  ;;  %v2029_v26 = vadd.f32 %v3339_v14, %v1890_v31  ;;  %v1825_v41 = vmul.f32 %v3326_v59, %v1431_v39  ;;  %v1891_v32 = vmul.f32 %v3326_v59, %v1695_v51  ;;  %v1433_v23 = vpop.f32.mrb[95].mxu0  ;;  %v1697_v47 = vpop.f32.mrb[95].mxu1 }
 0x1c5   : > { %v1794_v35 = vmul.f32 %v3326_v59, %v3303_v27  ;;  %2402 = vst.msk [vmem:[%s3803_s25] sm:$0xff] %vm2181_vm1, %v2186_v16  ;;  %v2191_v37 = vmax.f32 %v2189_v13, %v2190_v15  ;;  %2425 = vst.msk [vmem:[%s3803_s25 + $0xb8] sm:$0xff] %vm2181_vm1, %v2301_v52  ;;  %v2195_v31 = vsel %vm2181_vm1, %v2139_v34, -inf  ;;  %v2200_v55 = vsel %vm2181_vm1, %v2140_v62, -inf  ;;  %v4340_v23 = vld [vmem:[#allocation7_spill] sm:$0xff] }
 0x1c6   : > { %v2095_v43 = vmax.f32 %v1963_v1, 0.0  ;;  %v2161_v28 = vmax.f32 %v2029_v26, 0.0  ;;  %v1964_v9 = vadd.f32 %v3339_v14, %v1825_v41  ;;  %v2030_v21 = vadd.f32 %v3339_v14, %v1891_v32 }
 0x1c7   : > { %v2141_v40 = vmax.f32 %v3818_v50, 0.0  ;;  %v1872_v27 = vmul.f32 %v3326_v59, %v3424_v8  ;;  %2403 = vst.msk [vmem:[%s3803_s25 + $0x8] sm:$0xff] %vm2181_vm1, %v2191_v37  ;;  %v2142_v13 = vmax.f32 %v2010_v12, 0.0  ;;  %v1873_v34 = vmul.f32 %v3326_v59, %v3436_v44 }
 0x1c8   : > { %v2193_v15 = vsel %vm2181_vm1, %v2095_v43, -inf  ;;  %v2305_v54 = vsel %vm2181_vm1, %v2161_v28, -inf  ;;  %v2096_v29 = vmax.f32 %v1964_v9, 0.0  ;;  %v2162_v16 = vmax.f32 %v2030_v21, 0.0 }
 0x1c9   : > { %v2194_v62 = vmax.f32 %v3622_v24, %v2193_v15  ;;  %v4338_v50 = vmax.f32 %v3390_v18, %v3386_v49  ;;  %v1436_v8 = vpop.f32.mrb[96].mxu0  ;;  %v1700_v52 = vpop.f32.mrb[96].mxu1  ;;  %v3860_v44 = vadd.f32 %v3339_v14, %v1872_v27  ;;  %v4339_v18 = vld [vmem:[#allocation8_spill] sm:$0xff] }
 0x1ca   : > { %v2198_v39 = vsel %vm2181_vm1, %v2096_v29, -inf  ;;  %v2310_v51 = vsel %vm2181_vm1, %v2162_v16, -inf  ;;  %v1826_v1 = vmul.f32 %v3326_v59, %v1436_v8  ;;  %v1892_v26 = vmul.f32 %v3326_v59, %v1700_v52  ;;  %v1438_v41 = vpop.f32.mrb[97].mxu0  ;;  %v1702_v32 = vpop.f32.mrb[97].mxu1 }
 0x1cb   : > { %v2306_v6 = vmax.f32 %v4338_v50, %v2305_v54  ;;  %v2196_v24 = vmax.f32 %v2194_v62, %v2195_v31  ;;  %v2199_v49 = vmax.f32 %v3625_v19, %v2198_v39  ;;  %v4341_v47 = vmax.f32 %v4339_v18, %v4340_v23  ;;  %v1439_v37 = vpop.f32.mrb[98].mxu0  ;;  %v1703_v43 = vpop.f32.mrb[98].mxu1  ;;  %v4342_v41 = vld [vmem:[#allocation10_spill] sm:$0xff]  ;;  %v4343_v32 = vld [vmem:[#allocation9_spill] sm:$0xff] }
 0x1cc   : > { %v1965_v28 = vadd.f32 %v3339_v14, %v1826_v1  ;;  %v2031_v9 = vadd.f32 %v3339_v14, %v1892_v26  ;;  %v1827_v21 = vmul.f32 %v3326_v59, %v1439_v37  ;;  %v1893_v27 = vmul.f32 %v3326_v59, %v1703_v43  ;;  %v1441_v31 = vpop.f32.mrb[99].mxu0  ;;  %v1705_v15 = vpop.f32.mrb[99].mxu1 }
 0x1cd   : > { %2426 = vst.msk [vmem:[%s3803_s25 + $0xc0] sm:$0xff] %vm2181_vm1, %v2306_v6  ;;  %v2311_v12 = vmax.f32 %v4341_v47, %v2310_v51  ;;  %v3873_v54 = vsel %vm2181_vm1, %v2064_v58, -inf  ;;  %v3876_v19 = vadd.f32 %v3339_v14, %v1794_v35  ;;  %v2012_v29 = vadd.f32 %v3339_v14, %v1873_v34  ;;  %2404 = vst.msk [vmem:[%s3803_s25 + $0x10] sm:$0xff] %vm2181_vm1, %v2196_v24 }
 0x1ce   : > { %v2201_v16 = vmax.f32 %v2199_v49, %v2200_v55  ;;  %v2097_v62 = vmax.f32 %v1965_v28, 0.0  ;;  %v2163_v50 = vmax.f32 %v2031_v9, 0.0  ;;  %v1966_v6 = vadd.f32 %v3339_v14, %v1827_v21  ;;  %v4345_v9 = vld [vmem:[#allocation12_spill] sm:$0xff]  ;;  %v4346_v21 = vld [vmem:[#allocation11_spill] sm:$0xff] }
 0x1cf   : > { %2427 = vst.msk [vmem:[%s3803_s25 + $0xc8] sm:$0xff] %vm2181_vm1, %v2311_v12  ;;  %v2032_v8 = vadd.f32 %v3339_v14, %v1893_v27  ;;  %v2205_v52 = vsel %vm2181_vm1, %v2141_v40, -inf  ;;  %v2210_v58 = vsel %vm2181_vm1, %v2142_v13, -inf  ;;  %v2143_v35 = vmax.f32 %v3860_v44, 0.0 }
 0x1d0   : > { %v1874_v34 = vmul.f32 %v3326_v59, %v3454_v45  ;;  %2405 = vst.msk [vmem:[%s3803_s25 + $0x18] sm:$0xff] %vm2181_vm1, %v2201_v16  ;;  %v2203_v55 = vsel %vm2181_vm1, %v2097_v62, -inf  ;;  %v2315_v39 = vsel %vm2181_vm1, %v2163_v50, -inf  ;;  %v2098_v51 = vmax.f32 %v1966_v6, 0.0 }
 0x1d1   : > { %v2164_v1 = vmax.f32 %v2032_v8, 0.0  ;;  %v2144_v26 = vmax.f32 %v2012_v29, 0.0  ;;  %v1875_v40 = vmul.f32 %v3326_v59, %v3466_v20  ;;  %v2204_v13 = vmax.f32 %v3628_v63, %v2203_v55  ;;  %v1444_v45 = vpop.f32.mrb[100].mxu0  ;;  %v1708_v49 = vpop.f32.mrb[100].mxu1 }
 0x1d2   : > { %v4344_v44 = vmax.f32 %v4342_v41, %v4343_v32  ;;  %v2208_v18 = vsel %vm2181_vm1, %v2098_v51, -inf  ;;  %v1828_v47 = vmul.f32 %v3326_v59, %v1444_v45  ;;  %v1894_v12 = vmul.f32 %v3326_v59, %v1708_v49  ;;  %v1446_v37 = vpop.f32.mrb[101].mxu0  ;;  %v1710_v43 = vpop.f32.mrb[101].mxu1 }
 0x1d3   : > { %v2320_v23 = vsel %vm2181_vm1, %v2164_v1, -inf  ;;  %v3905_v20 = vadd.f32 %v3339_v14, %v1874_v34  ;;  %v2206_v63 = vmax.f32 %v2204_v13, %v2205_v52  ;;  %v2209_v28 = vmax.f32 %v3635_v7, %v2208_v18  ;;  %v1447_v15 = vpop.f32.mrb[102].mxu0  ;;  %v1711_v29 = vpop.f32.mrb[102].mxu1  ;;  %v4348_v7 = vld [vmem:[#allocation2_spill] sm:$0xff] }
 0x1d4   : > { %v2316_v24 = vmax.f32 %v4344_v44, %v2315_v39  ;;  %v4347_v27 = vmax.f32 %v4345_v9, %v4346_v21  ;;  %v1967_v16 = vadd.f32 %v3339_v14, %v1828_v47  ;;  %v2033_v62 = vadd.f32 %v3339_v14, %v1894_v12  ;;  %v1449_v8 = vpop.f32.mrb[103].mxu0  ;;  %v1713_v52 = vpop.f32.mrb[103].mxu1  ;;  %v4349_v47 = vld [vmem:[#allocation14_spill] sm:$0xff]  ;;  %v4350_v12 = vld [vmem:[#allocation13_spill] sm:$0xff] }
 0x1d5   : > { %v1829_v50 = vmul.f32 %v3326_v59, %v1447_v15  ;;  %v1895_v6 = vmul.f32 %v3326_v59, %v1711_v29  ;;  %v2065_v34 = vmax.f32 %v3876_v19, 0.0  ;;  %v1795_v55 = vmul.f32 %v3326_v59, %v4348_v7  ;;  %2406 = vst.msk [vmem:[%s3803_s25 + $0x20] sm:$0xff] %vm2181_vm1, %v2206_v63  ;;  %v3933_v59 = vld [vmem:[%s4255_s2] ss:$0 sm:$0xff] }
 0x1d6   : > { %2428 = vst.msk [vmem:[%s3803_s25 + $0xd0] sm:$0xff] %vm2181_vm1, %v2316_v24  ;;  %v2321_v31 = vmax.f32 %v4347_v27, %v2320_v23  ;;  %v2014_v39 = vadd.f32 %v3339_v14, %v1875_v40  ;;  %v2211_v51 = vmax.f32 %v2209_v28, %v2210_v58  ;;  %v2099_v1 = vmax.f32 %v1967_v16, 0.0  ;;  %v4352_v16 = vld [vmem:[#allocation16_spill] sm:$0xff] }
 0x1d7   : > { %v2165_v13 = vmax.f32 %v2033_v62, 0.0  ;;  %v1968_v41 = vadd.f32 %v3339_v14, %v1829_v50  ;;  %v2034_v32 = vadd.f32 %v3339_v14, %v1895_v6  ;;  %v2215_v44 = vsel %vm2181_vm1, %v2143_v35, -inf  ;;  %v4353_v62 = vld [vmem:[#allocation15_spill] sm:$0xff] }
 0x1d8   : > { %2429 = vst.msk [vmem:[%s3803_s25 + $0xd8] sm:$0xff] %vm2181_vm1, %v2321_v31  ;;  %v2220_v24 = vsel %vm2181_vm1, %v2144_v26, -inf  ;;  %v2145_v45 = vmax.f32 %v3905_v20, 0.0  ;;  %v1876_v58 = vmul.f32 %v3933_v59, %v3484_v30  ;;  %2407 = vst.msk [vmem:[%s3803_s25 + $0x28] sm:$0xff] %vm2181_vm1, %v2211_v51  ;;  %v2213_v40 = vsel %vm2181_vm1, %v2099_v1, -inf }
 0x1d9   : > { %v2325_v14 = vsel %vm2181_vm1, %v2165_v13, -inf  ;;  %v2100_v49 = vmax.f32 %v1968_v41, 0.0  ;;  %v2166_v35 = vmax.f32 %v2034_v32, 0.0  ;;  %v2146_v26 = vmax.f32 %v2014_v39, 0.0  ;;  %v1452_v30 = vpop.f32.mrb[104].mxu0  ;;  %v1716_v20 = vpop.f32.mrb[104].mxu1 }
 0x1da   : > { %v1877_v18 = vmul.f32 %v3933_v59, %v3496_v0  ;;  %v2214_v23 = vmax.f32 %v3677_v5, %v2213_v40  ;;  %v4351_v37 = vmax.f32 %v4349_v47, %v4350_v12  ;;  %v1830_v9 = vmul.f32 %v3933_v59, %v1452_v30  ;;  %v1454_v27 = vpop.f32.mrb[105].mxu0  ;;  %v1718_v31 = vpop.f32.mrb[105].mxu1  ;;  %v3954_v0 = vld [vmem:[%s4256_s3] ss:$0 sm:$0xff] }
 0x1db   : > { %v2218_v63 = vsel %vm2181_vm1, %v2100_v49, -inf  ;;  %v2330_v28 = vsel %vm2181_vm1, %v2166_v35, -inf  ;;  %v1896_v21 = vmul.f32 %v3933_v59, %v1716_v20  ;;  %v3957_v5 = vadd.f32 %v3954_v0, %v1876_v58  ;;  %v1455_v8 = vpop.f32.mrb[106].mxu0  ;;  %v1719_v52 = vpop.f32.mrb[106].mxu1 }
 0x1dc   : > { %v2326_v43 = vmax.f32 %v4351_v37, %v2325_v14  ;;  %v2216_v15 = vmax.f32 %v2214_v23, %v2215_v44  ;;  %v2219_v29 = vmax.f32 %v3680_v3, %v2218_v63  ;;  %v4354_v50 = vmax.f32 %v4352_v16, %v4353_v62  ;;  %v1457_v13 = vpop.f32.mrb[107].mxu0  ;;  %v1721_v41 = vpop.f32.mrb[107].mxu1  ;;  %v4355_v3 = vld [vmem:[#allocation3_spill] sm:$0xff]  ;;  %v4356_v63 = vld [vmem:[#allocation18_spill] sm:$0xff] }
 0x1dd   : > { %v1969_v7 = vadd.f32 %v3954_v0, %v1830_v9  ;;  %v2035_v39 = vadd.f32 %v3954_v0, %v1896_v21  ;;  %v1831_v51 = vmul.f32 %v3933_v59, %v1455_v8  ;;  %v1897_v1 = vmul.f32 %v3933_v59, %v1719_v52 }
 0x1de   : > { %2430 = vst.msk [vmem:[%s3803_s25 + $0xe0] sm:$0xff] %vm2181_vm1, %v2326_v43  ;;  %v2331_v6 = vmax.f32 %v4354_v50, %v2330_v28  ;;  %v3970_v32 = vadd.f32 %v3954_v0, %v1795_v55  ;;  %v1796_v44 = vmul.f32 %v3933_v59, %v4355_v3  ;;  %v2016_v58 = vadd.f32 %v3954_v0, %v1877_v18  ;;  %v4357_v28 = vld [vmem:[#allocation17_spill] sm:$0xff] }
 0x1df   : > { %2408 = vst.msk [vmem:[%s3803_s25 + $0x30] sm:$0xff] %vm2181_vm1, %v2216_v15  ;;  %v2221_v40 = vmax.f32 %v2219_v29, %v2220_v24  ;;  %v2101_v14 = vmax.f32 %v1969_v7, 0.0  ;;  %v2167_v49 = vmax.f32 %v2035_v39, 0.0  ;;  %v1970_v35 = vadd.f32 %v3954_v0, %v1831_v51 }
 0x1e0   : > { %2431 = vst.msk [vmem:[%s3803_s25 + $0xe8] sm:$0xff] %vm2181_vm1, %v2331_v6  ;;  %v2036_v23 = vadd.f32 %v3954_v0, %v1897_v1  ;;  %v2225_v47 = vsel %vm2181_vm1, %v2145_v45, -inf  ;;  %v2230_v55 = vsel %vm2181_vm1, %v2146_v26, -inf  ;;  %v2147_v12 = vmax.f32 %v3957_v5, 0.0  ;;  %v4359_v6 = vld [vmem:[#allocation19_spill] sm:$0xff] }
 0x1e1   : > { %v1878_v18 = vmul.f32 %v3933_v59, %v3516_v10  ;;  %2409 = vst.msk [vmem:[%s3803_s25 + $0x38] sm:$0xff] %vm2181_vm1, %v2221_v40  ;;  %v2223_v24 = vsel %vm2181_vm1, %v2101_v14, -inf  ;;  %v2335_v37 = vsel %vm2181_vm1, %v2167_v49, -inf  ;;  %v2102_v43 = vmax.f32 %v1970_v35, 0.0  ;;  %v1460_v10 = vpop.f32.mrb[108].mxu0  ;;  %v1724_v27 = vpop.f32.mrb[108].mxu1 }
 0x1e2   : > { %v2168_v30 = vmax.f32 %v2036_v23, 0.0  ;;  %v2148_v20 = vmax.f32 %v2016_v58, 0.0  ;;  %v1879_v45 = vmul.f32 %v3933_v59, %v3528_v48  ;;  %v2224_v26 = vmax.f32 %v3727_v25, %v2223_v24  ;;  %v1462_v16 = vpop.f32.mrb[109].mxu0  ;;  %v1726_v62 = vpop.f32.mrb[109].mxu1 }
 0x1e3   : > { %v4358_v9 = vmax.f32 %v4356_v63, %v4357_v28  ;;  %v2228_v31 = vsel %vm2181_vm1, %v2102_v43, -inf  ;;  %v1832_v15 = vmul.f32 %v3933_v59, %v1460_v10  ;;  %v1898_v29 = vmul.f32 %v3933_v59, %v1724_v27  ;;  %v1463_v7 = vpop.f32.mrb[110].mxu0  ;;  %v1727_v39 = vpop.f32.mrb[110].mxu1  ;;  %v4364_v16 = vld [vmem:[#allocation23_spill] sm:$0xff]  ;;  %v4365_v62 = vld [vmem:[#allocation22_spill] sm:$0xff] }
 0x1e4   : > { %v2340_v5 = vsel %vm2181_vm1, %v2168_v30, -inf  ;;  %v4001_v48 = vadd.f32 %v3954_v0, %v1878_v18  ;;  %v2226_v25 = vmax.f32 %v2224_v26, %v2225_v47  ;;  %v2229_v50 = vmax.f32 %v3730_v38, %v2228_v31  ;;  %v1465_v3 = vpop.f32.mrb[111].mxu0  ;;  %v1729_v58 = vpop.f32.mrb[111].mxu1  ;;  %v4362_v26 = vld [vmem:[#allocation20_spill] sm:$0xff] }
 0x1e5   : > { %v2336_v21 = vmax.f32 %v4358_v9, %v2335_v37  ;;  %v4360_v8 = vmax.f32 %v3491_v2, %v4359_v6  ;;  %v1971_v51 = vadd.f32 %v3954_v0, %v1832_v15  ;;  %v2037_v1 = vadd.f32 %v3954_v0, %v1898_v29 }
 0x1e6   : > { %v1833_v13 = vmul.f32 %v3933_v59, %v1463_v7  ;;  %v1899_v41 = vmul.f32 %v3933_v59, %v1727_v39  ;;  %v4016_v38 = vsel %vm2181_vm1, %v2065_v34, -inf  ;;  %v2066_v2 = vmax.f32 %v3970_v32, 0.0  ;;  %2410 = vst.msk [vmem:[%s3803_s25 + $0x40] sm:$0xff] %vm2181_vm1, %v2226_v25 }
 0x1e7   : > { %2432 = vst.msk [vmem:[%s3803_s25 + $0xf0] sm:$0xff] %vm2181_vm1, %v2336_v21  ;;  %v2341_v52 = vmax.f32 %v4360_v8, %v2340_v5  ;;  %v2018_v40 = vadd.f32 %v3954_v0, %v1879_v45  ;;  %v2231_v14 = vmax.f32 %v2229_v50, %v2230_v55  ;;  %v2103_v49 = vmax.f32 %v1971_v51, 0.0 }
 0x1e8   : > { %v2169_v35 = vmax.f32 %v2037_v1, 0.0  ;;  %v1972_v23 = vadd.f32 %v3954_v0, %v1833_v13  ;;  %v2038_v47 = vadd.f32 %v3954_v0, %v1899_v41  ;;  %v4027_v19 = vadd.f32 %v3954_v0, %v1796_v44 }
 0x1e9   : > { %2433 = vst.msk [vmem:[%s3803_s25 + $0xf8] sm:$0xff] %vm2181_vm1, %v2341_v52  ;;  %v2235_v34 = vsel %vm2181_vm1, %v2147_v12, -inf  ;;  %v2240_v32 = vsel %vm2181_vm1, %v2148_v20, -inf  ;;  %v2149_v18 = vmax.f32 %v4001_v48, 0.0  ;;  %2411 = vst.msk [vmem:[%s3803_s25 + $0x48] sm:$0xff] %vm2181_vm1, %v2231_v14  ;;  %v2233_v55 = vsel %vm2181_vm1, %v2103_v49, -inf }
 0x1ea   : > { %v2345_v24 = vsel %vm2181_vm1, %v2169_v35, -inf  ;;  %v2104_v37 = vmax.f32 %v1972_v23, 0.0  ;;  %v2170_v43 = vmax.f32 %v2038_v47, 0.0  ;;  %v2150_v30 = vmax.f32 %v2018_v40, 0.0  ;;  %v4361_v12 = vld [vmem:[#allocation21_spill] sm:$0xff]  ;;  %v1468_v28 = vpop.f32.mrb[112].mxu0 }
 0x1eb   : > { %v1880_v44 = vmul.f32 %v3933_v59, %v3555_v36  ;;  %v2234_v45 = vmax.f32 %v3733_v17, %v2233_v55  ;;  %v4363_v20 = vmax.f32 %v4361_v12, %v4362_v26  ;;  %v1732_v9 = vpop.f32.mrb[112].mxu1  ;;  %v1834_v27 = vmul.f32 %v3933_v59, %v1468_v28  ;;  %v1470_v5 = vpop.f32.mrb[113].mxu0 }
 0x1ec   : > { %v2238_v21 = vsel %vm2181_vm1, %v2104_v37, -inf  ;;  %v2350_v10 = vsel %vm2181_vm1, %v2170_v43, -inf  ;;  %v1900_v31 = vmul.f32 %v3933_v59, %v1732_v9  ;;  %v1734_v15 = vpop.f32.mrb[113].mxu1  ;;  %v1881_v36 = vmul.f32 %v3933_v59, %v3571_v56  ;;  %v1471_v50 = vpop.f32.mrb[114].mxu0  ;;  %v4372_v5 = vld [vmem:[#allocation26_spill] sm:$0xff] }
 0x1ed   : > { %v2346_v63 = vmax.f32 %v4363_v20, %v2345_v24  ;;  %v2236_v17 = vmax.f32 %v2234_v45, %v2235_v34  ;;  %v2239_v29 = vmax.f32 %v3738_v42, %v2238_v21  ;;  %v4366_v48 = vmax.f32 %v4364_v16, %v4365_v62  ;;  %v1735_v6 = vpop.f32.mrb[114].mxu1  ;;  %v1473_v39 = vpop.f32.mrb[115].mxu0  ;;  %v4367_v42 = vld [vmem:[#allocation4_spill] sm:$0xff] }
 0x1ee   : > { %v1973_v8 = vadd.f32 %v3954_v0, %v1834_v27  ;;  %v2039_v52 = vadd.f32 %v3954_v0, %v1900_v31  ;;  %v1835_v7 = vmul.f32 %v3933_v59, %v1471_v50  ;;  %v1901_v56 = vmul.f32 %v3933_v59, %v1735_v6  ;;  %v1737_v51 = vpop.f32.mrb[115].mxu1  ;;  %v4371_v31 = vld [vmem:[#allocation27_spill] sm:$0xff] }
 0x1ef   : > { %2434 = vst.msk [vmem:[%s3803_s25 + $0x100] sm:$0xff] %vm2181_vm1, %v2346_v63  ;;  %v2351_v25 = vmax.f32 %v4366_v48, %v2350_v10  ;;  %v4059_v1 = vsel %vm2181_vm1, %v2066_v2, -inf  ;;  %v1797_v13 = vmul.f32 %v3933_v59, %v4367_v42  ;;  %v2019_v41 = vadd.f32 %v3954_v0, %v1880_v44  ;;  %2412 = vst.msk [vmem:[%s3803_s25 + $0x50] sm:$0xff] %vm2181_vm1, %v2236_v17  ;;  %v4369_v44 = vld [vmem:[#allocation24_spill] sm:$0xff] }
 0x1f0   : > { %v2241_v3 = vmax.f32 %v2239_v29, %v2240_v32  ;;  %v2105_v58 = vmax.f32 %v1973_v8, 0.0  ;;  %v2171_v40 = vmax.f32 %v2039_v52, 0.0  ;;  %v1974_v14 = vadd.f32 %v3954_v0, %v1835_v7 }
 0x1f1   : > { %2435 = vst.msk [vmem:[%s3803_s25 + $0x108] sm:$0xff] %vm2181_vm1, %v2351_v25  ;;  %v2040_v49 = vadd.f32 %v3954_v0, %v1901_v56  ;;  %v2067_v35 = vmax.f32 %v4027_v19, 0.0  ;;  %v2245_v2 = vsel %vm2181_vm1, %v2149_v18, -inf  ;;  %v2250_v23 = vsel %vm2181_vm1, %v2150_v30, -inf  ;;  %v4368_v18 = vld [vmem:[#allocation25_spill] sm:$0xff]  ;;  %v1476_v12 = vpop.f32.mrb[116].mxu0 }
 0x1f2   : > { %v2020_v47 = vadd.f32 %v3954_v0, %v1881_v36  ;;  %2413 = vst.msk [vmem:[%s3803_s25 + $0x58] sm:$0xff] %vm2181_vm1, %v2241_v3  ;;  %v2243_v34 = vsel %vm2181_vm1, %v2105_v58, -inf  ;;  %v2355_v32 = vsel %vm2181_vm1, %v2171_v40, -inf  ;;  %v2106_v55 = vmax.f32 %v1974_v14, 0.0  ;;  %v1740_v26 = vpop.f32.mrb[116].mxu1  ;;  %v1478_v21 = vpop.f32.mrb[117].mxu0 }
 0x1f3   : > { %v2172_v24 = vmax.f32 %v2040_v49, 0.0  ;;  %v2151_v37 = vmax.f32 %v2019_v41, 0.0  ;;  %v1882_v43 = vmul.f32 %v3933_v59, %v3599_v11  ;;  %v2244_v19 = vmax.f32 %v3742_v22, %v2243_v34  ;;  %v1742_v10 = vpop.f32.mrb[117].mxu1  ;;  %v1479_v17 = vpop.f32.mrb[118].mxu0  ;;  %v4375_v34 = vld [vmem:[#allocation28_spill] sm:$0xff] }
 0x1f4   : > { %v4370_v30 = vmax.f32 %v4368_v18, %v4369_v44  ;;  %v2248_v20 = vsel %vm2181_vm1, %v2106_v55, -inf  ;;  %v1836_v28 = vmul.f32 %v3933_v59, %v1476_v12  ;;  %v1902_v9 = vmul.f32 %v3933_v59, %v1740_v26  ;;  %v1743_v29 = vpop.f32.mrb[118].mxu1  ;;  %v1481_v50 = vpop.f32.mrb[119].mxu0  ;;  %v4377_v26 = vld [vmem:[#allocation30_spill] sm:$0xff] }
 0x1f5   : > { %v2360_v63 = vsel %vm2181_vm1, %v2172_v24, -inf  ;;  %v2152_v27 = vmax.f32 %v2020_v47, 0.0  ;;  %v2246_v11 = vmax.f32 %v2244_v19, %v2245_v2  ;;  %v2249_v22 = vmax.f32 %v3783_v57, %v2248_v20  ;;  %v1745_v6 = vpop.f32.mrb[119].mxu1  ;;  %v4378_v20 = vld [vmem:[#allocation29_spill] sm:$0xff] }
 0x1f6   : > { %v2356_v45 = vmax.f32 %v4370_v30, %v2355_v32  ;;  %v4373_v15 = vmax.f32 %v4371_v31, %v4372_v5  ;;  %v1975_v16 = vadd.f32 %v3954_v0, %v1836_v28  ;;  %v2041_v62 = vadd.f32 %v3954_v0, %v1902_v9 }
 0x1f7   : > { %v1837_v48 = vmul.f32 %v3933_v59, %v1479_v17  ;;  %v1903_v25 = vmul.f32 %v3933_v59, %v1743_v29  ;;  %v4099_v8 = vadd.f32 %v3954_v0, %v1797_v13  ;;  %v2021_v57 = vadd.f32 %v3954_v0, %v1882_v43  ;;  %2414 = vst.msk [vmem:[%s3803_s25 + $0x60] sm:$0xff] %vm2181_vm1, %v2246_v11  ;;  %v4374_v13 = vld [vmem:[#allocation5_spill] sm:$0xff] }
 0x1f8   : > { %2436 = vst.msk [vmem:[%s3803_s25 + $0x110] sm:$0xff] %vm2181_vm1, %v2356_v45  ;;  %v2361_v36 = vmax.f32 %v4373_v15, %v2360_v63  ;;  %v1883_v52 = vmul.f32 %v3933_v59, %v3615_v60  ;;  %v2251_v7 = vmax.f32 %v2249_v22, %v2250_v23  ;;  %v2107_v56 = vmax.f32 %v1975_v16, 0.0 }
 0x1f9   : > { %v2173_v39 = vmax.f32 %v2041_v62, 0.0  ;;  %v1976_v51 = vadd.f32 %v3954_v0, %v1837_v48  ;;  %v2042_v42 = vadd.f32 %v3954_v0, %v1903_v25  ;;  %v4111_v41 = vsel %vm2181_vm1, %v2067_v35, -inf  ;;  %v1484_v24 = vpop.f32.mrb[120].mxu0  ;;  %v4380_v25 = vld [vmem:[#allocation6_spill] sm:$0xff] }
 0x1fa   : > { %2437 = vst.msk [vmem:[%s3803_s25 + $0x118] sm:$0xff] %vm2181_vm1, %v2361_v36  ;;  %v1798_v3 = vmul.f32 %v3933_v59, %v4374_v13  ;;  %v2255_v58 = vsel %vm2181_vm1, %v2151_v37, -inf  ;;  %v2260_v60 = vsel %vm2181_vm1, %v2152_v27, -inf  ;;  %2415 = vst.msk [vmem:[%s3803_s25 + $0x68] sm:$0xff] %vm2181_vm1, %v2251_v7  ;;  %v2253_v40 = vsel %vm2181_vm1, %v2107_v56, -inf  ;;  %v1748_v37 = vpop.f32.mrb[120].mxu1 }
 0x1fb   : > { %v2365_v14 = vsel %vm2181_vm1, %v2173_v39, -inf  ;;  %v2108_v49 = vmax.f32 %v1976_v51, 0.0  ;;  %v2174_v2 = vmax.f32 %v2042_v42, 0.0  ;;  %v2153_v23 = vmax.f32 %v2021_v57, 0.0  ;;  %v1486_v30 = vpop.f32.mrb[121].mxu0  ;;  %v1750_v45 = vpop.f32.mrb[121].mxu1 }
 0x1fc   : > { %v2022_v35 = vadd.f32 %v3954_v0, %v1883_v52  ;;  %v2254_v47 = vmax.f32 %v3786_v61, %v2253_v40  ;;  %v4376_v32 = vmax.f32 %v3593_v4, %v4375_v34  ;;  %v1838_v18 = vmul.f32 %v3933_v59, %v1484_v24  ;;  %v1487_v9 = vpop.f32.mrb[122].mxu0  ;;  %v1751_v21 = vpop.f32.mrb[122].mxu1  ;;  %v4381_v42 = vld [vmem:[#allocation32_spill] sm:$0xff]  ;;  %v4382_v13 = vld [vmem:[#allocation31_spill] sm:$0xff]  ;;  %v4385_v24 = vld [vmem:[#allocation33_spill] sm:$0xff] }
 0x1fd   : > { %v2258_v43 = vsel %vm2181_vm1, %v2108_v49, -inf  ;;  %v2370_v19 = vsel %vm2181_vm1, %v2174_v2, -inf  ;;  %v1904_v44 = vmul.f32 %v3933_v59, %v1748_v37  ;;  %v1884_v12 = vmul.f32 %v3933_v59, %v3654_v33  ;;  %v1489_v22 = vpop.f32.mrb[123].mxu0  ;;  %v1753_v31 = vpop.f32.mrb[123].mxu1 }
 0x1fe   : > { %v2366_v55 = vmax.f32 %v4376_v32, %v2365_v14  ;;  %v2256_v61 = vmax.f32 %v2254_v47, %v2255_v58  ;;  %v2259_v4 = vmax.f32 %v3873_v54, %v2258_v43  ;;  %v4379_v63 = vmax.f32 %v4377_v26, %v4378_v20  ;;  %v4387_v22 = vld [vmem:[#allocation39_spill] sm:$0xff] }
 0x1ff   : > { %v1977_v10 = vadd.f32 %v3954_v0, %v1838_v18  ;;  %v2043_v27 = vadd.f32 %v3954_v0, %v1904_v44  ;;  %v1839_v11 = vmul.f32 %v3933_v59, %v1487_v9  ;;  %v1905_v33 = vmul.f32 %v3933_v59, %v1751_v21 }
 0x200   : > { %2438 = vst.msk [vmem:[%s3803_s25 + $0x120] sm:$0xff] %vm2181_vm1, %v2366_v55  ;;  %v2371_v28 = vmax.f32 %v4379_v63, %v2370_v19  ;;  %v2068_v5 = vmax.f32 %v4099_v8, 0.0  ;;  %v2154_v54 = vmax.f32 %v2022_v35, 0.0  ;;  %v1885_v15 = vmul.f32 %v3933_v59, %v3670_v46  ;;  %2416 = vst.msk [vmem:[%s3803_s25 + $0x70] sm:$0xff] %vm2181_vm1, %v2256_v61  ;;  %v4384_v55 = vld [vmem:[#allocation34_spill] sm:$0xff] }
 0x201   : > { %v2261_v36 = vmax.f32 %v2259_v4, %v2260_v60  ;;  %v2109_v17 = vmax.f32 %v1977_v10, 0.0  ;;  %v2175_v29 = vmax.f32 %v2043_v27, 0.0  ;;  %v1978_v16 = vadd.f32 %v3954_v0, %v1839_v11  ;;  %v1492_v60 = vpop.f32.mrb[124].mxu0  ;;  %v1756_v40 = vpop.f32.mrb[124].mxu1 }
 0x202   : > { %2439 = vst.msk [vmem:[%s3803_s25 + $0x128] sm:$0xff] %vm2181_vm1, %v2371_v28  ;;  %v2044_v62 = vadd.f32 %v3954_v0, %v1905_v33  ;;  %v4152_v48 = vadd.f32 %v3954_v0, %v1798_v3  ;;  %v1799_v50 = vmul.f32 %v3933_v59, %v4380_v25  ;;  %v2265_v6 = vsel %vm2181_vm1, %v2153_v23, -inf  ;;  %v1494_v35 = vpop.f32.mrb[125].mxu0  ;;  %v1758_v47 = vpop.f32.mrb[125].mxu1 }
 0x203   : > { %v2023_v46 = vadd.f32 %v3954_v0, %v1884_v12  ;;  %2417 = vst.msk [vmem:[%s3803_s25 + $0x78] sm:$0xff] %vm2181_vm1, %v2261_v36  ;;  %v2263_v8 = vsel %vm2181_vm1, %v2109_v17, -inf  ;;  %v2375_v57 = vsel %vm2181_vm1, %v2175_v29, -inf  ;;  %v2110_v52 = vmax.f32 %v1978_v16, 0.0  ;;  %v1495_v19 = vpop.f32.mrb[126].mxu0  ;;  %v1759_v18 = vpop.f32.mrb[126].mxu1 }
 0x204   : > { %v2176_v7 = vmax.f32 %v2044_v62, 0.0  ;;  %v2270_v56 = vsel %vm2181_vm1, %v2154_v54, -inf  ;;  %v2024_v39 = vadd.f32 %v3954_v0, %v1885_v15  ;;  %v2264_v51 = vmax.f32 %v4016_v38, %v2263_v8  ;;  %v1497_v61 = vpop.f32.mrb[127].mxu0  ;;  %v1761_v4 = vpop.f32.mrb[127].mxu1  ;;  %v4388_v16 = vld [vmem:[#allocation36_spill] sm:$0xff]  ;;  %v4389_v62 = vld [vmem:[#allocation35_spill] sm:$0xff] }
 0x205   : > { %v4383_v3 = vmax.f32 %v4381_v42, %v4382_v13  ;;  %v2268_v14 = vsel %vm2181_vm1, %v2110_v52, -inf  ;;  %v1840_v2 = vmul.f32 %v3933_v59, %v1492_v60  ;;  %v1906_v23 = vmul.f32 %v3933_v59, %v1756_v40  ;;  %v4391_v42 = vld [vmem:[#allocation38_spill] sm:$0xff]  ;;  %v4392_v13 = vld [vmem:[#allocation37_spill] sm:$0xff]  ;;  %v4395_v4 = vld [vmem:[#allocation40_spill] sm:$0xff] }
 0x206   : > { %v2380_v49 = vsel %vm2181_vm1, %v2176_v7, -inf  ;;  %v2155_v34 = vmax.f32 %v2023_v46, 0.0  ;;  %v2266_v32 = vmax.f32 %v2264_v51, %v2265_v6  ;;  %v2269_v38 = vmax.f32 %v4059_v1, %v2268_v14  ;;  %v4394_v61 = vld [vmem:[#allocation41_spill] sm:$0xff] }
 0x207   : > { %v2376_v58 = vmax.f32 %v4383_v3, %v2375_v57  ;;  %v4386_v37 = vmax.f32 %v4384_v55, %v4385_v24  ;;  %v1979_v44 = vadd.f32 %v3954_v0, %v1840_v2  ;;  %v2045_v30 = vadd.f32 %v3954_v0, %v1906_v23 }
 0x208   : > { %v1841_v45 = vmul.f32 %v3933_v59, %v1495_v19  ;;  %v1907_v12 = vmul.f32 %v3933_v59, %v1759_v18  ;;  %v2277_v26 = vsel %vm2181_vm1, %v2068_v5, -inf  ;;  %v2156_v1 = vmax.f32 %v2024_v39, 0.0  ;;  %2418 = vst.msk [vmem:[%s3803_s25 + $0x80] sm:$0xff] %vm2181_vm1, %v2266_v32 }
 0x209   : > { %2440 = vst.msk [vmem:[%s3803_s25 + $0x130] sm:$0xff] %vm2181_vm1, %v2376_v58  ;;  %v2381_v43 = vmax.f32 %v4386_v37, %v2380_v49  ;;  %v1886_v20 = vmul.f32 %v3933_v59, %v3701_v53  ;;  %v2271_v63 = vmax.f32 %v2269_v38, %v2270_v56  ;;  %v2111_v28 = vmax.f32 %v1979_v44, 0.0  ;;  %v1764_v6 = vpop.f32.mrb[128].mxu1 }
 0x20a   : > { %v2177_v9 = vmax.f32 %v2045_v30, 0.0  ;;  %v1980_v21 = vadd.f32 %v3954_v0, %v1841_v45  ;;  %v2046_v10 = vadd.f32 %v3954_v0, %v1907_v12  ;;  %v2069_v27 = vmax.f32 %v4152_v48, 0.0  ;;  %v1766_v56 = vpop.f32.mrb[129].mxu1 }
 0x20b   : > { %2441 = vst.msk [vmem:[%s3803_s25 + $0x138] sm:$0xff] %vm2181_vm1, %v2381_v43  ;;  %v1938_v11 = vadd.f32 %v3954_v0, %v1799_v50  ;;  %v2275_v33 = vsel %vm2181_vm1, %v2155_v34, -inf  ;;  %v1887_v53 = vmul.f32 %v3933_v59, %v4387_v22  ;;  %2419 = vst.msk [vmem:[%s3803_s25 + $0x88] sm:$0xff] %vm2181_vm1, %v2271_v63  ;;  %v2273_v31 = vsel %vm2181_vm1, %v2111_v28, -inf  ;;  %v1500_v50 = vpop.f32.mrb[128].mxu0  ;;  %v1767_v40 = vpop.f32.mrb[130].mxu1 }
 0x20c   : > { %v2385_v5 = vsel %vm2181_vm1, %v2177_v9, -inf  ;;  %v2112_v54 = vmax.f32 %v1980_v21, 0.0  ;;  %v2178_v15 = vmax.f32 %v2046_v10, 0.0  ;;  %v2280_v36 = vsel %vm2181_vm1, %v2156_v1, -inf  ;;  %v1502_v7 = vpop.f32.mrb[129].mxu0  ;;  %v1769_v47 = vpop.f32.mrb[131].mxu1 }
 0x20d   : > { %v2025_v17 = vadd.f32 %v3954_v0, %v1886_v20  ;;  %v2274_v29 = vmax.f32 %v4111_v41, %v2273_v31  ;;  %v4390_v48 = vmax.f32 %v4388_v16, %v4389_v62  ;;  %v1842_v57 = vmul.f32 %v3933_v59, %v1500_v50  ;;  %v1503_v60 = vpop.f32.mrb[130].mxu0  ;;  %v4397_v10 = vld [vmem:[#allocation43_spill] sm:$0xff] }
 0x20e   : > { %v2278_v46 = vsel %vm2181_vm1, %v2112_v54, -inf  ;;  %v2390_v8 = vsel %vm2181_vm1, %v2178_v15, -inf  ;;  %v1908_v52 = vmul.f32 %v3933_v59, %v1764_v6  ;;  %v2026_v39 = vadd.f32 %v3954_v0, %v1887_v53  ;;  %v1505_v35 = vpop.f32.mrb[131].mxu0 }
 0x20f   : > { %v2386_v25 = vmax.f32 %v4390_v48, %v2385_v5  ;;  %v2276_v41 = vmax.f32 %v2274_v29, %v2275_v33  ;;  %v2279_v51 = vmax.f32 %v2277_v26, %v2278_v46  ;;  %v4393_v3 = vmax.f32 %v4391_v42, %v4392_v13 }
 0x210   : > { %v1981_v14 = vadd.f32 %v3954_v0, %v1842_v57  ;;  %v2047_v49 = vadd.f32 %v3954_v0, %v1908_v52  ;;  %v1843_v2 = vmul.f32 %v3933_v59, %v1503_v60  ;;  %v1909_v23 = vmul.f32 %v3933_v59, %v1767_v40 }
 0x211   : > { %2442 = vst.msk [vmem:[%s3803_s25 + $0x140] sm:$0xff] %vm2181_vm1, %v2386_v25  ;;  %v2391_v58 = vmax.f32 %v4393_v3, %v2390_v8  ;;  %v2070_v34 = vmax.f32 %v1938_v11, 0.0  ;;  %v2157_v32 = vmax.f32 %v2025_v17, 0.0  ;;  %2420 = vst.msk [vmem:[%s3803_s25 + $0x90] sm:$0xff] %vm2181_vm1, %v2276_v41  ;;  %v2281_v38 = vmax.f32 %v2279_v51, %v2280_v36 }
 0x212   : > { %v2113_v55 = vmax.f32 %v1981_v14, 0.0  ;;  %v2179_v24 = vmax.f32 %v2047_v49, 0.0  ;;  %v1982_v37 = vadd.f32 %v3954_v0, %v1843_v2  ;;  %v2048_v43 = vadd.f32 %v3954_v0, %v1909_v23 }
 0x213   : > { %2443 = vst.msk [vmem:[%s3803_s25 + $0x148] sm:$0xff] %vm2181_vm1, %v2391_v58  ;;  %v2282_v19 = vsel %vm2181_vm1, %v2069_v27, -inf  ;;  %v2158_v18 = vmax.f32 %v2026_v39, 0.0  ;;  %2421 = vst.msk [vmem:[%s3803_s25 + $0x98] sm:$0xff] %vm2181_vm1, %v2281_v38  ;;  %v4396_v26 = vmax.f32 %v4394_v61, %v4395_v4  ;;  %v2287_v0 = vsel %vm2181_vm1, %v2070_v34, -inf  ;;  %v4398_v27 = vld [vmem:[#allocation42_spill] sm:$0xff] }
 0x214   : > { %v2283_v59 = vsel %vm2181_vm1, %v2113_v55, -inf  ;;  %v2395_v44 = vsel %vm2181_vm1, %v2179_v24, -inf  ;;  %v2114_v30 = vmax.f32 %v1982_v37, 0.0  ;;  %v2180_v45 = vmax.f32 %v2048_v43, 0.0 }
 0x215   : > { %v2284_v12 = vmax.f32 %v2282_v19, %v2283_v59  ;;  %v2396_v1 = vmax.f32 %v4396_v26, %v2395_v44  ;;  %v2285_v20 = vsel %vm2181_vm1, %v2157_v32, -inf  ;;  %v4399_v11 = vmax.f32 %v4397_v10, %v4398_v27 }
 0x216   : > { %v2288_v63 = vsel %vm2181_vm1, %v2114_v30, -inf  ;;  %v2400_v28 = vsel %vm2181_vm1, %v2180_v45, -inf  ;;  %v2290_v22 = vsel %vm2181_vm1, %v2158_v18, -inf }
 0x217   : > { %v2286_v9 = vmax.f32 %v2284_v12, %v2285_v20  ;;  %2444 = vst.msk [vmem:[%s3803_s25 + $0x150] sm:$0xff] %vm2181_vm1, %v2396_v1  ;;  %v2289_v21 = vmax.f32 %v2287_v0, %v2288_v63  ;;  %v2401_v33 = vmax.f32 %v4399_v11, %v2400_v28 }
 0x219   : > { %2422 = vst.msk [vmem:[%s3803_s25 + $0xa0] sm:$0xff] %vm2181_vm1, %v2286_v9  ;;  %v2291_v53 = vmax.f32 %v2289_v21, %v2290_v22  ;;  %2445 = vst.msk [vmem:[%s3803_s25 + $0x158] sm:$0xff] %vm2181_vm1, %v2401_v33 }
 0x21b   : > { %2423 = vst.msk [vmem:[%s3803_s25 + $0xa8] sm:$0xff] %vm2181_vm1, %v2291_v53 }
 0x21c PF: > { %s14_s15 = sadd.s32 1, %s2968_s15  }
 0x21d   : > { %p11_p5 = scmp.ge.s32.totalorder %s14_s15, 4  }
 0x21f   :  { %13 = sbr.rel (!%p11_p5) target bundleno = 1 (0x1), region = 66 }

// kernel: cnn_trad_fpool3_forward.5
= control target key start
LH: loop header
LB: loop body
LE: loop exit
PB: predicated region body
PF: predicated region fallthrough
CT: control target
= control target key end

     0   :  { %10 = vsyncpa [#allocation4], 0  ;;  %s5973_s18 = smov 0   ;;  %s6486_s0 = inlined_call_operand.vmem [shape: bf16[2,11776], index: 0, kind: input, shape index: {}]   ;;  %s6487_s1 = inlined_call_operand.vmem [shape: bf16[11776,32], index: 1, kind: input, shape index: {}]   ;;  %s6488_s2 = inlined_call_operand.vmem [shape: f32[1,32], index: 2, kind: input, shape index: {}]   ;;  %s6489_s3 = inlined_call_operand.vmem [shape: bf16[32,128], index: 3, kind: input, shape index: {}]   ;;  %s6490_s4 = inlined_call_operand.vmem [shape: f32[1,128], index: 4, kind: input, shape index: {}]   ;;  %s6491_s5 = inlined_call_operand.hbm [shape: f32[2,128], index: 5, kind: output, shape index: {}]  }
   0x1 LB: > { %s5979_s19 = sadd.s32 4294967295, %s5936_s18   ;;  %p4603_p0 = scmp.ge.s32.totalorder %s5936_s18, 1  ;;  %s5936_s18 = sphi %s5973_s18, %s16_s18  }
   0x2   : > { %p194_p1 = scmp.lt.s32.totalorder %s5936_s18, 3 }
   0x4   : > { %p195_p2 = pnand %p4603_p0, %p194_p1 }
   0x5   : > { %s221_s20 = smul.u32 (!%p195_p2), 46, %s5979_s19  ;;  %p4605_p5 = scmp.ne.s32.totalorder (!%p195_p2), %s5979_s19, 0 }
   0x6   : > { %198 = sbr.rel (%p195_p2) target bundleno = 909 (0x38d), region = 40 }
   0x7   : > { %s226_s21 = smul.u32 (!%p195_p2), 736, %s5979_s19  ;;  %p222_p3 = scmp.lt.s32.totalorder (!%p195_p2), %s221_s20, 91 }
   0x9   : > { %p227_p4 = scmp.lt.s32.totalorder (!%p195_p2), %s226_s21, 1471 }
   0xd   : > { %s6493_s20 = smov (!%p222_p3, %s221_s20), 91  ;;  %s6495_s21 = smov (!%p227_p4, %s226_s21), 1471 }
   0xe   : > { %s5988_s24 = scalar_lea.vmem %s6486_s0, %s6493_s20  ;;  %s4604_s25 = sshll.u32 %s6495_s21, 2  ;;  %vm237_vm0 = vcmask (!%p4605_p5), 254976   ;;  %v5938_v0 = vmov (!%p4605_p5), 0.0  }
   0xf   : > { %s5993_s28 = scalar_lea.vmem %s6487_s1, %s4604_s25  ;;  %236 = sbr.rel (%p4605_p5) target bundleno = 22 (0x16), region = 44  ;;  %238 = vst.msk [vmem:[#allocation2] sm:$0x3] (!%p4605_p5), %vm237_vm0, %v5938_v0 }
  0x16 PF: > { %v5520_v1 = vld [vmem:[%s5993_s28 + $0x40] sm:$0xff]   ;;  %v5524_v5 = vld [vmem:[%s5993_s28 + $0x48] sm:$0xff]   ;;  %v5528_v9 = vld [vmem:[%s5993_s28 + $0x50] sm:$0xff]   ;;  %v992_v30 = vlaneseq  ;;  %v5939_v36 = vmov 1966171168   ;;  %vm4455_vm1 = vcmask 254976  }
  0x17   : > { %v5521_v2 = vld [vmem:[%s5993_s28 + $0xc0] sm:$0xff]   ;;  %4984 = vmatprep.subr.bf16.mxu0 %v5520_v1  ;;  %v5525_v6 = vld [vmem:[%s5993_s28 + $0xc8] sm:$0xff]   ;;  %v5529_v10 = vld [vmem:[%s5993_s28 + $0xd0] sm:$0xff]   ;;  %v990_v37 = vunpack.c.l.s4 %v5939_v36  ;;  %p4974_p6 = scmp.ne.s32.totalorder %s5979_s19, 1 }
  0x18   : > { %v5522_v3 = vld [vmem:[%s5993_s28] sm:$0xff]   ;;  %5006 = vmatprep.subr.bf16.mxu1 %v5521_v2  ;;  %v5526_v7 = vld [vmem:[%s5993_s28 + $0x8] sm:$0xff]   ;;  %v5530_v11 = vld [vmem:[%s5993_s28 + $0x10] sm:$0xff]   ;;  %v993_v34 = vshrl.u32 %v992_v30, 7  ;;  %vm5941_vm2 = vmmov (!%p4974_p6), 0   ;;  %vm4495_vm3 = vcmask (!%p4974_p6), 261120  }
  0x19   : > { %v5523_v4 = vld [vmem:[%s5993_s28 + $0x80] sm:$0xff]   ;;  %4985 = vmatpush3.bf16.msra.mxu0 %v5522_v3  ;;  %v5527_v8 = vld [vmem:[%s5993_s28 + $0x88] sm:$0xff]   ;;  %v5531_v12 = vld [vmem:[%s5993_s28 + $0x90] sm:$0xff]   ;;  %v991_v40 = vunpack.c.0.s8 %v990_v37 }
  0x1a   : > { %5007 = vmatpush3.bf16.msra.mxu1 %v5523_v4  ;;  %4986 = vmatprep.subr.bf16.mxu0 %v5524_v5  ;;  %v5532_v13 = vld [vmem:[%s5993_s28 + $0x58] sm:$0xff]   ;;  %v5536_v17 = vld [vmem:[%s5993_s28 + $0x60] sm:$0xff]   ;;  %v5540_v21 = vld [vmem:[%s5993_s28 + $0x68] sm:$0xff]  }
  0x1b   : > { %5008 = vmatprep.subr.bf16.mxu1 %v5525_v6  ;;  %v5533_v14 = vld [vmem:[%s5993_s28 + $0xd8] sm:$0xff]   ;;  %v5537_v18 = vld [vmem:[%s5993_s28 + $0xe0] sm:$0xff]   ;;  %v5541_v22 = vld [vmem:[%s5993_s28 + $0xe8] sm:$0xff]   ;;  %v6031_v42 = vsub.s32 %v991_v40, %v993_v34 }
  0x1c   : > { %v5534_v15 = vld [vmem:[%s5993_s28 + $0x18] sm:$0xff]   ;;  %v5538_v19 = vld [vmem:[%s5993_s28 + $0x20] sm:$0xff]   ;;  %v5542_v23 = vld [vmem:[%s5993_s28 + $0x28] sm:$0xff]  }
  0x1d   : > { %4987 = vmatpush3.bf16.msra.mxu0 %v5526_v7  ;;  %v5535_v16 = vld [vmem:[%s5993_s28 + $0x98] sm:$0xff]   ;;  %v5539_v20 = vld [vmem:[%s5993_s28 + $0xa0] sm:$0xff]   ;;  %v5543_v24 = vld [vmem:[%s5993_s28 + $0xa8] sm:$0xff]  }
  0x1e   : > { %5009 = vmatpush3.bf16.msra.mxu1 %v5527_v8  ;;  %4988 = vmatprep.subr.bf16.mxu0 %v5528_v9  ;;  %v5544_v25 = vld [vmem:[%s5993_s28 + $0x70] sm:$0xff]   ;;  %v5548_v29 = vld [vmem:[%s5993_s28 + $0x78] sm:$0xff]   ;;  %v5553_v35 = vld [vmem:[%s5993_s28 + $0x140] sm:$0xff]  }
  0x1f   : > { %5010 = vmatprep.subr.bf16.mxu1 %v5529_v10  ;;  %v5545_v26 = vld [vmem:[%s5993_s28 + $0xf0] sm:$0xff]   ;;  %v5549_v31 = vld [vmem:[%s5993_s28 + $0xf8] sm:$0xff]   ;;  %v240_v38 = vld [vmem:[%s5988_s24] sm:$0xff] }
  0x20   : > { %v5546_v27 = vld [vmem:[%s5993_s28 + $0x30] sm:$0xff]   ;;  %v5550_v32 = vld [vmem:[%s5993_s28 + $0x38] sm:$0xff]   ;;  %v988_v39 = vcombine.high %v240_v38, %v240_v38  ;;  %v5555_v41 = vld [vmem:[%s5993_s28 + $0x1c0] sm:$0xff]   ;;  %v995_v43 = vrot.slane %v240_v38, %v6031_v42 }
  0x21   : > { %4989 = vmatpush3.bf16.msra.mxu0 %v5530_v11  ;;  %v5547_v28 = vld [vmem:[%s5993_s28 + $0xb0] sm:$0xff]   ;;  %v5551_v33 = vld [vmem:[%s5993_s28 + $0xb8] sm:$0xff]   ;;  %v5554_v48 = vld [vmem:[%s5993_s28 + $0x100] sm:$0xff]  }
  0x22   : > { %5011 = vmatpush3.bf16.msra.mxu1 %v5531_v12  ;;  %4990 = vmatprep.subr.bf16.mxu0 %v5532_v13  ;;  %v6035_v44 = vrot.slane %v988_v39, %v6031_v42  ;;  %v1003_v45 = vcombine.high %v995_v43, %v995_v43  ;;  %v1011_v46 = vrot.slane %v995_v43, %v6031_v42  ;;  %v5556_v50 = vld [vmem:[%s5993_s28 + $0x180] sm:$0xff]   ;;  %v5557_v53 = vld [vmem:[%s5993_s28 + $0x148] sm:$0xff]   ;;  %v5561_v59 = vld [vmem:[%s5993_s28 + $0x150] sm:$0xff]  }
  0x23   : > { %5012 = vmatprep.subr.bf16.mxu1 %v5533_v14  ;;  %v5558_v55 = vld [vmem:[%s5993_s28 + $0x108] sm:$0xff]   ;;  %v5562_v60 = vld [vmem:[%s5993_s28 + $0x110] sm:$0xff]   ;;  %v5565_v63 = vld [vmem:[%s5993_s28 + $0x158] sm:$0xff]  }
  0x24   : > { %v1004_v47 = vcombine.high %v6035_v44, %v6035_v44  ;;  %v1025_v49 = vrot.slane %v1003_v45, %v6031_v42  ;;  %v1033_v52 = vcombine.high %v1011_v46, %v1011_v46  ;;  %v5559_v56 = vld [vmem:[%s5993_s28 + $0x1c8] sm:$0xff]   ;;  %v5563_v61 = vld [vmem:[%s5993_s28 + $0x1d0] sm:$0xff]   ;;  %v5566_v0 = vld [vmem:[%s5993_s28 + $0x118] sm:$0xff]  }
  0x25   : > { %4991 = vmatpush3.bf16.msra.mxu0 %v5534_v15  ;;  %v5560_v58 = vld [vmem:[%s5993_s28 + $0x188] sm:$0xff]   ;;  %v5564_v62 = vld [vmem:[%s5993_s28 + $0x190] sm:$0xff]   ;;  %v5567_v1 = vld [vmem:[%s5993_s28 + $0x1d8] sm:$0xff]  }
  0x26   : > { %5013 = vmatpush3.bf16.msra.mxu1 %v5535_v16  ;;  %4992 = vmatprep.subr.bf16.mxu0 %v5536_v17  ;;  %v1032_v51 = vrot.slane %v1004_v47, %v6031_v42  ;;  %v1035_v54 = vcombine.high %v1025_v49, %v1025_v49  ;;  %v5568_v2 = vld [vmem:[%s5993_s28 + $0x198] sm:$0xff]   ;;  %v5569_v3 = vld [vmem:[%s5993_s28 + $0x160] sm:$0xff]   ;;  %v5573_v7 = vld [vmem:[%s5993_s28 + $0x168] sm:$0xff]  }
  0x27   : > { %5014 = vmatprep.subr.bf16.mxu1 %v5537_v18  ;;  %3566 = vmatprep.mubr.bf16.mxu0 %v1025_v49  ;;  %v5570_v4 = vld [vmem:[%s5993_s28 + $0x120] sm:$0xff]   ;;  %v5574_v8 = vld [vmem:[%s5993_s28 + $0x128] sm:$0xff]   ;;  %v5577_v11 = vld [vmem:[%s5993_s28 + $0x170] sm:$0xff]  }
  0x28   : > { %v1036_v57 = vcombine.high %v1032_v51, %v1032_v51  ;;  %3606 = vmatprep.mubr.bf16.mxu1 %v1035_v54  ;;  %v5571_v5 = vld [vmem:[%s5993_s28 + $0x1e0] sm:$0xff]   ;;  %v5575_v9 = vld [vmem:[%s5993_s28 + $0x1e8] sm:$0xff]   ;;  %v5578_v12 = vld [vmem:[%s5993_s28 + $0x130] sm:$0xff]  }
  0x29   : > { %4993 = vmatpush3.bf16.msra.mxu0 %v5538_v19  ;;  %v5572_v6 = vld [vmem:[%s5993_s28 + $0x1a0] sm:$0xff]   ;;  %v5576_v10 = vld [vmem:[%s5993_s28 + $0x1a8] sm:$0xff]   ;;  %v5579_v13 = vld [vmem:[%s5993_s28 + $0x1f0] sm:$0xff]   ;;  %v1018_v19 = vrot.slane %v6035_v44, %v6031_v42 }
  0x2a   : > { %5015 = vmatpush3.bf16.msra.mxu1 %v5539_v20  ;;  %4994 = vmatprep.subr.bf16.mxu0 %v5540_v21  ;;  %v5580_v14 = vld [vmem:[%s5993_s28 + $0x1b0] sm:$0xff]   ;;  %v5581_v15 = vld [vmem:[%s5993_s28 + $0x178] sm:$0xff]   ;;  %v5585_v20 = vld [vmem:[%s5993_s28 + $0x240] sm:$0xff]  }
  0x2b   : > { %5016 = vmatprep.subr.bf16.mxu1 %v5541_v22  ;;  %v5582_v16 = vld [vmem:[%s5993_s28 + $0x138] sm:$0xff]   ;;  %v5586_v21 = vld [vmem:[%s5993_s28 + $0x200] sm:$0xff]   ;;  %v5594_v30 = vld [vmem:[%s5993_s28 + $0x210] sm:$0xff]  }
  0x2c   : > { %v5583_v17 = vld [vmem:[%s5993_s28 + $0x1f8] sm:$0xff]   ;;  %v5587_v22 = vld [vmem:[%s5993_s28 + $0x2c0] sm:$0xff]   ;;  %v5606_v43 = vld [vmem:[%s5993_s28 + $0x228] sm:$0xff]  }
  0x2d   : > { %4995 = vmatpush3.bf16.msra.mxu0 %v5542_v23  ;;  %v5584_v18 = vld [vmem:[%s5993_s28 + $0x1b8] sm:$0xff]   ;;  %v5588_v23 = vld [vmem:[%s5993_s28 + $0x280] sm:$0xff]   ;;  %v5607_v44 = vld [vmem:[%s5993_s28 + $0x2e8] sm:$0xff]  }
  0x2e   : > { %5017 = vmatpush3.bf16.msra.mxu1 %v5543_v24  ;;  %4996 = vmatprep.subr.bf16.mxu0 %v5544_v25  ;;  %v1034_v24 = vcombine.high %v1018_v19, %v1018_v19  ;;  %v5589_v25 = vld [vmem:[%s5993_s28 + $0x248] sm:$0xff]   ;;  %v5598_v34 = vld [vmem:[%s5993_s28 + $0x218] sm:$0xff]   ;;  %v5601_v37 = vld [vmem:[%s5993_s28 + $0x260] sm:$0xff]  }
  0x2f   : > { %5018 = vmatprep.subr.bf16.mxu1 %v5545_v26  ;;  %v5590_v26 = vld [vmem:[%s5993_s28 + $0x208] sm:$0xff]   ;;  %v5600_v36 = vld [vmem:[%s5993_s28 + $0x298] sm:$0xff]   ;;  %v5602_v38 = vld [vmem:[%s5993_s28 + $0x220] sm:$0xff]  }
  0x30   : > { %v5603_v39 = vld [vmem:[%s5993_s28 + $0x2e0] sm:$0xff]   ;;  %v5608_v45 = vld [vmem:[%s5993_s28 + $0x2a8] sm:$0xff]   ;;  %v5609_v47 = vld [vmem:[%s5993_s28 + $0x270] sm:$0xff]  }
  0x31   : > { %4997 = vmatpush3.bf16.msra.mxu0 %v5546_v27  ;;  %v5591_v27 = vld [vmem:[%s5993_s28 + $0x2c8] sm:$0xff]   ;;  %v5604_v40 = vld [vmem:[%s5993_s28 + $0x2a0] sm:$0xff]   ;;  %v5612_v54 = vld [vmem:[%s5993_s28 + $0x2b0] sm:$0xff]  }
  0x32   : > { %5019 = vmatpush3.bf16.msra.mxu1 %v5547_v28  ;;  %4998 = vmatprep.subr.bf16.mxu0 %v5548_v29  ;;  %v5592_v28 = vld [vmem:[%s5993_s28 + $0x288] sm:$0xff]   ;;  %v5593_v29 = vld [vmem:[%s5993_s28 + $0x250] sm:$0xff]  }
  0x33   : > { %5020 = vmatprep.subr.bf16.mxu1 %v5549_v31  ;;  %v5595_v31 = vld [vmem:[%s5993_s28 + $0x2d0] sm:$0xff]  }
  0x35   : > { %4999 = vmatpush3.bf16.msra.mxu0 %v5550_v32  ;;  %v5596_v32 = vld [vmem:[%s5993_s28 + $0x290] sm:$0xff]  }
  0x36   : > { %5021 = vmatpush3.bf16.msra.mxu1 %v5551_v33  ;;  %5028 = vmatprep.subr.bf16.mxu0 %v5553_v35  ;;  %v5597_v33 = vld [vmem:[%s5993_s28 + $0x258] sm:$0xff]  }
  0x37   : > { %5050 = vmatprep.subr.bf16.mxu1 %v5555_v41  ;;  %v5599_v35 = vld [vmem:[%s5993_s28 + $0x2d8] sm:$0xff]   ;;  %v5605_v41 = vld [vmem:[%s5993_s28 + $0x268] sm:$0xff]  }
  0x38   : > { %3567 = vmatmul.mubr.bf16.vlgmr.msra.gmra.mrb[0].mxu0 %v1011_v46  ;;  %v241_v46 = vld [vmem:[%s5988_s24 + $0x8] sm:$0xff] }
  0x39   : > { %5029 = vmatpush3.bf16.msra.mxu0 %v5554_v48  ;;  %3607 = vmatmul.mubr.bf16.vlgmr.msra.gmra.mrb[0].mxu1 %v1033_v52  ;;  %v1044_v48 = vrot.slane %v241_v46, %v6031_v42  ;;  %v1037_v49 = vcombine.high %v241_v46, %v241_v46  ;;  %v5659_v46 = vld [vmem:[%s5993_s28 + $0x410] sm:$0xff]  }
  0x3a   : > { %5030 = vmatprep.subr.bf16.mxu0 %v5557_v53  ;;  %5051 = vmatpush3.bf16.msra.mxu1 %v5556_v50  ;;  %v5610_v50 = vld [vmem:[%s5993_s28 + $0x230] sm:$0xff]  }
  0x3b   : > { %3646 = vmatprep.mubr.bf16.mxu0 %v1032_v51  ;;  %5052 = vmatprep.subr.bf16.mxu1 %v5559_v56  ;;  %v5611_v51 = vld [vmem:[%s5993_s28 + $0x2f0] sm:$0xff]   ;;  %v1052_v52 = vcombine.high %v1044_v48, %v1044_v48  ;;  %v6104_v53 = vrot.slane %v1037_v49, %v6031_v42  ;;  %v5662_v49 = vld [vmem:[%s5993_s28 + $0x458] sm:$0xff]  }
  0x3c   : > { %3686 = vmatprep.mubr.bf16.mxu1 %v1036_v57  ;;  %v5614_v57 = vld [vmem:[%s5993_s28 + $0x238] sm:$0xff]  }
  0x3d   : > { %5031 = vmatpush3.bf16.msra.mxu0 %v5558_v55  ;;  %v5613_v55 = vld [vmem:[%s5993_s28 + $0x278] sm:$0xff]   ;;  %v1074_v56 = vrot.slane %v1052_v52, %v6031_v42 }
  0x3e   : > { %5032 = vmatprep.subr.bf16.mxu0 %v5561_v59  ;;  %5053 = vmatpush3.bf16.msra.mxu1 %v5560_v58  ;;  %v1053_v58 = vcombine.high %v6104_v53, %v6104_v53  ;;  %v5615_v59 = vld [vmem:[%s5993_s28 + $0x2f8] sm:$0xff]  }
  0x3f   : > { %5054 = vmatprep.subr.bf16.mxu1 %v5563_v61  ;;  %v5616_v61 = vld [vmem:[%s5993_s28 + $0x2b8] sm:$0xff]  }
  0x40   : > { %v5665_v52 = vld [vmem:[%s5993_s28 + $0x498] sm:$0xff]  }
  0x41   : > { %5033 = vmatpush3.bf16.msra.mxu0 %v5562_v60  ;;  %v1084_v60 = vcombine.high %v1074_v56, %v1074_v56 }
  0x42   : > { %5034 = vmatprep.subr.bf16.mxu0 %v5565_v63  ;;  %5055 = vmatpush3.bf16.msra.mxu1 %v5564_v62  ;;  %v1060_v62 = vrot.slane %v1044_v48, %v6031_v42  ;;  %v5617_v63 = vld [vmem:[%s5993_s28 + $0x340] sm:$0xff]   ;;  %v5661_v48 = vld [vmem:[%s5993_s28 + $0x490] sm:$0xff]  }
  0x43   : > { %5056 = vmatprep.subr.bf16.mxu1 %v5567_v1  ;;  %v1081_v1 = vrot.slane %v1053_v58, %v6031_v42  ;;  %v5671_v58 = vld [vmem:[%s5993_s28 + $0x428] sm:$0xff]  }
  0x45   : > { %5035 = vmatpush3.bf16.msra.mxu0 %v5566_v0  ;;  %v5618_v0 = vld [vmem:[%s5993_s28 + $0x300] sm:$0xff]  }
  0x46   : > { %5036 = vmatprep.subr.bf16.mxu0 %v5569_v3  ;;  %5057 = vmatpush3.bf16.msra.mxu1 %v5568_v2  ;;  %v5619_v2 = vld [vmem:[%s5993_s28 + $0x3c0] sm:$0xff]  }
  0x47   : > { %5058 = vmatprep.subr.bf16.mxu1 %v5571_v5  ;;  %v5620_v3 = vld [vmem:[%s5993_s28 + $0x380] sm:$0xff]   ;;  %v5621_v5 = vld [vmem:[%s5993_s28 + $0x348] sm:$0xff]  }
  0x49   : > { %5037 = vmatpush3.bf16.msra.mxu0 %v5570_v4  ;;  %v1082_v4 = vcombine.high %v1060_v62, %v1060_v62 }
  0x4a   : > { %5038 = vmatprep.subr.bf16.mxu0 %v5573_v7  ;;  %5059 = vmatpush3.bf16.msra.mxu1 %v5572_v6  ;;  %v5622_v6 = vld [vmem:[%s5993_s28 + $0x308] sm:$0xff]   ;;  %v1085_v7 = vcombine.high %v1081_v1, %v1081_v1 }
  0x4b   : > { %5060 = vmatprep.subr.bf16.mxu1 %v5575_v9  ;;  %v5624_v9 = vld [vmem:[%s5993_s28 + $0x388] sm:$0xff]  }
  0x4d   : > { %5039 = vmatpush3.bf16.msra.mxu0 %v5574_v8  ;;  %v5623_v8 = vld [vmem:[%s5993_s28 + $0x3c8] sm:$0xff]  }
  0x4e   : > { %5040 = vmatprep.subr.bf16.mxu0 %v5577_v11  ;;  %5061 = vmatpush3.bf16.msra.mxu1 %v5576_v10  ;;  %v5625_v10 = vld [vmem:[%s5993_s28 + $0x350] sm:$0xff]  }
  0x4f   : > { %5062 = vmatprep.subr.bf16.mxu1 %v5579_v13  ;;  %v5626_v11 = vld [vmem:[%s5993_s28 + $0x310] sm:$0xff]  }
  0x50   : > { %v5628_v13 = vld [vmem:[%s5993_s28 + $0x390] sm:$0xff]  }
  0x51   : > { %5041 = vmatpush3.bf16.msra.mxu0 %v5578_v12  ;;  %v5627_v12 = vld [vmem:[%s5993_s28 + $0x3d0] sm:$0xff]  }
  0x52   : > { %5042 = vmatprep.subr.bf16.mxu0 %v5581_v15  ;;  %5063 = vmatpush3.bf16.msra.mxu1 %v5580_v14  ;;  %v5629_v14 = vld [vmem:[%s5993_s28 + $0x358] sm:$0xff]  }
  0x53   : > { %5064 = vmatprep.subr.bf16.mxu1 %v5583_v17  ;;  %v5630_v15 = vld [vmem:[%s5993_s28 + $0x318] sm:$0xff]  }
  0x54   : > { %v5632_v17 = vld [vmem:[%s5993_s28 + $0x398] sm:$0xff]  }
  0x55   : > { %5043 = vmatpush3.bf16.msra.mxu0 %v5582_v16  ;;  %v5631_v16 = vld [vmem:[%s5993_s28 + $0x3d8] sm:$0xff]  }
  0x56   : > { %5072 = vmatprep.subr.bf16.mxu0 %v5585_v20  ;;  %5065 = vmatpush3.bf16.msra.mxu1 %v5584_v18  ;;  %v5633_v18 = vld [vmem:[%s5993_s28 + $0x360] sm:$0xff]  }
  0x57   : > { %5094 = vmatprep.subr.bf16.mxu1 %v5587_v22  ;;  %v5635_v20 = vld [vmem:[%s5993_s28 + $0x3e0] sm:$0xff]   ;;  %v5637_v22 = vld [vmem:[%s5993_s28 + $0x368] sm:$0xff]  }
  0x58   : > { %3647 = vmatmul.mubr.bf16.vlgmr.msra.gmra.mrb[4].mxu0 %v1018_v19  ;;  %v5634_v19 = vld [vmem:[%s5993_s28 + $0x320] sm:$0xff]  }
  0x59   : > { %5073 = vmatpush3.bf16.msra.mxu0 %v5586_v21  ;;  %3687 = vmatmul.mubr.bf16.vlgmr.msra.gmra.mrb[4].mxu1 %v1034_v24  ;;  %v5636_v21 = vld [vmem:[%s5993_s28 + $0x3a0] sm:$0xff]   ;;  %v5639_v24 = vld [vmem:[%s5993_s28 + $0x3e8] sm:$0xff]  }
  0x5a   : > { %5074 = vmatprep.subr.bf16.mxu0 %v5589_v25  ;;  %5095 = vmatpush3.bf16.msra.mxu1 %v5588_v23  ;;  %v5638_v23 = vld [vmem:[%s5993_s28 + $0x328] sm:$0xff]  }
  0x5b   : > { %5096 = vmatprep.subr.bf16.mxu1 %v5591_v27  ;;  %3726 = vmatprep.mubr.bf16.mxu0 %v1074_v56  ;;  %v5640_v25 = vld [vmem:[%s5993_s28 + $0x3a8] sm:$0xff]   ;;  %v5642_v27 = vld [vmem:[%s5993_s28 + $0x330] sm:$0xff]   ;;  %v5669_v56 = vld [vmem:[%s5993_s28 + $0x4a0] sm:$0xff]  }
  0x5c   : > { %3766 = vmatprep.mubr.bf16.mxu1 %v1084_v60  ;;  %v5673_v60 = vld [vmem:[%s5993_s28 + $0x4a8] sm:$0xff]  }
  0x5d   : > { %5075 = vmatpush3.bf16.msra.mxu0 %v5590_v26  ;;  %v5641_v26 = vld [vmem:[%s5993_s28 + $0x370] sm:$0xff]  }
  0x5e   : > { %5076 = vmatprep.subr.bf16.mxu0 %v5593_v29  ;;  %5097 = vmatpush3.bf16.msra.mxu1 %v5592_v28  ;;  %v5643_v28 = vld [vmem:[%s5993_s28 + $0x3f0] sm:$0xff]  }
  0x5f   : > { %5098 = vmatprep.subr.bf16.mxu1 %v5595_v31  ;;  %v5644_v29 = vld [vmem:[%s5993_s28 + $0x3b0] sm:$0xff]   ;;  %v5646_v31 = vld [vmem:[%s5993_s28 + $0x338] sm:$0xff]  }
  0x61   : > { %5077 = vmatpush3.bf16.msra.mxu0 %v5594_v30  ;;  %v5645_v30 = vld [vmem:[%s5993_s28 + $0x378] sm:$0xff]  }
  0x62   : > { %5078 = vmatprep.subr.bf16.mxu0 %v5597_v33  ;;  %5099 = vmatpush3.bf16.msra.mxu1 %v5596_v32  ;;  %v5647_v32 = vld [vmem:[%s5993_s28 + $0x3f8] sm:$0xff]  }
  0x63   : > { %5100 = vmatprep.subr.bf16.mxu1 %v5599_v35  ;;  %v5649_v33 = vld [vmem:[%s5993_s28 + $0x3b8] sm:$0xff]   ;;  %v5650_v35 = vld [vmem:[%s5993_s28 + $0x440] sm:$0xff]  }
  0x65   : > { %5079 = vmatpush3.bf16.msra.mxu0 %v5598_v34  ;;  %v1067_v34 = vrot.slane %v6104_v53, %v6031_v42  ;;  %v5666_v53 = vld [vmem:[%s5993_s28 + $0x460] sm:$0xff]  }
  0x66   : > { %5080 = vmatprep.subr.bf16.mxu0 %v5601_v37  ;;  %5101 = vmatpush3.bf16.msra.mxu1 %v5600_v36  ;;  %v5651_v36 = vld [vmem:[%s5993_s28 + $0x400] sm:$0xff]  }
  0x67   : > { %5102 = vmatprep.subr.bf16.mxu1 %v5603_v39  ;;  %v5652_v37 = vld [vmem:[%s5993_s28 + $0x4c0] sm:$0xff]   ;;  %v1083_v39 = vcombine.high %v1067_v34, %v1067_v34 }
  0x69   : > { %5081 = vmatpush3.bf16.msra.mxu0 %v5602_v38  ;;  %v5653_v38 = vld [vmem:[%s5993_s28 + $0x480] sm:$0xff]  }
  0x6a   : > { %5082 = vmatprep.subr.bf16.mxu0 %v5605_v41  ;;  %5103 = vmatpush3.bf16.msra.mxu1 %v5604_v40  ;;  %v5654_v40 = vld [vmem:[%s5993_s28 + $0x448] sm:$0xff]  }
  0x6b   : > { %5104 = vmatprep.subr.bf16.mxu1 %v5607_v44  ;;  %v5655_v41 = vld [vmem:[%s5993_s28 + $0x408] sm:$0xff]  }
  0x6c   : > { %v5657_v44 = vld [vmem:[%s5993_s28 + $0x488] sm:$0xff]  }
  0x6d   : > { %5083 = vmatpush3.bf16.msra.mxu0 %v5606_v43  ;;  %v5656_v43 = vld [vmem:[%s5993_s28 + $0x4c8] sm:$0xff]  }
  0x6e   : > { %5084 = vmatprep.subr.bf16.mxu0 %v5609_v47  ;;  %5105 = vmatpush3.bf16.msra.mxu1 %v5608_v45  ;;  %v5658_v45 = vld [vmem:[%s5993_s28 + $0x450] sm:$0xff]  }
  0x6f   : > { %5106 = vmatprep.subr.bf16.mxu1 %v5611_v51  ;;  %v5660_v47 = vld [vmem:[%s5993_s28 + $0x4d0] sm:$0xff]   ;;  %v5664_v51 = vld [vmem:[%s5993_s28 + $0x4d8] sm:$0xff]  }
  0x71   : > { %5085 = vmatpush3.bf16.msra.mxu0 %v5610_v50  ;;  %v5663_v50 = vld [vmem:[%s5993_s28 + $0x418] sm:$0xff]  }
  0x72   : > { %5086 = vmatprep.subr.bf16.mxu0 %v5613_v55  ;;  %5107 = vmatpush3.bf16.msra.mxu1 %v5612_v54  ;;  %v5667_v54 = vld [vmem:[%s5993_s28 + $0x420] sm:$0xff]  }
  0x73   : > { %5108 = vmatprep.subr.bf16.mxu1 %v5615_v59  ;;  %v5668_v55 = vld [vmem:[%s5993_s28 + $0x4e0] sm:$0xff]   ;;  %v5672_v59 = vld [vmem:[%s5993_s28 + $0x4e8] sm:$0xff]  }
  0x75   : > { %5087 = vmatpush3.bf16.msra.mxu0 %v5614_v57  ;;  %v5670_v57 = vld [vmem:[%s5993_s28 + $0x468] sm:$0xff]  }
  0x76   : > { %5116 = vmatprep.subr.bf16.mxu0 %v5617_v63  ;;  %5109 = vmatpush3.bf16.msra.mxu1 %v5616_v61  ;;  %v242_v61 = vld [vmem:[%s5988_s24 + $0x10] sm:$0xff] }
  0x77   : > { %5138 = vmatprep.subr.bf16.mxu1 %v5619_v2  ;;  %v1093_v63 = vrot.slane %v242_v61, %v6031_v42  ;;  %v5676_v2 = vld [vmem:[%s5993_s28 + $0x4f0] sm:$0xff]  }
  0x78   : > { %3727 = vmatmul.mubr.bf16.vlgmr.msra.gmra.mrb[8].mxu0 %v1060_v62  ;;  %v5674_v62 = vld [vmem:[%s5993_s28 + $0x470] sm:$0xff]  }
  0x79   : > { %5117 = vmatpush3.bf16.msra.mxu0 %v5618_v0  ;;  %3806 = vmatprep.mubr.bf16.mxu0 %v1081_v1  ;;  %v1086_v0 = vcombine.high %v242_v61, %v242_v61  ;;  %v5675_v1 = vld [vmem:[%s5993_s28 + $0x430] sm:$0xff]  }
  0x7a   : > { %3767 = vmatmul.mubr.bf16.vlgmr.msra.gmra.mrb[8].mxu1 %v1082_v4  ;;  %5118 = vmatprep.subr.bf16.mxu0 %v5621_v5  ;;  %v5677_v5 = vld [vmem:[%s5993_s28 + $0x4b0] sm:$0xff]  }
  0x7b   : > { %5139 = vmatpush3.bf16.msra.mxu1 %v5620_v3  ;;  %3846 = vmatprep.mubr.bf16.mxu1 %v1085_v7  ;;  %v1101_v3 = vcombine.high %v1093_v63, %v1093_v63  ;;  %v6180_v4 = vrot.slane %v1086_v0, %v6031_v42  ;;  %v5724_v61 = vld [vmem:[%s5993_s28 + $0x610] sm:$0xff]   ;;  %v5727_v0 = vld [vmem:[%s5993_s28 + $0x658] sm:$0xff]  }
  0x7c   : > { %5140 = vmatprep.subr.bf16.mxu1 %v5623_v8  ;;  %v5679_v8 = vld [vmem:[%s5993_s28 + $0x438] sm:$0xff]  }
  0x7d   : > { %5119 = vmatpush3.bf16.msra.mxu0 %v5622_v6  ;;  %v5678_v6 = vld [vmem:[%s5993_s28 + $0x478] sm:$0xff]   ;;  %v1123_v7 = vrot.slane %v1101_v3, %v6031_v42 }
  0x7e   : > { %5120 = vmatprep.subr.bf16.mxu0 %v5625_v10  ;;  %v5680_v10 = vld [vmem:[%s5993_s28 + $0x4f8] sm:$0xff]  }
  0x7f   : > { %5141 = vmatpush3.bf16.msra.mxu1 %v5624_v9  ;;  %v1102_v9 = vcombine.high %v6180_v4, %v6180_v4  ;;  %v5730_v3 = vld [vmem:[%s5993_s28 + $0x698] sm:$0xff]  }
  0x80   : > { %5142 = vmatprep.subr.bf16.mxu1 %v5627_v12  ;;  %v5681_v12 = vld [vmem:[%s5993_s28 + $0x4b8] sm:$0xff]  }
  0x81   : > { %5121 = vmatpush3.bf16.msra.mxu0 %v5626_v11  ;;  %v1133_v11 = vcombine.high %v1123_v7, %v1123_v7 }
  0x82   : > { %5122 = vmatprep.subr.bf16.mxu0 %v5629_v14  ;;  %v5682_v14 = vld [vmem:[%s5993_s28 + $0x540] sm:$0xff]  }
  0x83   : > { %5143 = vmatpush3.bf16.msra.mxu1 %v5628_v13  ;;  %v1109_v13 = vrot.slane %v1093_v63, %v6031_v42  ;;  %v5726_v63 = vld [vmem:[%s5993_s28 + $0x690] sm:$0xff]  }
  0x84   : > { %5144 = vmatprep.subr.bf16.mxu1 %v5631_v16  ;;  %v1130_v16 = vrot.slane %v1102_v9, %v6031_v42  ;;  %v5736_v9 = vld [vmem:[%s5993_s28 + $0x628] sm:$0xff]  }
  0x85   : > { %5123 = vmatpush3.bf16.msra.mxu0 %v5630_v15  ;;  %v5683_v15 = vld [vmem:[%s5993_s28 + $0x500] sm:$0xff]  }
  0x86   : > { %5124 = vmatprep.subr.bf16.mxu0 %v5633_v18  ;;  %v5685_v18 = vld [vmem:[%s5993_s28 + $0x580] sm:$0xff]  }
  0x87   : > { %5145 = vmatpush3.bf16.msra.mxu1 %v5632_v17  ;;  %v5684_v17 = vld [vmem:[%s5993_s28 + $0x5c0] sm:$0xff]  }
  0x88   : > { %5146 = vmatprep.subr.bf16.mxu1 %v5635_v20  ;;  %v5686_v20 = vld [vmem:[%s5993_s28 + $0x548] sm:$0xff]  }
  0x89   : > { %5125 = vmatpush3.bf16.msra.mxu0 %v5634_v19  ;;  %v1131_v19 = vcombine.high %v1109_v13, %v1109_v13 }
  0x8a   : > { %5126 = vmatprep.subr.bf16.mxu0 %v5637_v22  ;;  %v1134_v22 = vcombine.high %v1130_v16, %v1130_v16 }
  0x8b   : > { %5147 = vmatpush3.bf16.msra.mxu1 %v5636_v21  ;;  %v5687_v21 = vld [vmem:[%s5993_s28 + $0x508] sm:$0xff]  }
  0x8c   : > { %5148 = vmatprep.subr.bf16.mxu1 %v5639_v24  ;;  %v5689_v24 = vld [vmem:[%s5993_s28 + $0x588] sm:$0xff]  }
  0x8d   : > { %5127 = vmatpush3.bf16.msra.mxu0 %v5638_v23  ;;  %v5688_v23 = vld [vmem:[%s5993_s28 + $0x5c8] sm:$0xff]  }
  0x8e   : > { %5128 = vmatprep.subr.bf16.mxu0 %v5641_v26  ;;  %v5691_v26 = vld [vmem:[%s5993_s28 + $0x510] sm:$0xff]  }
  0x8f   : > { %5149 = vmatpush3.bf16.msra.mxu1 %v5640_v25  ;;  %v5690_v25 = vld [vmem:[%s5993_s28 + $0x550] sm:$0xff]  }
  0x90   : > { %5150 = vmatprep.subr.bf16.mxu1 %v5643_v28  ;;  %v5693_v28 = vld [vmem:[%s5993_s28 + $0x590] sm:$0xff]  }
  0x91   : > { %5129 = vmatpush3.bf16.msra.mxu0 %v5642_v27  ;;  %v5692_v27 = vld [vmem:[%s5993_s28 + $0x5d0] sm:$0xff]  }
  0x92   : > { %5130 = vmatprep.subr.bf16.mxu0 %v5645_v30  ;;  %v5695_v30 = vld [vmem:[%s5993_s28 + $0x518] sm:$0xff]  }
  0x93   : > { %5151 = vmatpush3.bf16.msra.mxu1 %v5644_v29  ;;  %v5694_v29 = vld [vmem:[%s5993_s28 + $0x558] sm:$0xff]  }
  0x94   : > { %5152 = vmatprep.subr.bf16.mxu1 %v5647_v32  ;;  %v5697_v32 = vld [vmem:[%s5993_s28 + $0x598] sm:$0xff]  }
  0x95   : > { %5131 = vmatpush3.bf16.msra.mxu0 %v5646_v31  ;;  %v5696_v31 = vld [vmem:[%s5993_s28 + $0x5d8] sm:$0xff]  }
  0x96   : > { %5160 = vmatprep.subr.bf16.mxu0 %v5650_v35  ;;  %v5700_v35 = vld [vmem:[%s5993_s28 + $0x5e0] sm:$0xff]  }
  0x97   : > { %5153 = vmatpush3.bf16.msra.mxu1 %v5649_v33  ;;  %v5698_v33 = vld [vmem:[%s5993_s28 + $0x560] sm:$0xff]  }
  0x98   : > { %3807 = vmatmul.mubr.bf16.vlgmr.msra.gmra.mrb[12].mxu0 %v1067_v34  ;;  %5182 = vmatprep.subr.bf16.mxu1 %v5652_v37  ;;  %v5699_v34 = vld [vmem:[%s5993_s28 + $0x520] sm:$0xff]   ;;  %v5702_v37 = vld [vmem:[%s5993_s28 + $0x568] sm:$0xff]  }
  0x99   : > { %5161 = vmatpush3.bf16.msra.mxu0 %v5651_v36  ;;  %3886 = vmatprep.mubr.bf16.mxu0 %v1123_v7  ;;  %v5701_v36 = vld [vmem:[%s5993_s28 + $0x5a0] sm:$0xff]  }
  0x9a   : > { %3847 = vmatmul.mubr.bf16.vlgmr.msra.gmra.mrb[12].mxu1 %v1083_v39  ;;  %5162 = vmatprep.subr.bf16.mxu0 %v5654_v40  ;;  %v5704_v39 = vld [vmem:[%s5993_s28 + $0x5e8] sm:$0xff]   ;;  %v5734_v7 = vld [vmem:[%s5993_s28 + $0x6a0] sm:$0xff]  }
  0x9b   : > { %5183 = vmatpush3.bf16.msra.mxu1 %v5653_v38  ;;  %3926 = vmatprep.mubr.bf16.mxu1 %v1133_v11  ;;  %v5703_v38 = vld [vmem:[%s5993_s28 + $0x528] sm:$0xff]  }
  0x9c   : > { %5184 = vmatprep.subr.bf16.mxu1 %v5656_v43  ;;  %v5705_v40 = vld [vmem:[%s5993_s28 + $0x5a8] sm:$0xff]   ;;  %v5707_v43 = vld [vmem:[%s5993_s28 + $0x530] sm:$0xff]  }
  0x9d   : > { %5163 = vmatpush3.bf16.msra.mxu0 %v5655_v41  ;;  %v5706_v41 = vld [vmem:[%s5993_s28 + $0x570] sm:$0xff]   ;;  %v5738_v11 = vld [vmem:[%s5993_s28 + $0x6a8] sm:$0xff]  }
  0x9e   : > { %5164 = vmatprep.subr.bf16.mxu0 %v5658_v45  ;;  %v5709_v45 = vld [vmem:[%s5993_s28 + $0x5b0] sm:$0xff]  }
  0x9f   : > { %5185 = vmatpush3.bf16.msra.mxu1 %v5657_v44  ;;  %v5708_v44 = vld [vmem:[%s5993_s28 + $0x5f0] sm:$0xff]  }
  0xa0   : > { %5186 = vmatprep.subr.bf16.mxu1 %v5660_v47  ;;  %v5711_v47 = vld [vmem:[%s5993_s28 + $0x538] sm:$0xff]  }
  0xa1   : > { %5165 = vmatpush3.bf16.msra.mxu0 %v5659_v46  ;;  %v5710_v46 = vld [vmem:[%s5993_s28 + $0x578] sm:$0xff]  }
  0xa2   : > { %5166 = vmatprep.subr.bf16.mxu0 %v5662_v49  ;;  %v5714_v49 = vld [vmem:[%s5993_s28 + $0x5b8] sm:$0xff]  }
  0xa3   : > { %5187 = vmatpush3.bf16.msra.mxu1 %v5661_v48  ;;  %v5712_v48 = vld [vmem:[%s5993_s28 + $0x5f8] sm:$0xff]  }
  0xa4   : > { %5188 = vmatprep.subr.bf16.mxu1 %v5664_v51  ;;  %v5715_v51 = vld [vmem:[%s5993_s28 + $0x640] sm:$0xff]  }
  0xa5   : > { %5167 = vmatpush3.bf16.msra.mxu0 %v5663_v50  ;;  %v1116_v50 = vrot.slane %v6180_v4, %v6031_v42  ;;  %v5731_v4 = vld [vmem:[%s5993_s28 + $0x660] sm:$0xff]  }
  0xa6   : > { %5168 = vmatprep.subr.bf16.mxu0 %v5666_v53  ;;  %v5717_v53 = vld [vmem:[%s5993_s28 + $0x6c0] sm:$0xff]  }
  0xa7   : > { %5189 = vmatpush3.bf16.msra.mxu1 %v5665_v52  ;;  %v5716_v52 = vld [vmem:[%s5993_s28 + $0x600] sm:$0xff]  }
  0xa8   : > { %5190 = vmatprep.subr.bf16.mxu1 %v5668_v55  ;;  %v1132_v55 = vcombine.high %v1116_v50, %v1116_v50 }
  0xa9   : > { %5169 = vmatpush3.bf16.msra.mxu0 %v5667_v54  ;;  %v5718_v54 = vld [vmem:[%s5993_s28 + $0x680] sm:$0xff]  }
  0xaa   : > { %5170 = vmatprep.subr.bf16.mxu0 %v5670_v57  ;;  %v5720_v57 = vld [vmem:[%s5993_s28 + $0x608] sm:$0xff]  }
  0xab   : > { %5191 = vmatpush3.bf16.msra.mxu1 %v5669_v56  ;;  %v5719_v56 = vld [vmem:[%s5993_s28 + $0x648] sm:$0xff]  }
  0xac   : > { %5192 = vmatprep.subr.bf16.mxu1 %v5672_v59  ;;  %v5722_v59 = vld [vmem:[%s5993_s28 + $0x688] sm:$0xff]  }
  0xad   : > { %5171 = vmatpush3.bf16.msra.mxu0 %v5671_v58  ;;  %v5721_v58 = vld [vmem:[%s5993_s28 + $0x6c8] sm:$0xff]  }
  0xae   : > { %5172 = vmatprep.subr.bf16.mxu0 %v5674_v62  ;;  %v5725_v62 = vld [vmem:[%s5993_s28 + $0x6d0] sm:$0xff]  }
  0xaf   : > { %5193 = vmatpush3.bf16.msra.mxu1 %v5673_v60  ;;  %v5723_v60 = vld [vmem:[%s5993_s28 + $0x650] sm:$0xff]  }
  0xb0   : > { %5194 = vmatprep.subr.bf16.mxu1 %v5676_v2  ;;  %v5729_v2 = vld [vmem:[%s5993_s28 + $0x6d8] sm:$0xff]  }
  0xb1   : > { %5173 = vmatpush3.bf16.msra.mxu0 %v5675_v1  ;;  %v5728_v1 = vld [vmem:[%s5993_s28 + $0x618] sm:$0xff]  }
  0xb2   : > { %5174 = vmatprep.subr.bf16.mxu0 %v5678_v6  ;;  %v5733_v6 = vld [vmem:[%s5993_s28 + $0x6e0] sm:$0xff]  }
  0xb3   : > { %5195 = vmatpush3.bf16.msra.mxu1 %v5677_v5  ;;  %v5732_v5 = vld [vmem:[%s5993_s28 + $0x620] sm:$0xff]  }
  0xb4   : > { %5196 = vmatprep.subr.bf16.mxu1 %v5680_v10  ;;  %v5737_v10 = vld [vmem:[%s5993_s28 + $0x6e8] sm:$0xff]  }
  0xb5   : > { %5175 = vmatpush3.bf16.msra.mxu0 %v5679_v8  ;;  %v5735_v8 = vld [vmem:[%s5993_s28 + $0x668] sm:$0xff]  }
  0xb6   : > { %5204 = vmatprep.subr.bf16.mxu0 %v5682_v14  ;;  %v5740_v14 = vld [vmem:[%s5993_s28 + $0x630] sm:$0xff]  }
  0xb7   : > { %5197 = vmatpush3.bf16.msra.mxu1 %v5681_v12  ;;  %v5739_v12 = vld [vmem:[%s5993_s28 + $0x670] sm:$0xff]  }
  0xb8   : > { %3887 = vmatmul.mubr.bf16.vlgmr.msra.gmra.mrb[16].mxu0 %v1109_v13  ;;  %5226 = vmatprep.subr.bf16.mxu1 %v5684_v17  ;;  %v243_v13 = vld [vmem:[%s5988_s24 + $0x18] sm:$0xff]  ;;  %v5741_v17 = vld [vmem:[%s5993_s28 + $0x6f0] sm:$0xff]  }
  0xb9   : > { %5205 = vmatpush3.bf16.msra.mxu0 %v5683_v15  ;;  %3966 = vmatprep.mubr.bf16.mxu0 %v1130_v16  ;;  %v1142_v15 = vrot.slane %v243_v13, %v6031_v42  ;;  %v1135_v16 = vcombine.high %v243_v13, %v243_v13  ;;  %v5780_v13 = vld [vmem:[%s5993_s28 + $0x840] sm:$0xff]  }
  0xba   : > { %3927 = vmatmul.mubr.bf16.vlgmr.msra.gmra.mrb[16].mxu1 %v1131_v19  ;;  %5206 = vmatprep.subr.bf16.mxu0 %v5686_v20 }
  0xbb   : > { %5227 = vmatpush3.bf16.msra.mxu1 %v5685_v18  ;;  %4006 = vmatprep.mubr.bf16.mxu1 %v1134_v22  ;;  %v5742_v18 = vld [vmem:[%s5993_s28 + $0x6b0] sm:$0xff]   ;;  %v1150_v19 = vcombine.high %v1142_v15, %v1142_v15  ;;  %v6257_v20 = vrot.slane %v1135_v16, %v6031_v42  ;;  %v5744_v22 = vld [vmem:[%s5993_s28 + $0x638] sm:$0xff]   ;;  %v5783_v16 = vld [vmem:[%s5993_s28 + $0x880] sm:$0xff]  }
  0xbc   : > { %5228 = vmatprep.subr.bf16.mxu1 %v5688_v23 }
  0xbd   : > { %5207 = vmatpush3.bf16.msra.mxu0 %v5687_v21  ;;  %v5743_v21 = vld [vmem:[%s5993_s28 + $0x678] sm:$0xff]   ;;  %v1172_v23 = vrot.slane %v1150_v19, %v6031_v42  ;;  %v5785_v19 = vld [vmem:[%s5993_s28 + $0x808] sm:$0xff]  }
  0xbe   : > { %5208 = vmatprep.subr.bf16.mxu0 %v5690_v25  ;;  %v5745_v25 = vld [vmem:[%s5993_s28 + $0x6f8] sm:$0xff]  }
  0xbf   : > { %5229 = vmatpush3.bf16.msra.mxu1 %v5689_v24  ;;  %v1151_v24 = vcombine.high %v6257_v20, %v6257_v20 }
  0xc0   : > { %5230 = vmatprep.subr.bf16.mxu1 %v5692_v27  ;;  %v1182_v27 = vcombine.high %v1172_v23, %v1172_v23 }
  0xc1   : > { %5209 = vmatpush3.bf16.msra.mxu0 %v5691_v26  ;;  %v5746_v26 = vld [vmem:[%s5993_s28 + $0x6b8] sm:$0xff]  }
  0xc2   : > { %5210 = vmatprep.subr.bf16.mxu0 %v5694_v29  ;;  %v5747_v29 = vld [vmem:[%s5993_s28 + $0x740] sm:$0xff]  }
  0xc3   : > { %5231 = vmatpush3.bf16.msra.mxu1 %v5693_v28  ;;  %v1158_v28 = vrot.slane %v1142_v15, %v6031_v42  ;;  %v5782_v15 = vld [vmem:[%s5993_s28 + $0x8c0] sm:$0xff]  }
  0xc4   : > { %5232 = vmatprep.subr.bf16.mxu1 %v5696_v31  ;;  %v1179_v31 = vrot.slane %v1151_v24, %v6031_v42  ;;  %v5790_v24 = vld [vmem:[%s5993_s28 + $0x8d0] sm:$0xff]  }
  0xc5   : > { %5211 = vmatpush3.bf16.msra.mxu0 %v5695_v30  ;;  %v5748_v30 = vld [vmem:[%s5993_s28 + $0x700] sm:$0xff]  }
  0xc6   : > { %5212 = vmatprep.subr.bf16.mxu0 %v5698_v33  ;;  %v5750_v33 = vld [vmem:[%s5993_s28 + $0x780] sm:$0xff]  }
  0xc7   : > { %5233 = vmatpush3.bf16.msra.mxu1 %v5697_v32  ;;  %v5749_v32 = vld [vmem:[%s5993_s28 + $0x7c0] sm:$0xff]  }
  0xc8   : > { %5234 = vmatprep.subr.bf16.mxu1 %v5700_v35  ;;  %v5751_v35 = vld [vmem:[%s5993_s28 + $0x748] sm:$0xff]  }
  0xc9   : > { %5213 = vmatpush3.bf16.msra.mxu0 %v5699_v34  ;;  %v1180_v34 = vcombine.high %v1158_v28, %v1158_v28 }
  0xca   : > { %5214 = vmatprep.subr.bf16.mxu0 %v5702_v37  ;;  %v1183_v37 = vcombine.high %v1179_v31, %v1179_v31 }
  0xcb   : > { %5235 = vmatpush3.bf16.msra.mxu1 %v5701_v36  ;;  %v5752_v36 = vld [vmem:[%s5993_s28 + $0x708] sm:$0xff]  }
  0xcc   : > { %5236 = vmatprep.subr.bf16.mxu1 %v5704_v39  ;;  %v5754_v39 = vld [vmem:[%s5993_s28 + $0x788] sm:$0xff]  }
  0xcd   : > { %5215 = vmatpush3.bf16.msra.mxu0 %v5703_v38  ;;  %v5753_v38 = vld [vmem:[%s5993_s28 + $0x7c8] sm:$0xff]  }
  0xce   : > { %5216 = vmatprep.subr.bf16.mxu0 %v5706_v41  ;;  %v5756_v41 = vld [vmem:[%s5993_s28 + $0x710] sm:$0xff]  }
  0xcf   : > { %5237 = vmatpush3.bf16.msra.mxu1 %v5705_v40  ;;  %v5755_v40 = vld [vmem:[%s5993_s28 + $0x750] sm:$0xff]  }
  0xd0   : > { %5238 = vmatprep.subr.bf16.mxu1 %v5708_v44  ;;  %v5758_v44 = vld [vmem:[%s5993_s28 + $0x790] sm:$0xff]  }
  0xd1   : > { %5217 = vmatpush3.bf16.msra.mxu0 %v5707_v43  ;;  %v5757_v43 = vld [vmem:[%s5993_s28 + $0x7d0] sm:$0xff]  }
  0xd2   : > { %5218 = vmatprep.subr.bf16.mxu0 %v5710_v46  ;;  %v5760_v46 = vld [vmem:[%s5993_s28 + $0x718] sm:$0xff]  }
  0xd3   : > { %5239 = vmatpush3.bf16.msra.mxu1 %v5709_v45  ;;  %v5759_v45 = vld [vmem:[%s5993_s28 + $0x758] sm:$0xff]  }
  0xd4   : > { %5240 = vmatprep.subr.bf16.mxu1 %v5712_v48  ;;  %v5762_v48 = vld [vmem:[%s5993_s28 + $0x798] sm:$0xff]  }
  0xd5   : > { %5219 = vmatpush3.bf16.msra.mxu0 %v5711_v47  ;;  %v5761_v47 = vld [vmem:[%s5993_s28 + $0x7d8] sm:$0xff]  }
  0xd6   : > { %5248 = vmatprep.subr.bf16.mxu0 %v5715_v51  ;;  %v5765_v51 = vld [vmem:[%s5993_s28 + $0x7e0] sm:$0xff]  }
  0xd7   : > { %5241 = vmatpush3.bf16.msra.mxu1 %v5714_v49  ;;  %v5763_v49 = vld [vmem:[%s5993_s28 + $0x760] sm:$0xff]  }
  0xd8   : > { %3967 = vmatmul.mubr.bf16.vlgmr.msra.gmra.mrb[20].mxu0 %v1116_v50  ;;  %5270 = vmatprep.subr.bf16.mxu1 %v5717_v53  ;;  %v5764_v50 = vld [vmem:[%s5993_s28 + $0x720] sm:$0xff]   ;;  %v5767_v53 = vld [vmem:[%s5993_s28 + $0x768] sm:$0xff]  }
  0xd9   : > { %5249 = vmatpush3.bf16.msra.mxu0 %v5716_v52  ;;  %4046 = vmatprep.mubr.bf16.mxu0 %v1172_v23  ;;  %v5766_v52 = vld [vmem:[%s5993_s28 + $0x7a0] sm:$0xff]   ;;  %v5789_v23 = vld [vmem:[%s5993_s28 + $0x810] sm:$0xff]  }
  0xda   : > { %4007 = vmatmul.mubr.bf16.vlgmr.msra.gmra.mrb[20].mxu1 %v1132_v55  ;;  %5250 = vmatprep.subr.bf16.mxu0 %v5719_v56  ;;  %v5769_v55 = vld [vmem:[%s5993_s28 + $0x7e8] sm:$0xff]  }
  0xdb   : > { %5271 = vmatpush3.bf16.msra.mxu1 %v5718_v54  ;;  %4086 = vmatprep.mubr.bf16.mxu1 %v1182_v27  ;;  %v5768_v54 = vld [vmem:[%s5993_s28 + $0x728] sm:$0xff]   ;;  %v5793_v27 = vld [vmem:[%s5993_s28 + $0x818] sm:$0xff]  }
  0xdc   : > { %5272 = vmatprep.subr.bf16.mxu1 %v5721_v58  ;;  %v5770_v56 = vld [vmem:[%s5993_s28 + $0x7a8] sm:$0xff]  }
  0xdd   : > { %5251 = vmatpush3.bf16.msra.mxu0 %v5720_v57  ;;  %v5771_v57 = vld [vmem:[%s5993_s28 + $0x770] sm:$0xff]  }
  0xde   : > { %5252 = vmatprep.subr.bf16.mxu0 %v5723_v60 }
  0xdf   : > { %5273 = vmatpush3.bf16.msra.mxu1 %v5722_v59  ;;  %v5772_v59 = vld [vmem:[%s5993_s28 + $0x730] sm:$0xff]  }
  0xe0   : > { %5274 = vmatprep.subr.bf16.mxu1 %v5725_v62 }
  0xe1   : > { %5253 = vmatpush3.bf16.msra.mxu0 %v5724_v61  ;;  %v5773_v61 = vld [vmem:[%s5993_s28 + $0x7f0] sm:$0xff]  }
  0xe2   : > { %5254 = vmatprep.subr.bf16.mxu0 %v5727_v0 }
  0xe3   : > { %5275 = vmatpush3.bf16.msra.mxu1 %v5726_v63 }
  0xe4   : > { %5276 = vmatprep.subr.bf16.mxu1 %v5729_v2  ;;  %v5775_v2 = vld [vmem:[%s5993_s28 + $0x778] sm:$0xff]  }
  0xe5   : > { %5255 = vmatpush3.bf16.msra.mxu0 %v5728_v1  ;;  %v5774_v1 = vld [vmem:[%s5993_s28 + $0x7b0] sm:$0xff]  }
  0xe6   : > { %5256 = vmatprep.subr.bf16.mxu0 %v5731_v4 }
  0xe7   : > { %5277 = vmatpush3.bf16.msra.mxu1 %v5730_v3 }
  0xe8   : > { %5278 = vmatprep.subr.bf16.mxu1 %v5733_v6  ;;  %v5776_v6 = vld [vmem:[%s5993_s28 + $0x738] sm:$0xff]  }
  0xe9   : > { %5257 = vmatpush3.bf16.msra.mxu0 %v5732_v5 }
  0xea   : > { %5258 = vmatprep.subr.bf16.mxu0 %v5735_v8  ;;  %v5777_v8 = vld [vmem:[%s5993_s28 + $0x7f8] sm:$0xff]  }
  0xeb   : > { %5279 = vmatpush3.bf16.msra.mxu1 %v5734_v7 }
  0xec   : > { %5280 = vmatprep.subr.bf16.mxu1 %v5737_v10 }
  0xed   : > { %5259 = vmatpush3.bf16.msra.mxu0 %v5736_v9 }
  0xee   : > { %5260 = vmatprep.subr.bf16.mxu0 %v5739_v12  ;;  %v1165_v12 = vrot.slane %v6257_v20, %v6031_v42  ;;  %v5786_v20 = vld [vmem:[%s5993_s28 + $0x8c8] sm:$0xff]  }
  0xef   : > { %5281 = vmatpush3.bf16.msra.mxu1 %v5738_v11  ;;  %v5779_v11 = vld [vmem:[%s5993_s28 + $0x7b8] sm:$0xff]  }
  0xf0   : > { %5282 = vmatprep.subr.bf16.mxu1 %v5741_v17  ;;  %v1181_v17 = vcombine.high %v1165_v12, %v1165_v12 }
  0xf1   : > { %5261 = vmatpush3.bf16.msra.mxu0 %v5740_v14  ;;  %v5781_v14 = vld [vmem:[%s5993_s28 + $0x800] sm:$0xff]  }
  0xf2   : > { %5262 = vmatprep.subr.bf16.mxu0 %v5743_v21  ;;  %v5787_v21 = vld [vmem:[%s5993_s28 + $0x888] sm:$0xff]  }
  0xf3   : > { %5283 = vmatpush3.bf16.msra.mxu1 %v5742_v18  ;;  %v5784_v18 = vld [vmem:[%s5993_s28 + $0x848] sm:$0xff]  }
  0xf4   : > { %5284 = vmatprep.subr.bf16.mxu1 %v5745_v25  ;;  %v5791_v25 = vld [vmem:[%s5993_s28 + $0x890] sm:$0xff]  }
  0xf5   : > { %5263 = vmatpush3.bf16.msra.mxu0 %v5744_v22  ;;  %v5788_v22 = vld [vmem:[%s5993_s28 + $0x850] sm:$0xff]  }
  0xf6   : > { %5292 = vmatprep.subr.bf16.mxu0 %v5747_v29  ;;  %v5795_v29 = vld [vmem:[%s5993_s28 + $0x898] sm:$0xff]  }
  0xf7   : > { %5285 = vmatpush3.bf16.msra.mxu1 %v5746_v26  ;;  %v5792_v26 = vld [vmem:[%s5993_s28 + $0x858] sm:$0xff]  }
  0xf8   : > { %4047 = vmatmul.mubr.bf16.vlgmr.msra.gmra.mrb[24].mxu0 %v1158_v28  ;;  %5314 = vmatprep.subr.bf16.mxu1 %v5749_v32  ;;  %v5794_v28 = vld [vmem:[%s5993_s28 + $0x8d8] sm:$0xff]   ;;  %v5798_v32 = vld [vmem:[%s5993_s28 + $0x8e0] sm:$0xff]  }
  0xf9   : > { %5293 = vmatpush3.bf16.msra.mxu0 %v5748_v30  ;;  %4126 = vmatprep.mubr.bf16.mxu0 %v1179_v31  ;;  %v5796_v30 = vld [vmem:[%s5993_s28 + $0x860] sm:$0xff]  }
  0xfa   : > { %4087 = vmatmul.mubr.bf16.vlgmr.msra.gmra.mrb[24].mxu1 %v1180_v34  ;;  %5294 = vmatprep.subr.bf16.mxu0 %v5751_v35  ;;  %v5797_v31 = vld [vmem:[%s5993_s28 + $0x820] sm:$0xff]   ;;  %v5800_v34 = vld [vmem:[%s5993_s28 + $0x868] sm:$0xff]  }
  0xfb   : > { %5315 = vmatpush3.bf16.msra.mxu1 %v5750_v33  ;;  %4166 = vmatprep.mubr.bf16.mxu1 %v1183_v37  ;;  %v5799_v33 = vld [vmem:[%s5993_s28 + $0x8a0] sm:$0xff]   ;;  %v5801_v35 = vld [vmem:[%s5993_s28 + $0x828] sm:$0xff]  }
  0xfc   : > { %5316 = vmatprep.subr.bf16.mxu1 %v5753_v38  ;;  %v5803_v37 = vld [vmem:[%s5993_s28 + $0x8a8] sm:$0xff]   ;;  %v5804_v38 = vld [vmem:[%s5993_s28 + $0x870] sm:$0xff]  }
  0xfd   : > { %5295 = vmatpush3.bf16.msra.mxu0 %v5752_v36  ;;  %v5802_v36 = vld [vmem:[%s5993_s28 + $0x8e8] sm:$0xff]  }
  0xfe   : > { %5296 = vmatprep.subr.bf16.mxu0 %v5755_v40 }
  0xff   : > { %5317 = vmatpush3.bf16.msra.mxu1 %v5754_v39  ;;  %v244_v39 = vld [vmem:[%s5988_s24 + $0x20] sm:$0xff] }
 0x100   : > { %5318 = vmatprep.subr.bf16.mxu1 %v5757_v43  ;;  %v1191_v43 = vrot.slane %v244_v39, %v6031_v42 }
 0x101   : > { %5297 = vmatpush3.bf16.msra.mxu0 %v5756_v41  ;;  %v5805_v41 = vld [vmem:[%s5993_s28 + $0x830] sm:$0xff]  }
 0x102   : > { %5298 = vmatprep.subr.bf16.mxu0 %v5759_v45 }
 0x103   : > { %5319 = vmatpush3.bf16.msra.mxu1 %v5758_v44  ;;  %v1184_v44 = vcombine.high %v244_v39, %v244_v39  ;;  %v5839_v39 = vld [vmem:[%s5993_s28 + $0x9b0] sm:$0xff]  }
 0x104   : > { %5320 = vmatprep.subr.bf16.mxu1 %v5761_v47 }
 0x105   : > { %5299 = vmatpush3.bf16.msra.mxu0 %v5760_v46  ;;  %v5806_v46 = vld [vmem:[%s5993_s28 + $0x8f0] sm:$0xff]  }
 0x106   : > { %5300 = vmatprep.subr.bf16.mxu0 %v5763_v49 }
 0x107   : > { %5321 = vmatpush3.bf16.msra.mxu1 %v5762_v48 }
 0x108   : > { %5322 = vmatprep.subr.bf16.mxu1 %v5765_v51  ;;  %v6334_v51 = vrot.slane %v1184_v44, %v6031_v42 }
 0x109   : > { %5301 = vmatpush3.bf16.msra.mxu0 %v5764_v50  ;;  %v1199_v50 = vcombine.high %v1191_v43, %v1191_v43 }
 0x10a   : > { %5302 = vmatprep.subr.bf16.mxu0 %v5767_v53 }
 0x10b   : > { %v5000_v58 = vpop.f32.mrb[0].mxu0  ;;  %5323 = vmatpush3.bf16.msra.mxu1 %v5766_v52 }
 0x10c   : > { %v5001_v60 = vpop.f32.mrb[1].mxu0  ;;  %5324 = vmatprep.subr.bf16.mxu1 %v5769_v55  ;;  %v5022_v62 = vpop.f32.mrb[0].mxu1  ;;  %v5808_v55 = vld [vmem:[%s5993_s28 + $0x878] sm:$0xff]  }
 0x10d   : > { %v5002_v63 = vadd.f32 %v5001_v60, %v5000_v58  ;;  %v5003_v0 = vpop.f32.mrb[2].mxu0  ;;  %5303 = vmatpush3.bf16.msra.mxu0 %v5768_v54  ;;  %v5023_v3 = vpop.f32.mrb[1].mxu1  ;;  %v5807_v54 = vld [vmem:[%s5993_s28 + $0x8b0] sm:$0xff]   ;;  %v5809_v58 = vld [vmem:[%s5993_s28 + $0x838] sm:$0xff]  }
 0x10e   : > { %v5004_v4 = vpop.f32.mrb[3].mxu0  ;;  %5304 = vmatprep.subr.bf16.mxu0 %v5771_v57  ;;  %v5024_v5 = vadd.f32 %v5023_v3, %v5022_v62  ;;  %v5025_v7 = vpop.f32.mrb[2].mxu1  ;;  %v5810_v60 = vld [vmem:[%s5993_s28 + $0x8f8] sm:$0xff]   ;;  %v1200_v62 = vcombine.high %v6334_v51, %v6334_v51  ;;  %v1207_v3 = vrot.slane %v1191_v43, %v6031_v42 }
 0x10f   : > { %5325 = vmatpush3.bf16.msra.mxu1 %v5770_v56  ;;  %v5026_v9 = vpop.f32.mrb[3].mxu1  ;;  %v5811_v0 = vld [vmem:[%s5993_s28 + $0x8b8] sm:$0xff]   ;;  %v5812_v4 = vld [vmem:[%s5993_s28 + $0x940] sm:$0xff]  }
 0x110   : > { %5326 = vmatprep.subr.bf16.mxu1 %v5773_v61  ;;  %v6299_v10 = vadd.f32 %v5024_v5, %v5002_v63  ;;  %v5813_v5 = vld [vmem:[%s5993_s28 + $0x900] sm:$0xff]   ;;  %v1229_v9 = vcombine.high %v1207_v3, %v1207_v3 }
 0x111   : > { %5305 = vmatpush3.bf16.msra.mxu0 %v5772_v59  ;;  %v1221_v59 = vrot.slane %v1199_v50, %v6031_v42  ;;  %v5814_v7 = vld [vmem:[%s5993_s28 + $0x9c0] sm:$0xff]  }
 0x112   : > { %5306 = vmatprep.subr.bf16.mxu0 %v5775_v2 }
 0x113   : > { %5327 = vmatpush3.bf16.msra.mxu1 %v5774_v1  ;;  %v1231_v1 = vcombine.high %v1221_v59, %v1221_v59 }
 0x114   : > { %5328 = vmatprep.subr.bf16.mxu1 %v5777_v8  ;;  %v5815_v8 = vld [vmem:[%s5993_s28 + $0x980] sm:$0xff]  }
 0x115   : > { %5307 = vmatpush3.bf16.msra.mxu0 %v5776_v6  ;;  %v1228_v6 = vrot.slane %v1200_v62, %v6031_v42  ;;  %v5853_v62 = vld [vmem:[%s5993_s28 + $0xa50] sm:$0xff]  }
 0x116   : > { %5336 = vmatprep.subr.bf16.mxu0 %v5780_v13  ;;  %v5818_v13 = vld [vmem:[%s5993_s28 + $0x9c8] sm:$0xff]  }
 0x117   : > { %5329 = vmatpush3.bf16.msra.mxu1 %v5779_v11  ;;  %v5817_v11 = vld [vmem:[%s5993_s28 + $0x908] sm:$0xff]  }
 0x118   : > { %4127 = vmatmul.mubr.bf16.vlgmr.msra.gmra.mrb[28].mxu0 %v1165_v12  ;;  %5358 = vmatprep.subr.bf16.mxu1 %v5782_v15  ;;  %v1232_v12 = vcombine.high %v1228_v6, %v1228_v6  ;;  %v5820_v15 = vld [vmem:[%s5993_s28 + $0x950] sm:$0xff]  }
 0x119   : > { %5337 = vmatpush3.bf16.msra.mxu0 %v5781_v14  ;;  %4206 = vmatprep.mubr.bf16.mxu0 %v1221_v59  ;;  %v5819_v14 = vld [vmem:[%s5993_s28 + $0x988] sm:$0xff]  }
 0x11a   : > { %4167 = vmatmul.mubr.bf16.vlgmr.msra.gmra.mrb[28].mxu1 %v1181_v17  ;;  %5338 = vmatprep.subr.bf16.mxu0 %v5784_v18  ;;  %v5822_v17 = vld [vmem:[%s5993_s28 + $0x9d0] sm:$0xff]   ;;  %v5849_v59 = vld [vmem:[%s5993_s28 + $0xa48] sm:$0xff]  }
 0x11b   : > { %5359 = vmatpush3.bf16.msra.mxu1 %v5783_v16  ;;  %4246 = vmatprep.mubr.bf16.mxu1 %v1231_v1  ;;  %v5821_v16 = vld [vmem:[%s5993_s28 + $0x910] sm:$0xff]  }
 0x11c   : > { %5360 = vmatprep.subr.bf16.mxu1 %v5786_v20  ;;  %v5823_v18 = vld [vmem:[%s5993_s28 + $0x990] sm:$0xff]   ;;  %v5825_v20 = vld [vmem:[%s5993_s28 + $0x918] sm:$0xff]  }
 0x11d   : > { %5339 = vmatpush3.bf16.msra.mxu0 %v5785_v19  ;;  %v5824_v19 = vld [vmem:[%s5993_s28 + $0x958] sm:$0xff]   ;;  %v5856_v1 = vld [vmem:[%s5993_s28 + $0xa90] sm:$0xff]  }
 0x11e   : > { %5340 = vmatprep.subr.bf16.mxu0 %v5788_v22  ;;  %v5827_v22 = vld [vmem:[%s5993_s28 + $0x998] sm:$0xff]  }
 0x11f   : > { %5361 = vmatpush3.bf16.msra.mxu1 %v5787_v21  ;;  %v5826_v21 = vld [vmem:[%s5993_s28 + $0x9d8] sm:$0xff]  }
 0x120   : > { %5362 = vmatprep.subr.bf16.mxu1 %v5790_v24  ;;  %v5829_v24 = vld [vmem:[%s5993_s28 + $0x920] sm:$0xff]  }
 0x121   : > { %5341 = vmatpush3.bf16.msra.mxu0 %v5789_v23  ;;  %v5828_v23 = vld [vmem:[%s5993_s28 + $0x960] sm:$0xff]  }
 0x122   : > { %5342 = vmatprep.subr.bf16.mxu0 %v5792_v26  ;;  %v5831_v26 = vld [vmem:[%s5993_s28 + $0x9a0] sm:$0xff]  }
 0x123   : > { %5363 = vmatpush3.bf16.msra.mxu1 %v5791_v25  ;;  %v5830_v25 = vld [vmem:[%s5993_s28 + $0x9e0] sm:$0xff]  }
 0x124   : > { %5364 = vmatprep.subr.bf16.mxu1 %v5794_v28  ;;  %v5833_v28 = vld [vmem:[%s5993_s28 + $0x928] sm:$0xff]  }
 0x125   : > { %5343 = vmatpush3.bf16.msra.mxu0 %v5793_v27  ;;  %v5832_v27 = vld [vmem:[%s5993_s28 + $0x968] sm:$0xff]  }
 0x126   : > { %5344 = vmatprep.subr.bf16.mxu0 %v5796_v30  ;;  %v5835_v30 = vld [vmem:[%s5993_s28 + $0x9a8] sm:$0xff]  }
 0x127   : > { %5365 = vmatpush3.bf16.msra.mxu1 %v5795_v29  ;;  %v5834_v29 = vld [vmem:[%s5993_s28 + $0x9e8] sm:$0xff]  }
 0x128   : > { %5366 = vmatprep.subr.bf16.mxu1 %v5798_v32 }
 0x129   : > { %5345 = vmatpush3.bf16.msra.mxu0 %v5797_v31  ;;  %v5836_v31 = vld [vmem:[%s5993_s28 + $0x970] sm:$0xff]  }
 0x12a   : > { %5346 = vmatprep.subr.bf16.mxu0 %v5800_v34 }
 0x12b   : > { %v5044_v40 = vpop.f32.mrb[4].mxu0  ;;  %5367 = vmatpush3.bf16.msra.mxu1 %v5799_v33  ;;  %v5837_v33 = vld [vmem:[%s5993_s28 + $0x930] sm:$0xff]  }
 0x12c   : > { %v5045_v45 = vpop.f32.mrb[5].mxu0  ;;  %5368 = vmatprep.subr.bf16.mxu1 %v5802_v36  ;;  %v5066_v49 = vpop.f32.mrb[4].mxu1 }
 0x12d   : > { %v5046_v47 = vadd.f32 %v5045_v45, %v5044_v40  ;;  %v5047_v48 = vpop.f32.mrb[6].mxu0  ;;  %5347 = vmatpush3.bf16.msra.mxu0 %v5801_v35  ;;  %v5067_v53 = vpop.f32.mrb[5].mxu1  ;;  %v5838_v35 = vld [vmem:[%s5993_s28 + $0x9f0] sm:$0xff]   ;;  %v5840_v40 = vld [vmem:[%s5993_s28 + $0x978] sm:$0xff]  }
 0x12e   : > { %v5048_v52 = vpop.f32.mrb[7].mxu0  ;;  %5348 = vmatprep.subr.bf16.mxu0 %v5804_v38  ;;  %v5068_v57 = vadd.f32 %v5067_v53, %v5066_v49  ;;  %v5069_v61 = vpop.f32.mrb[6].mxu1  ;;  %v5842_v48 = vld [vmem:[%s5993_s28 + $0x9f8] sm:$0xff]   ;;  %v1214_v53 = vrot.slane %v6334_v51, %v6031_v42  ;;  %v5851_v51 = vld [vmem:[%s5993_s28 + $0xac8] sm:$0xff]  }
 0x12f   : > { %v3649_v56 = vadd.f32 %v5046_v47, %v6299_v10  ;;  %5369 = vmatpush3.bf16.msra.mxu1 %v5803_v37  ;;  %v5070_v2 = vpop.f32.mrb[7].mxu1  ;;  %v5816_v10 = vld [vmem:[%s5993_s28 + $0x948] sm:$0xff]   ;;  %v5844_v52 = vld [vmem:[%s5993_s28 + $0x9b8] sm:$0xff]  }
 0x130   : > { %5370 = vmatprep.subr.bf16.mxu1 %v5806_v46  ;;  %v5841_v46 = vld [vmem:[%s5993_s28 + $0x938] sm:$0xff]   ;;  %v5852_v61 = vld [vmem:[%s5993_s28 + $0xa88] sm:$0xff]  }
 0x131   : > { %v6344_v63 = vadd.f32 %v5068_v57, %v3649_v56  ;;  %5349 = vmatpush3.bf16.msra.mxu0 %v5805_v41  ;;  %v5847_v56 = vld [vmem:[%s5993_s28 + $0xac0] sm:$0xff]   ;;  %v5857_v2 = vld [vmem:[%s5993_s28 + $0xa58] sm:$0xff]  }
 0x132   : > { %5350 = vmatprep.subr.bf16.mxu0 %v5808_v55  ;;  %v5846_v55 = vld [vmem:[%s5993_s28 + $0xa00] sm:$0xff]  }
 0x133   : > { %5371 = vmatpush3.bf16.msra.mxu1 %v5807_v54  ;;  %v5845_v54 = vld [vmem:[%s5993_s28 + $0xa40] sm:$0xff]  }
 0x134   : > { %5372 = vmatprep.subr.bf16.mxu1 %v5810_v60  ;;  %v5848_v57 = vld [vmem:[%s5993_s28 + $0xa80] sm:$0xff]   ;;  %v5850_v60 = vld [vmem:[%s5993_s28 + $0xa08] sm:$0xff]  }
 0x135   : > { %5351 = vmatpush3.bf16.msra.mxu0 %v5809_v58  ;;  %v1230_v58 = vcombine.high %v1214_v53, %v1214_v53 }
 0x136   : > { %5380 = vmatprep.subr.bf16.mxu0 %v5812_v4  ;;  %v5859_v4 = vld [vmem:[%s5993_s28 + $0xad8] sm:$0xff]  }
 0x137   : > { %5373 = vmatpush3.bf16.msra.mxu1 %v5811_v0  ;;  %v5855_v0 = vld [vmem:[%s5993_s28 + $0xad0] sm:$0xff]  }
 0x138   : > { %4207 = vmatmul.mubr.bf16.vlgmr.msra.gmra.mrb[32].mxu0 %v1207_v3  ;;  %5402 = vmatprep.subr.bf16.mxu1 %v5814_v7  ;;  %v5858_v3 = vld [vmem:[%s5993_s28 + $0xa18] sm:$0xff]   ;;  %v5862_v7 = vld [vmem:[%s5993_s28 + $0xa20] sm:$0xff]  }
 0x139   : > { %5381 = vmatpush3.bf16.msra.mxu0 %v5813_v5  ;;  %4286 = vmatprep.mubr.bf16.mxu0 %v1228_v6  ;;  %v5860_v5 = vld [vmem:[%s5993_s28 + $0xa98] sm:$0xff]   ;;  %v5861_v6 = vld [vmem:[%s5993_s28 + $0xa60] sm:$0xff]  }
 0x13a   : > { %4247 = vmatmul.mubr.bf16.vlgmr.msra.gmra.mrb[32].mxu1 %v1229_v9  ;;  %5382 = vmatprep.subr.bf16.mxu0 %v5816_v10  ;;  %v5864_v9 = vld [vmem:[%s5993_s28 + $0xaa0] sm:$0xff]   ;;  %v5865_v10 = vld [vmem:[%s5993_s28 + $0xa68] sm:$0xff]  }
 0x13b   : > { %5403 = vmatpush3.bf16.msra.mxu1 %v5815_v8  ;;  %4326 = vmatprep.mubr.bf16.mxu1 %v1232_v12  ;;  %v5863_v8 = vld [vmem:[%s5993_s28 + $0xae0] sm:$0xff]   ;;  %v5867_v12 = vld [vmem:[%s5993_s28 + $0xae8] sm:$0xff]  }
 0x13c   : > { %5404 = vmatprep.subr.bf16.mxu1 %v5818_v13  ;;  %v5868_v13 = vld [vmem:[%s5993_s28 + $0xaa8] sm:$0xff]  }
 0x13d   : > { %5383 = vmatpush3.bf16.msra.mxu0 %v5817_v11  ;;  %v5866_v11 = vld [vmem:[%s5993_s28 + $0xa28] sm:$0xff]  }
 0x13e   : > { %5384 = vmatprep.subr.bf16.mxu0 %v5820_v15 }
 0x13f   : > { %5405 = vmatpush3.bf16.msra.mxu1 %v5819_v14  ;;  %v5869_v14 = vld [vmem:[%s5993_s28 + $0xa70] sm:$0xff]  }
 0x140   : > { %5406 = vmatprep.subr.bf16.mxu1 %v5822_v17  ;;  %v245_v17 = vld [vmem:[%s5988_s24 + $0x28] sm:$0x3f] }
 0x141   : > { %5385 = vmatpush3.bf16.msra.mxu0 %v5821_v16  ;;  %v5870_v16 = vld [vmem:[%s5993_s28 + $0xa30] sm:$0xff]  }
 0x142   : > { %5386 = vmatprep.subr.bf16.mxu0 %v5824_v19  ;;  %v5871_v19 = vld [vmem:[%s5993_s28 + $0xaf0] sm:$0xff]  }
 0x143   : > { %5407 = vmatpush3.bf16.msra.mxu1 %v5823_v18 }
 0x144   : > { %5408 = vmatprep.subr.bf16.mxu1 %v5826_v21  ;;  %v1233_v21 = vcombine.high %v245_v17, %v245_v17 }
 0x145   : > { %5387 = vmatpush3.bf16.msra.mxu0 %v5825_v20  ;;  %v1240_v20 = vrot.slane %v245_v17, %v6031_v42 }
 0x146   : > { %5388 = vmatprep.subr.bf16.mxu0 %v5828_v23 }
 0x147   : > { %5409 = vmatpush3.bf16.msra.mxu1 %v5827_v22 }
 0x148   : > { %5410 = vmatprep.subr.bf16.mxu1 %v5830_v25 }
 0x149   : > { %5389 = vmatpush3.bf16.msra.mxu0 %v5829_v24 }
 0x14a   : > { %5390 = vmatprep.subr.bf16.mxu0 %v5832_v27  ;;  %v5872_v27 = vld [vmem:[%s5993_s28 + $0xab0] sm:$0xff]  }
 0x14b   : > { %v5088_v32 = vpop.f32.mrb[8].mxu0  ;;  %5411 = vmatpush3.bf16.msra.mxu1 %v5831_v26 }
 0x14c   : > { %v5089_v34 = vpop.f32.mrb[9].mxu0  ;;  %5412 = vmatprep.subr.bf16.mxu1 %v5834_v29  ;;  %v1248_v29 = vcombine.high %v1240_v20, %v1240_v20 }
 0x14d   : > { %v5090_v36 = vadd.f32 %v5089_v34, %v5088_v32  ;;  %v5091_v37 = vpop.f32.mrb[10].mxu0  ;;  %v5110_v38 = vpop.f32.mrb[8].mxu1  ;;  %5391 = vmatpush3.bf16.msra.mxu0 %v5833_v28  ;;  %v5873_v28 = vld [vmem:[%s5993_s28 + $0xa78] sm:$0xff]  }
 0x14e   : > { %v5092_v41 = vpop.f32.mrb[11].mxu0  ;;  %v5111_v43 = vpop.f32.mrb[9].mxu1  ;;  %5392 = vmatprep.subr.bf16.mxu0 %v5836_v31  ;;  %v1270_v34 = vrot.slane %v1248_v29, %v6031_v42  ;;  %v5874_v37 = vld [vmem:[%s5993_s28 + $0xa38] sm:$0xff]  }
 0x14f   : > { %v3729_v44 = vadd.f32 %v5090_v36, %v6344_v63  ;;  %v5112_v45 = vadd.f32 %v5111_v43, %v5110_v38  ;;  %5413 = vmatpush3.bf16.msra.mxu1 %v5835_v30  ;;  %v5113_v47 = vpop.f32.mrb[10].mxu1  ;;  %v5854_v63 = vld [vmem:[%s5993_s28 + $0xa10] sm:$0xff]   ;;  %v6418_v30 = vrot.slane %v1233_v21, %v6031_v42  ;;  %v5877_v41 = vld [vmem:[%s5993_s28 + $0xb40] sm:$0xff]  }
 0x150   : > { %5414 = vmatprep.subr.bf16.mxu1 %v5838_v35  ;;  %v5114_v49 = vpop.f32.mrb[11].mxu1  ;;  %v1279_v43 = vcombine.high %v1270_v34, %v1270_v34 }
 0x151   : > { %v6381_v50 = vadd.f32 %v5112_v45, %v3729_v44  ;;  %5393 = vmatpush3.bf16.msra.mxu0 %v5837_v33  ;;  %v5875_v33 = vld [vmem:[%s5993_s28 + $0xaf8] sm:$0xff]   ;;  %v5878_v45 = vld [vmem:[%s5993_s28 + $0xb00] sm:$0xff]   ;;  %v5880_v49 = vld [vmem:[%s5993_s28 + $0xb08] sm:$0xff]  }
 0x152   : > { %5394 = vmatprep.subr.bf16.mxu0 %v5840_v40  ;;  %v1256_v40 = vrot.slane %v1240_v20, %v6031_v42  ;;  %v5876_v44 = vld [vmem:[%s5993_s28 + $0xab8] sm:$0xff]  }
 0x153   : > { %5415 = vmatpush3.bf16.msra.mxu1 %v5839_v39  ;;  %v1249_v39 = vcombine.high %v6418_v30, %v6418_v30 }
 0x154   : > { %5416 = vmatprep.subr.bf16.mxu1 %v5842_v48  ;;  %v1278_v47 = vcombine.high %v1256_v40, %v1256_v40  ;;  %v5879_v48 = vld [vmem:[%s5993_s28 + $0xb48] sm:$0xff]  }
 0x155   : > { %5395 = vmatpush3.bf16.msra.mxu0 %v5841_v46  ;;  %v1277_v46 = vrot.slane %v1249_v39, %v6031_v42 }
 0x156   : > { %5424 = vmatprep.subr.bf16.mxu0 %v5845_v54  ;;  %v5884_v54 = vld [vmem:[%s5993_s28 + $0xb18] sm:$0xff]  }
 0x157   : > { %5417 = vmatpush3.bf16.msra.mxu1 %v5844_v52  ;;  %v5882_v52 = vld [vmem:[%s5993_s28 + $0xb10] sm:$0xff]  }
 0x158   : > { %4287 = vmatmul.mubr.bf16.vlgmr.msra.gmra.mrb[36].mxu0 %v1214_v53  ;;  %5446 = vmatprep.subr.bf16.mxu1 %v5847_v56  ;;  %v5883_v53 = vld [vmem:[%s5993_s28 + $0xb58] sm:$0xff]   ;;  %v5886_v56 = vld [vmem:[%s5993_s28 + $0xb20] sm:$0xff]  }
 0x159   : > { %5425 = vmatpush3.bf16.msra.mxu0 %v5846_v55  ;;  %4366 = vmatprep.mubr.bf16.mxu0 %v1270_v34  ;;  %v5885_v55 = vld [vmem:[%s5993_s28 + $0xb60] sm:$0xff]  }
 0x15a   : > { %4327 = vmatmul.mubr.bf16.vlgmr.msra.gmra.mrb[36].mxu1 %v1230_v58  ;;  %5426 = vmatprep.subr.bf16.mxu0 %v5849_v59  ;;  %v5888_v58 = vld [vmem:[%s5993_s28 + $0xb28] sm:$0xff]   ;;  %v5889_v59 = vld [vmem:[%s5993_s28 + $0xb70] sm:$0xff]  }
 0x15b   : > { %5447 = vmatpush3.bf16.msra.mxu1 %v5848_v57  ;;  %4406 = vmatprep.mubr.bf16.mxu1 %v1279_v43  ;;  %v5887_v57 = vld [vmem:[%s5993_s28 + $0xb68] sm:$0xff]  }
 0x15c   : > { %5448 = vmatprep.subr.bf16.mxu1 %v5851_v51 }
 0x15d   : > { %5427 = vmatpush3.bf16.msra.mxu0 %v5850_v60 }
 0x15e   : > { %5428 = vmatprep.subr.bf16.mxu0 %v5853_v62 }
 0x15f   : > { %5449 = vmatpush3.bf16.msra.mxu1 %v5852_v61 }
 0x160   : > { %5450 = vmatprep.subr.bf16.mxu1 %v5855_v0  ;;  %v5890_v0 = vld [vmem:[%s5993_s28 + $0xb30] sm:$0xff]  }
 0x161   : > { %5429 = vmatpush3.bf16.msra.mxu0 %v5854_v63 }
 0x162   : > { %5430 = vmatprep.subr.bf16.mxu0 %v5857_v2 }
 0x163   : > { %5451 = vmatpush3.bf16.msra.mxu1 %v5856_v1 }
 0x164   : > { %5452 = vmatprep.subr.bf16.mxu1 %v5859_v4 }
 0x165   : > { %5431 = vmatpush3.bf16.msra.mxu0 %v5858_v3  ;;  %v5891_v3 = vld [vmem:[%s5993_s28 + $0xb78] sm:$0xff]  }
 0x166   : > { %5432 = vmatprep.subr.bf16.mxu0 %v5861_v6 }
 0x167   : > { %5453 = vmatpush3.bf16.msra.mxu1 %v5860_v5 }
 0x168   : > { %5454 = vmatprep.subr.bf16.mxu1 %v5863_v8 }
 0x169   : > { %5433 = vmatpush3.bf16.msra.mxu0 %v5862_v7 }
 0x16a   : > { %5434 = vmatprep.subr.bf16.mxu0 %v5865_v10  ;;  %v1263_v10 = vrot.slane %v6418_v30, %v6031_v42 }
 0x16b   : > { %v5132_v15 = vpop.f32.mrb[12].mxu0  ;;  %5455 = vmatpush3.bf16.msra.mxu1 %v5864_v9  ;;  %v5892_v9 = vld [vmem:[%s5993_s28 + $0xb38] sm:$0xff]  }
 0x16c   : > { %v5133_v18 = vpop.f32.mrb[13].mxu0  ;;  %5456 = vmatprep.subr.bf16.mxu1 %v5867_v12 }
 0x16d   : > { %v5134_v22 = vadd.f32 %v5133_v18, %v5132_v15  ;;  %v5135_v23 = vpop.f32.mrb[14].mxu0  ;;  %v5154_v24 = vpop.f32.mrb[12].mxu1  ;;  %5435 = vmatpush3.bf16.msra.mxu0 %v5866_v11 }
 0x16e   : > { %v5136_v25 = vpop.f32.mrb[15].mxu0  ;;  %v5155_v26 = vpop.f32.mrb[13].mxu1  ;;  %5436 = vmatprep.subr.bf16.mxu0 %v5869_v14 }
 0x16f   : > { %v3809_v31 = vadd.f32 %v5134_v22, %v6381_v50  ;;  %v5156_v32 = vadd.f32 %v5155_v26, %v5154_v24  ;;  %5457 = vmatpush3.bf16.msra.mxu1 %v5868_v13  ;;  %v5157_v35 = vpop.f32.mrb[14].mxu1  ;;  %v5881_v50 = vld [vmem:[%s5993_s28 + $0xb50] sm:$0xff]  }
 0x170   : > { %5458 = vmatprep.subr.bf16.mxu1 %v5871_v19  ;;  %v5158_v38 = vpop.f32.mrb[15].mxu1 }
 0x171   : > { %v3849_v36 = vadd.f32 %v5156_v32, %v3809_v31  ;;  %5437 = vmatpush3.bf16.msra.mxu0 %v5870_v16 }
 0x172   : > { %5438 = vmatprep.subr.bf16.mxu0 %v5873_v28 }
 0x173   : > { %5459 = vmatpush3.bf16.msra.mxu1 %v5872_v27 }
 0x174   : > { %5460 = vmatprep.subr.bf16.mxu1 %v5875_v33 }
 0x175   : > { %5439 = vmatpush3.bf16.msra.mxu0 %v5874_v37 }
 0x176   : > { %5468 = vmatprep.subr.bf16.mxu0 %v5877_v41 }
 0x177   : > { %5461 = vmatpush3.bf16.msra.mxu1 %v5876_v44 }
 0x178   : > { %4367 = vmatmul.mubr.bf16.vlgmr.msra.gmra.mrb[40].mxu0 %v1256_v40 }
 0x179   : > { %5469 = vmatpush3.bf16.msra.mxu0 %v5878_v45  ;;  %4446 = vmatprep.mubr.bf16.mxu0 %v1277_v46 }
 0x17a   : > { %4407 = vmatmul.mubr.bf16.vlgmr.msra.gmra.mrb[40].mxu1 %v1278_v47  ;;  %5470 = vmatprep.subr.bf16.mxu0 %v5879_v48 }
 0x17d   : > { %5471 = vmatpush3.bf16.msra.mxu0 %v5880_v49 }
 0x17e   : > { %5472 = vmatprep.subr.bf16.mxu0 %v5881_v50 }
 0x181   : > { %5473 = vmatpush3.bf16.msra.mxu0 %v5882_v52 }
 0x182   : > { %5474 = vmatprep.subr.bf16.mxu0 %v5883_v53 }
 0x185   : > { %5475 = vmatpush3.bf16.msra.mxu0 %v5884_v54 }
 0x186   : > { %5476 = vmatprep.subr.bf16.mxu0 %v5885_v55 }
 0x189   : > { %5477 = vmatpush3.bf16.msra.mxu0 %v5886_v56 }
 0x18a   : > { %5478 = vmatprep.subr.bf16.mxu0 %v5887_v57 }
 0x18b   : > { %v5176_v60 = vpop.f32.mrb[16].mxu0 }
 0x18c   : > { %v5177_v51 = vpop.f32.mrb[17].mxu0 }
 0x18d   : > { %v5178_v61 = vadd.f32 %v5177_v51, %v5176_v60  ;;  %v5179_v62 = vpop.f32.mrb[18].mxu0  ;;  %v5198_v63 = vpop.f32.mrb[16].mxu1  ;;  %5479 = vmatpush3.bf16.msra.mxu0 %v5888_v58 }
 0x18e   : > { %v5180_v1 = vpop.f32.mrb[19].mxu0  ;;  %v5199_v2 = vpop.f32.mrb[17].mxu1  ;;  %5480 = vmatprep.subr.bf16.mxu0 %v5889_v59 }
 0x18f   : > { %v3889_v4 = vadd.f32 %v5178_v61, %v3849_v36  ;;  %v5200_v5 = vadd.f32 %v5199_v2, %v5198_v63  ;;  %v5201_v6 = vpop.f32.mrb[18].mxu1 }
 0x190   : > { %v5202_v7 = vpop.f32.mrb[19].mxu1 }
 0x191   : > { %v3929_v8 = vadd.f32 %v5200_v5, %v3889_v4  ;;  %5481 = vmatpush3.bf16.msra.mxu0 %v5890_v0 }
 0x192   : > { %5482 = vmatprep.subr.bf16.mxu0 %v5891_v3 }
 0x195   : > { %5483 = vmatpush3.bf16.msra.mxu0 %v5892_v9 }
 0x198   : > { %4447 = vmatmul.mubr.bf16.vlgmr.msra.gmra.mrb[44].mxu0 %v1263_v10 }
 0x1ab   : > { %v5220_v11 = vpop.f32.mrb[20].mxu0 }
 0x1ac   : > { %v5221_v12 = vpop.f32.mrb[21].mxu0 }
 0x1ad   : > { %v5222_v13 = vadd.f32 %v5221_v12, %v5220_v11  ;;  %v5223_v14 = vpop.f32.mrb[22].mxu0  ;;  %v5242_v15 = vpop.f32.mrb[20].mxu1 }
 0x1ae   : > { %v5224_v16 = vpop.f32.mrb[23].mxu0  ;;  %v5243_v17 = vpop.f32.mrb[21].mxu1 }
 0x1af   : > { %v3969_v18 = vadd.f32 %v5222_v13, %v3929_v8  ;;  %v5244_v19 = vadd.f32 %v5243_v17, %v5242_v15  ;;  %v5245_v20 = vpop.f32.mrb[22].mxu1 }
 0x1b0   : > { %v5246_v21 = vpop.f32.mrb[23].mxu1 }
 0x1b1   : > { %v4009_v22 = vadd.f32 %v5244_v19, %v3969_v18 }
 0x1cb   : > { %v5264_v23 = vpop.f32.mrb[24].mxu0 }
 0x1cc   : > { %v5265_v24 = vpop.f32.mrb[25].mxu0 }
 0x1cd   : > { %v5266_v25 = vadd.f32 %v5265_v24, %v5264_v23  ;;  %v5267_v26 = vpop.f32.mrb[26].mxu0  ;;  %v5286_v27 = vpop.f32.mrb[24].mxu1  ;;  %v239_v23 = vld [vmem:[#allocation2] sm:$0x3] }
 0x1ce   : > { %v5268_v42 = vpop.f32.mrb[27].mxu0  ;;  %v5287_v28 = vpop.f32.mrb[25].mxu1 }
 0x1cf   : > { %v4049_v29 = vadd.f32 %v5266_v25, %v4009_v22  ;;  %v5288_v30 = vadd.f32 %v5287_v28, %v5286_v27  ;;  %v5289_v31 = vpop.f32.mrb[26].mxu1  ;;  %v5894_v27 = vld [vmem:[%s6489_s3] sm:$0xff] (!%p4974_p6)   ;;  %v5940_v42 = vmov (!%p4974_p6), 0.0   ;;  %v5895_v28 = vld [vmem:[%s6489_s3 + $0x8] sm:$0xff] (!%p4974_p6)  }
 0x1d0   : > { %v5290_v32 = vpop.f32.mrb[27].mxu1  ;;  %5493 = vmatprep.subr.bf16.mxu0 (!%p4974_p6), %v5940_v42  ;;  %5497 = vmatprep.mubr.msk.bf16.mxu0 (!%p4974_p6), %vm5941_vm2, %v5940_v42 }
 0x1d1   : > { %v4089_v33 = vadd.f32 %v5288_v30, %v4049_v29  ;;  %5494 = vmatpush3.bf16.msra.mxu0 (!%p4974_p6), %v5894_v27  ;;  %v4975_v30 = vld [vmem:[%s6488_s2] ss:$0 sm:$0xff] (!%p4974_p6) }
 0x1d2   : > { %5495 = vmatprep.subr.bf16.mxu0 (!%p4974_p6), %v5940_v42 }
 0x1d5   : > { %5496 = vmatpush3.bf16.msra.mxu0 (!%p4974_p6), %v5895_v28 }
 0x1eb   : > { %v5308_v34 = vpop.f32.mrb[28].mxu0 }
 0x1ec   : > { %v5309_v35 = vpop.f32.mrb[29].mxu0 }
 0x1ed   : > { %v5310_v36 = vadd.f32 %v5309_v35, %v5308_v34  ;;  %v5311_v37 = vpop.f32.mrb[30].mxu0  ;;  %v5330_v38 = vpop.f32.mrb[28].mxu1  ;;  %v4976_v34 = vld [vmem:[%s6490_s4] ss:$0 sm:$0xff] (!%p4974_p6) }
 0x1ee   : > { %v5312_v39 = vpop.f32.mrb[31].mxu0  ;;  %v5331_v40 = vpop.f32.mrb[29].mxu1 }
 0x1ef   : > { %v4129_v41 = vadd.f32 %v5310_v36, %v4089_v33  ;;  %v5332_v43 = vadd.f32 %v5331_v40, %v5330_v38  ;;  %v5333_v44 = vpop.f32.mrb[30].mxu1 }
 0x1f0   : > { %v5334_v45 = vpop.f32.mrb[31].mxu1 }
 0x1f1   : > { %v4169_v46 = vadd.f32 %v5332_v43, %v4129_v41 }
 0x20b   : > { %v5352_v47 = vpop.f32.mrb[32].mxu0 }
 0x20c   : > { %v5353_v48 = vpop.f32.mrb[33].mxu0 }
 0x20d   : > { %v5354_v49 = vadd.f32 %v5353_v48, %v5352_v47  ;;  %v5355_v50 = vpop.f32.mrb[34].mxu0  ;;  %v5374_v52 = vpop.f32.mrb[32].mxu1 }
 0x20e   : > { %v5356_v53 = vpop.f32.mrb[35].mxu0  ;;  %v5375_v54 = vpop.f32.mrb[33].mxu1 }
 0x20f   : > { %v4209_v55 = vadd.f32 %v5354_v49, %v4169_v46  ;;  %v5376_v56 = vadd.f32 %v5375_v54, %v5374_v52  ;;  %v5377_v57 = vpop.f32.mrb[34].mxu1 }
 0x210   : > { %v5378_v58 = vpop.f32.mrb[35].mxu1 }
 0x211   : > { %v4249_v59 = vadd.f32 %v5376_v56, %v4209_v55 }
 0x22b   : > { %v5396_v60 = vpop.f32.mrb[36].mxu0 }
 0x22c   : > { %v5397_v51 = vpop.f32.mrb[37].mxu0 }
 0x22d   : > { %v5398_v61 = vadd.f32 %v5397_v51, %v5396_v60  ;;  %v5399_v62 = vpop.f32.mrb[38].mxu0  ;;  %v5418_v63 = vpop.f32.mrb[36].mxu1 }
 0x22e   : > { %v5400_v0 = vpop.f32.mrb[39].mxu0  ;;  %v5419_v1 = vpop.f32.mrb[37].mxu1 }
 0x22f   : > { %v4289_v2 = vadd.f32 %v5398_v61, %v4249_v59  ;;  %v5420_v3 = vadd.f32 %v5419_v1, %v5418_v63  ;;  %v5421_v4 = vpop.f32.mrb[38].mxu1 }
 0x230   : > { %v5422_v5 = vpop.f32.mrb[39].mxu1 }
 0x231   : > { %v4329_v6 = vadd.f32 %v5420_v3, %v4289_v2 }
 0x24b   : > { %v5440_v7 = vpop.f32.mrb[40].mxu0 }
 0x24c   : > { %v5441_v8 = vpop.f32.mrb[41].mxu0 }
 0x24d   : > { %v5442_v9 = vadd.f32 %v5441_v8, %v5440_v7  ;;  %v5443_v10 = vpop.f32.mrb[42].mxu0  ;;  %v5462_v11 = vpop.f32.mrb[40].mxu1 }
 0x24e   : > { %v5444_v12 = vpop.f32.mrb[43].mxu0  ;;  %v5463_v13 = vpop.f32.mrb[41].mxu1 }
 0x24f   : > { %v4369_v14 = vadd.f32 %v5442_v9, %v4329_v6  ;;  %v5464_v15 = vadd.f32 %v5463_v13, %v5462_v11  ;;  %v5465_v16 = vpop.f32.mrb[42].mxu1 }
 0x250   : > { %v5466_v17 = vpop.f32.mrb[43].mxu1 }
 0x251   : > { %v4409_v18 = vadd.f32 %v5464_v15, %v4369_v14 }
 0x26b   : > { %v5484_v19 = vpop.f32.mrb[44].mxu0 }
 0x26c   : > { %v5485_v20 = vpop.f32.mrb[45].mxu0 }
 0x26d   : > { %v5486_v21 = vadd.f32 %v5485_v20, %v5484_v19  ;;  %v5487_v22 = vpop.f32.mrb[46].mxu0  ;;  %4460 = sbr.rel (%p4974_p6) target bundleno = 884 (0x374), region = 48 }
 0x26e   : > { %v5488_v24 = vpop.f32.mrb[47].mxu0 }
 0x26f   : > { %v4449_v25 = vadd.f32 %v5486_v21, %v4409_v18 }
 0x271   : > { %v4454_v26 = vadd.f32 %v4449_v25, %v239_v23 }
 0x273   : > { %4456 = vst.msk [vmem:[#allocation2] sm:$0x3] %vm4455_vm1, %v4454_v26 }
 0x27a   : > { %v4461_v29 = vld [vmem:[#allocation2] sm:$0x3] }
 0x27b   : > { %v4469_v31 = vadd.f32 %v4975_v30, %v4461_v29 }
 0x27d   : > { %v4470_v32 = vmax.f32 %v4469_v31, 0.0 }
 0x27f   : > { %v4471_v33 = vpack.c.bf16 %v4470_v32, %v4470_v32 }
 0x281   : > { %5498 = vmatmul.mubr.msk.bf16.vlgmr.msra.gmra.mrb[0].mxu0 %vm4495_vm3, %v4471_v33 }
 0x354   : > { %v4533_v35 = vpop.f32.mrb[0].mxu0 }
 0x355   : > { %v4534_v36 = vadd.f32 %v4976_v34, %v4533_v35  ;;  %v5499_v37 = vpop.f32.mrb[1].mxu0 }
 0x356   : > { %v4536_v38 = vpop.f32.mrb[2].mxu0 }
 0x357   : > { %v4539_v39 = vsub.f32 0.0, %v4534_v36  ;;  %v5500_v40 = vpop.f32.mrb[3].mxu0 }
 0x359   : > { %v4540_v41 = vmul.f32 1.442695, %v4539_v39 }
 0x35b   : > { %5896 = vpow2.f32 %v4540_v41 }
 0x365   : > { %v5897_v43 = vpop.eup %5896 }
 0x366   : > { %v4542_v44 = vadd.f32 1.0, %v5897_v43 }
 0x368   : > { %5898 = vrcp.f32 %v4542_v44 }
 0x372   : > { %v5899_v45 = vpop.eup %5898 }
 0x373   : > { %4544 = vst [vmem:[#allocation3] sm:$0x3] %v5899_v45 }
 0x374 PF: > { %p5505_p7 = scmp.eq.s32.totalorder %s5979_s19, 1  ;;  %s5942_s12 = smov [#allocation3]  }
 0x375   : > { %s4552_s13 = sshll.u32 %s5942_s12, 4  ;;  %s4553_s13 = int_to_ptr.vmem [resolvable:$true] %s4552_s13 }
 0x376   : > { %s5900_s14 = scalar_lea.vmem %s4553_s13, 32  ;;  %p5907_p11 = scmp.lt.s32.totalorder %s4553_s13, %s4553_s13 }
 0x377   : > { %p5901_p8 = scmp.ne.s32.totalorder %s4553_s13, %s5900_s14  ;;  %p5908_p12 = scmp.lt.s32.totalorder %s5900_s14, %s5900_s14 }
 0x379   : > { %p5902_p9 = pnand %p5901_p8, %p5505_p7  ;;  %p5909_p13 = por %p5908_p12, %p5907_p11 }
 0x37b   : > { %p5903_p10 = pneg %p5902_p9 }
 0x37d   : > { %p5910_p0 = pnand %p5909_p13, %p5903_p10 }
 0x37f   : > { %5913 = shalt.err (!%p5910_p0)
}
 0x380   : > { %s5914_s17 = scalar_lea.hbm %s6491_s5, 32 }
 0x381   : > { %p5915_p1 = scmp.ne.s32.totalorder %s6491_s5, %s5914_s17  ;;  %p5920_p4 = scmp.lt.u32.totalorder %s5914_s17, %s6491_s5 }
 0x383   : > { %p5916_p2 = pnand %p5915_p1, %p5505_p7 }
 0x385   : > { %p5917_p3 = pneg %p5916_p2 }
 0x387   : > { %p5922_p5 = pnand %p5920_p4, %p5917_p3 }
 0x389   : > { %5925 = shalt.err (!%p5922_p5)
}
 0x38a   : > { %5502 = dma.vmem_to_hbm [thread:$0]  (%p5505_p7), %s4553_s13, 32, %s6491_s5, [#allocation4]  }
 0x38b   : > { %5931 = dma.done.wait (%p5505_p7), [#allocation4], 32  }
 0x38c   : > { %5933 = vsyncadd (%p5505_p7), [#allocation4], 4294967264 }
 0x38d PF: > { %s16_s18 = sadd.s32 1, %s5936_s18  }
 0x38e   : > { %p13_p6 = scmp.ge.s32.totalorder %s16_s18, 4  }
 0x390   :  { %15 = sbr.rel (!%p13_p6) target bundleno = 1 (0x1), region = 78 }
 0x397   :  { %4565 = vsyncpa [#allocation4], 1 }
 0x398   :  { %4567 = vsyncpa [#allocation4 + $0x1], 1 }

// kernel: cnn_trad_fpool3_forward.4
= control target key start
LH: loop header
LB: loop body
LE: loop exit
PB: predicated region body
PF: predicated region fallthrough
CT: control target
= control target key end

     0   :  { %s15514_s15 = smov 0   ;;  %s17505_s0 = inlined_call_operand.vmem [shape: f32[2,32,11,64], index: 0, kind: input, shape index: {}]   ;;  %s17506_s1 = inlined_call_operand.vmem [shape: bf16[10,4,64,64], index: 1, kind: input, shape index: {}]   ;;  %s17507_s2 = inlined_call_operand.vmem [shape: f32[1,64], index: 2, kind: input, shape index: {}]   ;;  %s17508_s3 = inlined_call_operand.vmem [shape: f32[1,64], index: 3, kind: input, shape index: {}]   ;;  %s17509_s4 = inlined_call_operand.vmem [shape: bf16[368,64], index: 4, kind: output, shape index: {}]  }
   0x1 LB: > { %s15520_s16 = sadd.s32 4294967295, %s15487_s15   ;;  %p10623_p0 = scmp.ge.s32.totalorder %s15487_s15, 1  ;;  %s15487_s15 = sphi %s15514_s15, %s14_s15  }
   0x2   : > { %p162_p1 = scmp.lt.s32.totalorder %s15487_s15, 3 }
   0x4   : > { %p163_p2 = pnand %p10623_p0, %p162_p1 }
   0x5   : > { %v15321_v0 = vld [vmem:[%s17506_s1 + $0x20] sm:$0xff] (!%p163_p2)   ;;  %p188_p3 = scmp.lt.s32.totalorder (!%p163_p2), %s15520_s16, 1  ;;  %v15323_v2 = vld [vmem:[%s17506_s1 + $0x28] sm:$0xff] (!%p163_p2)   ;;  %v15325_v4 = vld [vmem:[%s17506_s1 + $0x30] sm:$0xff] (!%p163_p2)   ;;  %vm311_vm0 = vcmask (!%p163_p2), 523264   ;;  %s193_s19 = smul.u32 (!%p163_p2), 23, %s15520_s16 }
   0x6   : > { %166 = sbr.rel (%p163_p2) target bundleno = 1201 (0x4b1), region = 36  ;;  %v15322_v1 = vld [vmem:[%s17506_s1 + $0x280] sm:$0xff] (!%p163_p2)   ;;  %13098 = vmatprep.subr.bf16.mxu1 (!%p163_p2), %v15321_v0  ;;  %v15324_v3 = vld [vmem:[%s17506_s1 + $0x288] sm:$0xff] (!%p163_p2)   ;;  %v15326_v5 = vld [vmem:[%s17506_s1 + $0x290] sm:$0xff] (!%p163_p2)   ;;  %vm10539_vm1 = vcmask (!%p163_p2), 519168  }
   0x7   : > { %13738 = vmatprep.subr.bf16.mxu0 (!%p163_p2), %v15322_v1  ;;  %13099 = vmatpush3.bf16.msra.mxu1 (!%p163_p2), %v15321_v0  ;;  %v15327_v6 = vld [vmem:[%s17506_s1 + $0x38] sm:$0xff] (!%p163_p2)   ;;  %v15329_v16 = vld [vmem:[%s17506_s1] sm:$0xff] (!%p163_p2)   ;;  %v15331_v28 = vld [vmem:[%s17506_s1 + $0x8] sm:$0xff] (!%p163_p2)   ;;  %p194_p4 = scmp.lt.s32.totalorder (!%p163_p2), %s193_s19, 45 }
   0x8   : > { %13739 = vmatpush3.bf16.msra.mxu0 (!%p163_p2), %v15322_v1  ;;  %13100 = vmatprep.subr.bf16.mxu1 (!%p163_p2), %v15323_v2  ;;  %v15328_v10 = vld [vmem:[%s17506_s1 + $0x298] sm:$0xff] (!%p163_p2)   ;;  %v15330_v19 = vld [vmem:[%s17506_s1 + $0x2a0] sm:$0xff] (!%p163_p2)   ;;  %v15332_v29 = vld [vmem:[%s17506_s1 + $0x2a8] sm:$0xff] (!%p163_p2)  }
   0x9   : > { %13740 = vmatprep.subr.bf16.mxu0 (!%p163_p2), %v15324_v3  ;;  %v15333_v39 = vld [vmem:[%s17506_s1 + $0x10] sm:$0xff] (!%p163_p2)   ;;  %v15335_v50 = vld [vmem:[%s17506_s1 + $0x18] sm:$0xff] (!%p163_p2)   ;;  %v15337_v60 = vld [vmem:[%s17506_s1 + $0x40] sm:$0xff] (!%p163_p2)  }
   0xa   : > { %v15334_v43 = vld [vmem:[%s17506_s1 + $0x2b0] sm:$0xff] (!%p163_p2)   ;;  %v15336_v53 = vld [vmem:[%s17506_s1 + $0x2b8] sm:$0xff] (!%p163_p2)   ;;  %v15338_v0 = vld [vmem:[%s17506_s1 + $0x2c0] sm:$0xff] (!%p163_p2)  }
   0xb   : > { %13101 = vmatpush3.bf16.msra.mxu1 (!%p163_p2), %v15323_v2 }
   0xc   : > { %13741 = vmatpush3.bf16.msra.mxu0 (!%p163_p2), %v15324_v3  ;;  %13102 = vmatprep.subr.bf16.mxu1 (!%p163_p2), %v15325_v4 }
   0xd   : > { %s189_s23 = scalar_select %p188_p3, %s15520_s16, 1  ;;  %13742 = vmatprep.subr.bf16.mxu0 %v15326_v5 }
   0xe   : > { %s17511_s19 = smov (!%p194_p4, %s193_s19), 45 }
   0xf   : > { %s12434_s28 = sshll.u32 %s189_s23, 9  ;;  %13103 = vmatpush3.bf16.msra.mxu1 %v15325_v4  ;;  %s10626_s16 = sshll.u32 %s17511_s19, 2 }
  0x10   : > { %s15547_s7 = scalar_lea.vmem %s17505_s0, %s12434_s28  ;;  %13743 = vmatpush3.bf16.msra.mxu0 %v15326_v5  ;;  %13104 = vmatprep.subr.bf16.mxu1 %v15327_v6  ;;  %s17415_s25 = scalar_lea.vmem %s17509_s4, %s10626_s16 }
  0x11   : > { %v243_v7 = vld [vmem:[%s15547_s7 + $0x1] sm:$0xff]  ;;  %v244_v8 = vld [vmem:[%s15547_s7 + $0x11] sm:$0xff]  ;;  %13744 = vmatprep.subr.bf16.mxu0 %v15328_v10 }
  0x12   : > { %v15555_v9 = vld [vmem:[%s15547_s7 + $0x50] sm:$0xff]  ;;  %v266_v11 = vpack.c.bf16 %v244_v8, %v243_v7  ;;  %v15561_v12 = vld [vmem:[%s15547_s7 + $0x60] sm:$0xff] }
  0x13   : > { %v5282_v13 = vpack.c.bf16 %v15561_v12, %v15555_v9  ;;  %v245_v14 = vld [vmem:[%s15547_s7 + $0x21] sm:$0xff]  ;;  %v246_v15 = vld [vmem:[%s15547_s7 + $0x31] sm:$0xff]  ;;  %13105 = vmatpush3.bf16.msra.mxu1 %v15327_v6 }
  0x14   : > { %13106 = vmatprep.mubr.msk.bf16.mxu1 %vm311_vm0, %v266_v11  ;;  %v15572_v17 = vld [vmem:[%s15547_s7 + $0x70] sm:$0xff]  ;;  %v15575_v18 = vld [vmem:[%s15547_s7 + $0x80] sm:$0xff]  ;;  %v267_v22 = vpack.c.bf16 %v246_v15, %v245_v14  ;;  %13745 = vmatpush3.bf16.msra.mxu0 %v15328_v10 }
  0x15   : > { %13746 = vmatprep.mubr.msk.bf16.mxu0 %vm311_vm0, %v5282_v13  ;;  %v247_v20 = vld [vmem:[%s15547_s7 + $0x41] sm:$0xff]  ;;  %v15583_v21 = vld [vmem:[%s15547_s7 + $0x51] sm:$0xff]  ;;  %v5283_v25 = vpack.c.bf16 %v15575_v18, %v15572_v17  ;;  %13130 = vmatprep.subr.bf16.mxu1 %v15329_v16 }
  0x16   : > { %v15586_v23 = vld [vmem:[%s15547_s7 + $0x90] sm:$0xff]  ;;  %v15589_v24 = vld [vmem:[%s15547_s7 + $0xa0] sm:$0xff]  ;;  %v268_v26 = vpack.c.bf16 %v15583_v21, %v247_v20  ;;  %13770 = vmatprep.subr.bf16.mxu0 %v15330_v19  ;;  %13107 = vmatmul.mubr.msk.bf16.vlgmr.msra.gmra.mrb[0].mxu1 %vm311_vm0, %v267_v22 }
  0x17   : > { %v5284_v27 = vpack.c.bf16 %v15589_v24, %v15586_v23  ;;  %13747 = vmatmul.mubr.msk.bf16.vlgmr.msra.gmra.mrb[0].mxu0 %vm311_vm0, %v5283_v25  ;;  %13131 = vmatpush3.bf16.msra.mxu1 %v15329_v16  ;;  %v15605_v30 = vld [vmem:[%s15547_s7 + $0x61] sm:$0xff]  ;;  %v15608_v31 = vld [vmem:[%s15547_s7 + $0x71] sm:$0xff] }
  0x18   : > { %v15611_v32 = vld [vmem:[%s15547_s7 + $0xb0] sm:$0xff]  ;;  %13771 = vmatpush3.bf16.msra.mxu0 %v15330_v19  ;;  %13110 = vmatprep.mubr.msk.bf16.mxu1 %vm311_vm0, %v268_v26  ;;  %v15615_v33 = vld [vmem:[%s15547_s7 + $0xc0] sm:$0xff]  ;;  %v269_v38 = vpack.c.bf16 %v15608_v31, %v15605_v30 }
  0x19   : > { %v15618_v34 = vld [vmem:[%s15547_s7 + $0x81] sm:$0xff]  ;;  %v15621_v35 = vld [vmem:[%s15547_s7 + $0x91] sm:$0xff]  ;;  %13750 = vmatprep.mubr.msk.bf16.mxu0 %vm311_vm0, %v5284_v27  ;;  %13132 = vmatprep.subr.bf16.mxu1 %v15331_v28  ;;  %v5285_v40 = vpack.c.bf16 %v15615_v33, %v15611_v32 }
  0x1a   : > { %v15625_v36 = vld [vmem:[%s15547_s7 + $0xd0] sm:$0xff]  ;;  %v15628_v37 = vld [vmem:[%s15547_s7 + $0xe0] sm:$0xff]  ;;  %13772 = vmatprep.subr.bf16.mxu0 %v15332_v29  ;;  %v270_v41 = vpack.c.bf16 %v15621_v35, %v15618_v34 }
  0x1b   : > { %13133 = vmatpush3.bf16.msra.mxu1 %v15331_v28  ;;  %v5286_v42 = vpack.c.bf16 %v15628_v37, %v15625_v36  ;;  %v15645_v44 = vld [vmem:[%s15547_s7 + $0xa1] sm:$0xff]  ;;  %v15648_v45 = vld [vmem:[%s15547_s7 + $0xb1] sm:$0xff] }
  0x1c   : > { %13773 = vmatpush3.bf16.msra.mxu0 %v15332_v29  ;;  %13134 = vmatprep.subr.bf16.mxu1 %v15333_v39  ;;  %v15652_v46 = vld [vmem:[%s15547_s7 + $0xf0] sm:$0xff]  ;;  %v15655_v47 = vld [vmem:[%s15547_s7 + $0x100] sm:$0xff]  ;;  %v271_v54 = vpack.c.bf16 %v15648_v45, %v15645_v44 }
  0x1d   : > { %v15658_v48 = vld [vmem:[%s15547_s7 + $0xc1] sm:$0xff]  ;;  %13774 = vmatprep.subr.bf16.mxu0 %v15334_v43  ;;  %v15663_v49 = vld [vmem:[%s15547_s7 + $0xd1] sm:$0xff]  ;;  %v5287_v55 = vpack.c.bf16 %v15655_v47, %v15652_v46 }
  0x1e   : > { %13111 = vmatmul.mubr.msk.bf16.gmra.mrb[4].mxu1 %vm311_vm0, %v269_v38  ;;  %v15670_v51 = vld [vmem:[%s15547_s7 + $0x110] sm:$0xff]  ;;  %v15673_v52 = vld [vmem:[%s15547_s7 + $0x120] sm:$0xff]  ;;  %v272_v56 = vpack.c.bf16 %v15663_v49, %v15658_v48 }
  0x1f   : > { %13751 = vmatmul.mubr.msk.bf16.gmra.mrb[4].mxu0 %vm311_vm0, %v5285_v40  ;;  %13114 = vmatprep.mubr.msk.bf16.mxu1 %vm311_vm0, %v270_v41  ;;  %v5288_v57 = vpack.c.bf16 %v15673_v52, %v15670_v51  ;;  %v15687_v58 = vld [vmem:[%s15547_s7 + $0xe1] sm:$0xff]  ;;  %v15690_v59 = vld [vmem:[%s15547_s7 + $0xf1] sm:$0xff] }
  0x20   : > { %13754 = vmatprep.mubr.msk.bf16.mxu0 %vm311_vm0, %v5286_v42  ;;  %13135 = vmatpush3.bf16.msra.mxu1 %v15333_v39  ;;  %v15697_v61 = vld [vmem:[%s15547_s7 + $0x130] sm:$0xff]  ;;  %v15700_v62 = vld [vmem:[%s15547_s7 + $0x140] sm:$0xff]  ;;  %v273_v4 = vpack.c.bf16 %v15690_v59, %v15687_v58  ;;  %v5537_v42 = vpack.c.bf16 %v15605_v30, %v15583_v21  ;;  %v5538_v21 = vpack.c.bf16 %v15618_v34, %v15608_v31 }
  0x21   : > { %13775 = vmatpush3.bf16.msra.mxu0 %v15334_v43  ;;  %13136 = vmatprep.subr.bf16.mxu1 %v15335_v50  ;;  %v15703_v63 = vld [vmem:[%s15547_s7 + $0x101] sm:$0xff]  ;;  %v15711_v1 = vld [vmem:[%s15547_s7 + $0x111] sm:$0xff]  ;;  %v5289_v5 = vpack.c.bf16 %v15700_v62, %v15697_v61  ;;  %v226_v34 = vpack.c.bf16 %v15572_v17, %v15561_v12 }
  0x22   : > { %13776 = vmatprep.subr.bf16.mxu0 %v15336_v53  ;;  %v15715_v2 = vld [vmem:[%s15547_s7 + $0x150] sm:$0xff]  ;;  %v15718_v3 = vld [vmem:[%s15547_s7 + $0x160] sm:$0xff]  ;;  %v274_v6 = vpack.c.bf16 %v15711_v1, %v15703_v63  ;;  %v15344_v12 = vld [vmem:[%s17506_s1 + $0x2d8] sm:$0xff]  }
  0x23   : > { %v5290_v7 = vpack.c.bf16 %v15718_v3, %v15715_v2  ;;  %v15730_v8 = vld [vmem:[%s15547_s7 + $0x121] sm:$0xff]  ;;  %v15735_v10 = vld [vmem:[%s15547_s7 + $0x131] sm:$0xff] }
  0x24   : > { %13137 = vmatpush3.bf16.msra.mxu1 %v15335_v50  ;;  %v11485_v11 = vld [vmem:[%s15547_s7 + $0x170] sm:$0xff]  ;;  %v11486_v13 = vld [vmem:[%s15547_s7 + $0x180] sm:$0xff]  ;;  %v275_v20 = vpack.c.bf16 %v15735_v10, %v15730_v8 }
  0x25   : > { %13777 = vmatpush3.bf16.msra.mxu0 %v15336_v53  ;;  %13162 = vmatprep.subr.bf16.mxu1 %v15337_v60  ;;  %v15741_v14 = vld [vmem:[%s15547_s7 + $0x141] sm:$0xff]  ;;  %v15744_v15 = vld [vmem:[%s15547_s7 + $0x151] sm:$0xff]  ;;  %v5291_v22 = vpack.c.bf16 %v11486_v13, %v11485_v11 }
  0x26   : > { %13115 = vmatmul.mubr.msk.bf16.gmra.mrb[8].mxu1 %vm311_vm0, %v271_v54  ;;  %13802 = vmatprep.subr.bf16.mxu0 %v15338_v0  ;;  %v11487_v16 = vld [vmem:[%s15547_s7 + $0x190] sm:$0xff]  ;;  %v11488_v19 = vld [vmem:[%s15547_s7 + $0x1a0] sm:$0xff]  ;;  %v276_v25 = vpack.c.bf16 %v15744_v15, %v15741_v14 }
  0x27   : > { %13755 = vmatmul.mubr.msk.bf16.gmra.mrb[8].mxu0 %vm311_vm0, %v5287_v55  ;;  %13118 = vmatprep.mubr.msk.bf16.mxu1 %vm311_vm0, %v272_v56  ;;  %v5292_v26 = vpack.c.bf16 %v11488_v19, %v11487_v16  ;;  %v15756_v27 = vld [vmem:[%s15547_s7 + $0x161] sm:$0xff]  ;;  %v11489_v28 = vld [vmem:[%s15547_s7 + $0x1b0] sm:$0xff]  ;;  %v5539_v55 = vpack.c.bf16 %v15645_v44, %v15621_v35  ;;  %v5540_v35 = vpack.c.bf16 %v15658_v48, %v15648_v45 }
  0x28   : > { %13758 = vmatprep.mubr.msk.bf16.mxu0 %vm311_vm0, %v5288_v57  ;;  %v200_v29 = vld [vmem:[%s15547_s7] sm:$0xff]  ;;  %v15762_v38 = vld [vmem:[%s15547_s7 + $0x10] sm:$0xff]  ;;  %v277_v39 = vpack.c.bf16 %v15756_v27, %v15756_v27  ;;  %v5293_v40 = vpack.c.bf16 %v11489_v28, %v11489_v28  ;;  %v15339_v56 = vld [vmem:[%s17506_s1 + $0x48] sm:$0xff]   ;;  %v227_v44 = vpack.c.bf16 %v15586_v23, %v15575_v18  ;;  %v228_v48 = vpack.c.bf16 %v15611_v32, %v15589_v24 }
  0x29   : > { %v223_v41 = vpack.c.bf16 %v15762_v38, %v200_v29  ;;  %v15773_v43 = vld [vmem:[%s15547_s7 + $0x20] sm:$0xff]  ;;  %v15776_v50 = vld [vmem:[%s15547_s7 + $0x30] sm:$0xff]  ;;  %v15340_v57 = vld [vmem:[%s17506_s1 + $0x2c8] sm:$0xff]   ;;  %v230_v24 = vpack.c.bf16 %v15652_v46, %v15628_v37  ;;  %v5544_v32 = vpack.c.bf16 %v15741_v14, %v15735_v10 }
  0x2a   : > { %v15780_v53 = vld [vmem:[%s15547_s7 + $0x40] sm:$0xff]  ;;  %v224_v54 = vpack.c.bf16 %v15776_v50, %v15773_v43  ;;  %v15342_v31 = vld [vmem:[%s17506_s1 + $0x2d0] sm:$0xff]   ;;  %v1198_v17 = vpack.c.bf16 %v15773_v43, %v15762_v38  ;;  %v15348_v28 = vld [vmem:[%s17506_s1 + $0x2e8] sm:$0xff]  }
  0x2b   : > { %v225_v30 = vpack.c.bf16 %v15555_v9, %v15780_v53  ;;  %v15341_v9 = vld [vmem:[%s17506_s1 + $0x50] sm:$0xff]   ;;  %v1199_v18 = vpack.c.bf16 %v15780_v53, %v15776_v50  ;;  %v15831_v23 = vld [vmem:[%s17506_s1 + $0x60] sm:$0xff]   ;;  %v15363_v38 = vld [vmem:[%s17506_s1 + $0xa8] sm:$0xff]  }
  0x2c   : > { %v15836_v45 = vld [vmem:[%s17506_s1 + $0x2e0] sm:$0xff]   ;;  %v11532_v37 = vld [vmem:[%s15547_s7 + $0x171] sm:$0xff]  ;;  %v15364_v43 = vld [vmem:[%s17506_s1 + $0x328] sm:$0xff]  }
  0x2d   : > { %v11533_v46 = vld [vmem:[%s15547_s7 + $0x181] sm:$0xff]  ;;  %v667_v14 = vld [vmem:[%s15547_s7 + $0x32] sm:$0xff] }
  0x2e   : > { %13119 = vmatmul.mubr.msk.bf16.gmra.mrb[12].mxu1 %vm311_vm0, %v273_v4  ;;  %v5543_v4 = vpack.c.bf16 %v15730_v8, %v15711_v1  ;;  %v233_v1 = vpack.c.bf16 %v15715_v2, %v15700_v62  ;;  %v665_v8 = vld [vmem:[%s15547_s7 + $0x12] sm:$0xff]  ;;  %v234_v62 = vpack.c.bf16 %v15718_v3, %v15718_v3  ;;  %v666_v13 = vld [vmem:[%s15547_s7 + $0x22] sm:$0xff] }
  0x2f   : > { %13759 = vmatmul.mubr.msk.bf16.gmra.mrb[12].mxu0 %vm311_vm0, %v5289_v5  ;;  %13122 = vmatprep.mubr.msk.bf16.mxu1 %vm311_vm0, %v274_v6  ;;  %v11536_v6 = vld [vmem:[%s15547_s7 + $0x1b1] sm:$0xff]  ;;  %v11564_v16 = vld [vmem:[%s15547_s7 + $0x82] sm:$0xff] }
  0x30   : > { %13762 = vmatprep.mubr.msk.bf16.mxu0 %vm311_vm0, %v5290_v7  ;;  %v664_v7 = vld [vmem:[%s15547_s7 + $0x2] sm:$0xff]  ;;  %v5548_v2 = vpack.c.bf16 %v11536_v6, %v11536_v6  ;;  %v11565_v3 = vld [vmem:[%s15547_s7 + $0x92] sm:$0xff] }
  0x31   : > { %v687_v10 = vpack.c.bf16 %v665_v8, %v664_v7  ;;  %v668_v19 = vld [vmem:[%s15547_s7 + $0x42] sm:$0xff]  ;;  %v11583_v8 = vld [vmem:[%s15547_s7 + $0x1b2] sm:$0xff] }
  0x32   : > { %v11663_v50 = vld [vmem:[%s15547_s7 + $0xe0] sm:$0xff]  ;;  %v11664_v53 = vld [vmem:[%s15547_s7 + $0xf0] sm:$0xff] }
  0x36   : > { %13123 = vmatmul.mubr.msk.bf16.gmra.mrb[16].mxu1 %vm311_vm0, %v275_v20  ;;  %v11566_v20 = vld [vmem:[%s15547_s7 + $0xa2] sm:$0xff] }
  0x37   : > { %13763 = vmatmul.mubr.msk.bf16.gmra.mrb[16].mxu0 %vm311_vm0, %v5291_v22  ;;  %13126 = vmatprep.mubr.msk.bf16.mxu1 %vm311_vm0, %v276_v25  ;;  %v688_v22 = vpack.c.bf16 %v667_v14, %v666_v13  ;;  %v5794_v29 = vpack.c.bf16 %v11566_v20, %v11565_v3 }
  0x38   : > { %13766 = vmatprep.mubr.msk.bf16.mxu0 %vm311_vm0, %v5292_v26 }
  0x3e   : > { %13127 = vmatmul.mubr.msk.bf16.gmra.mrb[20].mxu1 %vm311_vm0, %v277_v39  ;;  %v11567_v39 = vld [vmem:[%s15547_s7 + $0xb2] sm:$0xff] }
  0x3f   : > { %13767 = vmatmul.mubr.msk.bf16.gmra.mrb[20].mxu0 %vm311_vm0, %v5293_v40  ;;  %13138 = vmatprep.mubr.msk.bf16.mxu1 %vm311_vm0, %v223_v41  ;;  %v11568_v40 = vld [vmem:[%s15547_s7 + $0xc2] sm:$0xff]  ;;  %v11569_v41 = vld [vmem:[%s15547_s7 + $0xd2] sm:$0xff] }
  0x40   : > { %13778 = vmatprep.mubr.msk.bf16.mxu0 %vm311_vm0, %v5537_v42  ;;  %v11570_v42 = vld [vmem:[%s15547_s7 + $0xe2] sm:$0xff] }
  0x46   : > { %13139 = vmatmul.mubr.msk.bf16.vlgmr.msra.gmra.mrb[0].mxu1 %vm311_vm0, %v224_v54  ;;  %v15349_v54 = vld [vmem:[%s17506_s1 + $0x70] sm:$0xff]  }
  0x47   : > { %13779 = vmatmul.mubr.msk.bf16.vlgmr.msra.gmra.mrb[0].mxu0 %vm311_vm0, %v5538_v21  ;;  %13163 = vmatpush3.bf16.msra.mxu1 %v15337_v60  ;;  %v5541_v60 = vpack.c.bf16 %v15687_v58, %v15663_v49  ;;  %v5542_v49 = vpack.c.bf16 %v15703_v63, %v15690_v59  ;;  %v229_v58 = vpack.c.bf16 %v15625_v36, %v15615_v33  ;;  %v11534_v59 = vld [vmem:[%s15547_s7 + $0x191] sm:$0xff]  ;;  %v11535_v63 = vld [vmem:[%s15547_s7 + $0x1a1] sm:$0xff] }
  0x48   : > { %13803 = vmatpush3.bf16.msra.mxu0 %v15338_v0  ;;  %13142 = vmatprep.mubr.msk.bf16.mxu1 %vm311_vm0, %v225_v30  ;;  %v15343_v0 = vld [vmem:[%s17506_s1 + $0x58] sm:$0xff]   ;;  %v231_v33 = vpack.c.bf16 %v15670_v51, %v15655_v47  ;;  %v5545_v36 = vpack.c.bf16 %v15756_v27, %v15744_v15  ;;  %v232_v47 = vpack.c.bf16 %v15697_v61, %v15673_v52  ;;  %v11562_v61 = vld [vmem:[%s15547_s7 + $0x62] sm:$0xff]  ;;  %v15350_v21 = vld [vmem:[%s17506_s1 + $0x2f0] sm:$0xff]  }
  0x49   : > { %13782 = vmatprep.mubr.msk.bf16.mxu0 %vm311_vm0, %v5539_v55  ;;  %13164 = vmatprep.subr.bf16.mxu1 %v15339_v56  ;;  %v5546_v51 = vpack.c.bf16 %v11533_v46, %v11532_v37  ;;  %v5547_v5 = vpack.c.bf16 %v11535_v63, %v11534_v59  ;;  %v11561_v52 = vld [vmem:[%s15547_s7 + $0x52] sm:$0xff]  ;;  %v15347_v27 = vld [vmem:[%s17506_s1 + $0x68] sm:$0xff]   ;;  %v5795_v55 = vpack.c.bf16 %v11568_v40, %v11567_v39 }
  0x4a   : > { %13804 = vmatprep.subr.bf16.mxu0 %v15340_v57  ;;  %v5792_v11 = vpack.c.bf16 %v11562_v61, %v11561_v52  ;;  %v11563_v15 = vld [vmem:[%s15547_s7 + $0x72] sm:$0xff]  ;;  %v689_v26 = vpack.c.bf16 %v11561_v52, %v668_v19  ;;  %v11580_v63 = vld [vmem:[%s15547_s7 + $0x182] sm:$0xff] }
  0x4b   : > { %13165 = vmatpush3.bf16.msra.mxu1 %v15339_v56  ;;  %v5793_v25 = vpack.c.bf16 %v11564_v16, %v11563_v15  ;;  %v690_v30 = vpack.c.bf16 %v11563_v15, %v11562_v61  ;;  %v691_v56 = vpack.c.bf16 %v11565_v3, %v11564_v16  ;;  %v11579_v59 = vld [vmem:[%s15547_s7 + $0x172] sm:$0xff]  ;;  %v919_v52 = vld [vmem:[%s15547_s7 + $0x3] sm:$0xff] }
  0x4c   : > { %13805 = vmatpush3.bf16.msra.mxu0 %v15340_v57  ;;  %13166 = vmatprep.subr.bf16.mxu1 %v15341_v9  ;;  %v15351_v57 = vld [vmem:[%s17506_s1 + $0x78] sm:$0xff]   ;;  %v921_v15 = vld [vmem:[%s15547_s7 + $0x23] sm:$0xff] }
  0x4d   : > { %13806 = vmatprep.subr.bf16.mxu0 %v15342_v31  ;;  %v920_v61 = vld [vmem:[%s15547_s7 + $0x13] sm:$0xff]  ;;  %v11611_v3 = vld [vmem:[%s15547_s7 + $0x83] sm:$0xff] }
  0x4e   : > { %13143 = vmatmul.mubr.msk.bf16.gmra.mrb[4].mxu1 %vm311_vm0, %v226_v34  ;;  %v11571_v34 = vld [vmem:[%s15547_s7 + $0xf2] sm:$0xff]  ;;  %v942_v13 = vpack.c.bf16 %v920_v61, %v919_v52 }
  0x4f   : > { %13783 = vmatmul.mubr.msk.bf16.gmra.mrb[4].mxu0 %vm311_vm0, %v5540_v35  ;;  %13146 = vmatprep.mubr.msk.bf16.mxu1 %vm311_vm0, %v227_v44  ;;  %v11572_v35 = vld [vmem:[%s15547_s7 + $0x102] sm:$0xff]  ;;  %v11573_v44 = vld [vmem:[%s15547_s7 + $0x112] sm:$0xff] }
  0x50   : > { %13786 = vmatprep.mubr.msk.bf16.mxu0 %vm311_vm0, %v5541_v60  ;;  %13167 = vmatpush3.bf16.msra.mxu1 %v15341_v9  ;;  %v5796_v9 = vpack.c.bf16 %v11570_v42, %v11569_v41  ;;  %v11574_v60 = vld [vmem:[%s15547_s7 + $0x122] sm:$0xff]  ;;  %v695_v37 = vpack.c.bf16 %v11573_v44, %v11572_v35  ;;  %v922_v16 = vld [vmem:[%s15547_s7 + $0x33] sm:$0xff] }
  0x51   : > { %13807 = vmatpush3.bf16.msra.mxu0 %v15342_v31  ;;  %13168 = vmatprep.subr.bf16.mxu1 %v15343_v0  ;;  %v15352_v31 = vld [vmem:[%s17506_s1 + $0x2f8] sm:$0xff]  }
  0x52   : > { %13808 = vmatprep.subr.bf16.mxu0 %v15344_v12  ;;  %v11610_v19 = vld [vmem:[%s15547_s7 + $0x73] sm:$0xff] }
  0x53   : > { %v11630_v61 = vld [vmem:[%s15547_s7 + $0x1b3] sm:$0xff] }
  0x54   : > { %13169 = vmatpush3.bf16.msra.mxu1 %v15343_v0  ;;  %v15933_v0 = vld [vmem:[%s17506_s1 + $0x80] sm:$0xff]  }
  0x55   : > { %13809 = vmatpush3.bf16.msra.mxu0 %v15344_v12  ;;  %13194 = vmatprep.subr.bf16.mxu1 %v15831_v23  ;;  %v15938_v12 = vld [vmem:[%s17506_s1 + $0x300] sm:$0xff]  }
  0x56   : > { %13147 = vmatmul.mubr.msk.bf16.gmra.mrb[8].mxu1 %vm311_vm0, %v228_v48  ;;  %13834 = vmatprep.subr.bf16.mxu0 %v15836_v45  ;;  %v693_v48 = vpack.c.bf16 %v11569_v41, %v11568_v40  ;;  %v11614_v41 = vld [vmem:[%s15547_s7 + $0xb3] sm:$0xff] }
  0x57   : > { %13787 = vmatmul.mubr.msk.bf16.gmra.mrb[8].mxu0 %vm311_vm0, %v5542_v49  ;;  %13150 = vmatprep.mubr.msk.bf16.mxu1 %vm311_vm0, %v229_v58  ;;  %v5798_v49 = vpack.c.bf16 %v11574_v60, %v11573_v44  ;;  %v11575_v58 = vld [vmem:[%s15547_s7 + $0x132] sm:$0xff] }
  0x58   : > { %13790 = vmatprep.mubr.msk.bf16.mxu0 %vm311_vm0, %v5543_v4  ;;  %v11576_v4 = vld [vmem:[%s15547_s7 + $0x142] sm:$0xff]  ;;  %v11618_v44 = vld [vmem:[%s15547_s7 + $0xf3] sm:$0xff] }
  0x5e   : > { %13151 = vmatmul.mubr.msk.bf16.gmra.mrb[12].mxu1 %vm311_vm0, %v230_v24  ;;  %v11577_v24 = vld [vmem:[%s15547_s7 + $0x152] sm:$0xff] }
  0x5f   : > { %13791 = vmatmul.mubr.msk.bf16.gmra.mrb[12].mxu0 %vm311_vm0, %v5544_v32  ;;  %13154 = vmatprep.mubr.msk.bf16.mxu1 %vm311_vm0, %v231_v33  ;;  %v11578_v32 = vld [vmem:[%s15547_s7 + $0x162] sm:$0xff]  ;;  %v694_v33 = vpack.c.bf16 %v11571_v34, %v11570_v42  ;;  %v697_v6 = vpack.c.bf16 %v11577_v24, %v11576_v4 }
  0x60   : > { %13794 = vmatprep.mubr.msk.bf16.mxu0 %vm311_vm0, %v5545_v36  ;;  %v5799_v36 = vpack.c.bf16 %v11576_v4, %v11575_v58  ;;  %v5800_v46 = vpack.c.bf16 %v11578_v32, %v11577_v24  ;;  %v11615_v42 = vld [vmem:[%s15547_s7 + $0xc3] sm:$0xff]  ;;  %v11622_v24 = vld [vmem:[%s15547_s7 + $0x133] sm:$0xff] }
  0x66   : > { %13155 = vmatmul.mubr.msk.bf16.gmra.mrb[16].mxu1 %vm311_vm0, %v232_v47  ;;  %v11581_v47 = vld [vmem:[%s15547_s7 + $0x192] sm:$0xff] }
  0x67   : > { %13795 = vmatmul.mubr.msk.bf16.gmra.mrb[16].mxu0 %vm311_vm0, %v5546_v51  ;;  %13158 = vmatprep.mubr.msk.bf16.mxu1 %vm311_vm0, %v233_v1  ;;  %v11582_v51 = vld [vmem:[%s15547_s7 + $0x1a2] sm:$0xff]  ;;  %v696_v1 = vpack.c.bf16 %v11575_v58, %v11574_v60 }
  0x68   : > { %13798 = vmatprep.mubr.msk.bf16.mxu0 %vm311_vm0, %v5547_v5  ;;  %v5801_v5 = vpack.c.bf16 %v11580_v63, %v11579_v59  ;;  %v5802_v7 = vpack.c.bf16 %v11582_v51, %v11581_v47  ;;  %v11619_v60 = vld [vmem:[%s15547_s7 + $0x103] sm:$0xff]  ;;  %v11626_v47 = vld [vmem:[%s15547_s7 + $0x173] sm:$0xff] }
  0x69   : > { %v11627_v51 = vld [vmem:[%s15547_s7 + $0x183] sm:$0xff] }
  0x6e   : > { %13159 = vmatmul.mubr.msk.bf16.gmra.mrb[20].mxu1 %vm311_vm0, %v234_v62  ;;  %v11608_v62 = vld [vmem:[%s15547_s7 + $0x53] sm:$0xff] }
  0x6f   : > { %13799 = vmatmul.mubr.msk.bf16.gmra.mrb[20].mxu0 %vm311_vm0, %v5548_v2  ;;  %13170 = vmatprep.mubr.msk.bf16.mxu1 %vm311_vm0, %v687_v10  ;;  %v11609_v2 = vld [vmem:[%s15547_s7 + $0x63] sm:$0xff]  ;;  %v698_v10 = vpack.c.bf16 %v11578_v32, %v11578_v32 }
  0x70   : > { %13810 = vmatprep.mubr.msk.bf16.mxu0 %vm311_vm0, %v5792_v11  ;;  %v5803_v11 = vpack.c.bf16 %v11583_v8, %v11583_v8  ;;  %v6047_v14 = vpack.c.bf16 %v11609_v2, %v11608_v62  ;;  %v11623_v32 = vld [vmem:[%s15547_s7 + $0x143] sm:$0xff] }
  0x76   : > { %13171 = vmatmul.mubr.msk.bf16.vlgmr.msra.gmra.mrb[0].mxu1 %vm311_vm0, %v688_v22  ;;  %v11612_v22 = vld [vmem:[%s15547_s7 + $0x93] sm:$0xff] }
  0x77   : > { %13811 = vmatmul.mubr.msk.bf16.vlgmr.msra.gmra.mrb[0].mxu0 %vm311_vm0, %v5793_v25  ;;  %13195 = vmatpush3.bf16.msra.mxu1 %v15831_v23  ;;  %v692_v23 = vpack.c.bf16 %v11567_v39, %v11566_v20  ;;  %v923_v20 = vld [vmem:[%s15547_s7 + $0x43] sm:$0xff] }
  0x78   : > { %13835 = vmatpush3.bf16.msra.mxu0 %v15836_v45  ;;  %13174 = vmatprep.mubr.msk.bf16.mxu1 %vm311_vm0, %v689_v26  ;;  %v5797_v45 = vpack.c.bf16 %v11572_v35, %v11571_v34  ;;  %v11613_v25 = vld [vmem:[%s15547_s7 + $0xa3] sm:$0xff]  ;;  %v943_v26 = vpack.c.bf16 %v922_v16, %v921_v15  ;;  %v15360_v35 = vld [vmem:[%s17506_s1 + $0x318] sm:$0xff]   ;;  %v11658_v15 = vld [vmem:[%s15547_s7 + $0x90] sm:$0xff] }
  0x79   : > { %13814 = vmatprep.mubr.msk.bf16.mxu0 %vm311_vm0, %v5794_v29  ;;  %13196 = vmatprep.subr.bf16.mxu1 %v15347_v27  ;;  %v15355_v29 = vld [vmem:[%s17506_s1 + $0x88] sm:$0xff]   ;;  %v6049_v40 = vpack.c.bf16 %v11613_v25, %v11612_v22  ;;  %v10719_v16 = vld [vmem:[%s15547_s7 + $0x50] sm:$0xff] }
  0x7a   : > { %13836 = vmatprep.subr.bf16.mxu0 %v15348_v28  ;;  %v15356_v39 = vld [vmem:[%s17506_s1 + $0x308] sm:$0xff]  }
  0x7b   : > { %13197 = vmatpush3.bf16.msra.mxu1 %v15347_v27  ;;  %v6048_v27 = vpack.c.bf16 %v11611_v3, %v11610_v19 }
  0x7c   : > { %13837 = vmatpush3.bf16.msra.mxu0 %v15348_v28  ;;  %13198 = vmatprep.subr.bf16.mxu1 %v15349_v54  ;;  %v944_v28 = vpack.c.bf16 %v11608_v62, %v923_v20  ;;  %v11655_v62 = vld [vmem:[%s15547_s7 + $0x60] sm:$0xff] }
  0x7d   : > { %13838 = vmatprep.subr.bf16.mxu0 %v15350_v21 }
  0x7e   : > { %13175 = vmatmul.mubr.msk.bf16.gmra.mrb[4].mxu1 %vm311_vm0, %v690_v30  ;;  %v15357_v30 = vld [vmem:[%s17506_s1 + $0x90] sm:$0xff]  }
  0x7f   : > { %13815 = vmatmul.mubr.msk.bf16.gmra.mrb[4].mxu0 %vm311_vm0, %v5795_v55  ;;  %13178 = vmatprep.mubr.msk.bf16.mxu1 %vm311_vm0, %v691_v56  ;;  %v15358_v55 = vld [vmem:[%s17506_s1 + $0x310] sm:$0xff]   ;;  %v945_v56 = vpack.c.bf16 %v11610_v19, %v11609_v2  ;;  %v11659_v19 = vld [vmem:[%s15547_s7 + $0xa0] sm:$0xff] }
  0x80   : > { %13818 = vmatprep.mubr.msk.bf16.mxu0 %vm311_vm0, %v5796_v9  ;;  %13199 = vmatpush3.bf16.msra.mxu1 %v15349_v54  ;;  %v11616_v54 = vld [vmem:[%s15547_s7 + $0xd3] sm:$0xff]  ;;  %v946_v9 = vpack.c.bf16 %v11612_v22, %v11611_v3  ;;  %v1200_v22 = vpack.c.bf16 %v11655_v62, %v10719_v16 }
  0x81   : > { %13839 = vmatpush3.bf16.msra.mxu0 %v15350_v21  ;;  %13200 = vmatprep.subr.bf16.mxu1 %v15351_v57  ;;  %v11617_v21 = vld [vmem:[%s15547_s7 + $0xe3] sm:$0xff]  ;;  %v948_v58 = vpack.c.bf16 %v11616_v54, %v11615_v42  ;;  %v11656_v2 = vld [vmem:[%s15547_s7 + $0x70] sm:$0xff] }
  0x82   : > { %13840 = vmatprep.subr.bf16.mxu0 %v15352_v31  ;;  %v6051_v34 = vpack.c.bf16 %v11617_v21, %v11616_v54  ;;  %v11660_v3 = vld [vmem:[%s15547_s7 + $0xb0] sm:$0xff]  ;;  %v11665_v54 = vld [vmem:[%s15547_s7 + $0x100] sm:$0xff] }
  0x84   : > { %13201 = vmatpush3.bf16.msra.mxu1 %v15351_v57  ;;  %v6050_v57 = vpack.c.bf16 %v11615_v42, %v11614_v41  ;;  %v15368_v42 = vld [vmem:[%s17506_s1 + $0x338] sm:$0xff]  }
  0x85   : > { %13841 = vmatpush3.bf16.msra.mxu0 %v15352_v31  ;;  %13226 = vmatprep.subr.bf16.mxu1 %v15933_v0  ;;  %v15359_v31 = vld [vmem:[%s17506_s1 + $0x98] sm:$0xff]  }
  0x86   : > { %13179 = vmatmul.mubr.msk.bf16.gmra.mrb[8].mxu1 %vm311_vm0, %v692_v23  ;;  %13866 = vmatprep.subr.bf16.mxu0 %v15938_v12  ;;  %v16017_v23 = vld [vmem:[%s17506_s1 + $0xa0] sm:$0xff]  }
  0x87   : > { %13819 = vmatmul.mubr.msk.bf16.gmra.mrb[8].mxu0 %vm311_vm0, %v5797_v45  ;;  %13182 = vmatprep.mubr.msk.bf16.mxu1 %vm311_vm0, %v693_v48  ;;  %v15362_v45 = vld [vmem:[%s17506_s1 + $0x320] sm:$0xff]   ;;  %v947_v48 = vpack.c.bf16 %v11614_v41, %v11613_v25  ;;  %v6305_v25 = vpack.c.bf16 %v11660_v3, %v11659_v19  ;;  %v15367_v41 = vld [vmem:[%s17506_s1 + $0xb8] sm:$0xff]  }
  0x88   : > { %13822 = vmatprep.mubr.msk.bf16.mxu0 %vm311_vm0, %v5798_v49  ;;  %v6052_v49 = vpack.c.bf16 %v11619_v60, %v11618_v44 }
  0x8e   : > { %13183 = vmatmul.mubr.msk.bf16.gmra.mrb[12].mxu1 %vm311_vm0, %v694_v33  ;;  %v11624_v33 = vld [vmem:[%s15547_s7 + $0x153] sm:$0xff] }
  0x8f   : > { %13823 = vmatmul.mubr.msk.bf16.gmra.mrb[12].mxu0 %vm311_vm0, %v5799_v36  ;;  %13186 = vmatprep.mubr.msk.bf16.mxu1 %vm311_vm0, %v695_v37  ;;  %v11625_v36 = vld [vmem:[%s15547_s7 + $0x163] sm:$0xff]  ;;  %v949_v37 = vpack.c.bf16 %v11618_v44, %v11617_v21  ;;  %v952_v8 = vpack.c.bf16 %v11624_v33, %v11623_v32  ;;  %v11666_v21 = vld [vmem:[%s15547_s7 + $0x110] sm:$0xff] }
  0x90   : > { %13826 = vmatprep.mubr.msk.bf16.mxu0 %vm311_vm0, %v5800_v46  ;;  %v6054_v46 = vpack.c.bf16 %v11623_v32, %v11622_v24  ;;  %v6055_v63 = vpack.c.bf16 %v11625_v36, %v11624_v33  ;;  %v11669_v44 = vld [vmem:[%s15547_s7 + $0x140] sm:$0xff]  ;;  %v11676_v32 = vld [vmem:[%s15547_s7 + $0x1b0] sm:$0xff] }
  0x96   : > { %13187 = vmatmul.mubr.msk.bf16.gmra.mrb[16].mxu1 %vm311_vm0, %v696_v1  ;;  %v11628_v1 = vld [vmem:[%s15547_s7 + $0x193] sm:$0xff] }
  0x97   : > { %13827 = vmatmul.mubr.msk.bf16.gmra.mrb[16].mxu0 %vm311_vm0, %v5801_v5  ;;  %13190 = vmatprep.mubr.msk.bf16.mxu1 %vm311_vm0, %v697_v6  ;;  %v11629_v5 = vld [vmem:[%s15547_s7 + $0x1a3] sm:$0xff] }
  0x98   : > { %13830 = vmatprep.mubr.msk.bf16.mxu0 %vm311_vm0, %v5802_v7  ;;  %v6056_v7 = vpack.c.bf16 %v11627_v51, %v11626_v47  ;;  %v6057_v52 = vpack.c.bf16 %v11629_v5, %v11628_v1  ;;  %v10763_v47 = vld [vmem:[%s15547_s7 + $0x21] sm:$0xff]  ;;  %v11703_v1 = vld [vmem:[%s15547_s7 + $0x71] sm:$0xff] }
  0x99   : > { %v11702_v51 = vld [vmem:[%s15547_s7 + $0x61] sm:$0xff] }
  0x9e   : > { %13191 = vmatmul.mubr.msk.bf16.gmra.mrb[20].mxu1 %vm311_vm0, %v698_v10  ;;  %v953_v10 = vpack.c.bf16 %v11625_v36, %v11625_v36 }
  0x9f   : > { %13831 = vmatmul.mubr.msk.bf16.gmra.mrb[20].mxu0 %vm311_vm0, %v5803_v11  ;;  %13202 = vmatprep.mubr.msk.bf16.mxu1 %vm311_vm0, %v942_v13  ;;  %v6058_v11 = vpack.c.bf16 %v11630_v61, %v11630_v61  ;;  %v6303_v13 = vpack.c.bf16 %v11656_v2, %v11655_v62  ;;  %v10765_v61 = vld [vmem:[%s15547_s7 + $0x41] sm:$0xff] }
  0xa0   : > { %13842 = vmatprep.mubr.msk.bf16.mxu0 %vm311_vm0, %v6047_v14  ;;  %v11657_v14 = vld [vmem:[%s15547_s7 + $0x80] sm:$0xff] }
  0xa1   : > { %v6304_v20 = vpack.c.bf16 %v11658_v15, %v11657_v14  ;;  %v11704_v62 = vld [vmem:[%s15547_s7 + $0x81] sm:$0xff] }
  0xa6   : > { %13203 = vmatmul.mubr.msk.bf16.vlgmr.msra.gmra.mrb[0].mxu1 %vm311_vm0, %v943_v26  ;;  %v11662_v26 = vld [vmem:[%s15547_s7 + $0xd0] sm:$0xff] }
  0xa7   : > { %13843 = vmatmul.mubr.msk.bf16.vlgmr.msra.gmra.mrb[0].mxu0 %vm311_vm0, %v6048_v27  ;;  %13227 = vmatpush3.bf16.msra.mxu1 %v15933_v0  ;;  %v11620_v0 = vld [vmem:[%s15547_s7 + $0x113] sm:$0xff] }
  0xa8   : > { %13867 = vmatpush3.bf16.msra.mxu0 %v15938_v12  ;;  %13206 = vmatprep.mubr.msk.bf16.mxu1 %vm311_vm0, %v944_v28  ;;  %v11621_v12 = vld [vmem:[%s15547_s7 + $0x123] sm:$0xff]  ;;  %v950_v59 = vpack.c.bf16 %v11620_v0, %v11619_v60  ;;  %v15365_v27 = vld [vmem:[%s17506_s1 + $0xb0] sm:$0xff]   ;;  %v1201_v28 = vpack.c.bf16 %v11657_v14, %v11656_v2 }
  0xa9   : > { %13846 = vmatprep.mubr.msk.bf16.mxu0 %vm311_vm0, %v6049_v40  ;;  %13228 = vmatprep.subr.bf16.mxu1 %v15355_v29  ;;  %v6053_v4 = vpack.c.bf16 %v11621_v12, %v11620_v0  ;;  %v951_v6 = vpack.c.bf16 %v11622_v24, %v11621_v12  ;;  %v6307_v40 = vpack.c.bf16 %v11664_v53, %v11663_v50  ;;  %v11670_v60 = vld [vmem:[%s15547_s7 + $0x150] sm:$0xff]  ;;  %v11671_v0 = vld [vmem:[%s15547_s7 + $0x160] sm:$0xff] }
  0xaa   : > { %13868 = vmatprep.subr.bf16.mxu0 %v15356_v39  ;;  %v11672_v12 = vld [vmem:[%s15547_s7 + $0x170] sm:$0xff]  ;;  %v11675_v24 = vld [vmem:[%s15547_s7 + $0x1a0] sm:$0xff] }
  0xab   : > { %13229 = vmatpush3.bf16.msra.mxu1 %v15355_v29  ;;  %v1209_v5 = vpack.c.bf16 %v11672_v12, %v11672_v12  ;;  %v11705_v2 = vld [vmem:[%s15547_s7 + $0x91] sm:$0xff] }
  0xac   : > { %13869 = vmatpush3.bf16.msra.mxu0 %v15356_v39  ;;  %13230 = vmatprep.subr.bf16.mxu1 %v15357_v30  ;;  %v1202_v39 = vpack.c.bf16 %v11659_v19, %v11658_v15  ;;  %v11707_v14 = vld [vmem:[%s15547_s7 + $0xb1] sm:$0xff]  ;;  %v6559_v15 = vpack.c.bf16 %v11705_v2, %v11704_v62 }
  0xad   : > { %13870 = vmatprep.subr.bf16.mxu0 %v15358_v55 }
  0xae   : > { %13207 = vmatmul.mubr.msk.bf16.gmra.mrb[4].mxu1 %vm311_vm0, %v945_v56  ;;  %v16099_v56 = vld [vmem:[%s17506_s1 + $0xc0] sm:$0xff]  }
  0xaf   : > { %13847 = vmatmul.mubr.msk.bf16.gmra.mrb[4].mxu0 %vm311_vm0, %v6050_v57  ;;  %13210 = vmatprep.mubr.msk.bf16.mxu1 %vm311_vm0, %v946_v9  ;;  %v16104_v9 = vld [vmem:[%s17506_s1 + $0x340] sm:$0xff]  }
  0xb0   : > { %13850 = vmatprep.mubr.msk.bf16.mxu0 %vm311_vm0, %v6051_v34  ;;  %13231 = vmatpush3.bf16.msra.mxu1 %v15357_v30  ;;  %v11667_v30 = vld [vmem:[%s15547_s7 + $0x120] sm:$0xff]  ;;  %v1204_v34 = vpack.c.bf16 %v11663_v50, %v11662_v26 }
  0xb1   : > { %13871 = vmatpush3.bf16.msra.mxu0 %v15358_v55  ;;  %13232 = vmatprep.subr.bf16.mxu1 %v15359_v31  ;;  %v11668_v55 = vld [vmem:[%s15547_s7 + $0x130] sm:$0xff] }
  0xb2   : > { %13872 = vmatprep.subr.bf16.mxu0 %v15360_v35  ;;  %v1207_v33 = vpack.c.bf16 %v11669_v44, %v11668_v55 }
  0xb4   : > { %13233 = vmatpush3.bf16.msra.mxu1 %v15359_v31  ;;  %v6308_v31 = vpack.c.bf16 %v11666_v21, %v11665_v54 }
  0xb5   : > { %13873 = vmatpush3.bf16.msra.mxu0 %v15360_v35  ;;  %13258 = vmatprep.subr.bf16.mxu1 %v16017_v23  ;;  %v6309_v35 = vpack.c.bf16 %v11668_v55, %v11667_v30 }
  0xb6   : > { %13211 = vmatmul.mubr.msk.bf16.gmra.mrb[8].mxu1 %vm311_vm0, %v947_v48  ;;  %13898 = vmatprep.subr.bf16.mxu0 %v15362_v45  ;;  %v1206_v48 = vpack.c.bf16 %v11667_v30, %v11666_v21  ;;  %v16188_v30 = vld [vmem:[%s17506_s1 + $0x360] sm:$0xff]  }
  0xb7   : > { %13851 = vmatmul.mubr.msk.bf16.gmra.mrb[8].mxu0 %vm311_vm0, %v6052_v49  ;;  %13214 = vmatprep.mubr.msk.bf16.mxu1 %vm311_vm0, %v948_v58  ;;  %v6311_v49 = vpack.c.bf16 %v11672_v12, %v11671_v0  ;;  %v11673_v58 = vld [vmem:[%s15547_s7 + $0x180] sm:$0xff] }
  0xb8   : > { %13854 = vmatprep.mubr.msk.bf16.mxu0 %vm311_vm0, %v6053_v4  ;;  %v11674_v4 = vld [vmem:[%s15547_s7 + $0x190] sm:$0xff] }
  0xb9   : > { %v6312_v36 = vpack.c.bf16 %v11674_v4, %v11673_v58 }
  0xbe   : > { %13215 = vmatmul.mubr.msk.bf16.gmra.mrb[12].mxu1 %vm311_vm0, %v949_v37  ;;  %v1208_v37 = vpack.c.bf16 %v11671_v0, %v11670_v60 }
  0xbf   : > { %13855 = vmatmul.mubr.msk.bf16.gmra.mrb[12].mxu0 %vm311_vm0, %v6054_v46  ;;  %13218 = vmatprep.mubr.msk.bf16.mxu1 %vm311_vm0, %v950_v59  ;;  %v6313_v46 = vpack.c.bf16 %v11676_v32, %v11675_v24  ;;  %v11677_v59 = vld [vmem:[%s15547_s7 + $0x1c0] sm:$0xff] }
  0xc0   : > { %13858 = vmatprep.mubr.msk.bf16.mxu0 %vm311_vm0, %v6055_v63  ;;  %v10762_v63 = vld [vmem:[%s15547_s7 + $0x11] sm:$0xff] }
  0xc6   : > { %13219 = vmatmul.mubr.msk.bf16.gmra.mrb[16].mxu1 %vm311_vm0, %v951_v6  ;;  %v6314_v6 = vpack.c.bf16 %v11677_v59, %v11677_v59  ;;  %v11750_v59 = vld [vmem:[%s15547_s7 + $0x72] sm:$0xff] }
  0xc7   : > { %13859 = vmatmul.mubr.msk.bf16.gmra.mrb[16].mxu0 %vm311_vm0, %v6056_v7  ;;  %13222 = vmatprep.mubr.msk.bf16.mxu1 %vm311_vm0, %v952_v8  ;;  %v1453_v7 = vpack.c.bf16 %v10763_v47, %v10762_v63  ;;  %v6558_v8 = vpack.c.bf16 %v11703_v1, %v11702_v51 }
  0xc8   : > { %13862 = vmatprep.mubr.msk.bf16.mxu0 %vm311_vm0, %v6057_v52  ;;  %v10764_v52 = vld [vmem:[%s15547_s7 + $0x31] sm:$0xff] }
  0xce   : > { %13223 = vmatmul.mubr.msk.bf16.gmra.mrb[20].mxu1 %vm311_vm0, %v953_v10  ;;  %v10766_v10 = vld [vmem:[%s15547_s7 + $0x51] sm:$0xff] }
  0xcf   : > { %13863 = vmatmul.mubr.msk.bf16.gmra.mrb[20].mxu0 %vm311_vm0, %v6058_v11  ;;  %13234 = vmatprep.mubr.msk.bf16.mxu1 %vm311_vm0, %v1198_v17  ;;  %v11661_v17 = vld [vmem:[%s15547_s7 + $0xc0] sm:$0xff]  ;;  %v1454_v11 = vpack.c.bf16 %v10765_v61, %v10764_v52  ;;  %v1455_v16 = vpack.c.bf16 %v11702_v51, %v10766_v10  ;;  %v10813_v52 = vld [vmem:[%s15547_s7 + $0x52] sm:$0xff] }
  0xd0   : > { %13874 = vmatprep.mubr.msk.bf16.mxu0 %vm311_vm0, %v6303_v13  ;;  %v6306_v29 = vpack.c.bf16 %v11662_v26, %v11661_v17  ;;  %v1203_v57 = vpack.c.bf16 %v11661_v17, %v11660_v3  ;;  %v11706_v13 = vld [vmem:[%s15547_s7 + $0xa1] sm:$0xff]  ;;  %v11711_v17 = vld [vmem:[%s15547_s7 + $0xf1] sm:$0xff] }
  0xd1   : > { %v6560_v19 = vpack.c.bf16 %v11707_v14, %v11706_v13  ;;  %v15371_v3 = vld [vmem:[%s17506_s1 + $0xc8] sm:$0xff]   ;;  %v15374_v26 = vld [vmem:[%s17506_s1 + $0x350] sm:$0xff]  }
  0xd6   : > { %13235 = vmatmul.mubr.msk.bf16.vlgmr.msra.gmra.mrb[0].mxu1 %vm311_vm0, %v1199_v18  ;;  %v15366_v18 = vld [vmem:[%s17506_s1 + $0x330] sm:$0xff]  }
  0xd7   : > { %13875 = vmatmul.mubr.msk.bf16.vlgmr.msra.gmra.mrb[0].mxu0 %vm311_vm0, %v6304_v20  ;;  %13259 = vmatpush3.bf16.msra.mxu1 %v16017_v23  ;;  %v1205_v23 = vpack.c.bf16 %v11665_v54, %v11664_v53  ;;  %v15372_v20 = vld [vmem:[%s17506_s1 + $0x348] sm:$0xff]   ;;  %v1457_v53 = vpack.c.bf16 %v11706_v13, %v11705_v2  ;;  %v16183_v54 = vld [vmem:[%s17506_s1 + $0xe0] sm:$0xff]   ;;  %v11754_v2 = vld [vmem:[%s15547_s7 + $0xb2] sm:$0xff] }
  0xd8   : > { %13899 = vmatpush3.bf16.msra.mxu0 %v15362_v45  ;;  %13238 = vmatprep.mubr.msk.bf16.mxu1 %vm311_vm0, %v1200_v22  ;;  %v6310_v45 = vpack.c.bf16 %v11670_v60, %v11669_v44  ;;  %v11708_v22 = vld [vmem:[%s15547_s7 + $0xc1] sm:$0xff] }
  0xd9   : > { %13878 = vmatprep.mubr.msk.bf16.mxu0 %vm311_vm0, %v6305_v25  ;;  %13260 = vmatprep.subr.bf16.mxu1 %v15363_v38  ;;  %v11709_v25 = vld [vmem:[%s15547_s7 + $0xd1] sm:$0xff]  ;;  %v1458_v21 = vpack.c.bf16 %v11708_v22, %v11707_v14  ;;  %v15379_v14 = vld [vmem:[%s17506_s1 + $0xe8] sm:$0xff]  }
  0xda   : > { %13900 = vmatprep.subr.bf16.mxu0 %v15364_v43  ;;  %v6561_v50 = vpack.c.bf16 %v11709_v25, %v11708_v22  ;;  %v11758_v22 = vld [vmem:[%s15547_s7 + $0xf2] sm:$0xff] }
  0xdb   : > { %13261 = vmatpush3.bf16.msra.mxu1 %v15363_v38  ;;  %v15373_v38 = vld [vmem:[%s17506_s1 + $0xd0] sm:$0xff]  }
  0xdc   : > { %13901 = vmatpush3.bf16.msra.mxu0 %v15364_v43  ;;  %13262 = vmatprep.subr.bf16.mxu1 %v15365_v27  ;;  %v11710_v43 = vld [vmem:[%s15547_s7 + $0xe1] sm:$0xff] }
  0xdd   : > { %13902 = vmatprep.subr.bf16.mxu0 %v15366_v18 }
  0xde   : > { %13239 = vmatmul.mubr.msk.bf16.gmra.mrb[4].mxu1 %vm311_vm0, %v1201_v28  ;;  %v15375_v28 = vld [vmem:[%s17506_s1 + $0xd8] sm:$0xff]  }
  0xdf   : > { %13879 = vmatmul.mubr.msk.bf16.gmra.mrb[4].mxu0 %vm311_vm0, %v6306_v29  ;;  %13242 = vmatprep.mubr.msk.bf16.mxu1 %vm311_vm0, %v1202_v39  ;;  %v15376_v29 = vld [vmem:[%s17506_s1 + $0x358] sm:$0xff]   ;;  %v11712_v39 = vld [vmem:[%s15547_s7 + $0x101] sm:$0xff] }
  0xe0   : > { %13882 = vmatprep.mubr.msk.bf16.mxu0 %vm311_vm0, %v6307_v40  ;;  %13263 = vmatpush3.bf16.msra.mxu1 %v15365_v27  ;;  %v1456_v27 = vpack.c.bf16 %v11704_v62, %v11703_v1  ;;  %v11713_v40 = vld [vmem:[%s15547_s7 + $0x111] sm:$0xff]  ;;  %v1460_v44 = vpack.c.bf16 %v11712_v39, %v11711_v17  ;;  %v11753_v62 = vld [vmem:[%s15547_s7 + $0xa2] sm:$0xff] }
  0xe1   : > { %13903 = vmatpush3.bf16.msra.mxu0 %v15366_v18  ;;  %13264 = vmatprep.subr.bf16.mxu1 %v15367_v41  ;;  %v6562_v18 = vpack.c.bf16 %v11711_v17, %v11710_v43  ;;  %v6563_v55 = vpack.c.bf16 %v11713_v40, %v11712_v39  ;;  %v6815_v13 = vpack.c.bf16 %v11754_v2, %v11753_v62  ;;  %v16267_v39 = vld [vmem:[%s17506_s1 + $0x100] sm:$0xff]  }
  0xe2   : > { %13904 = vmatprep.subr.bf16.mxu0 %v15368_v42 }
  0xe4   : > { %13265 = vmatpush3.bf16.msra.mxu1 %v15367_v41  ;;  %v11714_v41 = vld [vmem:[%s15547_s7 + $0x121] sm:$0xff] }
  0xe5   : > { %13905 = vmatpush3.bf16.msra.mxu0 %v15368_v42  ;;  %13290 = vmatprep.subr.bf16.mxu1 %v16099_v56  ;;  %v11715_v42 = vld [vmem:[%s15547_s7 + $0x131] sm:$0xff]  ;;  %v1461_v0 = vpack.c.bf16 %v11714_v41, %v11713_v40 }
  0xe6   : > { %13243 = vmatmul.mubr.msk.bf16.gmra.mrb[8].mxu1 %vm311_vm0, %v1203_v57  ;;  %13930 = vmatprep.subr.bf16.mxu0 %v16104_v9  ;;  %v6564_v57 = vpack.c.bf16 %v11715_v42, %v11714_v41  ;;  %v16272_v41 = vld [vmem:[%s17506_s1 + $0x380] sm:$0xff]  }
  0xe7   : > { %13883 = vmatmul.mubr.msk.bf16.gmra.mrb[8].mxu0 %vm311_vm0, %v6308_v31  ;;  %13246 = vmatprep.mubr.msk.bf16.mxu1 %vm311_vm0, %v1204_v34  ;;  %v11717_v31 = vld [vmem:[%s15547_s7 + $0x151] sm:$0xff]  ;;  %v11718_v34 = vld [vmem:[%s15547_s7 + $0x161] sm:$0xff] }
  0xe8   : > { %13886 = vmatprep.mubr.msk.bf16.mxu0 %vm311_vm0, %v6309_v35  ;;  %v11719_v35 = vld [vmem:[%s15547_s7 + $0x171] sm:$0xff]  ;;  %v1463_v24 = vpack.c.bf16 %v11718_v34, %v11717_v31 }
  0xe9   : > { %v6566_v12 = vpack.c.bf16 %v11719_v35, %v11718_v34  ;;  %v1464_v63 = vpack.c.bf16 %v11719_v35, %v11719_v35 }
  0xee   : > { %13247 = vmatmul.mubr.msk.bf16.gmra.mrb[12].mxu1 %vm311_vm0, %v1205_v23  ;;  %v11720_v23 = vld [vmem:[%s15547_s7 + $0x181] sm:$0xff] }
  0xef   : > { %13887 = vmatmul.mubr.msk.bf16.gmra.mrb[12].mxu0 %vm311_vm0, %v6310_v45  ;;  %13250 = vmatprep.mubr.msk.bf16.mxu1 %vm311_vm0, %v1206_v48  ;;  %v11721_v45 = vld [vmem:[%s15547_s7 + $0x191] sm:$0xff]  ;;  %v11722_v48 = vld [vmem:[%s15547_s7 + $0x1a1] sm:$0xff] }
  0xf0   : > { %13890 = vmatprep.mubr.msk.bf16.mxu0 %vm311_vm0, %v6311_v49  ;;  %v11723_v49 = vld [vmem:[%s15547_s7 + $0x1b1] sm:$0xff]  ;;  %v6567_v4 = vpack.c.bf16 %v11721_v45, %v11720_v23 }
  0xf1   : > { %v6568_v32 = vpack.c.bf16 %v11723_v49, %v11722_v48 }
  0xf6   : > { %13251 = vmatmul.mubr.msk.bf16.gmra.mrb[16].mxu1 %vm311_vm0, %v1207_v33  ;;  %v11724_v33 = vld [vmem:[%s15547_s7 + $0x1c1] sm:$0xff] }
  0xf7   : > { %13891 = vmatmul.mubr.msk.bf16.gmra.mrb[16].mxu0 %vm311_vm0, %v6312_v36  ;;  %13254 = vmatprep.mubr.msk.bf16.mxu1 %vm311_vm0, %v1208_v37  ;;  %v10809_v36 = vld [vmem:[%s15547_s7 + $0x12] sm:$0xff]  ;;  %v10810_v37 = vld [vmem:[%s15547_s7 + $0x22] sm:$0xff]  ;;  %v6569_v47 = vpack.c.bf16 %v11724_v33, %v11724_v33 }
  0xf8   : > { %13894 = vmatprep.mubr.msk.bf16.mxu0 %vm311_vm0, %v6313_v46  ;;  %v11749_v46 = vld [vmem:[%s15547_s7 + $0x62] sm:$0xff]  ;;  %v1708_v51 = vpack.c.bf16 %v10810_v37, %v10809_v36  ;;  %v11797_v33 = vld [vmem:[%s15547_s7 + $0x73] sm:$0xff] }
  0xf9   : > { %v6813_v1 = vpack.c.bf16 %v11750_v59, %v11749_v46 }
  0xfe   : > { %13255 = vmatmul.mubr.msk.bf16.gmra.mrb[20].mxu1 %vm311_vm0, %v1209_v5  ;;  %v10811_v5 = vld [vmem:[%s15547_s7 + $0x32] sm:$0xff] }
  0xff   : > { %13895 = vmatmul.mubr.msk.bf16.gmra.mrb[20].mxu0 %vm311_vm0, %v6314_v6  ;;  %13266 = vmatprep.mubr.msk.bf16.mxu1 %vm311_vm0, %v1453_v7  ;;  %v10812_v6 = vld [vmem:[%s15547_s7 + $0x42] sm:$0xff] }
 0x100   : > { %13906 = vmatprep.mubr.msk.bf16.mxu0 %vm311_vm0, %v6558_v8  ;;  %v11751_v7 = vld [vmem:[%s15547_s7 + $0x82] sm:$0xff]  ;;  %v11752_v8 = vld [vmem:[%s15547_s7 + $0x92] sm:$0xff]  ;;  %v1709_v61 = vpack.c.bf16 %v10812_v6, %v10811_v5 }
 0x101   : > { %v6814_v10 = vpack.c.bf16 %v11752_v8, %v11751_v7  ;;  %v1712_v17 = vpack.c.bf16 %v11753_v62, %v11752_v8  ;;  %v10860_v5 = vld [vmem:[%s15547_s7 + $0x53] sm:$0xff] }
 0x102   : > { %v11801_v8 = vld [vmem:[%s15547_s7 + $0xb3] sm:$0xff] }
 0x106   : > { %13267 = vmatmul.mubr.msk.bf16.vlgmr.msra.gmra.mrb[0].mxu1 %vm311_vm0, %v1454_v11  ;;  %v1710_v11 = vpack.c.bf16 %v11749_v46, %v10813_v52 }
 0x107   : > { %13907 = vmatmul.mubr.msk.bf16.vlgmr.msra.gmra.mrb[0].mxu0 %vm311_vm0, %v6559_v15  ;;  %13291 = vmatpush3.bf16.msra.mxu1 %v16099_v56  ;;  %v1459_v56 = vpack.c.bf16 %v11710_v43, %v11709_v25  ;;  %v15380_v15 = vld [vmem:[%s17506_s1 + $0x368] sm:$0xff]   ;;  %v15382_v25 = vld [vmem:[%s17506_s1 + $0x370] sm:$0xff]  }
 0x108   : > { %13931 = vmatpush3.bf16.msra.mxu0 %v16104_v9  ;;  %13270 = vmatprep.mubr.msk.bf16.mxu1 %vm311_vm0, %v1455_v16  ;;  %v11716_v9 = vld [vmem:[%s15547_s7 + $0x141] sm:$0xff] }
 0x109   : > { %13910 = vmatprep.mubr.msk.bf16.mxu0 %vm311_vm0, %v6560_v19  ;;  %13292 = vmatprep.subr.bf16.mxu1 %v15371_v3  ;;  %v6565_v60 = vpack.c.bf16 %v11717_v31, %v11716_v9  ;;  %v1462_v58 = vpack.c.bf16 %v11716_v9, %v11715_v42  ;;  %v11755_v16 = vld [vmem:[%s15547_s7 + $0xc2] sm:$0xff]  ;;  %v11756_v19 = vld [vmem:[%s15547_s7 + $0xd2] sm:$0xff] }
 0x10a   : > { %13932 = vmatprep.subr.bf16.mxu0 %v15372_v20  ;;  %v6816_v43 = vpack.c.bf16 %v11756_v19, %v11755_v16  ;;  %v1713_v40 = vpack.c.bf16 %v11755_v16, %v11754_v2  ;;  %v15387_v2 = vld [vmem:[%s17506_s1 + $0x108] sm:$0xff]   ;;  %v11805_v16 = vld [vmem:[%s15547_s7 + $0xf3] sm:$0xff] }
 0x10b   : > { %13293 = vmatpush3.bf16.msra.mxu1 %v15371_v3  ;;  %v15381_v3 = vld [vmem:[%s17506_s1 + $0xf0] sm:$0xff]  }
 0x10c   : > { %13933 = vmatpush3.bf16.msra.mxu0 %v15372_v20  ;;  %13294 = vmatprep.subr.bf16.mxu1 %v15373_v38  ;;  %v11757_v20 = vld [vmem:[%s15547_s7 + $0xe2] sm:$0xff] }
 0x10d   : > { %13934 = vmatprep.subr.bf16.mxu0 %v15374_v26 }
 0x10e   : > { %13271 = vmatmul.mubr.msk.bf16.gmra.mrb[4].mxu1 %vm311_vm0, %v1456_v27  ;;  %v15383_v27 = vld [vmem:[%s17506_s1 + $0xf8] sm:$0xff]  }
 0x10f   : > { %13911 = vmatmul.mubr.msk.bf16.gmra.mrb[4].mxu0 %vm311_vm0, %v6561_v50  ;;  %13274 = vmatprep.mubr.msk.bf16.mxu1 %vm311_vm0, %v1457_v53  ;;  %v15384_v50 = vld [vmem:[%s17506_s1 + $0x378] sm:$0xff]   ;;  %v11759_v53 = vld [vmem:[%s15547_s7 + $0x102] sm:$0xff] }
 0x110   : > { %13914 = vmatprep.mubr.msk.bf16.mxu0 %vm311_vm0, %v6562_v18  ;;  %13295 = vmatpush3.bf16.msra.mxu1 %v15373_v38  ;;  %v1711_v38 = vpack.c.bf16 %v11751_v7, %v11750_v59  ;;  %v11760_v18 = vld [vmem:[%s15547_s7 + $0x112] sm:$0xff]  ;;  %v1715_v9 = vpack.c.bf16 %v11759_v53, %v11758_v22  ;;  %v11800_v7 = vld [vmem:[%s15547_s7 + $0xa3] sm:$0xff] }
 0x111   : > { %13935 = vmatpush3.bf16.msra.mxu0 %v15374_v26  ;;  %13296 = vmatprep.subr.bf16.mxu1 %v15375_v28  ;;  %v6817_v26 = vpack.c.bf16 %v11758_v22, %v11757_v20  ;;  %v6818_v42 = vpack.c.bf16 %v11760_v18, %v11759_v53  ;;  %v7070_v62 = vpack.c.bf16 %v11801_v8, %v11800_v7  ;;  %v16351_v53 = vld [vmem:[%s17506_s1 + $0x120] sm:$0xff]  }
 0x112   : > { %13936 = vmatprep.subr.bf16.mxu0 %v15376_v29 }
 0x114   : > { %13297 = vmatpush3.bf16.msra.mxu1 %v15375_v28  ;;  %v11761_v28 = vld [vmem:[%s15547_s7 + $0x122] sm:$0xff] }
 0x115   : > { %13937 = vmatpush3.bf16.msra.mxu0 %v15376_v29  ;;  %13322 = vmatprep.subr.bf16.mxu1 %v16183_v54  ;;  %v11762_v29 = vld [vmem:[%s15547_s7 + $0x132] sm:$0xff]  ;;  %v1716_v34 = vpack.c.bf16 %v11761_v28, %v11760_v18 }
 0x116   : > { %13275 = vmatmul.mubr.msk.bf16.gmra.mrb[8].mxu1 %vm311_vm0, %v1458_v21  ;;  %13962 = vmatprep.subr.bf16.mxu0 %v16188_v30  ;;  %v6819_v21 = vpack.c.bf16 %v11762_v29, %v11761_v28  ;;  %v16356_v28 = vld [vmem:[%s17506_s1 + $0x3a0] sm:$0xff]  }
 0x117   : > { %13915 = vmatmul.mubr.msk.bf16.gmra.mrb[8].mxu0 %vm311_vm0, %v6563_v55  ;;  %13278 = vmatprep.mubr.msk.bf16.mxu1 %vm311_vm0, %v1459_v56  ;;  %v11764_v55 = vld [vmem:[%s15547_s7 + $0x152] sm:$0xff]  ;;  %v11765_v56 = vld [vmem:[%s15547_s7 + $0x162] sm:$0xff] }
 0x118   : > { %13918 = vmatprep.mubr.msk.bf16.mxu0 %vm311_vm0, %v6564_v57  ;;  %v11766_v57 = vld [vmem:[%s15547_s7 + $0x172] sm:$0xff]  ;;  %v1718_v48 = vpack.c.bf16 %v11765_v56, %v11764_v55 }
 0x119   : > { %v6821_v35 = vpack.c.bf16 %v11766_v57, %v11765_v56  ;;  %v1719_v36 = vpack.c.bf16 %v11766_v57, %v11766_v57 }
 0x11e   : > { %13279 = vmatmul.mubr.msk.bf16.gmra.mrb[12].mxu1 %vm311_vm0, %v1460_v44  ;;  %v11767_v44 = vld [vmem:[%s15547_s7 + $0x182] sm:$0xff] }
 0x11f   : > { %13919 = vmatmul.mubr.msk.bf16.gmra.mrb[12].mxu0 %vm311_vm0, %v6565_v60  ;;  %13282 = vmatprep.mubr.msk.bf16.mxu1 %vm311_vm0, %v1461_v0  ;;  %v11768_v60 = vld [vmem:[%s15547_s7 + $0x192] sm:$0xff]  ;;  %v11769_v0 = vld [vmem:[%s15547_s7 + $0x1a2] sm:$0xff] }
 0x120   : > { %13922 = vmatprep.mubr.msk.bf16.mxu0 %vm311_vm0, %v6566_v12  ;;  %v11770_v12 = vld [vmem:[%s15547_s7 + $0x1b2] sm:$0xff]  ;;  %v6822_v45 = vpack.c.bf16 %v11768_v60, %v11767_v44 }
 0x121   : > { %v6823_v49 = vpack.c.bf16 %v11770_v12, %v11769_v0 }
 0x126   : > { %13283 = vmatmul.mubr.msk.bf16.gmra.mrb[16].mxu1 %vm311_vm0, %v1462_v58  ;;  %v11771_v58 = vld [vmem:[%s15547_s7 + $0x1c2] sm:$0xff] }
 0x127   : > { %13923 = vmatmul.mubr.msk.bf16.gmra.mrb[16].mxu0 %vm311_vm0, %v6567_v4  ;;  %13286 = vmatprep.mubr.msk.bf16.mxu1 %vm311_vm0, %v1463_v24  ;;  %v10856_v4 = vld [vmem:[%s15547_s7 + $0x13] sm:$0xff]  ;;  %v10857_v24 = vld [vmem:[%s15547_s7 + $0x23] sm:$0xff]  ;;  %v6824_v37 = vpack.c.bf16 %v11771_v58, %v11771_v58 }
 0x128   : > { %13926 = vmatprep.mubr.msk.bf16.mxu0 %vm311_vm0, %v6568_v32  ;;  %v11796_v32 = vld [vmem:[%s15547_s7 + $0x63] sm:$0xff]  ;;  %v1963_v46 = vpack.c.bf16 %v10857_v24, %v10856_v4 }
 0x129   : > { %v7068_v59 = vpack.c.bf16 %v11797_v33, %v11796_v32  ;;  %v11844_v58 = vld [vmem:[%s15547_s7 + $0x80] sm:$0xff] }
 0x12e   : > { %13287 = vmatmul.mubr.msk.bf16.gmra.mrb[20].mxu1 %vm311_vm0, %v1464_v63  ;;  %v10858_v63 = vld [vmem:[%s15547_s7 + $0x33] sm:$0xff] }
 0x12f   : > { %13927 = vmatmul.mubr.msk.bf16.gmra.mrb[20].mxu0 %vm311_vm0, %v6569_v47  ;;  %13298 = vmatprep.mubr.msk.bf16.mxu1 %vm311_vm0, %v1708_v51  ;;  %v10859_v47 = vld [vmem:[%s15547_s7 + $0x43] sm:$0xff] }
 0x130   : > { %13938 = vmatprep.mubr.msk.bf16.mxu0 %vm311_vm0, %v6813_v1  ;;  %v11798_v51 = vld [vmem:[%s15547_s7 + $0x83] sm:$0xff]  ;;  %v11799_v1 = vld [vmem:[%s15547_s7 + $0x93] sm:$0xff]  ;;  %v1964_v6 = vpack.c.bf16 %v10859_v47, %v10858_v63 }
 0x131   : > { %v7069_v52 = vpack.c.bf16 %v11799_v1, %v11798_v51  ;;  %v1967_v22 = vpack.c.bf16 %v11800_v7, %v11799_v1  ;;  %v10907_v63 = vld [vmem:[%s15547_s7 + $0x60] sm:$0xff] }
 0x132   : > { %v11848_v1 = vld [vmem:[%s15547_s7 + $0xc0] sm:$0xff] }
 0x136   : > { %13299 = vmatmul.mubr.msk.bf16.vlgmr.msra.gmra.mrb[0].mxu1 %vm311_vm0, %v1709_v61  ;;  %v1965_v61 = vpack.c.bf16 %v11796_v32, %v10860_v5 }
 0x137   : > { %13939 = vmatmul.mubr.msk.bf16.vlgmr.msra.gmra.mrb[0].mxu0 %vm311_vm0, %v6814_v10  ;;  %13323 = vmatpush3.bf16.msra.mxu1 %v16183_v54  ;;  %v1714_v54 = vpack.c.bf16 %v11757_v20, %v11756_v19  ;;  %v15388_v10 = vld [vmem:[%s17506_s1 + $0x388] sm:$0xff]   ;;  %v15390_v19 = vld [vmem:[%s17506_s1 + $0x390] sm:$0xff]  }
 0x138   : > { %13963 = vmatpush3.bf16.msra.mxu0 %v16188_v30  ;;  %13302 = vmatprep.mubr.msk.bf16.mxu1 %vm311_vm0, %v1710_v11  ;;  %v11763_v30 = vld [vmem:[%s15547_s7 + $0x142] sm:$0xff] }
 0x139   : > { %13942 = vmatprep.mubr.msk.bf16.mxu0 %vm311_vm0, %v6815_v13  ;;  %13324 = vmatprep.subr.bf16.mxu1 %v15379_v14  ;;  %v6820_v31 = vpack.c.bf16 %v11764_v55, %v11763_v30  ;;  %v1717_v23 = vpack.c.bf16 %v11763_v30, %v11762_v29  ;;  %v11802_v11 = vld [vmem:[%s15547_s7 + $0xc3] sm:$0xff]  ;;  %v11803_v13 = vld [vmem:[%s15547_s7 + $0xd3] sm:$0xff] }
 0x13a   : > { %13964 = vmatprep.subr.bf16.mxu0 %v15380_v15  ;;  %v7071_v20 = vpack.c.bf16 %v11803_v13, %v11802_v11  ;;  %v1968_v18 = vpack.c.bf16 %v11802_v11, %v11801_v8  ;;  %v15395_v8 = vld [vmem:[%s17506_s1 + $0x128] sm:$0xff]   ;;  %v11852_v11 = vld [vmem:[%s15547_s7 + $0x100] sm:$0xff] }
 0x13b   : > { %13325 = vmatpush3.bf16.msra.mxu1 %v15379_v14  ;;  %v15389_v14 = vld [vmem:[%s17506_s1 + $0x110] sm:$0xff]  }
 0x13c   : > { %13965 = vmatpush3.bf16.msra.mxu0 %v15380_v15  ;;  %13326 = vmatprep.subr.bf16.mxu1 %v15381_v3  ;;  %v11804_v15 = vld [vmem:[%s15547_s7 + $0xe3] sm:$0xff] }
 0x13d   : > { %13966 = vmatprep.subr.bf16.mxu0 %v15382_v25 }
 0x13e   : > { %13303 = vmatmul.mubr.msk.bf16.gmra.mrb[4].mxu1 %vm311_vm0, %v1711_v38  ;;  %v15391_v38 = vld [vmem:[%s17506_s1 + $0x118] sm:$0xff]  }
 0x13f   : > { %13943 = vmatmul.mubr.msk.bf16.gmra.mrb[4].mxu0 %vm311_vm0, %v6816_v43  ;;  %13306 = vmatprep.mubr.msk.bf16.mxu1 %vm311_vm0, %v1712_v17  ;;  %v15392_v43 = vld [vmem:[%s17506_s1 + $0x398] sm:$0xff]   ;;  %v11806_v17 = vld [vmem:[%s15547_s7 + $0x103] sm:$0xff] }
 0x140   : > { %13946 = vmatprep.mubr.msk.bf16.mxu0 %vm311_vm0, %v6817_v26  ;;  %13327 = vmatpush3.bf16.msra.mxu1 %v15381_v3  ;;  %v1966_v3 = vpack.c.bf16 %v11798_v51, %v11797_v33  ;;  %v11807_v26 = vld [vmem:[%s15547_s7 + $0x113] sm:$0xff]  ;;  %v1970_v30 = vpack.c.bf16 %v11806_v17, %v11805_v16 }
 0x141   : > { %13967 = vmatpush3.bf16.msra.mxu0 %v15382_v25  ;;  %13328 = vmatprep.subr.bf16.mxu1 %v15383_v27  ;;  %v7072_v25 = vpack.c.bf16 %v11805_v16, %v11804_v15  ;;  %v7073_v29 = vpack.c.bf16 %v11807_v26, %v11806_v17  ;;  %v11847_v51 = vld [vmem:[%s15547_s7 + $0xb0] sm:$0xff]  ;;  %v16435_v17 = vld [vmem:[%s17506_s1 + $0x140] sm:$0xff]  }
 0x142   : > { %13968 = vmatprep.subr.bf16.mxu0 %v15384_v50  ;;  %v7326_v7 = vpack.c.bf16 %v11848_v1, %v11847_v51 }
 0x144   : > { %13329 = vmatpush3.bf16.msra.mxu1 %v15383_v27  ;;  %v11808_v27 = vld [vmem:[%s15547_s7 + $0x123] sm:$0xff] }
 0x145   : > { %13969 = vmatpush3.bf16.msra.mxu0 %v15384_v50  ;;  %13354 = vmatprep.subr.bf16.mxu1 %v16267_v39  ;;  %v11809_v50 = vld [vmem:[%s15547_s7 + $0x133] sm:$0xff]  ;;  %v1971_v56 = vpack.c.bf16 %v11808_v27, %v11807_v26 }
 0x146   : > { %13307 = vmatmul.mubr.msk.bf16.gmra.mrb[8].mxu1 %vm311_vm0, %v1713_v40  ;;  %13994 = vmatprep.subr.bf16.mxu0 %v16272_v41  ;;  %v7074_v40 = vpack.c.bf16 %v11809_v50, %v11808_v27  ;;  %v16440_v27 = vld [vmem:[%s17506_s1 + $0x3c0] sm:$0xff]  }
 0x147   : > { %13947 = vmatmul.mubr.msk.bf16.gmra.mrb[8].mxu0 %vm311_vm0, %v6818_v42  ;;  %13310 = vmatprep.mubr.msk.bf16.mxu1 %vm311_vm0, %v1714_v54  ;;  %v11811_v42 = vld [vmem:[%s15547_s7 + $0x153] sm:$0xff]  ;;  %v11812_v54 = vld [vmem:[%s15547_s7 + $0x163] sm:$0xff] }
 0x148   : > { %13950 = vmatprep.mubr.msk.bf16.mxu0 %vm311_vm0, %v6819_v21  ;;  %v11813_v21 = vld [vmem:[%s15547_s7 + $0x173] sm:$0xff]  ;;  %v1973_v0 = vpack.c.bf16 %v11812_v54, %v11811_v42 }
 0x149   : > { %v7076_v57 = vpack.c.bf16 %v11813_v21, %v11812_v54  ;;  %v1974_v4 = vpack.c.bf16 %v11813_v21, %v11813_v21 }
 0x14e   : > { %13311 = vmatmul.mubr.msk.bf16.gmra.mrb[12].mxu1 %vm311_vm0, %v1715_v9  ;;  %v11814_v9 = vld [vmem:[%s15547_s7 + $0x183] sm:$0xff] }
 0x14f   : > { %13951 = vmatmul.mubr.msk.bf16.gmra.mrb[12].mxu0 %vm311_vm0, %v6820_v31  ;;  %13314 = vmatprep.mubr.msk.bf16.mxu1 %vm311_vm0, %v1716_v34  ;;  %v11815_v31 = vld [vmem:[%s15547_s7 + $0x193] sm:$0xff]  ;;  %v11816_v34 = vld [vmem:[%s15547_s7 + $0x1a3] sm:$0xff] }
 0x150   : > { %13954 = vmatprep.mubr.msk.bf16.mxu0 %vm311_vm0, %v6821_v35  ;;  %v11817_v35 = vld [vmem:[%s15547_s7 + $0x1b3] sm:$0xff]  ;;  %v7077_v60 = vpack.c.bf16 %v11815_v31, %v11814_v9 }
 0x151   : > { %v7078_v12 = vpack.c.bf16 %v11817_v35, %v11816_v34 }
 0x156   : > { %13315 = vmatmul.mubr.msk.bf16.gmra.mrb[16].mxu1 %vm311_vm0, %v1717_v23  ;;  %v11818_v23 = vld [vmem:[%s15547_s7 + $0x1c3] sm:$0xff] }
 0x157   : > { %13955 = vmatmul.mubr.msk.bf16.gmra.mrb[16].mxu0 %vm311_vm0, %v6822_v45  ;;  %13318 = vmatprep.mubr.msk.bf16.mxu1 %vm311_vm0, %v1718_v48  ;;  %v10903_v45 = vld [vmem:[%s15547_s7 + $0x20] sm:$0xff]  ;;  %v10904_v48 = vld [vmem:[%s15547_s7 + $0x30] sm:$0xff]  ;;  %v7079_v24 = vpack.c.bf16 %v11818_v23, %v11818_v23 }
 0x158   : > { %13958 = vmatprep.mubr.msk.bf16.mxu0 %vm311_vm0, %v6823_v49  ;;  %v11843_v49 = vld [vmem:[%s15547_s7 + $0x70] sm:$0xff]  ;;  %v2219_v32 = vpack.c.bf16 %v10904_v48, %v10903_v45  ;;  %v11891_v23 = vld [vmem:[%s15547_s7 + $0x81] sm:$0xff] }
 0x159   : > { %v7324_v33 = vpack.c.bf16 %v11844_v58, %v11843_v49 }
 0x15e   : > { %13319 = vmatmul.mubr.msk.bf16.gmra.mrb[20].mxu1 %vm311_vm0, %v1719_v36  ;;  %v10905_v36 = vld [vmem:[%s15547_s7 + $0x40] sm:$0xff] }
 0x15f   : > { %13959 = vmatmul.mubr.msk.bf16.gmra.mrb[20].mxu0 %vm311_vm0, %v6824_v37  ;;  %13330 = vmatprep.mubr.msk.bf16.mxu1 %vm311_vm0, %v1963_v46  ;;  %v10906_v37 = vld [vmem:[%s15547_s7 + $0x50] sm:$0xff] }
 0x160   : > { %13970 = vmatprep.mubr.msk.bf16.mxu0 %vm311_vm0, %v7068_v59  ;;  %v11845_v46 = vld [vmem:[%s15547_s7 + $0x90] sm:$0xff]  ;;  %v11846_v59 = vld [vmem:[%s15547_s7 + $0xa0] sm:$0xff]  ;;  %v2220_v47 = vpack.c.bf16 %v10906_v37, %v10905_v36 }
 0x161   : > { %v7325_v5 = vpack.c.bf16 %v11846_v59, %v11845_v46  ;;  %v2223_v16 = vpack.c.bf16 %v11847_v51, %v11846_v59  ;;  %v10954_v36 = vld [vmem:[%s15547_s7 + $0x61] sm:$0xff] }
 0x162   : > { %v11895_v59 = vld [vmem:[%s15547_s7 + $0xc1] sm:$0xff] }
 0x166   : > { %13331 = vmatmul.mubr.msk.bf16.vlgmr.msra.gmra.mrb[0].mxu1 %vm311_vm0, %v1964_v6  ;;  %v2221_v6 = vpack.c.bf16 %v11843_v49, %v10907_v63 }
 0x167   : > { %13971 = vmatmul.mubr.msk.bf16.vlgmr.msra.gmra.mrb[0].mxu0 %vm311_vm0, %v7069_v52  ;;  %13355 = vmatpush3.bf16.msra.mxu1 %v16267_v39  ;;  %v1969_v39 = vpack.c.bf16 %v11804_v15, %v11803_v13  ;;  %v15396_v52 = vld [vmem:[%s17506_s1 + $0x3a8] sm:$0xff]   ;;  %v15398_v13 = vld [vmem:[%s17506_s1 + $0x3b0] sm:$0xff]  }
 0x168   : > { %13995 = vmatpush3.bf16.msra.mxu0 %v16272_v41  ;;  %13334 = vmatprep.mubr.msk.bf16.mxu1 %vm311_vm0, %v1965_v61  ;;  %v11810_v41 = vld [vmem:[%s15547_s7 + $0x143] sm:$0xff]  ;;  %v11849_v61 = vld [vmem:[%s15547_s7 + $0xd0] sm:$0xff] }
 0x169   : > { %13974 = vmatprep.mubr.msk.bf16.mxu0 %vm311_vm0, %v7070_v62  ;;  %13356 = vmatprep.subr.bf16.mxu1 %v15387_v2  ;;  %v7075_v55 = vpack.c.bf16 %v11811_v42, %v11810_v41  ;;  %v1972_v44 = vpack.c.bf16 %v11810_v41, %v11809_v50  ;;  %v11850_v62 = vld [vmem:[%s15547_s7 + $0xe0] sm:$0xff]  ;;  %v2224_v26 = vpack.c.bf16 %v11849_v61, %v11848_v1  ;;  %v15403_v1 = vld [vmem:[%s17506_s1 + $0x148] sm:$0xff]  }
 0x16a   : > { %13996 = vmatprep.subr.bf16.mxu0 %v15388_v10  ;;  %v7327_v15 = vpack.c.bf16 %v11850_v62, %v11849_v61  ;;  %v11899_v61 = vld [vmem:[%s15547_s7 + $0x101] sm:$0xff] }
 0x16b   : > { %13357 = vmatpush3.bf16.msra.mxu1 %v15387_v2  ;;  %v15397_v2 = vld [vmem:[%s17506_s1 + $0x130] sm:$0xff]  }
 0x16c   : > { %13997 = vmatpush3.bf16.msra.mxu0 %v15388_v10  ;;  %13358 = vmatprep.subr.bf16.mxu1 %v15389_v14  ;;  %v11851_v10 = vld [vmem:[%s15547_s7 + $0xf0] sm:$0xff] }
 0x16d   : > { %13998 = vmatprep.subr.bf16.mxu0 %v15390_v19 }
 0x16e   : > { %13335 = vmatmul.mubr.msk.bf16.gmra.mrb[4].mxu1 %vm311_vm0, %v1966_v3  ;;  %v15399_v3 = vld [vmem:[%s17506_s1 + $0x138] sm:$0xff]  }
 0x16f   : > { %13975 = vmatmul.mubr.msk.bf16.gmra.mrb[4].mxu0 %vm311_vm0, %v7071_v20  ;;  %13338 = vmatprep.mubr.msk.bf16.mxu1 %vm311_vm0, %v1967_v22  ;;  %v15400_v20 = vld [vmem:[%s17506_s1 + $0x3b8] sm:$0xff]   ;;  %v11853_v22 = vld [vmem:[%s15547_s7 + $0x110] sm:$0xff] }
 0x170   : > { %13978 = vmatprep.mubr.msk.bf16.mxu0 %vm311_vm0, %v7072_v25  ;;  %13359 = vmatpush3.bf16.msra.mxu1 %v15389_v14  ;;  %v2222_v14 = vpack.c.bf16 %v11845_v46, %v11844_v58  ;;  %v11854_v25 = vld [vmem:[%s15547_s7 + $0x120] sm:$0xff]  ;;  %v2226_v41 = vpack.c.bf16 %v11853_v22, %v11852_v11  ;;  %v11894_v46 = vld [vmem:[%s15547_s7 + $0xb1] sm:$0xff] }
 0x171   : > { %13999 = vmatpush3.bf16.msra.mxu0 %v15390_v19  ;;  %13360 = vmatprep.subr.bf16.mxu1 %v15391_v38  ;;  %v7328_v19 = vpack.c.bf16 %v11852_v11, %v11851_v10  ;;  %v7329_v50 = vpack.c.bf16 %v11854_v25, %v11853_v22  ;;  %v7581_v51 = vpack.c.bf16 %v11895_v59, %v11894_v46  ;;  %v16519_v22 = vld [vmem:[%s17506_s1 + $0x160] sm:$0xff]  }
 0x172   : > { %14000 = vmatprep.subr.bf16.mxu0 %v15392_v43 }
 0x174   : > { %13361 = vmatpush3.bf16.msra.mxu1 %v15391_v38  ;;  %v11855_v38 = vld [vmem:[%s15547_s7 + $0x130] sm:$0xff] }
 0x175   : > { %14001 = vmatpush3.bf16.msra.mxu0 %v15392_v43  ;;  %13386 = vmatprep.subr.bf16.mxu1 %v16351_v53  ;;  %v11856_v43 = vld [vmem:[%s15547_s7 + $0x140] sm:$0xff]  ;;  %v2227_v54 = vpack.c.bf16 %v11855_v38, %v11854_v25 }
 0x176   : > { %13339 = vmatmul.mubr.msk.bf16.gmra.mrb[8].mxu1 %vm311_vm0, %v1968_v18  ;;  %14026 = vmatprep.subr.bf16.mxu0 %v16356_v28  ;;  %v7330_v18 = vpack.c.bf16 %v11856_v43, %v11855_v38  ;;  %v16524_v38 = vld [vmem:[%s17506_s1 + $0x3e0] sm:$0xff]  }
 0x177   : > { %13979 = vmatmul.mubr.msk.bf16.gmra.mrb[8].mxu0 %vm311_vm0, %v7073_v29  ;;  %13342 = vmatprep.mubr.msk.bf16.mxu1 %vm311_vm0, %v1969_v39  ;;  %v11858_v29 = vld [vmem:[%s15547_s7 + $0x160] sm:$0xff]  ;;  %v11859_v39 = vld [vmem:[%s15547_s7 + $0x170] sm:$0xff] }
 0x178   : > { %13982 = vmatprep.mubr.msk.bf16.mxu0 %vm311_vm0, %v7074_v40  ;;  %v11860_v40 = vld [vmem:[%s15547_s7 + $0x180] sm:$0xff]  ;;  %v2229_v34 = vpack.c.bf16 %v11859_v39, %v11858_v29 }
 0x179   : > { %v7332_v21 = vpack.c.bf16 %v11860_v40, %v11859_v39  ;;  %v2230_v45 = vpack.c.bf16 %v11860_v40, %v11860_v40 }
 0x17e   : > { %13343 = vmatmul.mubr.msk.bf16.gmra.mrb[12].mxu1 %vm311_vm0, %v1970_v30  ;;  %v11861_v30 = vld [vmem:[%s15547_s7 + $0x190] sm:$0xff] }
 0x17f   : > { %13983 = vmatmul.mubr.msk.bf16.gmra.mrb[12].mxu0 %vm311_vm0, %v7075_v55  ;;  %13346 = vmatprep.mubr.msk.bf16.mxu1 %vm311_vm0, %v1971_v56  ;;  %v11862_v55 = vld [vmem:[%s15547_s7 + $0x1a0] sm:$0xff]  ;;  %v11863_v56 = vld [vmem:[%s15547_s7 + $0x1b0] sm:$0xff] }
 0x180   : > { %13986 = vmatprep.mubr.msk.bf16.mxu0 %vm311_vm0, %v7076_v57  ;;  %v11864_v57 = vld [vmem:[%s15547_s7 + $0x1c0] sm:$0xff]  ;;  %v7333_v31 = vpack.c.bf16 %v11862_v55, %v11861_v30 }
 0x181   : > { %v7334_v35 = vpack.c.bf16 %v11864_v57, %v11863_v56 }
 0x186   : > { %13347 = vmatmul.mubr.msk.bf16.gmra.mrb[16].mxu1 %vm311_vm0, %v1972_v44  ;;  %v11865_v44 = vld [vmem:[%s15547_s7 + $0x1d0] sm:$0xff] }
 0x187   : > { %13987 = vmatmul.mubr.msk.bf16.gmra.mrb[16].mxu0 %vm311_vm0, %v7077_v60  ;;  %13350 = vmatprep.mubr.msk.bf16.mxu1 %vm311_vm0, %v1973_v0  ;;  %v10950_v60 = vld [vmem:[%s15547_s7 + $0x21] sm:$0xff]  ;;  %v10951_v0 = vld [vmem:[%s15547_s7 + $0x31] sm:$0xff]  ;;  %v7335_v48 = vpack.c.bf16 %v11865_v44, %v11865_v44 }
 0x188   : > { %13990 = vmatprep.mubr.msk.bf16.mxu0 %vm311_vm0, %v7078_v12  ;;  %v11890_v12 = vld [vmem:[%s15547_s7 + $0x71] sm:$0xff]  ;;  %v2474_v49 = vpack.c.bf16 %v10951_v0, %v10950_v60  ;;  %v11938_v44 = vld [vmem:[%s15547_s7 + $0x82] sm:$0xff] }
 0x189   : > { %v7579_v58 = vpack.c.bf16 %v11891_v23, %v11890_v12 }
 0x18e   : > { %13351 = vmatmul.mubr.msk.bf16.gmra.mrb[20].mxu1 %vm311_vm0, %v1974_v4  ;;  %v10952_v4 = vld [vmem:[%s15547_s7 + $0x41] sm:$0xff] }
 0x18f   : > { %13991 = vmatmul.mubr.msk.bf16.gmra.mrb[20].mxu0 %vm311_vm0, %v7079_v24  ;;  %13362 = vmatprep.mubr.msk.bf16.mxu1 %vm311_vm0, %v2219_v32  ;;  %v10953_v24 = vld [vmem:[%s15547_s7 + $0x51] sm:$0xff] }
 0x190   : > { %14002 = vmatprep.mubr.msk.bf16.mxu0 %vm311_vm0, %v7324_v33  ;;  %v11892_v32 = vld [vmem:[%s15547_s7 + $0x91] sm:$0xff]  ;;  %v11893_v33 = vld [vmem:[%s15547_s7 + $0xa1] sm:$0xff]  ;;  %v2475_v37 = vpack.c.bf16 %v10953_v24, %v10952_v4 }
 0x191   : > { %v7580_v63 = vpack.c.bf16 %v11893_v33, %v11892_v32  ;;  %v2478_v11 = vpack.c.bf16 %v11894_v46, %v11893_v33  ;;  %v11001_v4 = vld [vmem:[%s15547_s7 + $0x62] sm:$0xff] }
 0x192   : > { %v11942_v33 = vld [vmem:[%s15547_s7 + $0xc2] sm:$0xff] }
 0x196   : > { %13363 = vmatmul.mubr.msk.bf16.vlgmr.msra.gmra.mrb[0].mxu1 %vm311_vm0, %v2220_v47  ;;  %v2476_v47 = vpack.c.bf16 %v11890_v12, %v10954_v36 }
 0x197   : > { %14003 = vmatmul.mubr.msk.bf16.vlgmr.msra.gmra.mrb[0].mxu0 %vm311_vm0, %v7325_v5  ;;  %13387 = vmatpush3.bf16.msra.mxu1 %v16351_v53  ;;  %v2225_v53 = vpack.c.bf16 %v11851_v10, %v11850_v62  ;;  %v15404_v5 = vld [vmem:[%s17506_s1 + $0x3c8] sm:$0xff]   ;;  %v15406_v62 = vld [vmem:[%s17506_s1 + $0x3d0] sm:$0xff]  }
 0x198   : > { %14027 = vmatpush3.bf16.msra.mxu0 %v16356_v28  ;;  %13366 = vmatprep.mubr.msk.bf16.mxu1 %vm311_vm0, %v2221_v6  ;;  %v11857_v28 = vld [vmem:[%s15547_s7 + $0x150] sm:$0xff] }
 0x199   : > { %14006 = vmatprep.mubr.msk.bf16.mxu0 %vm311_vm0, %v7326_v7  ;;  %13388 = vmatprep.subr.bf16.mxu1 %v15395_v8  ;;  %v7331_v42 = vpack.c.bf16 %v11858_v29, %v11857_v28  ;;  %v2228_v9 = vpack.c.bf16 %v11857_v28, %v11856_v43  ;;  %v11896_v6 = vld [vmem:[%s15547_s7 + $0xd1] sm:$0xff]  ;;  %v11897_v7 = vld [vmem:[%s15547_s7 + $0xe1] sm:$0xff] }
 0x19a   : > { %14028 = vmatprep.subr.bf16.mxu0 %v15396_v52  ;;  %v7582_v10 = vpack.c.bf16 %v11897_v7, %v11896_v6  ;;  %v2479_v25 = vpack.c.bf16 %v11896_v6, %v11895_v59  ;;  %v15411_v59 = vld [vmem:[%s17506_s1 + $0x168] sm:$0xff]  }
 0x19b   : > { %13389 = vmatpush3.bf16.msra.mxu1 %v15395_v8  ;;  %v15405_v8 = vld [vmem:[%s17506_s1 + $0x150] sm:$0xff]   ;;  %v11946_v6 = vld [vmem:[%s15547_s7 + $0x102] sm:$0xff] }
 0x19c   : > { %14029 = vmatpush3.bf16.msra.mxu0 %v15396_v52  ;;  %13390 = vmatprep.subr.bf16.mxu1 %v15397_v2  ;;  %v11898_v52 = vld [vmem:[%s15547_s7 + $0xf1] sm:$0xff] }
 0x19d   : > { %14030 = vmatprep.subr.bf16.mxu0 %v15398_v13 }
 0x19e   : > { %13367 = vmatmul.mubr.msk.bf16.gmra.mrb[4].mxu1 %vm311_vm0, %v2222_v14  ;;  %v15407_v14 = vld [vmem:[%s17506_s1 + $0x158] sm:$0xff]  }
 0x19f   : > { %14007 = vmatmul.mubr.msk.bf16.gmra.mrb[4].mxu0 %vm311_vm0, %v7327_v15  ;;  %13370 = vmatprep.mubr.msk.bf16.mxu1 %vm311_vm0, %v2223_v16  ;;  %v15408_v15 = vld [vmem:[%s17506_s1 + $0x3d8] sm:$0xff]  }
 0x1a0   : > { %14010 = vmatprep.mubr.msk.bf16.mxu0 %vm311_vm0, %v7328_v19  ;;  %13391 = vmatpush3.bf16.msra.mxu1 %v15397_v2  ;;  %v2477_v2 = vpack.c.bf16 %v11892_v32, %v11891_v23  ;;  %v11900_v16 = vld [vmem:[%s15547_s7 + $0x111] sm:$0xff]  ;;  %v11901_v19 = vld [vmem:[%s15547_s7 + $0x121] sm:$0xff] }
 0x1a1   : > { %14031 = vmatpush3.bf16.msra.mxu0 %v15398_v13  ;;  %13392 = vmatprep.subr.bf16.mxu1 %v15399_v3  ;;  %v7583_v13 = vpack.c.bf16 %v11899_v61, %v11898_v52  ;;  %v7584_v43 = vpack.c.bf16 %v11901_v19, %v11900_v16  ;;  %v2481_v28 = vpack.c.bf16 %v11900_v16, %v11899_v61  ;;  %v11941_v32 = vld [vmem:[%s15547_s7 + $0xb2] sm:$0xff]  ;;  %v16603_v16 = vld [vmem:[%s17506_s1 + $0x180] sm:$0xff]  }
 0x1a2   : > { %14032 = vmatprep.subr.bf16.mxu0 %v15400_v20  ;;  %v7836_v46 = vpack.c.bf16 %v11942_v33, %v11941_v32 }
 0x1a4   : > { %13393 = vmatpush3.bf16.msra.mxu1 %v15399_v3  ;;  %v11902_v3 = vld [vmem:[%s15547_s7 + $0x131] sm:$0xff] }
 0x1a5   : > { %14033 = vmatpush3.bf16.msra.mxu0 %v15400_v20  ;;  %13418 = vmatprep.subr.bf16.mxu1 %v16435_v17  ;;  %v11903_v20 = vld [vmem:[%s15547_s7 + $0x141] sm:$0xff]  ;;  %v2482_v39 = vpack.c.bf16 %v11902_v3, %v11901_v19 }
 0x1a6   : > { %13371 = vmatmul.mubr.msk.bf16.gmra.mrb[8].mxu1 %vm311_vm0, %v2224_v26  ;;  %14058 = vmatprep.subr.bf16.mxu0 %v16440_v27  ;;  %v7585_v26 = vpack.c.bf16 %v11903_v20, %v11902_v3  ;;  %v16608_v3 = vld [vmem:[%s17506_s1 + $0x400] sm:$0xff]  }
 0x1a7   : > { %14011 = vmatmul.mubr.msk.bf16.gmra.mrb[8].mxu0 %vm311_vm0, %v7329_v50  ;;  %13374 = vmatprep.mubr.msk.bf16.mxu1 %vm311_vm0, %v2225_v53  ;;  %v11905_v50 = vld [vmem:[%s15547_s7 + $0x161] sm:$0xff]  ;;  %v11906_v53 = vld [vmem:[%s15547_s7 + $0x171] sm:$0xff] }
 0x1a8   : > { %14014 = vmatprep.mubr.msk.bf16.mxu0 %vm311_vm0, %v7330_v18  ;;  %v11907_v18 = vld [vmem:[%s15547_s7 + $0x181] sm:$0xff]  ;;  %v2484_v56 = vpack.c.bf16 %v11906_v53, %v11905_v50 }
 0x1a9   : > { %v7587_v40 = vpack.c.bf16 %v11907_v18, %v11906_v53  ;;  %v2485_v60 = vpack.c.bf16 %v11907_v18, %v11907_v18 }
 0x1ae   : > { %13375 = vmatmul.mubr.msk.bf16.gmra.mrb[12].mxu1 %vm311_vm0, %v2226_v41  ;;  %v11908_v41 = vld [vmem:[%s15547_s7 + $0x191] sm:$0xff] }
 0x1af   : > { %14015 = vmatmul.mubr.msk.bf16.gmra.mrb[12].mxu0 %vm311_vm0, %v7331_v42  ;;  %13378 = vmatprep.mubr.msk.bf16.mxu1 %vm311_vm0, %v2227_v54  ;;  %v11909_v42 = vld [vmem:[%s15547_s7 + $0x1a1] sm:$0xff]  ;;  %v11910_v54 = vld [vmem:[%s15547_s7 + $0x1b1] sm:$0xff] }
 0x1b0   : > { %14018 = vmatprep.mubr.msk.bf16.mxu0 %vm311_vm0, %v7332_v21  ;;  %v11911_v21 = vld [vmem:[%s15547_s7 + $0x1c1] sm:$0xff]  ;;  %v7588_v55 = vpack.c.bf16 %v11909_v42, %v11908_v41 }
 0x1b1   : > { %v7589_v57 = vpack.c.bf16 %v11911_v21, %v11910_v54 }
 0x1b6   : > { %13379 = vmatmul.mubr.msk.bf16.gmra.mrb[16].mxu1 %vm311_vm0, %v2228_v9  ;;  %v11912_v9 = vld [vmem:[%s15547_s7 + $0x1d1] sm:$0xff] }
 0x1b7   : > { %14019 = vmatmul.mubr.msk.bf16.gmra.mrb[16].mxu0 %vm311_vm0, %v7333_v31  ;;  %13382 = vmatprep.mubr.msk.bf16.mxu1 %vm311_vm0, %v2229_v34  ;;  %v10997_v31 = vld [vmem:[%s15547_s7 + $0x22] sm:$0xff]  ;;  %v10998_v34 = vld [vmem:[%s15547_s7 + $0x32] sm:$0xff]  ;;  %v7590_v0 = vpack.c.bf16 %v11912_v9, %v11912_v9 }
 0x1b8   : > { %14022 = vmatprep.mubr.msk.bf16.mxu0 %vm311_vm0, %v7334_v35  ;;  %v11937_v35 = vld [vmem:[%s15547_s7 + $0x72] sm:$0xff]  ;;  %v2729_v12 = vpack.c.bf16 %v10998_v34, %v10997_v31  ;;  %v11985_v9 = vld [vmem:[%s15547_s7 + $0x83] sm:$0xff] }
 0x1b9   : > { %v7834_v23 = vpack.c.bf16 %v11938_v44, %v11937_v35 }
 0x1be   : > { %13383 = vmatmul.mubr.msk.bf16.gmra.mrb[20].mxu1 %vm311_vm0, %v2230_v45  ;;  %v10999_v45 = vld [vmem:[%s15547_s7 + $0x42] sm:$0xff] }
 0x1bf   : > { %14023 = vmatmul.mubr.msk.bf16.gmra.mrb[20].mxu0 %vm311_vm0, %v7335_v48  ;;  %13394 = vmatprep.mubr.msk.bf16.mxu1 %vm311_vm0, %v2474_v49  ;;  %v11000_v48 = vld [vmem:[%s15547_s7 + $0x52] sm:$0xff] }
 0x1c0   : > { %14034 = vmatprep.mubr.msk.bf16.mxu0 %vm311_vm0, %v7579_v58  ;;  %v11939_v49 = vld [vmem:[%s15547_s7 + $0x92] sm:$0xff]  ;;  %v11940_v58 = vld [vmem:[%s15547_s7 + $0xa2] sm:$0xff]  ;;  %v2730_v24 = vpack.c.bf16 %v11000_v48, %v10999_v45 }
 0x1c1   : > { %v7835_v36 = vpack.c.bf16 %v11940_v58, %v11939_v49  ;;  %v2733_v61 = vpack.c.bf16 %v11941_v32, %v11940_v58  ;;  %v11048_v45 = vld [vmem:[%s15547_s7 + $0x63] sm:$0xff] }
 0x1c2   : > { %v11989_v58 = vld [vmem:[%s15547_s7 + $0xc3] sm:$0xff] }
 0x1c6   : > { %13395 = vmatmul.mubr.msk.bf16.vlgmr.msra.gmra.mrb[0].mxu1 %vm311_vm0, %v2475_v37  ;;  %v2731_v37 = vpack.c.bf16 %v11937_v35, %v11001_v4 }
 0x1c7   : > { %14035 = vmatmul.mubr.msk.bf16.vlgmr.msra.gmra.mrb[0].mxu0 %vm311_vm0, %v7580_v63  ;;  %13419 = vmatpush3.bf16.msra.mxu1 %v16435_v17  ;;  %v2480_v17 = vpack.c.bf16 %v11898_v52, %v11897_v7  ;;  %v15412_v63 = vld [vmem:[%s17506_s1 + $0x3e8] sm:$0xff]   ;;  %v15414_v7 = vld [vmem:[%s17506_s1 + $0x3f0] sm:$0xff]  }
 0x1c8   : > { %14059 = vmatpush3.bf16.msra.mxu0 %v16440_v27  ;;  %13398 = vmatprep.mubr.msk.bf16.mxu1 %vm311_vm0, %v2476_v47  ;;  %v11904_v27 = vld [vmem:[%s15547_s7 + $0x151] sm:$0xff] }
 0x1c9   : > { %14038 = vmatprep.mubr.msk.bf16.mxu0 %vm311_vm0, %v7581_v51  ;;  %13420 = vmatprep.subr.bf16.mxu1 %v15403_v1  ;;  %v7586_v29 = vpack.c.bf16 %v11905_v50, %v11904_v27  ;;  %v2483_v30 = vpack.c.bf16 %v11904_v27, %v11903_v20  ;;  %v11943_v47 = vld [vmem:[%s15547_s7 + $0xd2] sm:$0xff]  ;;  %v11944_v51 = vld [vmem:[%s15547_s7 + $0xe2] sm:$0xff] }
 0x1ca   : > { %14060 = vmatprep.subr.bf16.mxu0 %v15404_v5  ;;  %v7837_v52 = vpack.c.bf16 %v11944_v51, %v11943_v47  ;;  %v2734_v19 = vpack.c.bf16 %v11943_v47, %v11942_v33  ;;  %v15419_v33 = vld [vmem:[%s17506_s1 + $0x188] sm:$0xff]  }
 0x1cb   : > { %13421 = vmatpush3.bf16.msra.mxu1 %v15403_v1  ;;  %v15413_v1 = vld [vmem:[%s17506_s1 + $0x170] sm:$0xff]   ;;  %v11993_v47 = vld [vmem:[%s15547_s7 + $0x103] sm:$0xff] }
 0x1cc   : > { %14061 = vmatpush3.bf16.msra.mxu0 %v15404_v5  ;;  %13422 = vmatprep.subr.bf16.mxu1 %v15405_v8  ;;  %v11945_v5 = vld [vmem:[%s15547_s7 + $0xf2] sm:$0xff] }
 0x1cd   : > { %14062 = vmatprep.subr.bf16.mxu0 %v15406_v62 }
 0x1ce   : > { %13399 = vmatmul.mubr.msk.bf16.gmra.mrb[4].mxu1 %vm311_vm0, %v2477_v2  ;;  %v15415_v2 = vld [vmem:[%s17506_s1 + $0x178] sm:$0xff]  }
 0x1cf   : > { %14039 = vmatmul.mubr.msk.bf16.gmra.mrb[4].mxu0 %vm311_vm0, %v7582_v10  ;;  %13402 = vmatprep.mubr.msk.bf16.mxu1 %vm311_vm0, %v2478_v11  ;;  %v15416_v10 = vld [vmem:[%s17506_s1 + $0x3f8] sm:$0xff]  }
 0x1d0   : > { %14042 = vmatprep.mubr.msk.bf16.mxu0 %vm311_vm0, %v7583_v13  ;;  %13423 = vmatpush3.bf16.msra.mxu1 %v15405_v8  ;;  %v2732_v8 = vpack.c.bf16 %v11939_v49, %v11938_v44  ;;  %v11947_v11 = vld [vmem:[%s15547_s7 + $0x112] sm:$0xff]  ;;  %v11948_v13 = vld [vmem:[%s15547_s7 + $0x122] sm:$0xff] }
 0x1d1   : > { %14063 = vmatpush3.bf16.msra.mxu0 %v15406_v62  ;;  %13424 = vmatprep.subr.bf16.mxu1 %v15407_v14  ;;  %v7838_v62 = vpack.c.bf16 %v11946_v6, %v11945_v5  ;;  %v7839_v20 = vpack.c.bf16 %v11948_v13, %v11947_v11  ;;  %v2736_v27 = vpack.c.bf16 %v11947_v11, %v11946_v6  ;;  %v11988_v49 = vld [vmem:[%s15547_s7 + $0xb3] sm:$0xff]  ;;  %v16687_v11 = vld [vmem:[%s17506_s1 + $0x1a0] sm:$0xff]  }
 0x1d2   : > { %14064 = vmatprep.subr.bf16.mxu0 %v15408_v15  ;;  %v8091_v32 = vpack.c.bf16 %v11989_v58, %v11988_v49 }
 0x1d4   : > { %13425 = vmatpush3.bf16.msra.mxu1 %v15407_v14  ;;  %v11949_v14 = vld [vmem:[%s15547_s7 + $0x132] sm:$0xff] }
 0x1d5   : > { %14065 = vmatpush3.bf16.msra.mxu0 %v15408_v15  ;;  %13450 = vmatprep.subr.bf16.mxu1 %v16519_v22  ;;  %v11950_v15 = vld [vmem:[%s15547_s7 + $0x142] sm:$0xff]  ;;  %v2737_v53 = vpack.c.bf16 %v11949_v14, %v11948_v13 }
 0x1d6   : > { %13403 = vmatmul.mubr.msk.bf16.gmra.mrb[8].mxu1 %vm311_vm0, %v2479_v25  ;;  %14090 = vmatprep.subr.bf16.mxu0 %v16524_v38  ;;  %v7840_v25 = vpack.c.bf16 %v11950_v15, %v11949_v14  ;;  %v16692_v14 = vld [vmem:[%s17506_s1 + $0x420] sm:$0xff]  }
 0x1d7   : > { %14043 = vmatmul.mubr.msk.bf16.gmra.mrb[8].mxu0 %vm311_vm0, %v7584_v43  ;;  %13406 = vmatprep.mubr.msk.bf16.mxu1 %vm311_vm0, %v2480_v17  ;;  %v11952_v43 = vld [vmem:[%s15547_s7 + $0x162] sm:$0xff]  ;;  %v11953_v17 = vld [vmem:[%s15547_s7 + $0x172] sm:$0xff] }
 0x1d8   : > { %14046 = vmatprep.mubr.msk.bf16.mxu0 %vm311_vm0, %v7585_v26  ;;  %v11954_v26 = vld [vmem:[%s15547_s7 + $0x182] sm:$0xff]  ;;  %v2739_v54 = vpack.c.bf16 %v11953_v17, %v11952_v43 }
 0x1d9   : > { %v7842_v18 = vpack.c.bf16 %v11954_v26, %v11953_v17  ;;  %v2740_v31 = vpack.c.bf16 %v11954_v26, %v11954_v26 }
 0x1de   : > { %13407 = vmatmul.mubr.msk.bf16.gmra.mrb[12].mxu1 %vm311_vm0, %v2481_v28  ;;  %v11955_v28 = vld [vmem:[%s15547_s7 + $0x192] sm:$0xff] }
 0x1df   : > { %14047 = vmatmul.mubr.msk.bf16.gmra.mrb[12].mxu0 %vm311_vm0, %v7586_v29  ;;  %13410 = vmatprep.mubr.msk.bf16.mxu1 %vm311_vm0, %v2482_v39  ;;  %v11956_v29 = vld [vmem:[%s15547_s7 + $0x1a2] sm:$0xff]  ;;  %v11957_v39 = vld [vmem:[%s15547_s7 + $0x1b2] sm:$0xff] }
 0x1e0   : > { %14050 = vmatprep.mubr.msk.bf16.mxu0 %vm311_vm0, %v7587_v40  ;;  %v11958_v40 = vld [vmem:[%s15547_s7 + $0x1c2] sm:$0xff]  ;;  %v7843_v42 = vpack.c.bf16 %v11956_v29, %v11955_v28 }
 0x1e1   : > { %v7844_v21 = vpack.c.bf16 %v11958_v40, %v11957_v39 }
 0x1e6   : > { %13411 = vmatmul.mubr.msk.bf16.gmra.mrb[16].mxu1 %vm311_vm0, %v2483_v30  ;;  %v11959_v30 = vld [vmem:[%s15547_s7 + $0x1d2] sm:$0xff] }
 0x1e7   : > { %14051 = vmatmul.mubr.msk.bf16.gmra.mrb[16].mxu0 %vm311_vm0, %v7588_v55  ;;  %13414 = vmatprep.mubr.msk.bf16.mxu1 %vm311_vm0, %v2484_v56  ;;  %v11044_v55 = vld [vmem:[%s15547_s7 + $0x23] sm:$0xff]  ;;  %v11045_v56 = vld [vmem:[%s15547_s7 + $0x33] sm:$0xff]  ;;  %v7845_v34 = vpack.c.bf16 %v11959_v30, %v11959_v30 }
 0x1e8   : > { %14054 = vmatprep.mubr.msk.bf16.mxu0 %vm311_vm0, %v7589_v57  ;;  %v11984_v57 = vld [vmem:[%s15547_s7 + $0x73] sm:$0xff]  ;;  %v2984_v35 = vpack.c.bf16 %v11045_v56, %v11044_v55 }
 0x1e9   : > { %v8089_v44 = vpack.c.bf16 %v11985_v9, %v11984_v57  ;;  %v12032_v30 = vld [vmem:[%s15547_s7 + $0x90] sm:$0xff] }
 0x1ee   : > { %13415 = vmatmul.mubr.msk.bf16.gmra.mrb[20].mxu1 %vm311_vm0, %v2485_v60  ;;  %v11046_v60 = vld [vmem:[%s15547_s7 + $0x43] sm:$0xff] }
 0x1ef   : > { %14055 = vmatmul.mubr.msk.bf16.gmra.mrb[20].mxu0 %vm311_vm0, %v7590_v0  ;;  %13426 = vmatprep.mubr.msk.bf16.mxu1 %vm311_vm0, %v2729_v12  ;;  %v11047_v0 = vld [vmem:[%s15547_s7 + $0x53] sm:$0xff] }
 0x1f0   : > { %14066 = vmatprep.mubr.msk.bf16.mxu0 %vm311_vm0, %v7834_v23  ;;  %v11986_v12 = vld [vmem:[%s15547_s7 + $0x93] sm:$0xff]  ;;  %v11987_v23 = vld [vmem:[%s15547_s7 + $0xa3] sm:$0xff]  ;;  %v2985_v48 = vpack.c.bf16 %v11047_v0, %v11046_v60 }
 0x1f1   : > { %v8090_v4 = vpack.c.bf16 %v11987_v23, %v11986_v12  ;;  %v2988_v6 = vpack.c.bf16 %v11988_v49, %v11987_v23  ;;  %v11095_v60 = vld [vmem:[%s15547_s7 + $0x70] sm:$0xff] }
 0x1f2   : > { %v12036_v23 = vld [vmem:[%s15547_s7 + $0xd0] sm:$0xff] }
 0x1f6   : > { %13427 = vmatmul.mubr.msk.bf16.vlgmr.msra.gmra.mrb[0].mxu1 %vm311_vm0, %v2730_v24  ;;  %v2986_v24 = vpack.c.bf16 %v11984_v57, %v11048_v45 }
 0x1f7   : > { %14067 = vmatmul.mubr.msk.bf16.vlgmr.msra.gmra.mrb[0].mxu0 %vm311_vm0, %v7835_v36  ;;  %13451 = vmatpush3.bf16.msra.mxu1 %v16519_v22  ;;  %v2735_v22 = vpack.c.bf16 %v11945_v5, %v11944_v51  ;;  %v15420_v36 = vld [vmem:[%s17506_s1 + $0x408] sm:$0xff]   ;;  %v15422_v51 = vld [vmem:[%s17506_s1 + $0x410] sm:$0xff]  }
 0x1f8   : > { %14091 = vmatpush3.bf16.msra.mxu0 %v16524_v38  ;;  %13430 = vmatprep.mubr.msk.bf16.mxu1 %vm311_vm0, %v2731_v37  ;;  %v11951_v38 = vld [vmem:[%s15547_s7 + $0x152] sm:$0xff] }
 0x1f9   : > { %14070 = vmatprep.mubr.msk.bf16.mxu0 %vm311_vm0, %v7836_v46  ;;  %13452 = vmatprep.subr.bf16.mxu1 %v15411_v59  ;;  %v7841_v50 = vpack.c.bf16 %v11952_v43, %v11951_v38  ;;  %v2738_v41 = vpack.c.bf16 %v11951_v38, %v11950_v15  ;;  %v11990_v37 = vld [vmem:[%s15547_s7 + $0xd3] sm:$0xff]  ;;  %v11991_v46 = vld [vmem:[%s15547_s7 + $0xe3] sm:$0xff] }
 0x1fa   : > { %14092 = vmatprep.subr.bf16.mxu0 %v15412_v63  ;;  %v8092_v5 = vpack.c.bf16 %v11991_v46, %v11990_v37  ;;  %v2989_v13 = vpack.c.bf16 %v11990_v37, %v11989_v58  ;;  %v15427_v58 = vld [vmem:[%s17506_s1 + $0x1a8] sm:$0xff]   ;;  %v12040_v37 = vld [vmem:[%s15547_s7 + $0x110] sm:$0xff] }
 0x1fb   : > { %13453 = vmatpush3.bf16.msra.mxu1 %v15411_v59  ;;  %v15421_v59 = vld [vmem:[%s17506_s1 + $0x190] sm:$0xff]  }
 0x1fc   : > { %14093 = vmatpush3.bf16.msra.mxu0 %v15412_v63  ;;  %13454 = vmatprep.subr.bf16.mxu1 %v15413_v1  ;;  %v11992_v63 = vld [vmem:[%s15547_s7 + $0xf3] sm:$0xff] }
 0x1fd   : > { %14094 = vmatprep.subr.bf16.mxu0 %v15414_v7 }
 0x1fe   : > { %13431 = vmatmul.mubr.msk.bf16.gmra.mrb[4].mxu1 %vm311_vm0, %v2732_v8  ;;  %v15423_v8 = vld [vmem:[%s17506_s1 + $0x198] sm:$0xff]  }
 0x1ff   : > { %14071 = vmatmul.mubr.msk.bf16.gmra.mrb[4].mxu0 %vm311_vm0, %v7837_v52  ;;  %13434 = vmatprep.mubr.msk.bf16.mxu1 %vm311_vm0, %v2733_v61  ;;  %v15424_v52 = vld [vmem:[%s17506_s1 + $0x418] sm:$0xff]  }
 0x200   : > { %14074 = vmatprep.mubr.msk.bf16.mxu0 %vm311_vm0, %v7838_v62  ;;  %13455 = vmatpush3.bf16.msra.mxu1 %v15413_v1  ;;  %v2987_v1 = vpack.c.bf16 %v11986_v12, %v11985_v9  ;;  %v11994_v61 = vld [vmem:[%s15547_s7 + $0x113] sm:$0xff]  ;;  %v11995_v62 = vld [vmem:[%s15547_s7 + $0x123] sm:$0xff] }
 0x201   : > { %14095 = vmatpush3.bf16.msra.mxu0 %v15414_v7  ;;  %13456 = vmatprep.subr.bf16.mxu1 %v15415_v2  ;;  %v8093_v7 = vpack.c.bf16 %v11993_v47, %v11992_v63  ;;  %v8094_v15 = vpack.c.bf16 %v11995_v62, %v11994_v61  ;;  %v2991_v38 = vpack.c.bf16 %v11994_v61, %v11993_v47  ;;  %v12035_v12 = vld [vmem:[%s15547_s7 + $0xc0] sm:$0xff] }
 0x202   : > { %14096 = vmatprep.subr.bf16.mxu0 %v15416_v10  ;;  %v8347_v49 = vpack.c.bf16 %v12036_v23, %v12035_v12  ;;  %v16771_v61 = vld [vmem:[%s17506_s1 + $0x1c0] sm:$0xff]  }
 0x204   : > { %13457 = vmatpush3.bf16.msra.mxu1 %v15415_v2  ;;  %v11996_v2 = vld [vmem:[%s15547_s7 + $0x133] sm:$0xff] }
 0x205   : > { %14097 = vmatpush3.bf16.msra.mxu0 %v15416_v10  ;;  %13482 = vmatprep.subr.bf16.mxu1 %v16603_v16  ;;  %v11997_v10 = vld [vmem:[%s15547_s7 + $0x143] sm:$0xff]  ;;  %v2992_v17 = vpack.c.bf16 %v11996_v2, %v11995_v62 }
 0x206   : > { %13435 = vmatmul.mubr.msk.bf16.gmra.mrb[8].mxu1 %vm311_vm0, %v2734_v19  ;;  %14122 = vmatprep.subr.bf16.mxu0 %v16608_v3  ;;  %v8095_v19 = vpack.c.bf16 %v11997_v10, %v11996_v2  ;;  %v16776_v2 = vld [vmem:[%s17506_s1 + $0x440] sm:$0xff]  }
 0x207   : > { %14075 = vmatmul.mubr.msk.bf16.gmra.mrb[8].mxu0 %vm311_vm0, %v7839_v20  ;;  %13438 = vmatprep.mubr.msk.bf16.mxu1 %vm311_vm0, %v2735_v22  ;;  %v11999_v20 = vld [vmem:[%s15547_s7 + $0x163] sm:$0xff]  ;;  %v12000_v22 = vld [vmem:[%s15547_s7 + $0x173] sm:$0xff] }
 0x208   : > { %14078 = vmatprep.mubr.msk.bf16.mxu0 %vm311_vm0, %v7840_v25  ;;  %v12001_v25 = vld [vmem:[%s15547_s7 + $0x183] sm:$0xff]  ;;  %v2994_v39 = vpack.c.bf16 %v12000_v22, %v11999_v20 }
 0x209   : > { %v8097_v26 = vpack.c.bf16 %v12001_v25, %v12000_v22  ;;  %v2995_v55 = vpack.c.bf16 %v12001_v25, %v12001_v25 }
 0x20e   : > { %13439 = vmatmul.mubr.msk.bf16.gmra.mrb[12].mxu1 %vm311_vm0, %v2736_v27  ;;  %v12002_v27 = vld [vmem:[%s15547_s7 + $0x193] sm:$0xff] }
 0x20f   : > { %14079 = vmatmul.mubr.msk.bf16.gmra.mrb[12].mxu0 %vm311_vm0, %v7841_v50  ;;  %13442 = vmatprep.mubr.msk.bf16.mxu1 %vm311_vm0, %v2737_v53  ;;  %v12003_v50 = vld [vmem:[%s15547_s7 + $0x1a3] sm:$0xff]  ;;  %v12004_v53 = vld [vmem:[%s15547_s7 + $0x1b3] sm:$0xff] }
 0x210   : > { %14082 = vmatprep.mubr.msk.bf16.mxu0 %vm311_vm0, %v7842_v18  ;;  %v12005_v18 = vld [vmem:[%s15547_s7 + $0x1c3] sm:$0xff]  ;;  %v8098_v29 = vpack.c.bf16 %v12003_v50, %v12002_v27 }
 0x211   : > { %v8099_v40 = vpack.c.bf16 %v12005_v18, %v12004_v53 }
 0x216   : > { %13443 = vmatmul.mubr.msk.bf16.gmra.mrb[16].mxu1 %vm311_vm0, %v2738_v41  ;;  %v12006_v41 = vld [vmem:[%s15547_s7 + $0x1d3] sm:$0xff] }
 0x217   : > { %14083 = vmatmul.mubr.msk.bf16.gmra.mrb[16].mxu0 %vm311_vm0, %v7843_v42  ;;  %13446 = vmatprep.mubr.msk.bf16.mxu1 %vm311_vm0, %v2739_v54  ;;  %v11091_v42 = vld [vmem:[%s15547_s7 + $0x30] sm:$0xff]  ;;  %v11092_v54 = vld [vmem:[%s15547_s7 + $0x40] sm:$0xff]  ;;  %v8100_v56 = vpack.c.bf16 %v12006_v41, %v12006_v41 }
 0x218   : > { %14086 = vmatprep.mubr.msk.bf16.mxu0 %vm311_vm0, %v7844_v21  ;;  %v12031_v21 = vld [vmem:[%s15547_s7 + $0x80] sm:$0xff]  ;;  %v3240_v57 = vpack.c.bf16 %v11092_v54, %v11091_v42  ;;  %v12079_v41 = vld [vmem:[%s15547_s7 + $0x91] sm:$0xff] }
 0x219   : > { %v8345_v9 = vpack.c.bf16 %v12032_v30, %v12031_v21 }
 0x21e   : > { %13447 = vmatmul.mubr.msk.bf16.gmra.mrb[20].mxu1 %vm311_vm0, %v2740_v31  ;;  %v11093_v31 = vld [vmem:[%s15547_s7 + $0x50] sm:$0xff] }
 0x21f   : > { %14087 = vmatmul.mubr.msk.bf16.gmra.mrb[20].mxu0 %vm311_vm0, %v7845_v34  ;;  %13458 = vmatprep.mubr.msk.bf16.mxu1 %vm311_vm0, %v2984_v35  ;;  %v11094_v34 = vld [vmem:[%s15547_s7 + $0x60] sm:$0xff] }
 0x220   : > { %14098 = vmatprep.mubr.msk.bf16.mxu0 %vm311_vm0, %v8089_v44  ;;  %v12033_v35 = vld [vmem:[%s15547_s7 + $0xa0] sm:$0xff]  ;;  %v12034_v44 = vld [vmem:[%s15547_s7 + $0xb0] sm:$0xff]  ;;  %v3241_v0 = vpack.c.bf16 %v11094_v34, %v11093_v31 }
 0x221   : > { %v8346_v45 = vpack.c.bf16 %v12034_v44, %v12033_v35  ;;  %v3244_v47 = vpack.c.bf16 %v12035_v12, %v12034_v44  ;;  %v11142_v31 = vld [vmem:[%s15547_s7 + $0x71] sm:$0xff] }
 0x222   : > { %v12083_v44 = vld [vmem:[%s15547_s7 + $0xd1] sm:$0xff] }
 0x226   : > { %13459 = vmatmul.mubr.msk.bf16.vlgmr.msra.gmra.mrb[0].mxu1 %vm311_vm0, %v2985_v48  ;;  %v3242_v48 = vpack.c.bf16 %v12031_v21, %v11095_v60 }
 0x227   : > { %14099 = vmatmul.mubr.msk.bf16.vlgmr.msra.gmra.mrb[0].mxu0 %vm311_vm0, %v8090_v4  ;;  %13483 = vmatpush3.bf16.msra.mxu1 %v16603_v16  ;;  %v2990_v16 = vpack.c.bf16 %v11992_v63, %v11991_v46  ;;  %v15428_v4 = vld [vmem:[%s17506_s1 + $0x428] sm:$0xff]   ;;  %v15430_v46 = vld [vmem:[%s17506_s1 + $0x430] sm:$0xff]  }
 0x228   : > { %14123 = vmatpush3.bf16.msra.mxu0 %v16608_v3  ;;  %13462 = vmatprep.mubr.msk.bf16.mxu1 %vm311_vm0, %v2986_v24  ;;  %v11998_v3 = vld [vmem:[%s15547_s7 + $0x153] sm:$0xff]  ;;  %v12037_v24 = vld [vmem:[%s15547_s7 + $0xe0] sm:$0xff] }
 0x229   : > { %14102 = vmatprep.mubr.msk.bf16.mxu0 %vm311_vm0, %v8091_v32  ;;  %13484 = vmatprep.subr.bf16.mxu1 %v15419_v33  ;;  %v8096_v43 = vpack.c.bf16 %v11999_v20, %v11998_v3  ;;  %v2993_v28 = vpack.c.bf16 %v11998_v3, %v11997_v10  ;;  %v12038_v32 = vld [vmem:[%s15547_s7 + $0xf0] sm:$0xff]  ;;  %v3245_v62 = vpack.c.bf16 %v12037_v24, %v12036_v23  ;;  %v15435_v23 = vld [vmem:[%s17506_s1 + $0x1c8] sm:$0xff]  }
 0x22a   : > { %14124 = vmatprep.subr.bf16.mxu0 %v15420_v36  ;;  %v8348_v63 = vpack.c.bf16 %v12038_v32, %v12037_v24  ;;  %v12087_v24 = vld [vmem:[%s15547_s7 + $0x111] sm:$0xff] }
 0x22b   : > { %13485 = vmatpush3.bf16.msra.mxu1 %v15419_v33  ;;  %v15429_v33 = vld [vmem:[%s17506_s1 + $0x1b0] sm:$0xff]  }
 0x22c   : > { %14125 = vmatpush3.bf16.msra.mxu0 %v15420_v36  ;;  %13486 = vmatprep.subr.bf16.mxu1 %v15421_v59  ;;  %v12039_v36 = vld [vmem:[%s15547_s7 + $0x100] sm:$0xff] }
 0x22d   : > { %14126 = vmatprep.subr.bf16.mxu0 %v15422_v51 }
 0x22e   : > { %13463 = vmatmul.mubr.msk.bf16.gmra.mrb[4].mxu1 %vm311_vm0, %v2987_v1  ;;  %v15431_v1 = vld [vmem:[%s17506_s1 + $0x1b8] sm:$0xff]  }
 0x22f   : > { %14103 = vmatmul.mubr.msk.bf16.gmra.mrb[4].mxu0 %vm311_vm0, %v8092_v5  ;;  %13466 = vmatprep.mubr.msk.bf16.mxu1 %vm311_vm0, %v2988_v6  ;;  %v15432_v5 = vld [vmem:[%s17506_s1 + $0x438] sm:$0xff]   ;;  %v12041_v6 = vld [vmem:[%s15547_s7 + $0x120] sm:$0xff] }
 0x230   : > { %14106 = vmatprep.mubr.msk.bf16.mxu0 %vm311_vm0, %v8093_v7  ;;  %13487 = vmatpush3.bf16.msra.mxu1 %v15421_v59  ;;  %v3243_v59 = vpack.c.bf16 %v12033_v35, %v12032_v30  ;;  %v12042_v7 = vld [vmem:[%s15547_s7 + $0x130] sm:$0xff]  ;;  %v3247_v3 = vpack.c.bf16 %v12041_v6, %v12040_v37  ;;  %v12082_v35 = vld [vmem:[%s15547_s7 + $0xc1] sm:$0xff] }
 0x231   : > { %14127 = vmatpush3.bf16.msra.mxu0 %v15422_v51  ;;  %13488 = vmatprep.subr.bf16.mxu1 %v15423_v8  ;;  %v8349_v51 = vpack.c.bf16 %v12040_v37, %v12039_v36  ;;  %v8350_v10 = vpack.c.bf16 %v12042_v7, %v12041_v6  ;;  %v8602_v12 = vpack.c.bf16 %v12083_v44, %v12082_v35  ;;  %v16855_v6 = vld [vmem:[%s17506_s1 + $0x1e0] sm:$0xff]  }
 0x232   : > { %14128 = vmatprep.subr.bf16.mxu0 %v15424_v52 }
 0x234   : > { %13489 = vmatpush3.bf16.msra.mxu1 %v15423_v8  ;;  %v12043_v8 = vld [vmem:[%s15547_s7 + $0x140] sm:$0xff] }
 0x235   : > { %14129 = vmatpush3.bf16.msra.mxu0 %v15424_v52  ;;  %13514 = vmatprep.subr.bf16.mxu1 %v16687_v11  ;;  %v12044_v52 = vld [vmem:[%s15547_s7 + $0x150] sm:$0xff]  ;;  %v3248_v22 = vpack.c.bf16 %v12043_v8, %v12042_v7 }
 0x236   : > { %13467 = vmatmul.mubr.msk.bf16.gmra.mrb[8].mxu1 %vm311_vm0, %v2989_v13  ;;  %14154 = vmatprep.subr.bf16.mxu0 %v16692_v14  ;;  %v8351_v13 = vpack.c.bf16 %v12044_v52, %v12043_v8  ;;  %v16860_v8 = vld [vmem:[%s17506_s1 + $0x460] sm:$0xff]  }
 0x237   : > { %14107 = vmatmul.mubr.msk.bf16.gmra.mrb[8].mxu0 %vm311_vm0, %v8094_v15  ;;  %13470 = vmatprep.mubr.msk.bf16.mxu1 %vm311_vm0, %v2990_v16  ;;  %v12046_v15 = vld [vmem:[%s15547_s7 + $0x170] sm:$0xff]  ;;  %v12047_v16 = vld [vmem:[%s15547_s7 + $0x180] sm:$0xff] }
 0x238   : > { %14110 = vmatprep.mubr.msk.bf16.mxu0 %vm311_vm0, %v8095_v19  ;;  %v12048_v19 = vld [vmem:[%s15547_s7 + $0x190] sm:$0xff]  ;;  %v3250_v53 = vpack.c.bf16 %v12047_v16, %v12046_v15 }
 0x239   : > { %v8353_v25 = vpack.c.bf16 %v12048_v19, %v12047_v16  ;;  %v3251_v42 = vpack.c.bf16 %v12048_v19, %v12048_v19 }
 0x23e   : > { %13471 = vmatmul.mubr.msk.bf16.gmra.mrb[12].mxu1 %vm311_vm0, %v2991_v38  ;;  %v12049_v38 = vld [vmem:[%s15547_s7 + $0x1a0] sm:$0xff] }
 0x23f   : > { %14111 = vmatmul.mubr.msk.bf16.gmra.mrb[12].mxu0 %vm311_vm0, %v8096_v43  ;;  %13474 = vmatprep.mubr.msk.bf16.mxu1 %vm311_vm0, %v2992_v17  ;;  %v12050_v43 = vld [vmem:[%s15547_s7 + $0x1b0] sm:$0xff]  ;;  %v12051_v17 = vld [vmem:[%s15547_s7 + $0x1c0] sm:$0xff] }
 0x240   : > { %14114 = vmatprep.mubr.msk.bf16.mxu0 %vm311_vm0, %v8097_v26  ;;  %v12052_v26 = vld [vmem:[%s15547_s7 + $0x1d0] sm:$0xff]  ;;  %v8354_v50 = vpack.c.bf16 %v12050_v43, %v12049_v38 }
 0x241   : > { %v8355_v18 = vpack.c.bf16 %v12052_v26, %v12051_v17 }
 0x246   : > { %13475 = vmatmul.mubr.msk.bf16.gmra.mrb[16].mxu1 %vm311_vm0, %v2993_v28  ;;  %v12053_v28 = vld [vmem:[%s15547_s7 + $0x1e0] sm:$0xff] }
 0x247   : > { %14115 = vmatmul.mubr.msk.bf16.gmra.mrb[16].mxu0 %vm311_vm0, %v8098_v29  ;;  %13478 = vmatprep.mubr.msk.bf16.mxu1 %vm311_vm0, %v2994_v39  ;;  %v11138_v29 = vld [vmem:[%s15547_s7 + $0x31] sm:$0xff]  ;;  %v11139_v39 = vld [vmem:[%s15547_s7 + $0x41] sm:$0xff]  ;;  %v8356_v54 = vpack.c.bf16 %v12053_v28, %v12053_v28 }
 0x248   : > { %14118 = vmatprep.mubr.msk.bf16.mxu0 %vm311_vm0, %v8099_v40  ;;  %v12078_v40 = vld [vmem:[%s15547_s7 + $0x81] sm:$0xff]  ;;  %v3495_v21 = vpack.c.bf16 %v11139_v39, %v11138_v29  ;;  %v12126_v28 = vld [vmem:[%s15547_s7 + $0x92] sm:$0xff] }
 0x249   : > { %v8600_v30 = vpack.c.bf16 %v12079_v41, %v12078_v40 }
 0x24e   : > { %13479 = vmatmul.mubr.msk.bf16.gmra.mrb[20].mxu1 %vm311_vm0, %v2995_v55  ;;  %v11140_v55 = vld [vmem:[%s15547_s7 + $0x51] sm:$0xff] }
 0x24f   : > { %14119 = vmatmul.mubr.msk.bf16.gmra.mrb[20].mxu0 %vm311_vm0, %v8100_v56  ;;  %13490 = vmatprep.mubr.msk.bf16.mxu1 %vm311_vm0, %v3240_v57  ;;  %v11141_v56 = vld [vmem:[%s15547_s7 + $0x61] sm:$0xff] }
 0x250   : > { %14130 = vmatprep.mubr.msk.bf16.mxu0 %vm311_vm0, %v8345_v9  ;;  %v12080_v57 = vld [vmem:[%s15547_s7 + $0xa1] sm:$0xff]  ;;  %v12081_v9 = vld [vmem:[%s15547_s7 + $0xb1] sm:$0xff]  ;;  %v3496_v34 = vpack.c.bf16 %v11141_v56, %v11140_v55 }
 0x251   : > { %v8601_v60 = vpack.c.bf16 %v12081_v9, %v12080_v57  ;;  %v3499_v37 = vpack.c.bf16 %v12082_v35, %v12081_v9  ;;  %v11189_v55 = vld [vmem:[%s15547_s7 + $0x72] sm:$0xff] }
 0x252   : > { %v12130_v9 = vld [vmem:[%s15547_s7 + $0xd2] sm:$0xff] }
 0x256   : > { %13491 = vmatmul.mubr.msk.bf16.vlgmr.msra.gmra.mrb[0].mxu1 %vm311_vm0, %v3241_v0  ;;  %v3497_v0 = vpack.c.bf16 %v12078_v40, %v11142_v31 }
 0x257   : > { %14131 = vmatmul.mubr.msk.bf16.vlgmr.msra.gmra.mrb[0].mxu0 %vm311_vm0, %v8346_v45  ;;  %13515 = vmatpush3.bf16.msra.mxu1 %v16687_v11  ;;  %v3246_v11 = vpack.c.bf16 %v12039_v36, %v12038_v32  ;;  %v15436_v45 = vld [vmem:[%s17506_s1 + $0x448] sm:$0xff]   ;;  %v15438_v32 = vld [vmem:[%s17506_s1 + $0x450] sm:$0xff]  }
 0x258   : > { %14155 = vmatpush3.bf16.msra.mxu0 %v16692_v14  ;;  %13494 = vmatprep.mubr.msk.bf16.mxu1 %vm311_vm0, %v3242_v48  ;;  %v12045_v14 = vld [vmem:[%s15547_s7 + $0x160] sm:$0xff] }
 0x259   : > { %14134 = vmatprep.mubr.msk.bf16.mxu0 %vm311_vm0, %v8347_v49  ;;  %13516 = vmatprep.subr.bf16.mxu1 %v15427_v58  ;;  %v8352_v20 = vpack.c.bf16 %v12046_v15, %v12045_v14  ;;  %v3249_v27 = vpack.c.bf16 %v12045_v14, %v12044_v52  ;;  %v12084_v48 = vld [vmem:[%s15547_s7 + $0xe1] sm:$0xff]  ;;  %v12085_v49 = vld [vmem:[%s15547_s7 + $0xf1] sm:$0xff] }
 0x25a   : > { %14156 = vmatprep.subr.bf16.mxu0 %v15428_v4  ;;  %v8603_v36 = vpack.c.bf16 %v12085_v49, %v12084_v48  ;;  %v3500_v7 = vpack.c.bf16 %v12084_v48, %v12083_v44  ;;  %v15443_v44 = vld [vmem:[%s17506_s1 + $0x1e8] sm:$0xff]   ;;  %v12134_v48 = vld [vmem:[%s15547_s7 + $0x112] sm:$0xff] }
 0x25b   : > { %13517 = vmatpush3.bf16.msra.mxu1 %v15427_v58  ;;  %v15437_v58 = vld [vmem:[%s17506_s1 + $0x1d0] sm:$0xff]  }
 0x25c   : > { %14157 = vmatpush3.bf16.msra.mxu0 %v15428_v4  ;;  %13518 = vmatprep.subr.bf16.mxu1 %v15429_v33  ;;  %v12086_v4 = vld [vmem:[%s15547_s7 + $0x101] sm:$0xff] }
 0x25d   : > { %14158 = vmatprep.subr.bf16.mxu0 %v15430_v46 }
 0x25e   : > { %13495 = vmatmul.mubr.msk.bf16.gmra.mrb[4].mxu1 %vm311_vm0, %v3243_v59  ;;  %v15439_v59 = vld [vmem:[%s17506_s1 + $0x1d8] sm:$0xff]  }
 0x25f   : > { %14135 = vmatmul.mubr.msk.bf16.gmra.mrb[4].mxu0 %vm311_vm0, %v8348_v63  ;;  %13498 = vmatprep.mubr.msk.bf16.mxu1 %vm311_vm0, %v3244_v47  ;;  %v15440_v63 = vld [vmem:[%s17506_s1 + $0x458] sm:$0xff]   ;;  %v12088_v47 = vld [vmem:[%s15547_s7 + $0x121] sm:$0xff] }
 0x260   : > { %14138 = vmatprep.mubr.msk.bf16.mxu0 %vm311_vm0, %v8349_v51  ;;  %13519 = vmatpush3.bf16.msra.mxu1 %v15429_v33  ;;  %v3498_v33 = vpack.c.bf16 %v12080_v57, %v12079_v41  ;;  %v12089_v51 = vld [vmem:[%s15547_s7 + $0x131] sm:$0xff]  ;;  %v3502_v14 = vpack.c.bf16 %v12088_v47, %v12087_v24  ;;  %v12129_v57 = vld [vmem:[%s15547_s7 + $0xc2] sm:$0xff] }
 0x261   : > { %14159 = vmatpush3.bf16.msra.mxu0 %v15430_v46  ;;  %13520 = vmatprep.subr.bf16.mxu1 %v15431_v1  ;;  %v8604_v46 = vpack.c.bf16 %v12087_v24, %v12086_v4  ;;  %v8605_v52 = vpack.c.bf16 %v12089_v51, %v12088_v47  ;;  %v8857_v35 = vpack.c.bf16 %v12130_v9, %v12129_v57  ;;  %v16939_v47 = vld [vmem:[%s17506_s1 + $0x200] sm:$0xff]  }
 0x262   : > { %14160 = vmatprep.subr.bf16.mxu0 %v15432_v5 }
 0x264   : > { %13521 = vmatpush3.bf16.msra.mxu1 %v15431_v1  ;;  %v12090_v1 = vld [vmem:[%s15547_s7 + $0x141] sm:$0xff] }
 0x265   : > { %14161 = vmatpush3.bf16.msra.mxu0 %v15432_v5  ;;  %13546 = vmatprep.subr.bf16.mxu1 %v16771_v61  ;;  %v12091_v5 = vld [vmem:[%s15547_s7 + $0x151] sm:$0xff]  ;;  %v3503_v16 = vpack.c.bf16 %v12090_v1, %v12089_v51 }
 0x266   : > { %13499 = vmatmul.mubr.msk.bf16.gmra.mrb[8].mxu1 %vm311_vm0, %v3245_v62  ;;  %14186 = vmatprep.subr.bf16.mxu0 %v16776_v2  ;;  %v8606_v62 = vpack.c.bf16 %v12091_v5, %v12090_v1  ;;  %v16944_v1 = vld [vmem:[%s17506_s1 + $0x480] sm:$0xff]  }
 0x267   : > { %14139 = vmatmul.mubr.msk.bf16.gmra.mrb[8].mxu0 %vm311_vm0, %v8350_v10  ;;  %13502 = vmatprep.mubr.msk.bf16.mxu1 %vm311_vm0, %v3246_v11  ;;  %v12093_v10 = vld [vmem:[%s15547_s7 + $0x171] sm:$0xff]  ;;  %v12094_v11 = vld [vmem:[%s15547_s7 + $0x181] sm:$0xff] }
 0x268   : > { %14142 = vmatprep.mubr.msk.bf16.mxu0 %vm311_vm0, %v8351_v13  ;;  %v12095_v13 = vld [vmem:[%s15547_s7 + $0x191] sm:$0xff]  ;;  %v3505_v17 = vpack.c.bf16 %v12094_v11, %v12093_v10 }
 0x269   : > { %v8608_v19 = vpack.c.bf16 %v12095_v13, %v12094_v11  ;;  %v3506_v29 = vpack.c.bf16 %v12095_v13, %v12095_v13 }
 0x26e   : > { %13503 = vmatmul.mubr.msk.bf16.gmra.mrb[12].mxu1 %vm311_vm0, %v3247_v3  ;;  %v12096_v3 = vld [vmem:[%s15547_s7 + $0x1a1] sm:$0xff] }
 0x26f   : > { %14143 = vmatmul.mubr.msk.bf16.gmra.mrb[12].mxu0 %vm311_vm0, %v8352_v20  ;;  %13506 = vmatprep.mubr.msk.bf16.mxu1 %vm311_vm0, %v3248_v22  ;;  %v12097_v20 = vld [vmem:[%s15547_s7 + $0x1b1] sm:$0xff]  ;;  %v12098_v22 = vld [vmem:[%s15547_s7 + $0x1c1] sm:$0xff] }
 0x270   : > { %14146 = vmatprep.mubr.msk.bf16.mxu0 %vm311_vm0, %v8353_v25  ;;  %v12099_v25 = vld [vmem:[%s15547_s7 + $0x1d1] sm:$0xff]  ;;  %v8609_v43 = vpack.c.bf16 %v12097_v20, %v12096_v3 }
 0x271   : > { %v8610_v26 = vpack.c.bf16 %v12099_v25, %v12098_v22 }
 0x276   : > { %13507 = vmatmul.mubr.msk.bf16.gmra.mrb[16].mxu1 %vm311_vm0, %v3249_v27  ;;  %v12100_v27 = vld [vmem:[%s15547_s7 + $0x1e1] sm:$0xff] }
 0x277   : > { %14147 = vmatmul.mubr.msk.bf16.gmra.mrb[16].mxu0 %vm311_vm0, %v8354_v50  ;;  %13510 = vmatprep.mubr.msk.bf16.mxu1 %vm311_vm0, %v3250_v53  ;;  %v11185_v50 = vld [vmem:[%s15547_s7 + $0x32] sm:$0xff]  ;;  %v11186_v53 = vld [vmem:[%s15547_s7 + $0x42] sm:$0xff]  ;;  %v8611_v39 = vpack.c.bf16 %v12100_v27, %v12100_v27 }
 0x278   : > { %14150 = vmatprep.mubr.msk.bf16.mxu0 %vm311_vm0, %v8355_v18  ;;  %v12125_v18 = vld [vmem:[%s15547_s7 + $0x82] sm:$0xff]  ;;  %v3750_v40 = vpack.c.bf16 %v11186_v53, %v11185_v50  ;;  %v12173_v27 = vld [vmem:[%s15547_s7 + $0x93] sm:$0xff] }
 0x279   : > { %v8855_v41 = vpack.c.bf16 %v12126_v28, %v12125_v18 }
 0x27e   : > { %13511 = vmatmul.mubr.msk.bf16.gmra.mrb[20].mxu1 %vm311_vm0, %v3251_v42  ;;  %v11187_v42 = vld [vmem:[%s15547_s7 + $0x52] sm:$0xff] }
 0x27f   : > { %14151 = vmatmul.mubr.msk.bf16.gmra.mrb[20].mxu0 %vm311_vm0, %v8356_v54  ;;  %13522 = vmatprep.mubr.msk.bf16.mxu1 %vm311_vm0, %v3495_v21  ;;  %v11188_v54 = vld [vmem:[%s15547_s7 + $0x62] sm:$0xff] }
 0x280   : > { %14162 = vmatprep.mubr.msk.bf16.mxu0 %vm311_vm0, %v8600_v30  ;;  %v12127_v21 = vld [vmem:[%s15547_s7 + $0xa2] sm:$0xff]  ;;  %v12128_v30 = vld [vmem:[%s15547_s7 + $0xb2] sm:$0xff]  ;;  %v3751_v56 = vpack.c.bf16 %v11188_v54, %v11187_v42 }
 0x281   : > { %v8856_v31 = vpack.c.bf16 %v12128_v30, %v12127_v21  ;;  %v3754_v24 = vpack.c.bf16 %v12129_v57, %v12128_v30  ;;  %v11236_v42 = vld [vmem:[%s15547_s7 + $0x73] sm:$0xff] }
 0x282   : > { %v12177_v30 = vld [vmem:[%s15547_s7 + $0xd3] sm:$0xff] }
 0x286   : > { %13523 = vmatmul.mubr.msk.bf16.vlgmr.msra.gmra.mrb[0].mxu1 %vm311_vm0, %v3496_v34  ;;  %v3752_v34 = vpack.c.bf16 %v12125_v18, %v11189_v55 }
 0x287   : > { %14163 = vmatmul.mubr.msk.bf16.vlgmr.msra.gmra.mrb[0].mxu0 %vm311_vm0, %v8601_v60  ;;  %13547 = vmatpush3.bf16.msra.mxu1 %v16771_v61  ;;  %v3501_v61 = vpack.c.bf16 %v12086_v4, %v12085_v49  ;;  %v15444_v60 = vld [vmem:[%s17506_s1 + $0x468] sm:$0xff]   ;;  %v15446_v49 = vld [vmem:[%s17506_s1 + $0x470] sm:$0xff]  }
 0x288   : > { %14187 = vmatpush3.bf16.msra.mxu0 %v16776_v2  ;;  %13526 = vmatprep.mubr.msk.bf16.mxu1 %vm311_vm0, %v3497_v0  ;;  %v12092_v2 = vld [vmem:[%s15547_s7 + $0x161] sm:$0xff] }
 0x289   : > { %14166 = vmatprep.mubr.msk.bf16.mxu0 %vm311_vm0, %v8602_v12  ;;  %13548 = vmatprep.subr.bf16.mxu1 %v15435_v23  ;;  %v8607_v15 = vpack.c.bf16 %v12093_v10, %v12092_v2  ;;  %v3504_v38 = vpack.c.bf16 %v12092_v2, %v12091_v5  ;;  %v12131_v0 = vld [vmem:[%s15547_s7 + $0xe2] sm:$0xff]  ;;  %v12132_v12 = vld [vmem:[%s15547_s7 + $0xf2] sm:$0xff] }
 0x28a   : > { %14188 = vmatprep.subr.bf16.mxu0 %v15436_v45  ;;  %v8858_v4 = vpack.c.bf16 %v12132_v12, %v12131_v0  ;;  %v3755_v51 = vpack.c.bf16 %v12131_v0, %v12130_v9  ;;  %v15451_v9 = vld [vmem:[%s17506_s1 + $0x208] sm:$0xff]   ;;  %v12181_v0 = vld [vmem:[%s15547_s7 + $0x113] sm:$0xff] }
 0x28b   : > { %13549 = vmatpush3.bf16.msra.mxu1 %v15435_v23  ;;  %v15445_v23 = vld [vmem:[%s17506_s1 + $0x1f0] sm:$0xff]  }
 0x28c   : > { %14189 = vmatpush3.bf16.msra.mxu0 %v15436_v45  ;;  %13550 = vmatprep.subr.bf16.mxu1 %v15437_v58  ;;  %v12133_v45 = vld [vmem:[%s15547_s7 + $0x102] sm:$0xff] }
 0x28d   : > { %14190 = vmatprep.subr.bf16.mxu0 %v15438_v32 }
 0x28e   : > { %13527 = vmatmul.mubr.msk.bf16.gmra.mrb[4].mxu1 %vm311_vm0, %v3498_v33  ;;  %v15447_v33 = vld [vmem:[%s17506_s1 + $0x1f8] sm:$0xff]  }
 0x28f   : > { %14167 = vmatmul.mubr.msk.bf16.gmra.mrb[4].mxu0 %vm311_vm0, %v8603_v36  ;;  %13530 = vmatprep.mubr.msk.bf16.mxu1 %vm311_vm0, %v3499_v37  ;;  %v15448_v36 = vld [vmem:[%s17506_s1 + $0x478] sm:$0xff]   ;;  %v12135_v37 = vld [vmem:[%s15547_s7 + $0x122] sm:$0xff] }
 0x290   : > { %14170 = vmatprep.mubr.msk.bf16.mxu0 %vm311_vm0, %v8604_v46  ;;  %13551 = vmatpush3.bf16.msra.mxu1 %v15437_v58  ;;  %v3753_v58 = vpack.c.bf16 %v12127_v21, %v12126_v28  ;;  %v12136_v46 = vld [vmem:[%s15547_s7 + $0x132] sm:$0xff]  ;;  %v3757_v2 = vpack.c.bf16 %v12135_v37, %v12134_v48  ;;  %v12176_v21 = vld [vmem:[%s15547_s7 + $0xc3] sm:$0xff] }
 0x291   : > { %14191 = vmatpush3.bf16.msra.mxu0 %v15438_v32  ;;  %13552 = vmatprep.subr.bf16.mxu1 %v15439_v59  ;;  %v8859_v32 = vpack.c.bf16 %v12134_v48, %v12133_v45  ;;  %v8860_v5 = vpack.c.bf16 %v12136_v46, %v12135_v37  ;;  %v9112_v57 = vpack.c.bf16 %v12177_v30, %v12176_v21  ;;  %v17030_v37 = vld [vmem:[%s17506_s1 + $0x220] sm:$0xff]  }
 0x292   : > { %14192 = vmatprep.subr.bf16.mxu0 %v15440_v63 }
 0x294   : > { %13553 = vmatpush3.bf16.msra.mxu1 %v15439_v59  ;;  %v12137_v59 = vld [vmem:[%s15547_s7 + $0x142] sm:$0xff] }
 0x295   : > { %14193 = vmatpush3.bf16.msra.mxu0 %v15440_v63  ;;  %13578 = vmatprep.subr.bf16.mxu1 %v16855_v6  ;;  %v12138_v63 = vld [vmem:[%s15547_s7 + $0x152] sm:$0xff]  ;;  %v3758_v11 = vpack.c.bf16 %v12137_v59, %v12136_v46 }
 0x296   : > { %13531 = vmatmul.mubr.msk.bf16.gmra.mrb[8].mxu1 %vm311_vm0, %v3500_v7  ;;  %14218 = vmatprep.subr.bf16.mxu0 %v16860_v8  ;;  %v8861_v7 = vpack.c.bf16 %v12138_v63, %v12137_v59  ;;  %v17035_v59 = vld [vmem:[%s17506_s1 + $0x4a0] sm:$0xff]  }
 0x297   : > { %14171 = vmatmul.mubr.msk.bf16.gmra.mrb[8].mxu0 %vm311_vm0, %v8605_v52  ;;  %13534 = vmatprep.mubr.msk.bf16.mxu1 %vm311_vm0, %v3501_v61  ;;  %v12140_v52 = vld [vmem:[%s15547_s7 + $0x172] sm:$0xff]  ;;  %v12141_v61 = vld [vmem:[%s15547_s7 + $0x182] sm:$0xff] }
 0x298   : > { %14174 = vmatprep.mubr.msk.bf16.mxu0 %vm311_vm0, %v8606_v62  ;;  %v12142_v62 = vld [vmem:[%s15547_s7 + $0x192] sm:$0xff]  ;;  %v3760_v22 = vpack.c.bf16 %v12141_v61, %v12140_v52 }
 0x299   : > { %v8863_v13 = vpack.c.bf16 %v12142_v62, %v12141_v61  ;;  %v3761_v50 = vpack.c.bf16 %v12142_v62, %v12142_v62 }
 0x29e   : > { %13535 = vmatmul.mubr.msk.bf16.gmra.mrb[12].mxu1 %vm311_vm0, %v3502_v14  ;;  %v12143_v14 = vld [vmem:[%s15547_s7 + $0x1a2] sm:$0xff] }
 0x29f   : > { %14175 = vmatmul.mubr.msk.bf16.gmra.mrb[12].mxu0 %vm311_vm0, %v8607_v15  ;;  %13538 = vmatprep.mubr.msk.bf16.mxu1 %vm311_vm0, %v3503_v16  ;;  %v12144_v15 = vld [vmem:[%s15547_s7 + $0x1b2] sm:$0xff]  ;;  %v12145_v16 = vld [vmem:[%s15547_s7 + $0x1c2] sm:$0xff] }
 0x2a0   : > { %14178 = vmatprep.mubr.msk.bf16.mxu0 %vm311_vm0, %v8608_v19  ;;  %v12146_v19 = vld [vmem:[%s15547_s7 + $0x1d2] sm:$0xff]  ;;  %v8864_v20 = vpack.c.bf16 %v12144_v15, %v12143_v14 }
 0x2a1   : > { %v8865_v25 = vpack.c.bf16 %v12146_v19, %v12145_v16 }
 0x2a6   : > { %13539 = vmatmul.mubr.msk.bf16.gmra.mrb[16].mxu1 %vm311_vm0, %v3504_v38  ;;  %v12147_v38 = vld [vmem:[%s15547_s7 + $0x1e2] sm:$0xff] }
 0x2a7   : > { %14179 = vmatmul.mubr.msk.bf16.gmra.mrb[16].mxu0 %vm311_vm0, %v8609_v43  ;;  %13542 = vmatprep.mubr.msk.bf16.mxu1 %vm311_vm0, %v3505_v17  ;;  %v11232_v43 = vld [vmem:[%s15547_s7 + $0x33] sm:$0xff]  ;;  %v11233_v17 = vld [vmem:[%s15547_s7 + $0x43] sm:$0xff]  ;;  %v8866_v53 = vpack.c.bf16 %v12147_v38, %v12147_v38 }
 0x2a8   : > { %14182 = vmatprep.mubr.msk.bf16.mxu0 %vm311_vm0, %v8610_v26  ;;  %v12172_v26 = vld [vmem:[%s15547_s7 + $0x83] sm:$0xff]  ;;  %v4005_v18 = vpack.c.bf16 %v11233_v17, %v11232_v43 }
 0x2a9   : > { %v9110_v28 = vpack.c.bf16 %v12173_v27, %v12172_v26  ;;  %v12220_v38 = vld [vmem:[%s15547_s7 + $0xa0] sm:$0xff] }
 0x2ae   : > { %13543 = vmatmul.mubr.msk.bf16.gmra.mrb[20].mxu1 %vm311_vm0, %v3506_v29  ;;  %v11234_v29 = vld [vmem:[%s15547_s7 + $0x53] sm:$0xff] }
 0x2af   : > { %14183 = vmatmul.mubr.msk.bf16.gmra.mrb[20].mxu0 %vm311_vm0, %v8611_v39  ;;  %13554 = vmatprep.mubr.msk.bf16.mxu1 %vm311_vm0, %v3750_v40  ;;  %v11235_v39 = vld [vmem:[%s15547_s7 + $0x63] sm:$0xff] }
 0x2b0   : > { %14194 = vmatprep.mubr.msk.bf16.mxu0 %vm311_vm0, %v8855_v41  ;;  %v12174_v40 = vld [vmem:[%s15547_s7 + $0xa3] sm:$0xff]  ;;  %v12175_v41 = vld [vmem:[%s15547_s7 + $0xb3] sm:$0xff]  ;;  %v4006_v54 = vpack.c.bf16 %v11235_v39, %v11234_v29 }
 0x2b1   : > { %v9111_v55 = vpack.c.bf16 %v12175_v41, %v12174_v40  ;;  %v4009_v48 = vpack.c.bf16 %v12176_v21, %v12175_v41  ;;  %v11283_v29 = vld [vmem:[%s15547_s7 + $0x80] sm:$0xff] }
 0x2b2   : > { %v12224_v41 = vld [vmem:[%s15547_s7 + $0xe0] sm:$0xff] }
 0x2b6   : > { %13555 = vmatmul.mubr.msk.bf16.vlgmr.msra.gmra.mrb[0].mxu1 %vm311_vm0, %v3751_v56  ;;  %v4007_v56 = vpack.c.bf16 %v12172_v26, %v11236_v42 }
 0x2b7   : > { %14195 = vmatmul.mubr.msk.bf16.vlgmr.msra.gmra.mrb[0].mxu0 %vm311_vm0, %v8856_v31  ;;  %13579 = vmatpush3.bf16.msra.mxu1 %v16855_v6  ;;  %v3756_v6 = vpack.c.bf16 %v12133_v45, %v12132_v12  ;;  %v15452_v31 = vld [vmem:[%s17506_s1 + $0x488] sm:$0xff]   ;;  %v15454_v12 = vld [vmem:[%s17506_s1 + $0x490] sm:$0xff]  }
 0x2b8   : > { %14219 = vmatpush3.bf16.msra.mxu0 %v16860_v8  ;;  %13558 = vmatprep.mubr.msk.bf16.mxu1 %vm311_vm0, %v3752_v34  ;;  %v12139_v8 = vld [vmem:[%s15547_s7 + $0x162] sm:$0xff] }
 0x2b9   : > { %14198 = vmatprep.mubr.msk.bf16.mxu0 %vm311_vm0, %v8857_v35  ;;  %13580 = vmatprep.subr.bf16.mxu1 %v15443_v44  ;;  %v8862_v10 = vpack.c.bf16 %v12140_v52, %v12139_v8  ;;  %v3759_v3 = vpack.c.bf16 %v12139_v8, %v12138_v63  ;;  %v12178_v34 = vld [vmem:[%s15547_s7 + $0xe3] sm:$0xff]  ;;  %v12179_v35 = vld [vmem:[%s15547_s7 + $0xf3] sm:$0xff] }
 0x2ba   : > { %14220 = vmatprep.subr.bf16.mxu0 %v15444_v60  ;;  %v9113_v45 = vpack.c.bf16 %v12179_v35, %v12178_v34  ;;  %v4010_v46 = vpack.c.bf16 %v12178_v34, %v12177_v30  ;;  %v15459_v30 = vld [vmem:[%s17506_s1 + $0x228] sm:$0xff]   ;;  %v12228_v34 = vld [vmem:[%s15547_s7 + $0x120] sm:$0xff] }
 0x2bb   : > { %13581 = vmatpush3.bf16.msra.mxu1 %v15443_v44  ;;  %v15453_v44 = vld [vmem:[%s17506_s1 + $0x210] sm:$0xff]  }
 0x2bc   : > { %14221 = vmatpush3.bf16.msra.mxu0 %v15444_v60  ;;  %13582 = vmatprep.subr.bf16.mxu1 %v15445_v23  ;;  %v17002_v60 = vld [vmem:[%s15547_s7 + $0x103] sm:$0xff] }
 0x2bd   : > { %14222 = vmatprep.subr.bf16.mxu0 %v15446_v49 }
 0x2be   : > { %13559 = vmatmul.mubr.msk.bf16.gmra.mrb[4].mxu1 %vm311_vm0, %v3753_v58  ;;  %v15455_v58 = vld [vmem:[%s17506_s1 + $0x218] sm:$0xff]  }
 0x2bf   : > { %14199 = vmatmul.mubr.msk.bf16.gmra.mrb[4].mxu0 %vm311_vm0, %v8858_v4  ;;  %13562 = vmatprep.mubr.msk.bf16.mxu1 %vm311_vm0, %v3754_v24  ;;  %v15456_v4 = vld [vmem:[%s17506_s1 + $0x498] sm:$0xff]   ;;  %v17020_v24 = vld [vmem:[%s15547_s7 + $0x123] sm:$0xff] }
 0x2c0   : > { %14202 = vmatprep.mubr.msk.bf16.mxu0 %vm311_vm0, %v8859_v32  ;;  %13583 = vmatpush3.bf16.msra.mxu1 %v15445_v23  ;;  %v4008_v23 = vpack.c.bf16 %v12174_v40, %v12173_v27  ;;  %v12183_v32 = vld [vmem:[%s15547_s7 + $0x133] sm:$0xff]  ;;  %v4012_v8 = vpack.c.bf16 %v17020_v24, %v12181_v0 }
 0x2c1   : > { %14223 = vmatpush3.bf16.msra.mxu0 %v15446_v49  ;;  %13584 = vmatprep.subr.bf16.mxu1 %v15447_v33  ;;  %v9114_v49 = vpack.c.bf16 %v12181_v0, %v17002_v60  ;;  %v9115_v63 = vpack.c.bf16 %v12183_v32, %v17020_v24  ;;  %v12223_v40 = vld [vmem:[%s15547_s7 + $0xd0] sm:$0xff] }
 0x2c2   : > { %14224 = vmatprep.subr.bf16.mxu0 %v15448_v36  ;;  %v9368_v21 = vpack.c.bf16 %v12224_v41, %v12223_v40 }
 0x2c4   : > { %13585 = vmatpush3.bf16.msra.mxu1 %v15447_v33  ;;  %v17024_v33 = vld [vmem:[%s15547_s7 + $0x143] sm:$0xff] }
 0x2c5   : > { %14225 = vmatpush3.bf16.msra.mxu0 %v15448_v36  ;;  %13610 = vmatprep.subr.bf16.mxu1 %v16939_v47  ;;  %v12185_v36 = vld [vmem:[%s15547_s7 + $0x153] sm:$0xff]  ;;  %v4013_v61 = vpack.c.bf16 %v17024_v33, %v12183_v32  ;;  %v12232_v32 = vld [vmem:[%s15547_s7 + $0x160] sm:$0xff] }
 0x2c6   : > { %13563 = vmatmul.mubr.msk.bf16.gmra.mrb[8].mxu1 %vm311_vm0, %v3755_v51  ;;  %14250 = vmatprep.subr.bf16.mxu0 %v16944_v1  ;;  %v9116_v51 = vpack.c.bf16 %v12185_v36, %v17024_v33 }
 0x2c7   : > { %14203 = vmatmul.mubr.msk.bf16.gmra.mrb[8].mxu0 %vm311_vm0, %v8860_v5  ;;  %13566 = vmatprep.mubr.msk.bf16.mxu1 %vm311_vm0, %v3756_v6  ;;  %v12187_v5 = vld [vmem:[%s15547_s7 + $0x173] sm:$0xff]  ;;  %v12188_v6 = vld [vmem:[%s15547_s7 + $0x183] sm:$0xff] }
 0x2c8   : > { %14206 = vmatprep.mubr.msk.bf16.mxu0 %vm311_vm0, %v8861_v7  ;;  %v17052_v7 = vld [vmem:[%s15547_s7 + $0x193] sm:$0xff]  ;;  %v17077_v16 = vpack.c.bf16 %v12188_v6, %v12187_v5 }
 0x2c9   : > { %v9118_v62 = vpack.c.bf16 %v17052_v7, %v12188_v6  ;;  %v4016_v43 = vpack.c.bf16 %v17052_v7, %v17052_v7  ;;  %v12235_v6 = vld [vmem:[%s15547_s7 + $0x190] sm:$0xff] }
 0x2ce   : > { %13567 = vmatmul.mubr.msk.bf16.gmra.mrb[12].mxu1 %vm311_vm0, %v3757_v2  ;;  %v17063_v2 = vld [vmem:[%s15547_s7 + $0x1a3] sm:$0xff] }
 0x2cf   : > { %14207 = vmatmul.mubr.msk.bf16.gmra.mrb[12].mxu0 %vm311_vm0, %v8862_v10  ;;  %13570 = vmatprep.mubr.msk.bf16.mxu1 %vm311_vm0, %v3758_v11  ;;  %v17066_v10 = vld [vmem:[%s15547_s7 + $0x1b3] sm:$0xff]  ;;  %v17069_v11 = vld [vmem:[%s15547_s7 + $0x1c3] sm:$0xff] }
 0x2d0   : > { %14210 = vmatprep.mubr.msk.bf16.mxu0 %vm311_vm0, %v8863_v13  ;;  %v17072_v13 = vld [vmem:[%s15547_s7 + $0x1d3] sm:$0xff]  ;;  %v9119_v15 = vpack.c.bf16 %v17066_v10, %v17063_v2 }
 0x2d1   : > { %v9120_v19 = vpack.c.bf16 %v17072_v13, %v17069_v11 }
 0x2d6   : > { %13571 = vmatmul.mubr.msk.bf16.gmra.mrb[16].mxu1 %vm311_vm0, %v3759_v3  ;;  %v17087_v3 = vld [vmem:[%s15547_s7 + $0x1e3] sm:$0xff] }
 0x2d7   : > { %14211 = vmatmul.mubr.msk.bf16.gmra.mrb[16].mxu0 %vm311_vm0, %v8864_v20  ;;  %13574 = vmatprep.mubr.msk.bf16.mxu1 %vm311_vm0, %v3760_v22  ;;  %v11279_v20 = vld [vmem:[%s15547_s7 + $0x40] sm:$0xff]  ;;  %v11280_v22 = vld [vmem:[%s15547_s7 + $0x50] sm:$0xff]  ;;  %v9121_v17 = vpack.c.bf16 %v17087_v3, %v17087_v3 }
 0x2d8   : > { %14214 = vmatprep.mubr.msk.bf16.mxu0 %vm311_vm0, %v8865_v25  ;;  %v12219_v25 = vld [vmem:[%s15547_s7 + $0x90] sm:$0xff]  ;;  %v4261_v26 = vpack.c.bf16 %v11280_v22, %v11279_v20  ;;  %v12240_v22 = vld [vmem:[%s15547_s7 + $0x1e0] sm:$0xff] }
 0x2d9   : > { %v9366_v27 = vpack.c.bf16 %v12220_v38, %v12219_v25  ;;  %v12239_v20 = vld [vmem:[%s15547_s7 + $0x1d0] sm:$0xff] }
 0x2de   : > { %13575 = vmatmul.mubr.msk.bf16.gmra.mrb[20].mxu1 %vm311_vm0, %v3761_v50  ;;  %v11281_v50 = vld [vmem:[%s15547_s7 + $0x60] sm:$0xff] }
 0x2df   : > { %14215 = vmatmul.mubr.msk.bf16.gmra.mrb[20].mxu0 %vm311_vm0, %v8866_v53  ;;  %13586 = vmatprep.mubr.msk.bf16.mxu1 %vm311_vm0, %v4005_v18  ;;  %v11282_v53 = vld [vmem:[%s15547_s7 + $0x70] sm:$0xff] }
 0x2e0   : > { %14226 = vmatprep.mubr.msk.bf16.mxu0 %vm311_vm0, %v9110_v28  ;;  %v12221_v18 = vld [vmem:[%s15547_s7 + $0xb0] sm:$0xff]  ;;  %v12222_v28 = vld [vmem:[%s15547_s7 + $0xc0] sm:$0xff]  ;;  %v4262_v39 = vpack.c.bf16 %v11282_v53, %v11281_v50 }
 0x2e1   : > { %v9367_v42 = vpack.c.bf16 %v12222_v28, %v12221_v18  ;;  %v11327_v50 = vld [vmem:[%s15547_s7 + $0x51] sm:$0xff] }
 0x2e2   : > { %v12266_v53 = vld [vmem:[%s15547_s7 + $0x91] sm:$0xff] }
 0x2e6   : > { %13587 = vmatmul.mubr.msk.bf16.vlgmr.msra.gmra.mrb[0].mxu1 %vm311_vm0, %v4006_v54  ;;  %v4263_v54 = vpack.c.bf16 %v12219_v25, %v11283_v29 }
 0x2e7   : > { %14227 = vmatmul.mubr.msk.bf16.vlgmr.msra.gmra.mrb[0].mxu0 %vm311_vm0, %v9111_v55  ;;  %13611 = vmatpush3.bf16.msra.mxu1 %v16939_v47  ;;  %v4011_v47 = vpack.c.bf16 %v17002_v60, %v12179_v35  ;;  %v15460_v55 = vld [vmem:[%s17506_s1 + $0x4a8] sm:$0xff]   ;;  %v15462_v35 = vld [vmem:[%s17506_s1 + $0x4b0] sm:$0xff]  }
 0x2e8   : > { %14251 = vmatpush3.bf16.msra.mxu0 %v16944_v1  ;;  %13590 = vmatprep.mubr.msk.bf16.mxu1 %vm311_vm0, %v4007_v56  ;;  %v17047_v1 = vld [vmem:[%s15547_s7 + $0x163] sm:$0xff]  ;;  %v12225_v56 = vld [vmem:[%s15547_s7 + $0xf0] sm:$0xff] }
 0x2e9   : > { %14230 = vmatprep.mubr.msk.bf16.mxu0 %vm311_vm0, %v9112_v57  ;;  %13612 = vmatprep.subr.bf16.mxu1 %v15451_v9  ;;  %v9117_v52 = vpack.c.bf16 %v12187_v5, %v17047_v1  ;;  %v4014_v14 = vpack.c.bf16 %v17047_v1, %v12185_v36  ;;  %v12226_v57 = vld [vmem:[%s15547_s7 + $0x100] sm:$0xff] }
 0x2ea   : > { %14252 = vmatprep.subr.bf16.mxu0 %v15452_v31  ;;  %v9369_v0 = vpack.c.bf16 %v12226_v57, %v12225_v56  ;;  %v17147_v36 = vld [vmem:[%s17506_s1 + $0x240] sm:$0xff]  }
 0x2eb   : > { %13613 = vmatpush3.bf16.msra.mxu1 %v15451_v9  ;;  %v15461_v9 = vld [vmem:[%s17506_s1 + $0x230] sm:$0xff]   ;;  %v12234_v5 = vld [vmem:[%s15547_s7 + $0x180] sm:$0xff] }
 0x2ec   : > { %14253 = vmatpush3.bf16.msra.mxu0 %v15452_v31  ;;  %13614 = vmatprep.subr.bf16.mxu1 %v15453_v44  ;;  %v12227_v31 = vld [vmem:[%s15547_s7 + $0x110] sm:$0xff] }
 0x2ed   : > { %14254 = vmatprep.subr.bf16.mxu0 %v15454_v12 }
 0x2ee   : > { %13591 = vmatmul.mubr.msk.bf16.gmra.mrb[4].mxu1 %vm311_vm0, %v4008_v23  ;;  %v9370_v23 = vpack.c.bf16 %v12228_v34, %v12227_v31 }
 0x2ef   : > { %14231 = vmatmul.mubr.msk.bf16.gmra.mrb[4].mxu0 %vm311_vm0, %v9113_v45  ;;  %13594 = vmatprep.mubr.msk.bf16.mxu1 %vm311_vm0, %v4009_v48  ;;  %v15463_v45 = vld [vmem:[%s17506_s1 + $0x238] sm:$0xff]  }
 0x2f0   : > { %14234 = vmatprep.mubr.msk.bf16.mxu0 %vm311_vm0, %v9114_v49  ;;  %13615 = vmatpush3.bf16.msra.mxu1 %v15453_v44  ;;  %v4264_v44 = vpack.c.bf16 %v12221_v18, %v12220_v38  ;;  %v15464_v48 = vld [vmem:[%s17506_s1 + $0x4b8] sm:$0xff]   ;;  %v12229_v49 = vld [vmem:[%s15547_s7 + $0x130] sm:$0xff]  ;;  %v12267_v18 = vld [vmem:[%s15547_s7 + $0xa1] sm:$0xff] }
 0x2f1   : > { %14255 = vmatpush3.bf16.msra.mxu0 %v15454_v12  ;;  %13616 = vmatprep.subr.bf16.mxu1 %v15455_v58  ;;  %v4265_v12 = vpack.c.bf16 %v12223_v40, %v12222_v28  ;;  %v9621_v40 = vpack.c.bf16 %v12267_v18, %v12266_v53 }
 0x2f2   : > { %14256 = vmatprep.subr.bf16.mxu0 %v15456_v4 }
 0x2f4   : > { %13617 = vmatpush3.bf16.msra.mxu1 %v15455_v58  ;;  %v12230_v58 = vld [vmem:[%s15547_s7 + $0x140] sm:$0xff] }
 0x2f5   : > { %14257 = vmatpush3.bf16.msra.mxu0 %v15456_v4  ;;  %13642 = vmatprep.subr.bf16.mxu1 %v17030_v37  ;;  %v12231_v4 = vld [vmem:[%s15547_s7 + $0x150] sm:$0xff] }
 0x2f6   : > { %13595 = vmatmul.mubr.msk.bf16.gmra.mrb[8].mxu1 %vm311_vm0, %v4010_v46  ;;  %14282 = vmatprep.subr.bf16.mxu0 %v17035_v59  ;;  %v17152_v46 = vld [vmem:[%s17506_s1 + $0x4c0] sm:$0xff]  }
 0x2f7   : > { %14235 = vmatmul.mubr.msk.bf16.gmra.mrb[8].mxu0 %vm311_vm0, %v9115_v63  ;;  %13598 = vmatprep.mubr.msk.bf16.mxu1 %vm311_vm0, %v4011_v47  ;;  %v4267_v63 = vpack.c.bf16 %v12227_v31, %v12226_v57  ;;  %v9372_v47 = vpack.c.bf16 %v12232_v32, %v12231_v4  ;;  %v12271_v57 = vld [vmem:[%s15547_s7 + $0xe1] sm:$0xff] }
 0x2f8   : > { %14238 = vmatprep.mubr.msk.bf16.mxu0 %vm311_vm0, %v9116_v51  ;;  %v12233_v51 = vld [vmem:[%s15547_s7 + $0x170] sm:$0xff] }
 0x2f9   : > { %v4270_v25 = vpack.c.bf16 %v12233_v51, %v12232_v32 }
 0x2fe   : > { %13599 = vmatmul.mubr.msk.bf16.gmra.mrb[12].mxu1 %vm311_vm0, %v4012_v8  ;;  %v12236_v8 = vld [vmem:[%s15547_s7 + $0x1a0] sm:$0xff] }
 0x2ff   : > { %14239 = vmatmul.mubr.msk.bf16.gmra.mrb[12].mxu0 %vm311_vm0, %v9117_v52  ;;  %13602 = vmatprep.mubr.msk.bf16.mxu1 %vm311_vm0, %v4013_v61  ;;  %v4268_v52 = vpack.c.bf16 %v12229_v49, %v12228_v34  ;;  %v9373_v61 = vpack.c.bf16 %v12234_v5, %v12233_v51  ;;  %v4272_v28 = vpack.c.bf16 %v12236_v8, %v12236_v8  ;;  %v12279_v51 = vld [vmem:[%s15547_s7 + $0x161] sm:$0xff] }
 0x300   : > { %14242 = vmatprep.mubr.msk.bf16.mxu0 %vm311_vm0, %v9118_v62  ;;  %v4269_v62 = vpack.c.bf16 %v12231_v4, %v12230_v58 }
 0x306   : > { %13603 = vmatmul.mubr.msk.bf16.gmra.mrb[16].mxu1 %vm311_vm0, %v4014_v14  ;;  %v9374_v14 = vpack.c.bf16 %v12236_v8, %v12235_v6  ;;  %v17236_v8 = vld [vmem:[%s17506_s1 + $0x4e0] sm:$0xff]  }
 0x307   : > { %14243 = vmatmul.mubr.msk.bf16.gmra.mrb[16].mxu0 %vm311_vm0, %v9119_v15  ;;  %13606 = vmatprep.mubr.msk.bf16.mxu1 %vm311_vm0, %v17077_v16  ;;  %v12237_v15 = vld [vmem:[%s15547_s7 + $0x1b0] sm:$0xff] }
 0x308   : > { %14246 = vmatprep.mubr.msk.bf16.mxu0 %vm311_vm0, %v9120_v19  ;;  %v12238_v19 = vld [vmem:[%s15547_s7 + $0x1c0] sm:$0xff] }
 0x309   : > { %v9375_v38 = vpack.c.bf16 %v12238_v19, %v12237_v15  ;;  %v12281_v15 = vld [vmem:[%s15547_s7 + $0x181] sm:$0xff]  ;;  %v12282_v19 = vld [vmem:[%s15547_s7 + $0x191] sm:$0xff] }
 0x30e   : > { %13607 = vmatmul.mubr.msk.bf16.gmra.mrb[20].mxu1 %vm311_vm0, %v4016_v43  ;;  %v4271_v43 = vpack.c.bf16 %v12235_v6, %v12234_v5  ;;  %v17231_v5 = vld [vmem:[%s17506_s1 + $0x260] sm:$0xff]  }
 0x30f   : > { %14247 = vmatmul.mubr.msk.bf16.gmra.mrb[20].mxu0 %vm311_vm0, %v9121_v17  ;;  %13618 = vmatprep.mubr.msk.bf16.mxu1 %vm311_vm0, %v4261_v26  ;;  %v9376_v17 = vpack.c.bf16 %v12240_v22, %v12239_v20  ;;  %v12241_v26 = vld [vmem:[%s15547_s7 + $0x1f0] sm:$0xff]  ;;  %v12283_v20 = vld [vmem:[%s15547_s7 + $0x1a1] sm:$0xff] }
 0x310   : > { %14258 = vmatprep.mubr.msk.bf16.mxu0 %vm311_vm0, %v9366_v27  ;;  %v11326_v27 = vld [vmem:[%s15547_s7 + $0x41] sm:$0xff]  ;;  %v9377_v29 = vpack.c.bf16 %v12241_v26, %v12241_v26 }
 0x311   : > { %v12285_v26 = vld [vmem:[%s15547_s7 + $0x1c1] sm:$0xff] }
 0x316   : > { %13619 = vmatmul.mubr.msk.bf16.vlgmr.msra.gmra.mrb[0].mxu1 %vm311_vm0, %v4262_v39  ;;  %v4516_v39 = vpack.c.bf16 %v11327_v50, %v11326_v27  ;;  %v12286_v27 = vld [vmem:[%s15547_s7 + $0x1d1] sm:$0xff]  ;;  %v12287_v50 = vld [vmem:[%s15547_s7 + $0x1e1] sm:$0xff] }
 0x317   : > { %14259 = vmatmul.mubr.msk.bf16.vlgmr.msra.gmra.mrb[0].mxu0 %vm311_vm0, %v9367_v42  ;;  %13643 = vmatpush3.bf16.msra.mxu1 %v17030_v37  ;;  %v4266_v37 = vpack.c.bf16 %v12225_v56, %v12224_v41  ;;  %v11328_v41 = vld [vmem:[%s15547_s7 + $0x61] sm:$0xff]  ;;  %v11329_v42 = vld [vmem:[%s15547_s7 + $0x71] sm:$0xff] }
 0x318   : > { %14283 = vmatpush3.bf16.msra.mxu0 %v17035_v59  ;;  %13622 = vmatprep.mubr.msk.bf16.mxu1 %vm311_vm0, %v4263_v54  ;;  %v9371_v59 = vpack.c.bf16 %v12230_v58, %v12229_v49  ;;  %v12268_v54 = vld [vmem:[%s15547_s7 + $0xb1] sm:$0xff] }
 0x319   : > { %14262 = vmatprep.mubr.msk.bf16.mxu0 %vm311_vm0, %v9368_v21  ;;  %13644 = vmatprep.subr.bf16.mxu1 %v15459_v30  ;;  %v12269_v21 = vld [vmem:[%s15547_s7 + $0xc1] sm:$0xff]  ;;  %v12270_v56 = vld [vmem:[%s15547_s7 + $0xd1] sm:$0xff]  ;;  %v4519_v58 = vpack.c.bf16 %v12268_v54, %v12267_v18 }
 0x31a   : > { %14284 = vmatprep.subr.bf16.mxu0 %v15460_v55  ;;  %v9623_v34 = vpack.c.bf16 %v12271_v57, %v12270_v56  ;;  %v15470_v49 = vld [vmem:[%s17506_s1 + $0x4d0] sm:$0xff]   ;;  %v4520_v32 = vpack.c.bf16 %v12270_v56, %v12269_v21 }
 0x31b   : > { %13645 = vmatpush3.bf16.msra.mxu1 %v15459_v30  ;;  %v11330_v30 = vld [vmem:[%s15547_s7 + $0x81] sm:$0xff] }
 0x31c   : > { %14285 = vmatpush3.bf16.msra.mxu0 %v15460_v55  ;;  %13646 = vmatprep.subr.bf16.mxu1 %v15461_v9  ;;  %v4517_v55 = vpack.c.bf16 %v11329_v42, %v11328_v41  ;;  %v4518_v31 = vpack.c.bf16 %v12266_v53, %v11330_v30  ;;  %v11374_v41 = vld [vmem:[%s15547_s7 + $0x52] sm:$0xff] }
 0x31d   : > { %14286 = vmatprep.subr.bf16.mxu0 %v15462_v35  ;;  %v12313_v42 = vld [vmem:[%s15547_s7 + $0x92] sm:$0xff] }
 0x31e   : > { %13623 = vmatmul.mubr.msk.bf16.gmra.mrb[4].mxu1 %vm311_vm0, %v4264_v44  ;;  %v15468_v44 = vld [vmem:[%s17506_s1 + $0x4c8] sm:$0xff]  }
 0x31f   : > { %14263 = vmatmul.mubr.msk.bf16.gmra.mrb[4].mxu0 %vm311_vm0, %v9369_v0  ;;  %13626 = vmatprep.mubr.msk.bf16.mxu1 %vm311_vm0, %v4265_v12  ;;  %v12272_v0 = vld [vmem:[%s15547_s7 + $0xf1] sm:$0xff]  ;;  %v12273_v12 = vld [vmem:[%s15547_s7 + $0x101] sm:$0xff] }
 0x320   : > { %14266 = vmatprep.mubr.msk.bf16.mxu0 %vm311_vm0, %v9370_v23  ;;  %13647 = vmatpush3.bf16.msra.mxu1 %v15461_v9  ;;  %v9622_v9 = vpack.c.bf16 %v12269_v21, %v12268_v54  ;;  %v15469_v23 = vld [vmem:[%s17506_s1 + $0x250] sm:$0xff]   ;;  %v9624_v4 = vpack.c.bf16 %v12273_v12, %v12272_v0  ;;  %v4521_v6 = vpack.c.bf16 %v12272_v0, %v12271_v57  ;;  %v12314_v54 = vld [vmem:[%s15547_s7 + $0xa2] sm:$0xff] }
 0x321   : > { %14287 = vmatpush3.bf16.msra.mxu0 %v15462_v35  ;;  %13648 = vmatprep.subr.bf16.mxu1 %v15463_v45  ;;  %v15467_v35 = vld [vmem:[%s17506_s1 + $0x248] sm:$0xff]   ;;  %v4527_v21 = vpack.c.bf16 %v12283_v20, %v12283_v20  ;;  %v9876_v56 = vpack.c.bf16 %v12314_v54, %v12313_v42  ;;  %v12317_v0 = vld [vmem:[%s15547_s7 + $0xd2] sm:$0xff] }
 0x322   : > { %14288 = vmatprep.subr.bf16.mxu0 %v15464_v48  ;;  %v11375_v57 = vld [vmem:[%s15547_s7 + $0x62] sm:$0xff] }
 0x324   : > { %13649 = vmatpush3.bf16.msra.mxu1 %v15463_v45  ;;  %v12274_v45 = vld [vmem:[%s15547_s7 + $0x111] sm:$0xff] }
 0x325   : > { %14289 = vmatpush3.bf16.msra.mxu0 %v15464_v48  ;;  %13674 = vmatprep.subr.bf16.mxu1 %v17147_v36  ;;  %v12275_v48 = vld [vmem:[%s15547_s7 + $0x121] sm:$0xff] }
 0x326   : > { %13627 = vmatmul.mubr.msk.bf16.gmra.mrb[8].mxu1 %vm311_vm0, %v4266_v37  ;;  %14314 = vmatprep.subr.bf16.mxu0 %v17152_v46  ;;  %v15471_v37 = vld [vmem:[%s17506_s1 + $0x258] sm:$0xff]  }
 0x327   : > { %14267 = vmatmul.mubr.msk.bf16.gmra.mrb[8].mxu0 %vm311_vm0, %v9371_v59  ;;  %13630 = vmatprep.mubr.msk.bf16.mxu1 %vm311_vm0, %v4267_v63  ;;  %v12276_v59 = vld [vmem:[%s15547_s7 + $0x131] sm:$0xff]  ;;  %v12277_v63 = vld [vmem:[%s15547_s7 + $0x141] sm:$0xff] }
 0x328   : > { %14270 = vmatprep.mubr.msk.bf16.mxu0 %vm311_vm0, %v9372_v47  ;;  %v12278_v47 = vld [vmem:[%s15547_s7 + $0x151] sm:$0xff]  ;;  %v4523_v22 = vpack.c.bf16 %v12276_v59, %v12275_v48 }
 0x32e   : > { %13631 = vmatmul.mubr.msk.bf16.gmra.mrb[12].mxu1 %vm311_vm0, %v4268_v52  ;;  %v9626_v52 = vpack.c.bf16 %v12277_v63, %v12276_v59  ;;  %v15478_v59 = vld [vmem:[%s17506_s1 + $0x4f0] sm:$0xff]  }
 0x32f   : > { %14271 = vmatmul.mubr.msk.bf16.gmra.mrb[12].mxu0 %vm311_vm0, %v9373_v61  ;;  %13634 = vmatprep.mubr.msk.bf16.mxu1 %vm311_vm0, %v4269_v62  ;;  %v4522_v61 = vpack.c.bf16 %v12274_v45, %v12273_v12  ;;  %v9627_v62 = vpack.c.bf16 %v12279_v51, %v12278_v47  ;;  %v12318_v12 = vld [vmem:[%s15547_s7 + $0xe2] sm:$0xff] }
 0x330   : > { %14274 = vmatprep.mubr.msk.bf16.mxu0 %vm311_vm0, %v9374_v14  ;;  %v12280_v14 = vld [vmem:[%s15547_s7 + $0x171] sm:$0xff] }
 0x331   : > { %v4525_v53 = vpack.c.bf16 %v12280_v14, %v12279_v51 }
 0x336   : > { %13635 = vmatmul.mubr.msk.bf16.gmra.mrb[16].mxu1 %vm311_vm0, %v4270_v25  ;;  %v9628_v25 = vpack.c.bf16 %v12281_v15, %v12280_v14  ;;  %v12326_v14 = vld [vmem:[%s15547_s7 + $0x162] sm:$0xff] }
 0x337   : > { %14275 = vmatmul.mubr.msk.bf16.gmra.mrb[16].mxu0 %vm311_vm0, %v9375_v38  ;;  %13638 = vmatprep.mubr.msk.bf16.mxu1 %vm311_vm0, %v4271_v43  ;;  %v4524_v38 = vpack.c.bf16 %v12278_v47, %v12277_v63  ;;  %v9629_v43 = vpack.c.bf16 %v12283_v20, %v12282_v19 }
 0x338   : > { %14278 = vmatprep.mubr.msk.bf16.mxu0 %vm311_vm0, %v9376_v17  ;;  %v12284_v17 = vld [vmem:[%s15547_s7 + $0x1b1] sm:$0xff] }
 0x339   : > { %v9630_v18 = vpack.c.bf16 %v12285_v26, %v12284_v17  ;;  %v12330_v17 = vld [vmem:[%s15547_s7 + $0x1a2] sm:$0xff] }
 0x33e   : > { %13639 = vmatmul.mubr.msk.bf16.gmra.mrb[20].mxu1 %vm311_vm0, %v4272_v28  ;;  %v4526_v28 = vpack.c.bf16 %v12282_v19, %v12281_v15 }
 0x33f   : > { %14279 = vmatmul.mubr.msk.bf16.gmra.mrb[20].mxu0 %vm311_vm0, %v9377_v29  ;;  %13650 = vmatprep.mubr.msk.bf16.mxu1 %vm311_vm0, %v4516_v39  ;;  %v9631_v29 = vpack.c.bf16 %v12287_v50, %v12286_v27  ;;  %v12288_v39 = vld [vmem:[%s15547_s7 + $0x1f1] sm:$0xff] }
 0x340   : > { %14290 = vmatprep.mubr.msk.bf16.mxu0 %vm311_vm0, %v9621_v40  ;;  %v11373_v40 = vld [vmem:[%s15547_s7 + $0x42] sm:$0xff]  ;;  %v9632_v30 = vpack.c.bf16 %v12288_v39, %v12288_v39 }
 0x341   : > { %v12334_v39 = vld [vmem:[%s15547_s7 + $0x1e2] sm:$0xff] }
 0x346   : > { %13651 = vmatmul.mubr.msk.bf16.vlgmr.msra.gmra.mrb[0].mxu1 %vm311_vm0, %v4517_v55  ;;  %v4771_v55 = vpack.c.bf16 %v11374_v41, %v11373_v40 }
 0x347   : > { %14291 = vmatmul.mubr.msk.bf16.vlgmr.msra.gmra.mrb[0].mxu0 %vm311_vm0, %v9622_v9  ;;  %13675 = vmatpush3.bf16.msra.mxu1 %v17147_v36  ;;  %v9625_v36 = vpack.c.bf16 %v12275_v48, %v12274_v45  ;;  %v11376_v9 = vld [vmem:[%s15547_s7 + $0x72] sm:$0xff]  ;;  %v9878_v48 = vpack.c.bf16 %v12318_v12, %v12317_v0 }
 0x348   : > { %14315 = vmatpush3.bf16.msra.mxu0 %v17152_v46  ;;  %13654 = vmatprep.mubr.msk.bf16.mxu1 %vm311_vm0, %v4518_v31  ;;  %v15472_v46 = vld [vmem:[%s17506_s1 + $0x4d8] sm:$0xff]  }
 0x349   : > { %14294 = vmatprep.mubr.msk.bf16.mxu0 %vm311_vm0, %v9623_v34  ;;  %13676 = vmatprep.subr.bf16.mxu1 %v15467_v35  ;;  %v12315_v31 = vld [vmem:[%s15547_s7 + $0xb2] sm:$0xff]  ;;  %v12316_v34 = vld [vmem:[%s15547_s7 + $0xc2] sm:$0xff] }
 0x34a   : > { %14316 = vmatprep.subr.bf16.mxu0 %v15468_v44  ;;  %v4774_v63 = vpack.c.bf16 %v12315_v31, %v12314_v54  ;;  %v4775_v51 = vpack.c.bf16 %v12317_v0, %v12316_v34  ;;  %v11423_v0 = vld [vmem:[%s15547_s7 + $0x73] sm:$0xff] }
 0x34b   : > { %13677 = vmatpush3.bf16.msra.mxu1 %v15467_v35  ;;  %v11377_v35 = vld [vmem:[%s15547_s7 + $0x82] sm:$0xff] }
 0x34c   : > { %14317 = vmatpush3.bf16.msra.mxu0 %v15468_v44  ;;  %13678 = vmatprep.subr.bf16.mxu1 %v15469_v23  ;;  %v4772_v44 = vpack.c.bf16 %v11376_v9, %v11375_v57  ;;  %v4773_v45 = vpack.c.bf16 %v12313_v42, %v11377_v35  ;;  %v12361_v57 = vld [vmem:[%s15547_s7 + $0xa3] sm:$0xff]  ;;  %v4782_v9 = vpack.c.bf16 %v12330_v17, %v12330_v17 }
 0x34d   : > { %14318 = vmatprep.subr.bf16.mxu0 %v15470_v49 }
 0x34e   : > { %13655 = vmatmul.mubr.msk.bf16.gmra.mrb[4].mxu1 %vm311_vm0, %v4519_v58  ;;  %v15476_v58 = vld [vmem:[%s17506_s1 + $0x4e8] sm:$0xff]  }
 0x34f   : > { %14295 = vmatmul.mubr.msk.bf16.gmra.mrb[4].mxu0 %vm311_vm0, %v9624_v4  ;;  %13658 = vmatprep.mubr.msk.bf16.mxu1 %vm311_vm0, %v4520_v32  ;;  %v12319_v4 = vld [vmem:[%s15547_s7 + $0xf2] sm:$0xff]  ;;  %v12320_v32 = vld [vmem:[%s15547_s7 + $0x102] sm:$0xff] }
 0x350   : > { %14298 = vmatprep.mubr.msk.bf16.mxu0 %vm311_vm0, %v9625_v36  ;;  %13679 = vmatpush3.bf16.msra.mxu1 %v15469_v23  ;;  %v9877_v23 = vpack.c.bf16 %v12316_v34, %v12315_v31  ;;  %v15477_v36 = vld [vmem:[%s17506_s1 + $0x270] sm:$0xff]   ;;  %v9879_v47 = vpack.c.bf16 %v12320_v32, %v12319_v4  ;;  %v4776_v15 = vpack.c.bf16 %v12319_v4, %v12318_v12 }
 0x351   : > { %14319 = vmatpush3.bf16.msra.mxu0 %v15470_v49  ;;  %13680 = vmatprep.subr.bf16.mxu1 %v15471_v37  ;;  %v15475_v49 = vld [vmem:[%s17506_s1 + $0x268] sm:$0xff]   ;;  %v12362_v12 = vld [vmem:[%s15547_s7 + $0xb3] sm:$0xff] }
 0x352   : > { %14320 = vmatprep.subr.bf16.mxu0 %v15472_v46 }
 0x354   : > { %13681 = vmatpush3.bf16.msra.mxu1 %v15471_v37  ;;  %v12321_v37 = vld [vmem:[%s15547_s7 + $0x112] sm:$0xff] }
 0x355   : > { %14321 = vmatpush3.bf16.msra.mxu0 %v15472_v46  ;;  %13706 = vmatprep.subr.bf16.mxu1 %v17231_v5  ;;  %v12322_v46 = vld [vmem:[%s15547_s7 + $0x122] sm:$0xff]  ;;  %v4777_v20 = vpack.c.bf16 %v12321_v37, %v12320_v32 }
 0x356   : > { %13659 = vmatmul.mubr.msk.bf16.gmra.mrb[8].mxu1 %vm311_vm0, %v4521_v6  ;;  %14346 = vmatprep.subr.bf16.mxu0 %v17236_v8  ;;  %v15479_v6 = vld [vmem:[%s17506_s1 + $0x278] sm:$0xff]  }
 0x357   : > { %14299 = vmatmul.mubr.msk.bf16.gmra.mrb[8].mxu0 %vm311_vm0, %v9626_v52  ;;  %13662 = vmatprep.mubr.msk.bf16.mxu1 %vm311_vm0, %v4522_v61  ;;  %v12323_v52 = vld [vmem:[%s15547_s7 + $0x132] sm:$0xff]  ;;  %v12324_v61 = vld [vmem:[%s15547_s7 + $0x142] sm:$0xff] }
 0x358   : > { %14302 = vmatprep.mubr.msk.bf16.mxu0 %vm311_vm0, %v9627_v62  ;;  %v12325_v62 = vld [vmem:[%s15547_s7 + $0x152] sm:$0xff]  ;;  %v9881_v19 = vpack.c.bf16 %v12324_v61, %v12323_v52  ;;  %v4778_v26 = vpack.c.bf16 %v12323_v52, %v12322_v46 }
 0x359   : > { %v4779_v50 = vpack.c.bf16 %v12325_v62, %v12324_v61 }
 0x35e   : > { %13663 = vmatmul.mubr.msk.bf16.gmra.mrb[12].mxu1 %vm311_vm0, %v4523_v22  ;;  %v9882_v22 = vpack.c.bf16 %v12326_v14, %v12325_v62  ;;  %v11434_v62 = vld [vmem:[%s15547_s7 + $0x123] sm:$0xff] }
 0x35f   : > { %14303 = vmatmul.mubr.msk.bf16.gmra.mrb[12].mxu0 %vm311_vm0, %v9628_v25  ;;  %13666 = vmatprep.mubr.msk.bf16.mxu1 %vm311_vm0, %v4524_v38  ;;  %v12327_v25 = vld [vmem:[%s15547_s7 + $0x172] sm:$0xff]  ;;  %v12328_v38 = vld [vmem:[%s15547_s7 + $0x182] sm:$0xff] }
 0x360   : > { %14306 = vmatprep.mubr.msk.bf16.mxu0 %vm311_vm0, %v9629_v43  ;;  %v12329_v43 = vld [vmem:[%s15547_s7 + $0x192] sm:$0xff]  ;;  %v9883_v27 = vpack.c.bf16 %v12328_v38, %v12327_v25  ;;  %v4780_v40 = vpack.c.bf16 %v12327_v25, %v12326_v14  ;;  %v11436_v14 = vld [vmem:[%s15547_s7 + $0x143] sm:$0xff] }
 0x361   : > { %v4781_v42 = vpack.c.bf16 %v12329_v43, %v12328_v38  ;;  %v11441_v25 = vld [vmem:[%s15547_s7 + $0x193] sm:$0xff] }
 0x366   : > { %13667 = vmatmul.mubr.msk.bf16.gmra.mrb[16].mxu1 %vm311_vm0, %v4525_v53  ;;  %v9884_v53 = vpack.c.bf16 %v12330_v17, %v12329_v43  ;;  %v10141_v43 = vpack.c.bf16 %v17087_v3, %v17072_v13  ;;  %v12382_v17 = vld [vmem:[%s15547_s7 + $0x1f3] sm:$0xff]  ;;  %v17398_v13 = vld [vmem:[%s17507_s2] ss:$0 sm:$0xff] }
 0x367   : > { %14307 = vmatmul.mubr.msk.bf16.gmra.mrb[16].mxu0 %vm311_vm0, %v9630_v18  ;;  %13670 = vmatprep.mubr.msk.bf16.mxu1 %vm311_vm0, %v4526_v28  ;;  %v12331_v18 = vld [vmem:[%s15547_s7 + $0x1b2] sm:$0xff]  ;;  %v12332_v28 = vld [vmem:[%s15547_s7 + $0x1c2] sm:$0xff] }
 0x368   : > { %14310 = vmatprep.mubr.msk.bf16.mxu0 %vm311_vm0, %v9631_v29  ;;  %v12333_v29 = vld [vmem:[%s15547_s7 + $0x1d2] sm:$0xff]  ;;  %v9885_v41 = vpack.c.bf16 %v12332_v28, %v12331_v18  ;;  %v17403_v28 = vld [vmem:[%s17508_s3] ss:$0 sm:$0xff] }
 0x369   : > { %v9886_v54 = vpack.c.bf16 %v12334_v39, %v12333_v29 }
 0x36e   : > { %13671 = vmatmul.mubr.msk.bf16.gmra.mrb[20].mxu1 %vm311_vm0, %v4527_v21  ;;  %v12335_v21 = vld [vmem:[%s15547_s7 + $0x1f2] sm:$0xff] }
 0x36f   : > { %14311 = vmatmul.mubr.msk.bf16.gmra.mrb[20].mxu0 %vm311_vm0, %v9632_v30  ;;  %13682 = vmatprep.mubr.msk.bf16.mxu1 %vm311_vm0, %v4771_v55  ;;  %v11420_v30 = vld [vmem:[%s15547_s7 + $0x43] sm:$0xff]  ;;  %v11421_v55 = vld [vmem:[%s15547_s7 + $0x53] sm:$0xff]  ;;  %v9887_v31 = vpack.c.bf16 %v12335_v21, %v12335_v21 }
 0x370   : > { %14322 = vmatprep.mubr.msk.bf16.mxu0 %vm311_vm0, %v9876_v56  ;;  %v12360_v56 = vld [vmem:[%s15547_s7 + $0x93] sm:$0xff]  ;;  %v5026_v34 = vpack.c.bf16 %v11421_v55, %v11420_v30 }
 0x371   : > { %v10131_v35 = vpack.c.bf16 %v12361_v57, %v12360_v56 }
 0x376   : > { %13683 = vmatmul.mubr.msk.bf16.vlgmr.msra.gmra.mrb[0].mxu1 %vm311_vm0, %v4772_v44  ;;  %v11422_v44 = vld [vmem:[%s15547_s7 + $0x63] sm:$0xff] }
 0x377   : > { %14323 = vmatmul.mubr.msk.bf16.vlgmr.msra.gmra.mrb[0].mxu0 %vm311_vm0, %v9877_v23  ;;  %13707 = vmatpush3.bf16.msra.mxu1 %v17231_v5  ;;  %v9880_v5 = vpack.c.bf16 %v12322_v46, %v12321_v37  ;;  %v12363_v23 = vld [vmem:[%s15547_s7 + $0xc3] sm:$0xff]  ;;  %v12366_v37 = vld [vmem:[%s15547_s7 + $0xf3] sm:$0xff] }
 0x378   : > { %14347 = vmatpush3.bf16.msra.mxu0 %v17236_v8  ;;  %13686 = vmatprep.mubr.msk.bf16.mxu1 %vm311_vm0, %v4773_v45  ;;  %v15480_v8 = vld [vmem:[%s17506_s1 + $0x4f8] sm:$0xff]   ;;  %v11424_v45 = vld [vmem:[%s15547_s7 + $0x83] sm:$0xff]  ;;  %v10132_v4 = vpack.c.bf16 %v12363_v23, %v12362_v12 }
 0x379   : > { %14326 = vmatprep.mubr.msk.bf16.mxu0 %vm311_vm0, %v9878_v48  ;;  %13708 = vmatprep.subr.bf16.mxu1 %v15475_v49  ;;  %v12364_v48 = vld [vmem:[%s15547_s7 + $0xd3] sm:$0xff]  ;;  %v5028_v32 = vpack.c.bf16 %v12360_v56, %v11424_v45 }
 0x37a   : > { %14348 = vmatprep.subr.bf16.mxu0 %v15476_v58  ;;  %v12368_v46 = vld [vmem:[%s15547_s7 + $0x113] sm:$0xff] }
 0x37b   : > { %13709 = vmatpush3.bf16.msra.mxu1 %v15475_v49  ;;  %v12365_v49 = vld [vmem:[%s15547_s7 + $0xe3] sm:$0xff] }
 0x37c   : > { %14349 = vmatpush3.bf16.msra.mxu0 %v15476_v58  ;;  %13710 = vmatprep.subr.bf16.mxu1 %v15477_v36  ;;  %v5027_v58 = vpack.c.bf16 %v11423_v0, %v11422_v44  ;;  %v5031_v52 = vpack.c.bf16 %v12366_v37, %v12365_v49 }
 0x37d   : > { %14350 = vmatprep.subr.bf16.mxu0 %v15478_v59 }
 0x37e   : > { %13687 = vmatmul.mubr.msk.bf16.gmra.mrb[4].mxu1 %vm311_vm0, %v4774_v63  ;;  %v10134_v63 = vpack.c.bf16 %v17002_v60, %v12366_v37 }
 0x37f   : > { %14327 = vmatmul.mubr.msk.bf16.gmra.mrb[4].mxu0 %vm311_vm0, %v9879_v47  ;;  %13690 = vmatprep.mubr.msk.bf16.mxu1 %vm311_vm0, %v4775_v51  ;;  %v5030_v47 = vpack.c.bf16 %v12364_v48, %v12363_v23  ;;  %v10135_v51 = vpack.c.bf16 %v17020_v24, %v12368_v46 }
 0x380   : > { %14330 = vmatprep.mubr.msk.bf16.mxu0 %vm311_vm0, %v9880_v5  ;;  %13711 = vmatpush3.bf16.msra.mxu1 %v15477_v36  ;;  %v10133_v36 = vpack.c.bf16 %v12365_v49, %v12364_v48  ;;  %v12370_v5 = vld [vmem:[%s15547_s7 + $0x133] sm:$0xff] }
 0x381   : > { %14351 = vmatpush3.bf16.msra.mxu0 %v15478_v59  ;;  %13712 = vmatprep.subr.bf16.mxu1 %v15479_v6  ;;  %v5029_v59 = vpack.c.bf16 %v12362_v12, %v12361_v57  ;;  %v10136_v60 = vpack.c.bf16 %v17024_v33, %v12370_v5  ;;  %v10139_v33 = vpack.c.bf16 %v17063_v2, %v17052_v7 }
 0x382   : > { %14352 = vmatprep.subr.bf16.mxu0 %v15480_v8  ;;  %v10140_v7 = vpack.c.bf16 %v17069_v11, %v17066_v10 }
 0x384   : > { %13713 = vmatpush3.bf16.msra.mxu1 %v15479_v6  ;;  %v11432_v6 = vld [vmem:[%s15547_s7 + $0x103] sm:$0xff] }
 0x385   : > { %14353 = vmatpush3.bf16.msra.mxu0 %v15480_v8  ;;  %v12372_v8 = vld [vmem:[%s15547_s7 + $0x153] sm:$0xff]  ;;  %v5032_v61 = vpack.c.bf16 %v12368_v46, %v11432_v6 }
 0x386   : > { %13691 = vmatmul.mubr.msk.bf16.gmra.mrb[8].mxu1 %vm311_vm0, %v4776_v15  ;;  %v10137_v24 = vpack.c.bf16 %v17047_v1, %v12372_v8  ;;  %v5033_v15 = vpack.c.bf16 %v12370_v5, %v11434_v62  ;;  %v11438_v1 = vld [vmem:[%s15547_s7 + $0x163] sm:$0xff] }
 0x387   : > { %14331 = vmatmul.mubr.msk.bf16.gmra.mrb[8].mxu0 %vm311_vm0, %v9881_v19  ;;  %13694 = vmatprep.mubr.msk.bf16.mxu1 %vm311_vm0, %v4777_v20  ;;  %v5034_v19 = vpack.c.bf16 %v12372_v8, %v11436_v14  ;;  %v11439_v20 = vld [vmem:[%s15547_s7 + $0x173] sm:$0xff] }
 0x388   : > { %14334 = vmatprep.mubr.msk.bf16.mxu0 %vm311_vm0, %v9882_v22  ;;  %v11440_v22 = vld [vmem:[%s15547_s7 + $0x183] sm:$0xff]  ;;  %v5035_v38 = vpack.c.bf16 %v11439_v20, %v11438_v1 }
 0x389   : > { %v5036_v2 = vpack.c.bf16 %v11441_v25, %v11440_v22 }
 0x38e   : > { %13695 = vmatmul.mubr.msk.bf16.gmra.mrb[12].mxu1 %vm311_vm0, %v4778_v26 }
 0x38f   : > { %14335 = vmatmul.mubr.msk.bf16.gmra.mrb[12].mxu0 %vm311_vm0, %v9883_v27  ;;  %13698 = vmatprep.mubr.msk.bf16.mxu1 %vm311_vm0, %v4779_v50  ;;  %v10142_v27 = vpack.c.bf16 %v12382_v17, %v12382_v17 }
 0x390   : > { %14338 = vmatprep.mubr.msk.bf16.mxu0 %vm311_vm0, %v9884_v53 }
 0x396   : > { %13699 = vmatmul.mubr.msk.bf16.gmra.mrb[16].mxu1 %vm311_vm0, %v4780_v40 }
 0x397   : > { %14339 = vmatmul.mubr.msk.bf16.gmra.mrb[16].mxu0 %vm311_vm0, %v9885_v41  ;;  %13702 = vmatprep.mubr.msk.bf16.mxu1 %vm311_vm0, %v4781_v42 }
 0x398   : > { %14342 = vmatprep.mubr.msk.bf16.mxu0 %vm311_vm0, %v9886_v54 }
 0x39e   : > { %13703 = vmatmul.mubr.msk.bf16.gmra.mrb[20].mxu1 %vm311_vm0, %v4782_v9 }
 0x39f   : > { %14343 = vmatmul.mubr.msk.bf16.gmra.mrb[20].mxu0 %vm311_vm0, %v9887_v31  ;;  %13714 = vmatprep.mubr.msk.bf16.mxu1 %vm311_vm0, %v5026_v34 }
 0x3a0   : > { %14354 = vmatprep.mubr.msk.bf16.mxu0 %vm311_vm0, %v10131_v35 }
 0x3a6   : > { %13715 = vmatmul.mubr.msk.bf16.vlgmr.msra.gmra.mrb[0].mxu1 %vm311_vm0, %v5027_v58 }
 0x3a7   : > { %14355 = vmatmul.mubr.msk.bf16.vlgmr.msra.gmra.mrb[0].mxu0 %vm311_vm0, %v10132_v4  ;;  %13718 = vmatprep.mubr.msk.bf16.mxu1 %vm311_vm0, %v5028_v32 }
 0x3a8   : > { %14358 = vmatprep.mubr.msk.bf16.mxu0 %vm311_vm0, %v10133_v36 }
 0x3ae   : > { %13719 = vmatmul.mubr.msk.bf16.gmra.mrb[4].mxu1 %vm311_vm0, %v5029_v59 }
 0x3af   : > { %14359 = vmatmul.mubr.msk.bf16.gmra.mrb[4].mxu0 %vm311_vm0, %v10134_v63  ;;  %13722 = vmatprep.mubr.msk.bf16.mxu1 %vm311_vm0, %v5030_v47 }
 0x3b0   : > { %14362 = vmatprep.mubr.msk.bf16.mxu0 %vm311_vm0, %v10135_v51 }
 0x3b6   : > { %13723 = vmatmul.mubr.msk.bf16.gmra.mrb[8].mxu1 %vm311_vm0, %v5031_v52 }
 0x3b7   : > { %14363 = vmatmul.mubr.msk.bf16.gmra.mrb[8].mxu0 %vm311_vm0, %v10136_v60  ;;  %13726 = vmatprep.mubr.msk.bf16.mxu1 %vm311_vm0, %v5032_v61 }
 0x3b8   : > { %14366 = vmatprep.mubr.msk.bf16.mxu0 %vm311_vm0, %v10137_v24 }
 0x3be   : > { %13727 = vmatmul.mubr.msk.bf16.gmra.mrb[12].mxu1 %vm311_vm0, %v5033_v15 }
 0x3bf   : > { %14367 = vmatmul.mubr.msk.bf16.gmra.mrb[12].mxu0 %vm311_vm0, %v17077_v16  ;;  %13730 = vmatprep.mubr.msk.bf16.mxu1 %vm311_vm0, %v5034_v19  ;;  %v11442_v16 = vld [vmem:[%s15547_s7 + $0x1a3] sm:$0xff] }
 0x3c0   : > { %14370 = vmatprep.mubr.msk.bf16.mxu0 %vm311_vm0, %v10139_v33  ;;  %v5037_v26 = vpack.c.bf16 %v11442_v16, %v11442_v16 }
 0x3c6   : > { %13731 = vmatmul.mubr.msk.bf16.gmra.mrb[16].mxu1 %vm311_vm0, %v5035_v38 }
 0x3c7   : > { %14371 = vmatmul.mubr.msk.bf16.gmra.mrb[16].mxu0 %vm311_vm0, %v10140_v7  ;;  %13734 = vmatprep.mubr.msk.bf16.mxu1 %vm311_vm0, %v5036_v2 }
 0x3c8   : > { %14374 = vmatprep.mubr.msk.bf16.mxu0 %vm311_vm0, %v10141_v43 }
 0x3ce   : > { %13735 = vmatmul.mubr.msk.bf16.gmra.mrb[20].mxu1 %vm311_vm0, %v5037_v26 }
 0x3cf   : > { %14375 = vmatmul.mubr.msk.bf16.gmra.mrb[20].mxu0 %vm311_vm0, %v10142_v27 }
 0x479   : > { %v13716_v10 = vpop.f32.mrb[0].mxu1 }
 0x47a   : > { %v14356_v11 = vpop.f32.mrb[0].mxu0  ;;  %v5141_v3 = vpop.f32.mrb[1].mxu1 }
 0x47b   : > { %v14378_v50 = vadd.f32 %v14356_v11, %v13716_v10  ;;  %v10246_v53 = vpop.f32.mrb[1].mxu0  ;;  %v13717_v18 = vpop.f32.mrb[2].mxu1 }
 0x47c   : > { %v14379_v29 = vadd.f32 %v10246_v53, %v5141_v3  ;;  %v14357_v39 = vpop.f32.mrb[2].mxu0  ;;  %v5144_v40 = vpop.f32.mrb[3].mxu1 }
 0x47d   : > { %v10372_v41 = vmul.f32 %v14378_v50, %v17398_v13  ;;  %v14380_v42 = vadd.f32 %v14357_v39, %v13717_v18  ;;  %v10249_v54 = vpop.f32.mrb[3].mxu0 }
 0x47e   : > { %v10370_v21 = vmul.f32 %v14379_v29, %v17398_v13  ;;  %v14381_v30 = vadd.f32 %v10249_v54, %v5144_v40 }
 0x47f   : > { %v10402_v55 = vadd.f32 %v17403_v28, %v10372_v41  ;;  %v10373_v56 = vmul.f32 %v14380_v42, %v17398_v13 }
 0x480   : > { %v10400_v57 = vadd.f32 %v17403_v28, %v10370_v21  ;;  %v10371_v9 = vmul.f32 %v14381_v30, %v17398_v13 }
 0x481   : > { %v10425_v31 = vmax.f32 %v10402_v55, 0.0  ;;  %v10403_v34 = vadd.f32 %v17403_v28, %v10373_v56  ;;  %v13720_v35 = vpop.f32.mrb[4].mxu1 }
 0x482   : > { %v10423_v44 = vmax.f32 %v10400_v57, 0.0  ;;  %v10401_v0 = vadd.f32 %v17403_v28, %v10371_v9  ;;  %v14360_v12 = vpop.f32.mrb[4].mxu0  ;;  %v5157_v23 = vpop.f32.mrb[5].mxu1 }
 0x483   : > { %v12437_v45 = vpack.c.bf16 %v10425_v31, %v10425_v31  ;;  %v10426_v48 = vmax.f32 %v10403_v34, 0.0  ;;  %v14382_v49 = vadd.f32 %v14360_v12, %v13720_v35  ;;  %v10262_v58 = vpop.f32.mrb[5].mxu0  ;;  %v13721_v4 = vpop.f32.mrb[6].mxu1 }
 0x484   : > { %v12435_v32 = vpack.c.bf16 %v10423_v44, %v10423_v44  ;;  %v10424_v36 = vmax.f32 %v10401_v0, 0.0  ;;  %v14383_v37 = vadd.f32 %v10262_v58, %v5157_v23  ;;  %v14361_v46 = vpop.f32.mrb[6].mxu0  ;;  %v5160_v59 = vpop.f32.mrb[7].mxu1 }
 0x485   : > { %10542 = vst.msk [vmem:[%s17415_s25 + $0x8] sm:$0xf] %vm10539_vm1, %v12437_v45  ;;  %v12438_v63 = vpack.c.bf16 %v10426_v48, %v10426_v48  ;;  %v10376_v47 = vmul.f32 %v14382_v49, %v17398_v13  ;;  %v14384_v51 = vadd.f32 %v14361_v46, %v13721_v4  ;;  %v10265_v5 = vpop.f32.mrb[7].mxu0 }
 0x486   : > { %10540 = vst.msk [vmem:[%s17415_s25] sm:$0xf] %vm10539_vm1, %v12435_v32  ;;  %v12436_v6 = vpack.c.bf16 %v10424_v36, %v10424_v36  ;;  %v10374_v8 = vmul.f32 %v14383_v37, %v17398_v13  ;;  %v14385_v52 = vadd.f32 %v10265_v5, %v5160_v59 }
 0x487   : > { %10543 = vst.msk [vmem:[%s17415_s25 + $0xc] sm:$0xf] %vm10539_vm1, %v12438_v63  ;;  %v10406_v60 = vadd.f32 %v17403_v28, %v10376_v47  ;;  %v10377_v61 = vmul.f32 %v14384_v51, %v17398_v13 }
 0x488   : > { %10541 = vst.msk [vmem:[%s17415_s25 + $0x4] sm:$0xf] %vm10539_vm1, %v12436_v6  ;;  %v10404_v24 = vadd.f32 %v17403_v28, %v10374_v8  ;;  %v10375_v62 = vmul.f32 %v14385_v52, %v17398_v13 }
 0x489   : > { %v10429_v14 = vmax.f32 %v10406_v60, 0.0  ;;  %v10407_v15 = vadd.f32 %v17403_v28, %v10377_v61  ;;  %v13724_v19 = vpop.f32.mrb[8].mxu1 }
 0x48a   : > { %v10427_v33 = vmax.f32 %v10404_v24, 0.0  ;;  %v10405_v1 = vadd.f32 %v17403_v28, %v10375_v62  ;;  %v14364_v20 = vpop.f32.mrb[8].mxu0  ;;  %v5173_v22 = vpop.f32.mrb[9].mxu1 }
 0x48b   : > { %v12441_v25 = vpack.c.bf16 %v10429_v14, %v10429_v14  ;;  %v10430_v38 = vmax.f32 %v10407_v15, 0.0  ;;  %v14386_v7 = vadd.f32 %v14364_v20, %v13724_v19  ;;  %v10278_v2 = vpop.f32.mrb[9].mxu0  ;;  %v13725_v43 = vpop.f32.mrb[10].mxu1 }
 0x48c   : > { %v12439_v16 = vpack.c.bf16 %v10427_v33, %v10427_v33  ;;  %v10428_v17 = vmax.f32 %v10405_v1, 0.0  ;;  %v14387_v26 = vadd.f32 %v10278_v2, %v5173_v22  ;;  %v14365_v27 = vpop.f32.mrb[10].mxu0  ;;  %v5176_v10 = vpop.f32.mrb[11].mxu1 }
 0x48d   : > { %10546 = vst.msk [vmem:[%s17415_s25 + $0x18] sm:$0xf] %vm10539_vm1, %v12441_v25  ;;  %v12442_v11 = vpack.c.bf16 %v10430_v38, %v10430_v38  ;;  %v10380_v3 = vmul.f32 %v14386_v7, %v17398_v13  ;;  %v14388_v50 = vadd.f32 %v14365_v27, %v13725_v43  ;;  %v10281_v53 = vpop.f32.mrb[11].mxu0 }
 0x48e   : > { %10544 = vst.msk [vmem:[%s17415_s25 + $0x10] sm:$0xf] %vm10539_vm1, %v12439_v16  ;;  %v12440_v18 = vpack.c.bf16 %v10428_v17, %v10428_v17  ;;  %v10378_v29 = vmul.f32 %v14387_v26, %v17398_v13  ;;  %v14389_v39 = vadd.f32 %v10281_v53, %v5176_v10 }
 0x48f   : > { %10547 = vst.msk [vmem:[%s17415_s25 + $0x1c] sm:$0xf] %vm10539_vm1, %v12442_v11  ;;  %v10410_v40 = vadd.f32 %v17403_v28, %v10380_v3  ;;  %v10381_v41 = vmul.f32 %v14388_v50, %v17398_v13 }
 0x490   : > { %10545 = vst.msk [vmem:[%s17415_s25 + $0x14] sm:$0xf] %vm10539_vm1, %v12440_v18  ;;  %v10408_v42 = vadd.f32 %v17403_v28, %v10378_v29  ;;  %v10379_v54 = vmul.f32 %v14389_v39, %v17398_v13 }
 0x491   : > { %v10433_v21 = vmax.f32 %v10410_v40, 0.0  ;;  %v10411_v30 = vadd.f32 %v17403_v28, %v10381_v41  ;;  %v13728_v55 = vpop.f32.mrb[12].mxu1 }
 0x492   : > { %v10431_v56 = vmax.f32 %v10408_v42, 0.0  ;;  %v10409_v57 = vadd.f32 %v17403_v28, %v10379_v54  ;;  %v14368_v9 = vpop.f32.mrb[12].mxu0  ;;  %v5189_v31 = vpop.f32.mrb[13].mxu1 }
 0x493   : > { %v12445_v34 = vpack.c.bf16 %v10433_v21, %v10433_v21  ;;  %v10434_v35 = vmax.f32 %v10411_v30, 0.0  ;;  %v14390_v44 = vadd.f32 %v14368_v9, %v13728_v55  ;;  %v10294_v0 = vpop.f32.mrb[13].mxu0  ;;  %v13729_v12 = vpop.f32.mrb[14].mxu1 }
 0x494   : > { %v12443_v23 = vpack.c.bf16 %v10431_v56, %v10431_v56  ;;  %v10432_v45 = vmax.f32 %v10409_v57, 0.0  ;;  %v14391_v48 = vadd.f32 %v10294_v0, %v5189_v31  ;;  %v14369_v49 = vpop.f32.mrb[14].mxu0  ;;  %v5192_v58 = vpop.f32.mrb[15].mxu1 }
 0x495   : > { %10550 = vst.msk [vmem:[%s17415_s25 + $0x28] sm:$0xf] %vm10539_vm1, %v12445_v34  ;;  %v12446_v4 = vpack.c.bf16 %v10434_v35, %v10434_v35  ;;  %v10384_v32 = vmul.f32 %v14390_v44, %v17398_v13  ;;  %v14392_v36 = vadd.f32 %v14369_v49, %v13729_v12  ;;  %v10297_v37 = vpop.f32.mrb[15].mxu0 }
 0x496   : > { %10548 = vst.msk [vmem:[%s17415_s25 + $0x20] sm:$0xf] %vm10539_vm1, %v12443_v23  ;;  %v12444_v46 = vpack.c.bf16 %v10432_v45, %v10432_v45  ;;  %v10382_v59 = vmul.f32 %v14391_v48, %v17398_v13  ;;  %v14393_v63 = vadd.f32 %v10297_v37, %v5192_v58 }
 0x497   : > { %10551 = vst.msk [vmem:[%s17415_s25 + $0x2c] sm:$0xf] %vm10539_vm1, %v12446_v4  ;;  %v10414_v47 = vadd.f32 %v17403_v28, %v10384_v32  ;;  %v10385_v51 = vmul.f32 %v14392_v36, %v17398_v13 }
 0x498   : > { %10549 = vst.msk [vmem:[%s17415_s25 + $0x24] sm:$0xf] %vm10539_vm1, %v12444_v46  ;;  %v10412_v5 = vadd.f32 %v17403_v28, %v10382_v59  ;;  %v10383_v6 = vmul.f32 %v14393_v63, %v17398_v13 }
 0x499   : > { %v10437_v8 = vmax.f32 %v10414_v47, 0.0  ;;  %v10415_v52 = vadd.f32 %v17403_v28, %v10385_v51  ;;  %v13732_v60 = vpop.f32.mrb[16].mxu1 }
 0x49a   : > { %v10435_v61 = vmax.f32 %v10412_v5, 0.0  ;;  %v10413_v24 = vadd.f32 %v17403_v28, %v10383_v6  ;;  %v14372_v62 = vpop.f32.mrb[16].mxu0  ;;  %v5205_v14 = vpop.f32.mrb[17].mxu1 }
 0x49b   : > { %v12449_v15 = vpack.c.bf16 %v10437_v8, %v10437_v8  ;;  %v10438_v19 = vmax.f32 %v10415_v52, 0.0  ;;  %v14394_v33 = vadd.f32 %v14372_v62, %v13732_v60  ;;  %v10310_v1 = vpop.f32.mrb[17].mxu0  ;;  %v13733_v20 = vpop.f32.mrb[18].mxu1 }
 0x49c   : > { %v12447_v22 = vpack.c.bf16 %v10435_v61, %v10435_v61  ;;  %v10436_v25 = vmax.f32 %v10413_v24, 0.0  ;;  %v14395_v38 = vadd.f32 %v10310_v1, %v5205_v14  ;;  %v14373_v7 = vpop.f32.mrb[18].mxu0  ;;  %v5208_v2 = vpop.f32.mrb[19].mxu1 }
 0x49d   : > { %10554 = vst.msk [vmem:[%s17415_s25 + $0x38] sm:$0xf] %vm10539_vm1, %v12449_v15  ;;  %v12450_v43 = vpack.c.bf16 %v10438_v19, %v10438_v19  ;;  %v10388_v16 = vmul.f32 %v14394_v33, %v17398_v13  ;;  %v14396_v17 = vadd.f32 %v14373_v7, %v13733_v20  ;;  %v10313_v26 = vpop.f32.mrb[19].mxu0 }
 0x49e   : > { %10552 = vst.msk [vmem:[%s17415_s25 + $0x30] sm:$0xf] %vm10539_vm1, %v12447_v22  ;;  %v12448_v27 = vpack.c.bf16 %v10436_v25, %v10436_v25  ;;  %v10386_v10 = vmul.f32 %v14395_v38, %v17398_v13  ;;  %v14397_v11 = vadd.f32 %v10313_v26, %v5208_v2 }
 0x49f   : > { %10555 = vst.msk [vmem:[%s17415_s25 + $0x3c] sm:$0xf] %vm10539_vm1, %v12450_v43  ;;  %v10418_v3 = vadd.f32 %v17403_v28, %v10388_v16  ;;  %v10389_v50 = vmul.f32 %v14396_v17, %v17398_v13 }
 0x4a0   : > { %10553 = vst.msk [vmem:[%s17415_s25 + $0x34] sm:$0xf] %vm10539_vm1, %v12448_v27  ;;  %v10416_v53 = vadd.f32 %v17403_v28, %v10386_v10  ;;  %v10387_v18 = vmul.f32 %v14397_v11, %v17398_v13 }
 0x4a1   : > { %v10441_v29 = vmax.f32 %v10418_v3, 0.0  ;;  %v10419_v39 = vadd.f32 %v17403_v28, %v10389_v50  ;;  %v13736_v40 = vpop.f32.mrb[20].mxu1 }
 0x4a2   : > { %v10439_v41 = vmax.f32 %v10416_v53, 0.0  ;;  %v10417_v42 = vadd.f32 %v17403_v28, %v10387_v18  ;;  %v14376_v54 = vpop.f32.mrb[20].mxu0  ;;  %v5221_v21 = vpop.f32.mrb[21].mxu1 }
 0x4a3   : > { %v12453_v30 = vpack.c.bf16 %v10441_v29, %v10441_v29  ;;  %v10442_v55 = vmax.f32 %v10419_v39, 0.0  ;;  %v14398_v56 = vadd.f32 %v14376_v54, %v13736_v40  ;;  %v10326_v57 = vpop.f32.mrb[21].mxu0  ;;  %v13737_v9 = vpop.f32.mrb[22].mxu1 }
 0x4a4   : > { %v12451_v31 = vpack.c.bf16 %v10439_v41, %v10439_v41  ;;  %v10440_v34 = vmax.f32 %v10417_v42, 0.0  ;;  %v14399_v35 = vadd.f32 %v10326_v57, %v5221_v21  ;;  %v14377_v44 = vpop.f32.mrb[22].mxu0  ;;  %v5224_v0 = vpop.f32.mrb[23].mxu1 }
 0x4a5   : > { %10558 = vst.msk [vmem:[%s17415_s25 + $0x48] sm:$0xf] %vm10539_vm1, %v12453_v30  ;;  %v12454_v12 = vpack.c.bf16 %v10442_v55, %v10442_v55  ;;  %v10392_v23 = vmul.f32 %v14398_v56, %v17398_v13  ;;  %v10329_v45 = vpop.f32.mrb[23].mxu0 }
 0x4a6   : > { %10556 = vst.msk [vmem:[%s17415_s25 + $0x40] sm:$0xf] %vm10539_vm1, %v12451_v31  ;;  %v12452_v48 = vpack.c.bf16 %v10440_v34, %v10440_v34  ;;  %v10390_v49 = vmul.f32 %v14399_v35, %v17398_v13  ;;  %v14400_v58 = vadd.f32 %v10329_v45, %v5224_v0 }
 0x4a7   : > { %10559 = vst.msk [vmem:[%s17415_s25 + $0x4c] sm:$0xf] %vm10539_vm1, %v12454_v12  ;;  %v10422_v4 = vadd.f32 %v17403_v28, %v10392_v23 }
 0x4a8   : > { %10557 = vst.msk [vmem:[%s17415_s25 + $0x44] sm:$0xf] %vm10539_vm1, %v12452_v48  ;;  %v10420_v32 = vadd.f32 %v17403_v28, %v10390_v49  ;;  %v10391_v36 = vmul.f32 %v14400_v58, %v17398_v13 }
 0x4a9   : > { %v10445_v37 = vmax.f32 %v10422_v4, 0.0 }
 0x4aa   : > { %v10443_v46 = vmax.f32 %v10420_v32, 0.0  ;;  %v10421_v59 = vadd.f32 %v17403_v28, %v10391_v36 }
 0x4ab   : > { %v12457_v63 = vpack.c.bf16 %v10445_v37, %v10445_v37 }
 0x4ac   : > { %v12455_v47 = vpack.c.bf16 %v10443_v46, %v10443_v46  ;;  %v10444_v51 = vmax.f32 %v10421_v59, 0.0 }
 0x4ad   : > { %10562 = vst.msk [vmem:[%s17415_s25 + $0x58] sm:$0xf] %vm10539_vm1, %v12457_v63 }
 0x4ae   : > { %10560 = vst.msk [vmem:[%s17415_s25 + $0x50] sm:$0xf] %vm10539_vm1, %v12455_v47  ;;  %v12456_v5 = vpack.c.bf16 %v10444_v51, %v10444_v51 }
 0x4b0   : > { %10561 = vst.msk [vmem:[%s17415_s25 + $0x54] sm:$0xf] %vm10539_vm1, %v12456_v5 }
 0x4b1 PF: > { %s14_s15 = sadd.s32 1, %s15487_s15  }
 0x4b2   : > { %p11_p5 = scmp.ge.s32.totalorder %s14_s15, 4  }
 0x4b4   :  { %13 = sbr.rel (!%p11_p5) target bundleno = 1 (0x1), region = 114 }

</bundles_post_ra>
